<compile_context>
chip_gen: v6e
topology: v6e:2x2x1
jax: 0.10.0
libtpu: 0.0.40
codegen_flags: <defaults>
</compile_context>

<pallas_src>
import functools
import numpy as np
import jax
import jax.numpy as jnp
from jax.experimental import pallas as pl
from jax.experimental.pallas import tpu as pltpu

GRIPPER_DEPTH = 0.1034
TM = 256  # grasp rows per grid step (multiple of 8; >=128 fills the MXU M dim)


# ----------------------------- Pallas kernel ------------------------------- #
def action_decoder_kernel(x_ref, w1_ref, b1_ref, w2_ref, b2_ref, w3_ref, b3_ref,
                          offset_vals_ref, g_ref, *, feat_dim, nbins):
    x = x_ref[...]                                 # [TM, feat_dim+3]  feats | contact pts
    pts = x[:, feat_dim:feat_dim + 3]              # [TM, 3] contact points

    # Fused 3-head MLP (w1 has zero rows under the contact-point lanes,
    # w2/w3 block-diagonal): one 3-matmul chain for all heads.
    h = jnp.maximum(jnp.dot(x, w1_ref[...], preferred_element_type=jnp.float32) + b1_ref[...], 0.0)
    h = jnp.maximum(jnp.dot(h, w2_ref[...], preferred_element_type=jnp.float32) + b2_ref[...], 0.0)
    y = jnp.dot(h, w3_ref[...], preferred_element_type=jnp.float32) + b3_ref[...]   # [TM, 6+nbins]

    cd = y[:, 0:3]                 # contact dirs
    ad = y[:, 3:6]                 # approach dirs
    ol = y[:, 6:6 + nbins]         # offset logits

    eps = 1e-12  # F.normalize default eps
    cd = cd / jnp.maximum(jnp.sqrt(jnp.sum(cd * cd, axis=-1, keepdims=True)), eps)
    ad = ad - cd * jnp.sum(ad * cd, axis=-1, keepdims=True)
    ad = ad / jnp.maximum(jnp.sqrt(jnp.sum(ad * ad, axis=-1, keepdims=True)), eps)

    # one_hot(argmax(offset_logits)) @ offset_vals  (first-max tie-break, like torch.argmax)
    iota = jax.lax.broadcasted_iota(jnp.int32, ol.shape, 1)
    max_val = jnp.max(ol, axis=-1, keepdims=True)
    first_idx = jnp.min(jnp.where(ol == max_val, iota, nbins), axis=-1, keepdims=True)
    one_hot = (iota == first_idx).astype(jnp.float32)
    offsets = jnp.sum(one_hot * offset_vals_ref[...], axis=-1, keepdims=True)  # [TM, 1]

    # build_6d_grasp pieces
    pos = pts + cd * offsets / 2.0 - GRIPPER_DEPTH * ad   # [TM, 3]

    ax_, ay_, az_ = ad[:, 0:1], ad[:, 1:2], ad[:, 2:3]
    cx_, cy_, cz_ = cd[:, 0:1], cd[:, 1:2], cd[:, 2:3]
    cross = jnp.concatenate([ay_ * cz_ - az_ * cy_,
                             az_ * cx_ - ax_ * cz_,
                             ax_ * cy_ - ay_ * cx_], axis=-1)   # cross(approach, contact)

    # Emit only the 3x4 top block as 4 width-3 vectors; wrapper transposes
    # (N,4,3)->(N,3,4) and appends the constant [0,0,0,1] row.
    g_ref[...] = jnp.concatenate([cd, cross, ad, pos], axis=-1)  # [TM, 12]


def pack_fused_params(params, hidden, nbins):
    """Concatenate / block-diagonalize the three MLP heads into one chain."""
    H = hidden
    cc, aa, oo = params['contact'], params['approach'], params['offset']
    w1 = jnp.concatenate([cc['w1'], aa['w1'], oo['w1']], axis=1)               # [F, 3H]
    w1 = jnp.concatenate([w1, jnp.zeros((3, 3 * H), jnp.float32)], axis=0)     # [F+3, 3H]
    b1 = jnp.concatenate([cc['b1'], aa['b1'], oo['b1']])[None, :]              # [1, 3H]
    w2 = jnp.zeros((3 * H, 3 * H), jnp.float32)
    w2 = (w2.at[:H, :H].set(cc['w2'])
             .at[H:2 * H, H:2 * H].set(aa['w2'])
             .at[2 * H:, 2 * H:].set(oo['w2']))
    b2 = jnp.concatenate([cc['b2'], aa['b2'], oo['b2']])[None, :]
    w3 = jnp.zeros((3 * H, 6 + nbins), jnp.float32)
    w3 = (w3.at[:H, 0:3].set(cc['w3'])
             .at[H:2 * H, 3:6].set(aa['w3'])
             .at[2 * H:, 6:6 + nbins].set(oo['w3']))
    b3 = jnp.concatenate([cc['b3'], aa['b3'], oo['b3']])[None, :]
    return w1, b1, w2, b2, w3, b3


def run_grasp_kernel(inputs, contacts, params, offset_vals):
    """inputs: [N, feat_dim] f32, contacts: [N, 3] f32 -> grasps [N, 4, 4]."""
    n = int(inputs.shape[0])
    if n == 0:
        return jnp.zeros((0, 4, 4), jnp.float32)
    feat_dim = inputs.shape[1]
    hidden = params['contact']['w2'].shape[0]
    nbins = offset_vals.shape[0]
    n_pad = ((n + TM - 1) // TM) * TM

    # Merge feats + contact points into a single dense input stream (one DMA).
    x = jnp.concatenate([inputs.astype(jnp.float32),
                         contacts.astype(jnp.float32)], axis=-1)   # [N, F+3]
    x = jnp.zeros((n_pad, feat_dim + 3), jnp.float32).at[:n].set(x)

    w1, b1, w2, b2, w3, b3 = pack_fused_params(params, hidden, nbins)
    ov = offset_vals[None, :].astype(jnp.float32)

    full = lambda a: pl.BlockSpec(a.shape, lambda i: (0, 0))
    kern = functools.partial(action_decoder_kernel, feat_dim=feat_dim, nbins=nbins)

    out = pl.pallas_call(
        kern,
        out_shape=jax.ShapeDtypeStruct((n_pad, 12), jnp.float32),
        grid=(n_pad // TM,),
        in_specs=[pl.BlockSpec((TM, feat_dim + 3), lambda i: (i, 0)),
                  full(w1), full(b1), full(w2), full(b2), full(w3), full(b3), full(ov)],
        out_specs=pl.BlockSpec((TM, 12), lambda i: (i, 0)),
        compiler_params=pltpu.CompilerParams(dimension_semantics=("parallel",)),
    )(x, w1, b1, w2, b2, w3, b3, ov)

    cols = out[:n].reshape(n, 4, 3)                      # rows: cd, cross, ad, pos
    top = jnp.swapaxes(cols, 1, 2)                       # [n, 3, 4] columns = cd,cross,ad,pos
    last = jnp.broadcast_to(jnp.array([0., 0., 0., 1.], jnp.float32), (n, 1, 4))
    return jnp.concatenate([top, last], axis=1)          # [n, 4, 4]


# ------------------------------ glue (numpy) -------------------------------- #
def double_split_np(arr, chunks):
    sizes = [sum(c) for c in chunks]
    outer = np.split(arr, np.cumsum(sizes)[:-1]) if len(sizes) > 1 else [arr]
    return [list(np.split(o, np.cumsum(c)[:-1])) if len(c) > 1 else [o]
            for o, c in zip(outer, chunks)]


def action_decoder_forward(xyz, mask_feats, logits, embedding, params, *,
                           conf_thresh, offset_bins, use_embed=True):
    # TODO(synk): gt_masks training path and max_num_pred randperm subsampling not
    # implemented (data-dependent random gather); inference path reproduced exactly.
    # TODO(synk): the per-object threshold gather below is variable-length and stays
    # on host; for large scene counts it should move to jitted JAX / scalar-prefetch.
    offset_bins = np.asarray(offset_bins, np.float32)
    offset_vals = (offset_bins[:-1] + offset_bins[1:]) / 2.0

    xyz = np.asarray(xyz, np.float32)
    mask_feats = np.moveaxis(np.asarray(mask_feats, np.float32), 1, -1)  # [S, P, F]
    contacts_l, inputs_l, confidence, num_grasps = [], [], [], []
    total_grasps, num_objs = 0, 0
    for i in range(xyz.shape[0]):
        pts, feat = xyz[i], mask_feats[i]
        emb = np.asarray(embedding[i], np.float32)
        logit = np.asarray(logits[i], np.float32)
        conf_all = 1.0 / (1.0 + np.exp(-logit))
        mask = conf_all > conf_thresh
        conf_list, num = [], []
        for j in range(logit.shape[0]):
            m = mask[j]
            f, p, c = feat[m], pts[m], conf_all[j][m]
            if use_embed:
                f = np.concatenate([f, np.repeat(emb[j][None, :], f.shape[0], axis=0)], axis=-1)
            contacts_l.append(p)
            inputs_l.append(f)
            conf_list.append(c)
            num.append(f.shape[0])
            total_grasps += f.shape[0]
        confidence.append(conf_list)
        num_grasps.append(num)
        num_objs += logit.shape[0]
    contacts = np.concatenate(contacts_l, axis=0)
    inputs = np.concatenate(inputs_l, axis=0)

    grasps = run_grasp_kernel(jnp.asarray(inputs), jnp.asarray(contacts),
                              params, jnp.asarray(offset_vals))
    grasps = np.asarray(jax.block_until_ready(grasps))

    num_pred = total_grasps / max(num_objs, 1)
    outputs = {
        'grasps': double_split_np(grasps, num_grasps),
        'confidence': confidence,
        'contacts': double_split_np(contacts, num_grasps),
        'num_pred_grasps': np.float32(num_pred),
        'grasp_pos_ratio': np.float32(num_pred / xyz.shape[1]),
    }
    return outputs, inputs, contacts, offset_vals


# --------------------------- params & reference ----------------------------- #
def init_mlp_params(key, in_dim, hidden, out_dim):
    ks = jax.random.split(key, 6)
    s1, s2 = 1.0 / np.sqrt(in_dim), 1.0 / np.sqrt(hidden)
    return {
        'w1': jax.random.uniform(ks[0], (in_dim, hidden), jnp.float32, -s1, s1),
        'b1': jax.random.uniform(ks[1], (hidden,), jnp.float32, -s1, s1),
        'w2': jax.random.uniform(ks[2], (hidden, hidden), jnp.float32, -s2, s2),
        'b2': jax.random.uniform(ks[3], (hidden,), jnp.float32, -s2, s2),
        'w3': jax.random.uniform(ks[4], (hidden, out_dim), jnp.float32, -s2, s2),
        'b3': jax.random.uniform(ks[5], (out_dim,), jnp.float32, -s2, s2),
    }


def reference_grasps(inputs, contacts, params, offset_vals):
    def mlp(x, p):
        h = jax.nn.relu(x @ p['w1'] + p['b1'])
        h = jax.nn.relu(h @ p['w2'] + p['b2'])
        return h @ p['w3'] + p['b3']
    cd = mlp(inputs, params['contact'])
    cd = cd / jnp.maximum(jnp.linalg.norm(cd, axis=-1, keepdims=True), 1e-12)
    ad = mlp(inputs, params['approach'])
    ad = ad - cd * jnp.sum(ad * cd, axis=-1, keepdims=True)
    ad = ad / jnp.maximum(jnp.linalg.norm(ad, axis=-1, keepdims=True), 1e-12)
    ol = mlp(inputs, params['offset'])
    offsets = offset_vals[jnp.argmax(ol, axis=-1)]
    pos = contacts + cd * offsets[:, None] / 2.0 - GRIPPER_DEPTH * ad
    top = jnp.stack([cd, jnp.cross(ad, cd), ad, pos], axis=-1)          # [N, 3, 4]
    last = jnp.broadcast_to(jnp.array([[0., 0., 0., 1.]], jnp.float32),
                            (inputs.shape[0], 1, 4))
    return jnp.concatenate([top, last], axis=-2)                         # [N, 4, 4]


# ---------------------------------- main ------------------------------------ #
if __name__ == "__main__":
    key = jax.random.PRNGKey(0)
    num_scenes, num_points, num_objects = 2, 16, 3
    mask_dim, embed_dim, hidden = 24, 8, 32
    feat_dim = mask_dim + embed_dim      # use_embed=True
    offset_bins = [0.0, 0.01, 0.02, 0.03, 0.04]
    conf_thresh = 0.5

    keys = jax.random.split(key, 8)
    xyz = jax.random.normal(keys[0], (num_scenes, num_points, 3), jnp.float32)
    mask_feats = jax.random.normal(keys[1], (num_scenes, mask_dim, num_points), jnp.float32)
    logits = jax.random.normal(keys[2], (num_scenes, num_objects, num_points), jnp.float32)
    embedding = jax.random.normal(keys[3], (num_scenes, num_objects, embed_dim), jnp.float32)

    params = {
        'contact': init_mlp_params(keys[4], feat_dim, hidden, 3),
        'approach': init_mlp_params(keys[5], feat_dim, hidden, 3),
        'offset': init_mlp_params(keys[6], feat_dim, hidden, len(offset_bins) - 1),
    }

    outputs, inputs_np, contacts_np, offset_vals = action_decoder_forward(
        xyz, mask_feats, list(logits), list(embedding), params,
        conf_thresh=conf_thresh, offset_bins=offset_bins, use_embed=True)

    # correctness check vs pure-JAX reference (uses the original unfused params,
    # so it also validates the block-diagonal weight packing)
    ref = jax.block_until_ready(
        reference_grasps(jnp.asarray(inputs_np), jnp.asarray(contacts_np),
                         params, jnp.asarray(offset_vals)))
    got = np.concatenate([g for scene in outputs['grasps'] for g in scene], axis=0)
    np.testing.assert_allclose(got, np.asarray(ref), rtol=1e-5, atol=1e-5)

    print("KERNEL_OK")
</pallas_src>

<mosaic_0001>
module attributes {stable_mosaic.version = 11 : i64} {
  func.func @action_decoder_kernel(%arg0: i32, %arg1: memref<256x35xf32, #tpu.memory_space<vmem>>, %arg2: memref<35x96xf32, #tpu.memory_space<vmem>>, %arg3: memref<1x96xf32, #tpu.memory_space<vmem>>, %arg4: memref<96x96xf32, #tpu.memory_space<vmem>>, %arg5: memref<1x96xf32, #tpu.memory_space<vmem>>, %arg6: memref<96x10xf32, #tpu.memory_space<vmem>>, %arg7: memref<1x10xf32, #tpu.memory_space<vmem>>, %arg8: memref<1x4xf32, #tpu.memory_space<vmem>>, %arg9: memref<256x12xf32, #tpu.memory_space<vmem>>) attributes {dimension_semantics = [#tpu.dimension_semantics<parallel>], iteration_bounds = array<i64: 1>, scalar_prefetch = 0 : i64, scratch_operands = 0 : i64, tpu.core_type = #tpu.core_type<tc>, window_params = [{transform_indices = @transform_0, window_bounds = array<i64: 256, 35>}, {pipeline_mode = #tpu.pipeline_mode<synchronous>, transform_indices = @transform_1, window_bounds = array<i64: 35, 96>}, {pipeline_mode = #tpu.pipeline_mode<synchronous>, transform_indices = @transform_2, window_bounds = array<i64: 1, 96>}, {pipeline_mode = #tpu.pipeline_mode<synchronous>, transform_indices = @transform_3, window_bounds = array<i64: 96, 96>}, {pipeline_mode = #tpu.pipeline_mode<synchronous>, transform_indices = @transform_4, window_bounds = array<i64: 1, 96>}, {pipeline_mode = #tpu.pipeline_mode<synchronous>, transform_indices = @transform_5, window_bounds = array<i64: 96, 10>}, {pipeline_mode = #tpu.pipeline_mode<synchronous>, transform_indices = @transform_6, window_bounds = array<i64: 1, 10>}, {pipeline_mode = #tpu.pipeline_mode<synchronous>, transform_indices = @transform_7, window_bounds = array<i64: 1, 4>}, {transform_indices = @transform_8, window_bounds = array<i64: 256, 12>}]} {
    %c0 = arith.constant 0 : index
    %c0_0 = arith.constant 0 : index
    %0 = vector.load %arg1[%c0, %c0_0] : memref<256x35xf32, #tpu.memory_space<vmem>>, vector<256x35xf32>
    %1 = vector.extract_strided_slice %0 {offsets = [0, 32], sizes = [256, 3], strides = [1, 1]} : vector<256x35xf32> to vector<256x3xf32>
    %c0_1 = arith.constant 0 : index
    %c0_2 = arith.constant 0 : index
    %2 = vector.load %arg2[%c0_1, %c0_2] : memref<35x96xf32, #tpu.memory_space<vmem>>, vector<35x96xf32>
    %cst = arith.constant dense<0.000000e+00> : vector<256x96xf32>
    %3 = tpu.matmul %0, %2, %cst {dimension_numbers = #tpu.dot_dimension_numbers<[1], [0], [0], [1], [0, 0, 1, 1], [], []>} : vector<256x35xf32>, vector<35x96xf32>, vector<256x96xf32> -> vector<256x96xf32>
    %c0_3 = arith.constant 0 : index
    %c0_4 = arith.constant 0 : index
    %4 = vector.load %arg3[%c0_3, %c0_4] : memref<1x96xf32, #tpu.memory_space<vmem>>, vector<1x96xf32>
    %5 = vector.broadcast %4 : vector<1x96xf32> to vector<256x96xf32>
    %6 = arith.addf %3, %5 : vector<256x96xf32>
    %cst_5 = arith.constant 0.000000e+00 : f32
    %7 = vector.broadcast %cst_5 : f32 to vector<256x96xf32>
    %8 = arith.maximumf %6, %7 : vector<256x96xf32>
    %c0_6 = arith.constant 0 : index
    %c0_7 = arith.constant 0 : index
    %9 = vector.load %arg4[%c0_6, %c0_7] : memref<96x96xf32, #tpu.memory_space<vmem>>, vector<96x96xf32>
    %cst_8 = arith.constant dense<0.000000e+00> : vector<256x96xf32>
    %10 = tpu.matmul %8, %9, %cst_8 {dimension_numbers = #tpu.dot_dimension_numbers<[1], [0], [0], [1], [0, 0, 1, 1], [], []>} : vector<256x96xf32>, vector<96x96xf32>, vector<256x96xf32> -> vector<256x96xf32>
    %c0_9 = arith.constant 0 : index
    %c0_10 = arith.constant 0 : index
    %11 = vector.load %arg5[%c0_9, %c0_10] : memref<1x96xf32, #tpu.memory_space<vmem>>, vector<1x96xf32>
    %12 = vector.broadcast %11 : vector<1x96xf32> to vector<256x96xf32>
    %13 = arith.addf %10, %12 : vector<256x96xf32>
    %cst_11 = arith.constant 0.000000e+00 : f32
    %14 = vector.broadcast %cst_11 : f32 to vector<256x96xf32>
    %15 = arith.maximumf %13, %14 : vector<256x96xf32>
    %c0_12 = arith.constant 0 : index
    %c0_13 = arith.constant 0 : index
    %16 = vector.load %arg6[%c0_12, %c0_13] : memref<96x10xf32, #tpu.memory_space<vmem>>, vector<96x10xf32>
    %cst_14 = arith.constant dense<0.000000e+00> : vector<256x10xf32>
    %17 = tpu.matmul %15, %16, %cst_14 {dimension_numbers = #tpu.dot_dimension_numbers<[1], [0], [0], [1], [0, 0, 1, 1], [], []>} : vector<256x96xf32>, vector<96x10xf32>, vector<256x10xf32> -> vector<256x10xf32>
    %c0_15 = arith.constant 0 : index
    %c0_16 = arith.constant 0 : index
    %18 = vector.load %arg7[%c0_15, %c0_16] : memref<1x10xf32, #tpu.memory_space<vmem>>, vector<1x10xf32>
    %19 = vector.broadcast %18 : vector<1x10xf32> to vector<256x10xf32>
    %20 = arith.addf %17, %19 : vector<256x10xf32>
    %21 = vector.extract_strided_slice %20 {offsets = [0, 0], sizes = [256, 3], strides = [1, 1]} : vector<256x10xf32> to vector<256x3xf32>
    %22 = vector.extract_strided_slice %20 {offsets = [0, 3], sizes = [256, 3], strides = [1, 1]} : vector<256x10xf32> to vector<256x3xf32>
    %23 = vector.extract_strided_slice %20 {offsets = [0, 6], sizes = [256, 4], strides = [1, 1]} : vector<256x10xf32> to vector<256x4xf32>
    %24 = arith.mulf %21, %21 : vector<256x3xf32>
    %cst_17 = arith.constant dense<0.000000e+00> : vector<256xf32>
    %25 = vector.multi_reduction <add>, %24, %cst_17 [1] : vector<256x3xf32> to vector<256xf32>
    %26 = vector.shape_cast %25 : vector<256xf32> to vector<256x1xf32>
    %27 = math.sqrt %26 : vector<256x1xf32>
    %cst_18 = arith.constant 9.99999996E-13 : f32
    %28 = vector.broadcast %cst_18 : f32 to vector<256x1xf32>
    %29 = arith.maximumf %27, %28 : vector<256x1xf32>
    %30 = vector.broadcast %29 : vector<256x1xf32> to vector<256x3xf32>
    %31 = arith.divf %21, %30 : vector<256x3xf32>
    %32 = arith.mulf %22, %31 : vector<256x3xf32>
    %cst_19 = arith.constant dense<0.000000e+00> : vector<256xf32>
    %33 = vector.multi_reduction <add>, %32, %cst_19 [1] : vector<256x3xf32> to vector<256xf32>
    %34 = vector.shape_cast %33 : vector<256xf32> to vector<256x1xf32>
    %35 = vector.broadcast %34 : vector<256x1xf32> to vector<256x3xf32>
    %36 = arith.mulf %31, %35 : vector<256x3xf32>
    %37 = arith.subf %22, %36 : vector<256x3xf32>
    %38 = arith.mulf %37, %37 : vector<256x3xf32>
    %cst_20 = arith.constant dense<0.000000e+00> : vector<256xf32>
    %39 = vector.multi_reduction <add>, %38, %cst_20 [1] : vector<256x3xf32> to vector<256xf32>
    %40 = vector.shape_cast %39 : vector<256xf32> to vector<256x1xf32>
    %41 = math.sqrt %40 : vector<256x1xf32>
    %cst_21 = arith.constant 9.99999996E-13 : f32
    %42 = vector.broadcast %cst_21 : f32 to vector<256x1xf32>
    %43 = arith.maximumf %41, %42 : vector<256x1xf32>
    %44 = vector.broadcast %43 : vector<256x1xf32> to vector<256x3xf32>
    %45 = arith.divf %37, %44 : vector<256x3xf32>
    %46 = tpu.iota {dimensions = array<i32: 1>} : vector<256x4xi32>
    %cst_22 = arith.constant dense<0xFF800000> : vector<256xf32>
    %47 = vector.multi_reduction <maximumf>, %23, %cst_22 [1] : vector<256x4xf32> to vector<256xf32>
    %48 = vector.shape_cast %47 : vector<256xf32> to vector<256x1xf32>
    %49 = vector.broadcast %48 : vector<256x1xf32> to vector<256x4xf32>
    %50 = arith.cmpf oeq, %23, %49 : vector<256x4xf32>
    %c4_i32 = arith.constant 4 : i32
    %51 = vector.broadcast %c4_i32 : i32 to vector<256x4xi32>
    %52 = arith.select %50, %46, %51 : vector<256x4xi1>, vector<256x4xi32>
    %cst_23 = arith.constant dense<2147483647> : vector<256xi32>
    %53 = vector.multi_reduction <minsi>, %52, %cst_23 [1] : vector<256x4xi32> to vector<256xi32>
    %54 = vector.shape_cast %53 : vector<256xi32> to vector<256x1xi32>
    %55 = vector.broadcast %54 : vector<256x1xi32> to vector<256x4xi32>
    %56 = arith.cmpi eq, %46, %55 : vector<256x4xi32>
    %57 = arith.extui %56 : vector<256x4xi1> to vector<256x4xi32>
    %58 = arith.sitofp %57 : vector<256x4xi32> to vector<256x4xf32>
    %c0_24 = arith.constant 0 : index
    %c0_25 = arith.constant 0 : index
    %59 = vector.load %arg8[%c0_24, %c0_25] : memref<1x4xf32, #tpu.memory_space<vmem>>, vector<1x4xf32>
    %60 = vector.broadcast %59 : vector<1x4xf32> to vector<256x4xf32>
    %61 = arith.mulf %58, %60 : vector<256x4xf32>
    %cst_26 = arith.constant dense<0.000000e+00> : vector<256xf32>
    %62 = vector.multi_reduction <add>, %61, %cst_26 [1] : vector<256x4xf32> to vector<256xf32>
    %63 = vector.shape_cast %62 : vector<256xf32> to vector<256x1xf32>
    %64 = vector.broadcast %63 : vector<256x1xf32> to vector<256x3xf32>
    %65 = arith.mulf %31, %64 : vector<256x3xf32>
    %cst_27 = arith.constant 2.000000e+00 : f32
    %66 = vector.broadcast %cst_27 : f32 to vector<256x3xf32>
    %67 = arith.divf %65, %66 : vector<256x3xf32>
    %68 = arith.addf %1, %67 : vector<256x3xf32>
    %cst_28 = arith.constant 1.034000e-01 : f32
    %69 = vector.broadcast %cst_28 : f32 to vector<256x3xf32>
    %70 = arith.mulf %69, %45 : vector<256x3xf32>
    %71 = arith.subf %68, %70 : vector<256x3xf32>
    %72 = vector.extract_strided_slice %45 {offsets = [0, 0], sizes = [256, 1], strides = [1, 1]} : vector<256x3xf32> to vector<256x1xf32>
    %73 = vector.extract_strided_slice %45 {offsets = [0, 1], sizes = [256, 1], strides = [1, 1]} : vector<256x3xf32> to vector<256x1xf32>
    %74 = vector.extract_strided_slice %45 {offsets = [0, 2], sizes = [256, 1], strides = [1, 1]} : vector<256x3xf32> to vector<256x1xf32>
    %75 = vector.extract_strided_slice %31 {offsets = [0, 0], sizes = [256, 1], strides = [1, 1]} : vector<256x3xf32> to vector<256x1xf32>
    %76 = vector.extract_strided_slice %31 {offsets = [0, 1], sizes = [256, 1], strides = [1, 1]} : vector<256x3xf32> to vector<256x1xf32>
    %77 = vector.extract_strided_slice %31 {offsets = [0, 2], sizes = [256, 1], strides = [1, 1]} : vector<256x3xf32> to vector<256x1xf32>
    %78 = arith.mulf %73, %77 : vector<256x1xf32>
    %79 = arith.mulf %74, %76 : vector<256x1xf32>
    %80 = arith.subf %78, %79 : vector<256x1xf32>
    %81 = arith.mulf %74, %75 : vector<256x1xf32>
    %82 = arith.mulf %72, %77 : vector<256x1xf32>
    %83 = arith.subf %81, %82 : vector<256x1xf32>
    %84 = arith.mulf %72, %76 : vector<256x1xf32>
    %85 = arith.mulf %73, %75 : vector<256x1xf32>
    %86 = arith.subf %84, %85 : vector<256x1xf32>
    %87 = tpu.concatenate %80, %83, %86 in 1 : vector<256x1xf32>, vector<256x1xf32>, vector<256x1xf32> -> vector<256x3xf32>
    %88 = tpu.concatenate %31, %87, %45, %71 in 1 : vector<256x3xf32>, vector<256x3xf32>, vector<256x3xf32>, vector<256x3xf32> -> vector<256x12xf32>
    %c0_29 = arith.constant 0 : index
    %c0_30 = arith.constant 0 : index
    %89 = vector.load %arg9[%c0_29, %c0_30] : memref<256x12xf32, #tpu.memory_space<vmem>>, vector<256x12xf32>
    tpu.vector_store %arg9[%c0_29, %c0_30], %88 {strides = array<i32>} : memref<256x12xf32, #tpu.memory_space<vmem>>, vector<256x12xf32>,
    return
  }
  func.func @transform_0(%arg0: i32) -> (i32, i32) {
    %c0_i32 = arith.constant 0 : i32
    %c0_i32_0 = arith.constant 0 : i32
    return %arg0, %c0_i32 : i32, i32
  }
  func.func @transform_1(%arg0: i32) -> (i32, i32) {
    %c0_i32 = arith.constant 0 : i32
    %c0_i32_0 = arith.constant 0 : i32
    %c0_i32_1 = arith.constant 0 : i32
    return %c0_i32, %c0_i32_0 : i32, i32
  }
  func.func @transform_2(%arg0: i32) -> (i32, i32) {
    %c0_i32 = arith.constant 0 : i32
    %c0_i32_0 = arith.constant 0 : i32
    %c0_i32_1 = arith.constant 0 : i32
    return %c0_i32, %c0_i32_0 : i32, i32
  }
  func.func @transform_3(%arg0: i32) -> (i32, i32) {
    %c0_i32 = arith.constant 0 : i32
    %c0_i32_0 = arith.constant 0 : i32
    %c0_i32_1 = arith.constant 0 : i32
    return %c0_i32, %c0_i32_0 : i32, i32
  }
  func.func @transform_4(%arg0: i32) -> (i32, i32) {
    %c0_i32 = arith.constant 0 : i32
    %c0_i32_0 = arith.constant 0 : i32
    %c0_i32_1 = arith.constant 0 : i32
    return %c0_i32, %c0_i32_0 : i32, i32
  }
  func.func @transform_5(%arg0: i32) -> (i32, i32) {
    %c0_i32 = arith.constant 0 : i32
    %c0_i32_0 = arith.constant 0 : i32
    %c0_i32_1 = arith.constant 0 : i32
    return %c0_i32, %c0_i32_0 : i32, i32
  }
  func.func @transform_6(%arg0: i32) -> (i32, i32) {
    %c0_i32 = arith.constant 0 : i32
    %c0_i32_0 = arith.constant 0 : i32
    %c0_i32_1 = arith.constant 0 : i32
    return %c0_i32, %c0_i32_0 : i32, i32
  }
  func.func @transform_7(%arg0: i32) -> (i32, i32) {
    %c0_i32 = arith.constant 0 : i32
    %c0_i32_0 = arith.constant 0 : i32
    %c0_i32_1 = arith.constant 0 : i32
    return %c0_i32, %c0_i32_0 : i32, i32
  }
  func.func @transform_8(%arg0: i32) -> (i32, i32) {
    %c0_i32 = arith.constant 0 : i32
    %c0_i32_0 = arith.constant 0 : i32
    return %arg0, %c0_i32 : i32, i32
  }
}

</mosaic_0001>

<bundles_post_ra>
// kernel: tpu_custom_call.1
= control target key start
LH: loop header
LB: loop body
LE: loop exit
PB: predicated region body
PF: predicated region fallthrough
CT: control target
= control target key end

     0   :  { %vm170_vm0 = vcmask 1042432   ;;  %vm73_vm1 = vcmask 285696   ;;  %vm450_vm2 = vcmask 785408   ;;  %s6579_s12 = smov 6   ;;  %vm2747_vm3 = vcmask 80944   ;;  %s6581_s15 = smov 2   ;;  %s11546_s1 = inlined_call_operand.vmem [shape: f32[35,96], index: 1, kind: input, shape index: {}]   ;;  %s11547_s0 = inlined_call_operand.vmem [shape: f32[256,35], index: 0, kind: input, shape index: {}]   ;;  %s11548_s3 = inlined_call_operand.vmem [shape: f32[96,96], index: 3, kind: input, shape index: {}]   ;;  %s11549_s5 = inlined_call_operand.vmem [shape: f32[96,10], index: 5, kind: input, shape index: {}]   ;;  %s11550_s2 = inlined_call_operand.vmem [shape: f32[1,96], index: 2, kind: input, shape index: {}]   ;;  %s11551_s4 = inlined_call_operand.vmem [shape: f32[1,96], index: 4, kind: input, shape index: {}]   ;;  %s11552_s6 = inlined_call_operand.vmem [shape: f32[1,10], index: 6, kind: input, shape index: {}]   ;;  %s11553_s7 = inlined_call_operand.vmem [shape: f32[1,4], index: 7, kind: input, shape index: {}]   ;;  %s11554_s8 = inlined_call_operand.vmem [shape: f32[256,12], index: 8, kind: output, shape index: {}]  }
   0x1   :  { %v65_v0 = vld [vmem:[%s11546_s1 + $0x20] sm:$0x7]  ;;  %v64_v1 = vld [vmem:[%s11546_s1 + $0x18] sm:$0xff]  ;;  %v63_v3 = vld [vmem:[%s11546_s1 + $0x10] sm:$0xff]  ;;  %vm1176_vm4 = vcmask 23552   ;;  %s6582_s16 = smov 4  }
   0x2   :  { %6066 = vmatprep.subr.msk.mxu0 %vm170_vm0, %v65_v0  ;;  %v29_v2 = vld [vmem:[%s11547_s0] sm:$0xff]  ;;  %6268 = vmatprep.subr.msk.mxu1 %vm170_vm0, %v65_v0  ;;  %v62_v4 = vld [vmem:[%s11546_s1 + $0x8] sm:$0xff]  ;;  %v31_v7 = vld [vmem:[%s11547_s0 + $0x10] sm:$0xff]  ;;  %s6583_s17 = smov 5   ;;  %s6585_s18 = smov 125  }
   0x3   :  { %6067 = vmatpush3.msk.msra.mxu0 %vm170_vm0, %v65_v0  ;;  %6076 = vmatprep.mubr.msk.f32.mxu0 %vm73_vm1, %v29_v2  ;;  %v61_v5 = vld [vmem:[%s11546_s1] sm:$0xff]  ;;  %v30_v6 = vld [vmem:[%s11547_s0 + $0x8] sm:$0xff]  ;;  %v47_v10 = vld [vmem:[%s11547_s0 + $0x90] sm:$0xff]  ;;  %s6588_s21 = smov 29   ;;  %s6589_s22 = smov 127  }
   0x4   :  { %6068 = vmatprep.subr.mxu0 %v64_v1  ;;  %6273 = vmatpush3.msk.msra.mxu1 %vm170_vm0, %v65_v0  ;;  %v45_v8 = vld [vmem:[%s11547_s0 + $0x80] sm:$0xff]  ;;  %v46_v9 = vld [vmem:[%s11547_s0 + $0x88] sm:$0xff]  ;;  %v32_v11 = vld [vmem:[%s11547_s0 + $0x18] sm:$0xff]  ;;  %s6590_s1 = smov 124   ;;  %s6591_s27 = smov 105  }
   0x5   :  { %6069 = vmatpush3.msra.mxu0 %v64_v1  ;;  %6269 = vmatprep.subr.mxu1 %v64_v1  ;;  %v442_v12 = vld [vmem:[%s11548_s3 + $0x58] sm:$0xff]  ;;  %v441_v13 = vld [vmem:[%s11548_s3 + $0x50] sm:$0xff]  ;;  %v33_v14 = vld [vmem:[%s11547_s0 + $0x20] sm:$0xff] }
   0x6   :  { %6070 = vmatprep.subr.mxu0 %v63_v3  ;;  %6274 = vmatpush3.msra.mxu1 %v64_v1  ;;  %v48_v15 = vld [vmem:[%s11547_s0 + $0x98] sm:$0xff]  ;;  %v440_v16 = vld [vmem:[%s11548_s3 + $0x48] sm:$0xff]  ;;  %v49_v17 = vld [vmem:[%s11547_s0 + $0xa0] sm:$0xff] }
   0x7   :  { %6071 = vmatpush3.msra.mxu0 %v63_v3  ;;  %6270 = vmatprep.subr.mxu1 %v63_v3  ;;  %v34_v18 = vld [vmem:[%s11547_s0 + $0x28] sm:$0xff]  ;;  %v439_v19 = vld [vmem:[%s11548_s3 + $0x40] sm:$0xff]  ;;  %v35_v20 = vld [vmem:[%s11547_s0 + $0x30] sm:$0xff] }
   0x8   :  { %6072 = vmatprep.subr.mxu0 %v62_v4  ;;  %6275 = vmatpush3.msra.mxu1 %v63_v3  ;;  %v50_v21 = vld [vmem:[%s11547_s0 + $0xa8] sm:$0xff]  ;;  %v438_v22 = vld [vmem:[%s11548_s3 + $0x38] sm:$0xff]  ;;  %v51_v23 = vld [vmem:[%s11547_s0 + $0xb0] sm:$0xff] }
   0x9   :  { %6073 = vmatpush3.msra.mxu0 %v62_v4  ;;  %6271 = vmatprep.subr.mxu1 %v62_v4  ;;  %v36_v24 = vld [vmem:[%s11547_s0 + $0x38] sm:$0xff]  ;;  %v437_v25 = vld [vmem:[%s11548_s3 + $0x30] sm:$0xff]  ;;  %v37_v26 = vld [vmem:[%s11547_s0 + $0x40] sm:$0xff] }
   0xa   :  { %6074 = vmatprep.subr.mxu0 %v61_v5  ;;  %6276 = vmatpush3.msra.mxu1 %v62_v4  ;;  %v52_v27 = vld [vmem:[%s11547_s0 + $0xb8] sm:$0xff]  ;;  %v436_v28 = vld [vmem:[%s11548_s3 + $0x28] sm:$0xff]  ;;  %v53_v29 = vld [vmem:[%s11547_s0 + $0xc0] sm:$0xff] }
   0xb   :  { %6075 = vmatpush3.msra.mxu0 %v61_v5  ;;  %6272 = vmatprep.subr.mxu1 %v61_v5  ;;  %v38_v30 = vld [vmem:[%s11547_s0 + $0x48] sm:$0xff]  ;;  %v435_v31 = vld [vmem:[%s11548_s3 + $0x20] sm:$0xff]  ;;  %v39_v32 = vld [vmem:[%s11547_s0 + $0x50] sm:$0xff] }
   0xc   :  { %6077 = vmatmul.mubr.msk.f32.vlgmr.msra.gmra.mxu0 %vm73_vm1, %v30_v6  ;;  %6277 = vmatpush3.msra.mxu1 %v61_v5  ;;  %v54_v33 = vld [vmem:[%s11547_s0 + $0xc8] sm:$0xff]  ;;  %v434_v34 = vld [vmem:[%s11548_s3 + $0x18] sm:$0xff]  ;;  %v55_v35 = vld [vmem:[%s11547_s0 + $0xd0] sm:$0xff] }
   0xd   :  { %6079 = vmatprep.mubr.msk.f32.mxu0 %vm73_vm1, %v31_v7  ;;  %6100 = vmatprep.mubr.msk.f32.mxu1 %vm73_vm1, %v45_v8  ;;  %v40_v36 = vld [vmem:[%s11547_s0 + $0x58] sm:$0xff]  ;;  %v433_v37 = vld [vmem:[%s11548_s3 + $0x10] sm:$0xff]  ;;  %v41_v38 = vld [vmem:[%s11547_s0 + $0x60] sm:$0xff] }
   0xe   :  { %6101 = vmatmul.mubr.msk.f32.vlgmr.msra.gmra.mxu1 %vm73_vm1, %v46_v9  ;;  %6124 = vmatprep.subr.mxu1 %v442_v12  ;;  %v56_v39 = vld [vmem:[%s11547_s0 + $0xd8] sm:$0xff]  ;;  %v57_v40 = vld [vmem:[%s11547_s0 + $0xe0] sm:$0xff]  ;;  %v42_v41 = vld [vmem:[%s11547_s0 + $0x68] sm:$0xff] }
   0xf   :  { %6103 = vmatprep.mubr.msk.f32.mxu1 %vm73_vm1, %v47_v10  ;;  %6125 = vmatpush3.msra.mxu1 %v442_v12  ;;  %v43_v42 = vld [vmem:[%s11547_s0 + $0x70] sm:$0xff]  ;;  %v58_v43 = vld [vmem:[%s11547_s0 + $0xe8] sm:$0xff]  ;;  %v44_v45 = vld [vmem:[%s11547_s0 + $0x78] sm:$0xff] }
  0x10   :  { %6080 = vmatmul.mubr.msk.f32.gmra.mxu0 %vm73_vm1, %v32_v11  ;;  %6126 = vmatprep.subr.mxu1 %v441_v13  ;;  %v59_v44 = vld [vmem:[%s11547_s0 + $0xf0] sm:$0xff]  ;;  %v60_v46 = vld [vmem:[%s11547_s0 + $0xf8] sm:$0xff]  ;;  %v432_v47 = vld [vmem:[%s11548_s3 + $0x8] sm:$0xff] }
  0x11   :  { %6082 = vmatprep.mubr.msk.f32.mxu0 %vm73_vm1, %v33_v14  ;;  %6127 = vmatpush3.msra.mxu1 %v441_v13  ;;  %v431_v48 = vld [vmem:[%s11548_s3] sm:$0xff]  ;;  %v815_v49 = vld [vmem:[%s11549_s5 + $0x58] sm:$0xff]  ;;  %v814_v50 = vld [vmem:[%s11549_s5 + $0x50] sm:$0xff]  ;;  %s6584_s3 = smov 1  }
  0x12   :  { %6104 = vmatmul.mubr.msk.f32.gmra.mxu1 %vm73_vm1, %v48_v15  ;;  %6128 = vmatprep.subr.mxu1 %v440_v16  ;;  %v813_v51 = vld [vmem:[%s11549_s5 + $0x48] sm:$0xff]  ;;  %v812_v52 = vld [vmem:[%s11549_s5 + $0x40] sm:$0xff]  ;;  %v811_v53 = vld [vmem:[%s11549_s5 + $0x38] sm:$0xff] }
  0x13   :  { %6106 = vmatprep.mubr.msk.f32.mxu1 %vm73_vm1, %v49_v17  ;;  %6129 = vmatpush3.msra.mxu1 %v440_v16  ;;  %v810_v54 = vld [vmem:[%s11549_s5 + $0x30] sm:$0xff]  ;;  %v809_v55 = vld [vmem:[%s11549_s5 + $0x28] sm:$0xff]  ;;  %v808_v56 = vld [vmem:[%s11549_s5 + $0x20] sm:$0xff] }
  0x14   :  { %6083 = vmatmul.mubr.msk.f32.gmra.mxu0 %vm73_vm1, %v34_v18  ;;  %6130 = vmatprep.subr.mxu1 %v439_v19  ;;  %v807_v57 = vld [vmem:[%s11549_s5 + $0x18] sm:$0xff]  ;;  %v806_v58 = vld [vmem:[%s11549_s5 + $0x10] sm:$0xff]  ;;  %v6849_v59 = vld [vmem:[%s11550_s2] ss:$0 sm:$0xff] }
  0x15   :  { %6085 = vmatprep.mubr.msk.f32.mxu0 %vm73_vm1, %v35_v20  ;;  %6131 = vmatpush3.msra.mxu1 %v439_v19 }
  0x16   :  { %6107 = vmatmul.mubr.msk.f32.gmra.mxu1 %vm73_vm1, %v50_v21  ;;  %6132 = vmatprep.subr.mxu1 %v438_v22 }
  0x17   :  { %6109 = vmatprep.mubr.msk.f32.mxu1 %vm73_vm1, %v51_v23  ;;  %6133 = vmatpush3.msra.mxu1 %v438_v22 }
  0x18   :  { %6086 = vmatmul.mubr.msk.f32.gmra.mxu0 %vm73_vm1, %v36_v24  ;;  %6134 = vmatprep.subr.mxu1 %v437_v25 }
  0x19   :  { %6088 = vmatprep.mubr.msk.f32.mxu0 %vm73_vm1, %v37_v26  ;;  %6135 = vmatpush3.msra.mxu1 %v437_v25 }
  0x1a   :  { %6110 = vmatmul.mubr.msk.f32.gmra.mxu1 %vm73_vm1, %v52_v27  ;;  %6136 = vmatprep.subr.mxu1 %v436_v28 }
  0x1b   :  { %6112 = vmatprep.mubr.msk.f32.mxu1 %vm73_vm1, %v53_v29  ;;  %6137 = vmatpush3.msra.mxu1 %v436_v28 }
  0x1c   :  { %6089 = vmatmul.mubr.msk.f32.gmra.mxu0 %vm73_vm1, %v38_v30  ;;  %6138 = vmatprep.subr.mxu1 %v435_v31 }
  0x1d   :  { %6091 = vmatprep.mubr.msk.f32.mxu0 %vm73_vm1, %v39_v32  ;;  %6139 = vmatpush3.msra.mxu1 %v435_v31 }
  0x1e   :  { %6113 = vmatmul.mubr.msk.f32.gmra.mxu1 %vm73_vm1, %v54_v33  ;;  %6140 = vmatprep.subr.mxu1 %v434_v34 }
  0x1f   :  { %6115 = vmatprep.mubr.msk.f32.mxu1 %vm73_vm1, %v55_v35  ;;  %6141 = vmatpush3.msra.mxu1 %v434_v34 }
  0x20   :  { %6092 = vmatmul.mubr.msk.f32.gmra.mxu0 %vm73_vm1, %v40_v36  ;;  %6142 = vmatprep.subr.mxu1 %v433_v37 }
  0x21   :  { %6094 = vmatprep.mubr.msk.f32.mxu0 %vm73_vm1, %v41_v38  ;;  %6143 = vmatpush3.msra.mxu1 %v433_v37 }
  0x22   :  { %6116 = vmatmul.mubr.msk.f32.gmra.mxu1 %vm73_vm1, %v56_v39  ;;  %6144 = vmatprep.subr.mxu1 %v432_v47 }
  0x23   :  { %6118 = vmatprep.mubr.msk.f32.mxu1 %vm73_vm1, %v57_v40  ;;  %6145 = vmatpush3.msra.mxu1 %v432_v47 }
  0x24   :  { %6095 = vmatmul.mubr.msk.f32.gmra.mxu0 %vm73_vm1, %v42_v41  ;;  %6146 = vmatprep.subr.mxu1 %v431_v48 }
  0x25   :  { %6097 = vmatprep.mubr.msk.f32.mxu0 %vm73_vm1, %v43_v42  ;;  %6147 = vmatpush3.msra.mxu1 %v431_v48 }
  0x26   :  { %6119 = vmatmul.mubr.msk.f32.gmra.mxu1 %vm73_vm1, %v58_v43  ;;  %6196 = vmatprep.subr.mxu0 %v815_v49 }
  0x27   :  { %6121 = vmatprep.mubr.msk.f32.mxu1 %vm73_vm1, %v59_v44  ;;  %6197 = vmatpush3.msra.mxu0 %v815_v49 }
  0x28   :  { %6098 = vmatmul.mubr.msk.f32.gmra.mxu0 %vm73_vm1, %v44_v45  ;;  %6198 = vmatprep.subr.mxu0 %v814_v50 }
  0x29   :  { %6199 = vmatpush3.msra.mxu0 %v814_v50 }
  0x2a   :  { %6122 = vmatmul.mubr.msk.f32.gmra.mxu1 %vm73_vm1, %v60_v46  ;;  %6200 = vmatprep.subr.mxu0 %v813_v51 }
  0x2b   :  { %6201 = vmatpush3.msra.mxu0 %v813_v51 }
  0x2c   :  { %6202 = vmatprep.subr.mxu0 %v812_v52 }
  0x2d   :  { %6203 = vmatpush3.msra.mxu0 %v812_v52 }
  0x2e   :  { %6204 = vmatprep.subr.mxu0 %v811_v53 }
  0x2f   :  { %6205 = vmatpush3.msra.mxu0 %v811_v53 }
  0x30   :  { %6206 = vmatprep.subr.mxu0 %v810_v54 }
  0x31   :  { %6207 = vmatpush3.msra.mxu0 %v810_v54 }
  0x32   :  { %6208 = vmatprep.subr.mxu0 %v809_v55 }
  0x33   :  { %6209 = vmatpush3.msra.mxu0 %v809_v55 }
  0x34   :  { %6210 = vmatprep.subr.mxu0 %v808_v56 }
  0x35   :  { %6211 = vmatpush3.msra.mxu0 %v808_v56 }
  0x36   :  { %6212 = vmatprep.subr.mxu0 %v807_v57 }
  0x37   :  { %6213 = vmatpush3.msra.mxu0 %v807_v57 }
  0x38   :  { %6214 = vmatprep.subr.mxu0 %v806_v58 }
  0x39   :  { %6215 = vmatpush3.msra.mxu0 %v806_v58 }
  0xcc   :  { %v6078_v60 = vpop.f32.mrf.mxu0 }
  0xcd   :  { %v246_v61 = vadd.f32 %v6078_v60, %v6849_v59 }
  0xce   :  { %v240_v62 = vpop.f32.mrf.mxu0  ;;  %v6102_v8 = vpop.f32.mrf.mxu1 }
  0xcf   :  { %v241_v63 = vadd.f32 %v6849_v59, %v240_v62  ;;  %v400_v3 = vmax.f32 %v246_v61, 0.0  ;;  %v326_v52 = vadd.f32 %v6102_v8, %v6849_v59 }
  0xd0   :  { %v6081_v0 = vpop.f32.mrf.mxu0  ;;  %v320_v15 = vpop.f32.mrf.mxu1 }
  0xd1   :  { %v399_v1 = vmax.f32 %v241_v63, 0.0  ;;  %v256_v2 = vadd.f32 %v6081_v0, %v6849_v59  ;;  %v321_v47 = vadd.f32 %v6849_v59, %v320_v15  ;;  %v416_v57 = vmax.f32 %v326_v52, 0.0 }
  0xd2   :  { %v250_v4 = vpop.f32.mrf.mxu0  ;;  %v6105_v19 = vpop.f32.mrf.mxu1 }
  0xd3   :  { %v251_v5 = vadd.f32 %v6849_v59, %v250_v4  ;;  %6148 = vmatprep.mubr.msk.f32.mxu1 %vm450_vm2, %v399_v1  ;;  %v402_v6 = vmax.f32 %v256_v2, 0.0  ;;  %v415_v55 = vmax.f32 %v321_v47, 0.0  ;;  %v336_v58 = vadd.f32 %v6105_v19, %v6849_v59 }
  0xd4   :  { %6149 = vmatmul.mubr.msk.f32.vlgmr.msra.gmra.mxu1 %vm450_vm2, %v400_v3  ;;  %v6084_v7 = vpop.f32.mrf.mxu0  ;;  %v330_v26 = vpop.f32.mrf.mxu1 }
  0xd5   :  { %v401_v9 = vmax.f32 %v251_v5, 0.0  ;;  %v266_v10 = vadd.f32 %v6084_v7, %v6849_v59  ;;  %v331_v56 = vadd.f32 %v6849_v59, %v330_v26  ;;  %v418_v0 = vmax.f32 %v336_v58, 0.0 }
  0xd6   :  { %v260_v11 = vpop.f32.mrf.mxu0  ;;  %v6108_v30 = vpop.f32.mrf.mxu1 }
  0xd7   :  { %6151 = vmatprep.mubr.msk.f32.mxu1 %vm450_vm2, %v401_v9  ;;  %v261_v12 = vadd.f32 %v6849_v59, %v260_v11  ;;  %v404_v13 = vmax.f32 %v266_v10, 0.0  ;;  %v417_v61 = vmax.f32 %v331_v56, 0.0  ;;  %v346_v1 = vadd.f32 %v6108_v30, %v6849_v59 }
  0xd8   :  { %6152 = vmatmul.mubr.msk.f32.gmra.mxu1 %vm450_vm2, %v402_v6  ;;  %v6087_v14 = vpop.f32.mrf.mxu0  ;;  %v340_v37 = vpop.f32.mrf.mxu1  ;;  %v2745_v30 = vlaneseq }
  0xd9   :  { %v403_v16 = vmax.f32 %v261_v12, 0.0  ;;  %v276_v17 = vadd.f32 %v6087_v14, %v6849_v59  ;;  %v341_v62 = vadd.f32 %v6849_v59, %v340_v37  ;;  %v420_v5 = vmax.f32 %v346_v1, 0.0 }
  0xda   :  { %v270_v18 = vpop.f32.mrf.mxu0  ;;  %v6111_v41 = vpop.f32.mrf.mxu1 }
  0xdb   :  { %6154 = vmatprep.mubr.msk.f32.mxu1 %vm450_vm2, %v403_v16  ;;  %v271_v20 = vadd.f32 %v6849_v59, %v270_v18  ;;  %v406_v21 = vmax.f32 %v276_v17, 0.0  ;;  %v419_v2 = vmax.f32 %v341_v62, 0.0  ;;  %v356_v6 = vadd.f32 %v6111_v41, %v6849_v59 }
  0xdc   :  { %6155 = vmatmul.mubr.msk.f32.gmra.mxu1 %vm450_vm2, %v404_v13  ;;  %v6090_v22 = vpop.f32.mrf.mxu0  ;;  %v350_v49 = vpop.f32.mrf.mxu1 }
  0xdd   :  { %v405_v23 = vmax.f32 %v271_v20, 0.0  ;;  %v286_v24 = vadd.f32 %v6090_v22, %v6849_v59  ;;  %v351_v3 = vadd.f32 %v6849_v59, %v350_v49  ;;  %v422_v10 = vmax.f32 %v356_v6, 0.0 }
  0xde   :  { %v280_v25 = vpop.f32.mrf.mxu0  ;;  %v6114_v53 = vpop.f32.mrf.mxu1 }
  0xdf   :  { %6157 = vmatprep.mubr.msk.f32.mxu1 %vm450_vm2, %v405_v23  ;;  %v281_v27 = vadd.f32 %v6849_v59, %v280_v25  ;;  %v408_v28 = vmax.f32 %v286_v24, 0.0  ;;  %v421_v8 = vmax.f32 %v351_v3, 0.0  ;;  %v366_v11 = vadd.f32 %v6114_v53, %v6849_v59 }
  0xe0   :  { %6158 = vmatmul.mubr.msk.f32.gmra.mxu1 %vm450_vm2, %v406_v21  ;;  %v6093_v29 = vpop.f32.mrf.mxu0  ;;  %v360_v60 = vpop.f32.mrf.mxu1 }
  0xe1   :  { %v407_v31 = vmax.f32 %v281_v27, 0.0  ;;  %v296_v32 = vadd.f32 %v6093_v29, %v6849_v59  ;;  %v361_v9 = vadd.f32 %v6849_v59, %v360_v60  ;;  %v424_v16 = vmax.f32 %v366_v11, 0.0  ;;  %v805_v29 = vld [vmem:[%s11549_s5 + $0x8] sm:$0xff] }
  0xe2   :  { %v290_v33 = vpop.f32.mrf.mxu0  ;;  %v6117_v63 = vpop.f32.mrf.mxu1  ;;  %6216 = vmatprep.subr.mxu0 %v805_v29 }
  0xe3   :  { %6160 = vmatprep.mubr.msk.f32.mxu1 %vm450_vm2, %v407_v31  ;;  %v291_v34 = vadd.f32 %v6849_v59, %v290_v33  ;;  %v410_v35 = vmax.f32 %v296_v32, 0.0  ;;  %v423_v13 = vmax.f32 %v361_v9, 0.0  ;;  %v376_v17 = vadd.f32 %v6117_v63, %v6849_v59  ;;  %6217 = vmatpush3.msra.mxu0 %v805_v29  ;;  %v6927_v32 = vld [vmem:[%s11551_s4] ss:$0 sm:$0xff] }
  0xe4   :  { %6161 = vmatmul.mubr.msk.f32.gmra.mxu1 %vm450_vm2, %v408_v28  ;;  %v6096_v36 = vpop.f32.mrf.mxu0  ;;  %v370_v4 = vpop.f32.mrf.mxu1  ;;  %v6921_v31 = vand.u32 127, %v2745_v30 }
  0xe5   :  { %v409_v38 = vmax.f32 %v291_v34, 0.0  ;;  %v306_v39 = vadd.f32 %v6096_v36, %v6849_v59  ;;  %v371_v14 = vadd.f32 %v6849_v59, %v370_v4  ;;  %v426_v21 = vmax.f32 %v376_v17, 0.0 }
  0xe6   :  { %v300_v40 = vpop.f32.mrf.mxu0  ;;  %v6120_v7 = vpop.f32.mrf.mxu1  ;;  %11822 = vst [vmem:[#allocation2_spill] sm:$0xff] %v6921_v31  ;;  %2876 = vrot.lane.b32.xlu0 %v6921_v31, %s6579_s12 }
  0xe7   :  { %6163 = vmatprep.mubr.msk.f32.mxu1 %vm450_vm2, %v409_v38  ;;  %v301_v42 = vadd.f32 %v6849_v59, %v300_v40  ;;  %v412_v43 = vmax.f32 %v306_v39, 0.0  ;;  %v425_v18 = vmax.f32 %v371_v14, 0.0  ;;  %v386_v22 = vadd.f32 %v6120_v7, %v6849_v59 }
  0xe8   :  { %6164 = vmatmul.mubr.msk.f32.gmra.mxu1 %vm450_vm2, %v410_v35  ;;  %v6099_v44 = vpop.f32.mrf.mxu0  ;;  %v380_v12 = vpop.f32.mrf.mxu1 }
  0xe9   :  { %v411_v45 = vmax.f32 %v301_v42, 0.0  ;;  %v316_v46 = vadd.f32 %v6099_v44, %v6849_v59  ;;  %v381_v19 = vadd.f32 %v6849_v59, %v380_v12  ;;  %v428_v25 = vmax.f32 %v386_v22, 0.0 }
  0xea   :  { %v310_v48 = vpop.f32.mrf.mxu0  ;;  %v6123_v15 = vpop.f32.mrf.mxu1 }
  0xeb   :  { %6166 = vmatprep.mubr.msk.f32.mxu1 %vm450_vm2, %v411_v45  ;;  %v311_v50 = vadd.f32 %v6849_v59, %v310_v48  ;;  %v414_v51 = vmax.f32 %v316_v46, 0.0  ;;  %v427_v23 = vmax.f32 %v381_v19, 0.0  ;;  %v396_v26 = vadd.f32 %v6123_v15, %v6849_v59 }
  0xec   :  { %6167 = vmatmul.mubr.msk.f32.gmra.mxu1 %vm450_vm2, %v412_v43  ;;  %v390_v20 = vpop.f32.mrf.mxu1 }
  0xed   :  { %v413_v54 = vmax.f32 %v311_v50, 0.0  ;;  %v391_v24 = vadd.f32 %v6849_v59, %v390_v20  ;;  %v430_v28 = vmax.f32 %v396_v26, 0.0  ;;  %v804_v59 = vld [vmem:[%s11549_s5] sm:$0xff] }
  0xee   :  { %6218 = vmatprep.subr.mxu0 %v804_v59 }
  0xef   :  { %6169 = vmatprep.mubr.msk.f32.mxu1 %vm450_vm2, %v413_v54  ;;  %v429_v27 = vmax.f32 %v391_v24, 0.0  ;;  %6219 = vmatpush3.msra.mxu0 %v804_v59 }
  0xf0   :  { %6170 = vmatmul.mubr.msk.f32.gmra.mxu1 %vm450_vm2, %v414_v51 }
  0xf1   :  { %6172 = vmatprep.mubr.msk.f32.mxu1 %vm450_vm2, %v415_v55 }
  0xf4   :  { %6173 = vmatmul.mubr.msk.f32.gmra.mxu1 %vm450_vm2, %v416_v57 }
  0xf5   :  { %6175 = vmatprep.mubr.msk.f32.mxu1 %vm450_vm2, %v417_v61 }
  0xf8   :  { %6176 = vmatmul.mubr.msk.f32.gmra.mxu1 %vm450_vm2, %v418_v0 }
  0xf9   :  { %6178 = vmatprep.mubr.msk.f32.mxu1 %vm450_vm2, %v419_v2 }
  0xfc   :  { %6179 = vmatmul.mubr.msk.f32.gmra.mxu1 %vm450_vm2, %v420_v5 }
  0xfd   :  { %6181 = vmatprep.mubr.msk.f32.mxu1 %vm450_vm2, %v421_v8 }
 0x100   :  { %6182 = vmatmul.mubr.msk.f32.gmra.mxu1 %vm450_vm2, %v422_v10 }
 0x101   :  { %6184 = vmatprep.mubr.msk.f32.mxu1 %vm450_vm2, %v423_v13 }
 0x104   :  { %6185 = vmatmul.mubr.msk.f32.gmra.mxu1 %vm450_vm2, %v424_v16 }
 0x105   :  { %6187 = vmatprep.mubr.msk.f32.mxu1 %vm450_vm2, %v425_v18 }
 0x108   :  { %6188 = vmatmul.mubr.msk.f32.gmra.mxu1 %vm450_vm2, %v426_v21 }
 0x109   :  { %6190 = vmatprep.mubr.msk.f32.mxu1 %vm450_vm2, %v427_v23 }
 0x10c   :  { %6191 = vmatmul.mubr.msk.f32.gmra.mxu1 %vm450_vm2, %v428_v25 }
 0x10d   :  { %6193 = vmatprep.mubr.msk.f32.mxu1 %vm450_vm2, %v429_v27 }
 0x110   :  { %6194 = vmatmul.mubr.msk.f32.gmra.mxu1 %vm450_vm2, %v430_v28 }
 0x194   :  { %v6150_v33 = vpop.f32.mrf.mxu1 }
 0x195   :  { %v619_v34 = vadd.f32 %v6150_v33, %v6927_v32 }
 0x196   :  { %v613_v35 = vpop.f32.mrf.mxu1 }
 0x197   :  { %v614_v36 = vadd.f32 %v6927_v32, %v613_v35  ;;  %v773_v40 = vmax.f32 %v619_v34, 0.0 }
 0x198   :  { %v6153_v37 = vpop.f32.mrf.mxu1 }
 0x199   :  { %v772_v38 = vmax.f32 %v614_v36, 0.0  ;;  %v629_v39 = vadd.f32 %v6153_v37, %v6927_v32 }
 0x19a   :  { %v623_v41 = vpop.f32.mrf.mxu1 }
 0x19b   :  { %v624_v42 = vadd.f32 %v6927_v32, %v623_v41  ;;  %6220 = vmatprep.mubr.msk.f32.mxu0 %vm450_vm2, %v772_v38  ;;  %v775_v43 = vmax.f32 %v629_v39, 0.0 }
 0x19c   :  { %6221 = vmatmul.mubr.msk.f32.vlgmr.msra.gmra.mxu0 %vm450_vm2, %v773_v40  ;;  %v6156_v44 = vpop.f32.mrf.mxu1 }
 0x19d   :  { %v774_v45 = vmax.f32 %v624_v42, 0.0  ;;  %v639_v46 = vadd.f32 %v6156_v44, %v6927_v32 }
 0x19e   :  { %v633_v47 = vpop.f32.mrf.mxu1 }
 0x19f   :  { %6223 = vmatprep.mubr.msk.f32.mxu0 %vm450_vm2, %v774_v45  ;;  %v634_v48 = vadd.f32 %v6927_v32, %v633_v47  ;;  %v777_v49 = vmax.f32 %v639_v46, 0.0 }
 0x1a0   :  { %6224 = vmatmul.mubr.msk.f32.gmra.mxu0 %vm450_vm2, %v775_v43  ;;  %v6159_v50 = vpop.f32.mrf.mxu1 }
 0x1a1   :  { %v776_v51 = vmax.f32 %v634_v48, 0.0  ;;  %v649_v52 = vadd.f32 %v6159_v50, %v6927_v32 }
 0x1a2   :  { %v643_v53 = vpop.f32.mrf.mxu1 }
 0x1a3   :  { %6226 = vmatprep.mubr.msk.f32.mxu0 %vm450_vm2, %v776_v51  ;;  %v644_v54 = vadd.f32 %v6927_v32, %v643_v53  ;;  %v779_v55 = vmax.f32 %v649_v52, 0.0 }
 0x1a4   :  { %6227 = vmatmul.mubr.msk.f32.gmra.mxu0 %vm450_vm2, %v777_v49  ;;  %v6162_v56 = vpop.f32.mrf.mxu1 }
 0x1a5   :  { %v778_v57 = vmax.f32 %v644_v54, 0.0  ;;  %v659_v58 = vadd.f32 %v6162_v56, %v6927_v32 }
 0x1a6   :  { %v653_v60 = vpop.f32.mrf.mxu1 }
 0x1a7   :  { %6229 = vmatprep.mubr.msk.f32.mxu0 %vm450_vm2, %v778_v57  ;;  %v654_v61 = vadd.f32 %v6927_v32, %v653_v60  ;;  %v781_v62 = vmax.f32 %v659_v58, 0.0 }
 0x1a8   :  { %6230 = vmatmul.mubr.msk.f32.gmra.mxu0 %vm450_vm2, %v779_v55  ;;  %v6165_v63 = vpop.f32.mrf.mxu1 }
 0x1a9   :  { %v780_v0 = vmax.f32 %v654_v61, 0.0  ;;  %v669_v1 = vadd.f32 %v6165_v63, %v6927_v32 }
 0x1aa   :  { %v663_v2 = vpop.f32.mrf.mxu1 }
 0x1ab   :  { %6232 = vmatprep.mubr.msk.f32.mxu0 %vm450_vm2, %v780_v0  ;;  %v664_v3 = vadd.f32 %v6927_v32, %v663_v2  ;;  %v783_v4 = vmax.f32 %v669_v1, 0.0 }
 0x1ac   :  { %6233 = vmatmul.mubr.msk.f32.gmra.mxu0 %vm450_vm2, %v781_v62  ;;  %v6168_v5 = vpop.f32.mrf.mxu1 }
 0x1ad   :  { %v782_v6 = vmax.f32 %v664_v3, 0.0  ;;  %v679_v7 = vadd.f32 %v6168_v5, %v6927_v32 }
 0x1ae   :  { %v673_v8 = vpop.f32.mrf.mxu1 }
 0x1af   :  { %6235 = vmatprep.mubr.msk.f32.mxu0 %vm450_vm2, %v782_v6  ;;  %v674_v9 = vadd.f32 %v6927_v32, %v673_v8  ;;  %v785_v10 = vmax.f32 %v679_v7, 0.0 }
 0x1b0   :  { %6236 = vmatmul.mubr.msk.f32.gmra.mxu0 %vm450_vm2, %v783_v4  ;;  %v6171_v11 = vpop.f32.mrf.mxu1  ;;  %v6996_v4 = vld [vmem:[%s11552_s6] ss:$0 sm:$0xff]  ;;  %s6580_s6 = smov 3  }
 0x1b1   :  { %v784_v12 = vmax.f32 %v674_v9, 0.0  ;;  %v689_v13 = vadd.f32 %v6171_v11, %v6927_v32 }
 0x1b2   :  { %v683_v14 = vpop.f32.mrf.mxu1 }
 0x1b3   :  { %6238 = vmatprep.mubr.msk.f32.mxu0 %vm450_vm2, %v784_v12  ;;  %v684_v15 = vadd.f32 %v6927_v32, %v683_v14  ;;  %v787_v16 = vmax.f32 %v689_v13, 0.0 }
 0x1b4   :  { %6239 = vmatmul.mubr.msk.f32.gmra.mxu0 %vm450_vm2, %v785_v10  ;;  %v6174_v17 = vpop.f32.mrf.mxu1 }
 0x1b5   :  { %v786_v18 = vmax.f32 %v684_v15, 0.0  ;;  %v699_v19 = vadd.f32 %v6174_v17, %v6927_v32 }
 0x1b6   :  { %v693_v20 = vpop.f32.mrf.mxu1 }
 0x1b7   :  { %6241 = vmatprep.mubr.msk.f32.mxu0 %vm450_vm2, %v786_v18  ;;  %v694_v21 = vadd.f32 %v6927_v32, %v693_v20  ;;  %v789_v22 = vmax.f32 %v699_v19, 0.0 }
 0x1b8   :  { %6242 = vmatmul.mubr.msk.f32.gmra.mxu0 %vm450_vm2, %v787_v16  ;;  %v6177_v23 = vpop.f32.mrf.mxu1 }
 0x1b9   :  { %v788_v24 = vmax.f32 %v694_v21, 0.0  ;;  %v709_v25 = vadd.f32 %v6177_v23, %v6927_v32 }
 0x1ba   :  { %v703_v26 = vpop.f32.mrf.mxu1 }
 0x1bb   :  { %6244 = vmatprep.mubr.msk.f32.mxu0 %vm450_vm2, %v788_v24  ;;  %v704_v27 = vadd.f32 %v6927_v32, %v703_v26  ;;  %v791_v28 = vmax.f32 %v709_v25, 0.0 }
 0x1bc   :  { %6245 = vmatmul.mubr.msk.f32.gmra.mxu0 %vm450_vm2, %v789_v22  ;;  %v6180_v29 = vpop.f32.mrf.mxu1 }
 0x1bd   :  { %v790_v59 = vmax.f32 %v704_v27, 0.0  ;;  %v719_v30 = vadd.f32 %v6180_v29, %v6927_v32 }
 0x1be   :  { %v713_v33 = vpop.f32.mrf.mxu1 }
 0x1bf   :  { %6247 = vmatprep.mubr.msk.f32.mxu0 %vm450_vm2, %v790_v59  ;;  %v714_v34 = vadd.f32 %v6927_v32, %v713_v33  ;;  %v793_v35 = vmax.f32 %v719_v30, 0.0 }
 0x1c0   :  { %6248 = vmatmul.mubr.msk.f32.gmra.mxu0 %vm450_vm2, %v791_v28  ;;  %v6183_v36 = vpop.f32.mrf.mxu1 }
 0x1c1   :  { %v792_v37 = vmax.f32 %v714_v34, 0.0  ;;  %v729_v38 = vadd.f32 %v6183_v36, %v6927_v32 }
 0x1c2   :  { %v723_v39 = vpop.f32.mrf.mxu1 }
 0x1c3   :  { %6250 = vmatprep.mubr.msk.f32.mxu0 %vm450_vm2, %v792_v37  ;;  %v724_v40 = vadd.f32 %v6927_v32, %v723_v39  ;;  %v795_v41 = vmax.f32 %v729_v38, 0.0 }
 0x1c4   :  { %6251 = vmatmul.mubr.msk.f32.gmra.mxu0 %vm450_vm2, %v793_v35  ;;  %v6186_v42 = vpop.f32.mrf.mxu1 }
 0x1c5   :  { %v794_v43 = vmax.f32 %v724_v40, 0.0  ;;  %v739_v44 = vadd.f32 %v6186_v42, %v6927_v32 }
 0x1c6   :  { %v733_v45 = vpop.f32.mrf.mxu1 }
 0x1c7   :  { %6253 = vmatprep.mubr.msk.f32.mxu0 %vm450_vm2, %v794_v43  ;;  %v734_v46 = vadd.f32 %v6927_v32, %v733_v45  ;;  %v797_v47 = vmax.f32 %v739_v44, 0.0 }
 0x1c8   :  { %6254 = vmatmul.mubr.msk.f32.gmra.mxu0 %vm450_vm2, %v795_v41  ;;  %v6189_v48 = vpop.f32.mrf.mxu1 }
 0x1c9   :  { %v796_v49 = vmax.f32 %v734_v46, 0.0  ;;  %v749_v50 = vadd.f32 %v6189_v48, %v6927_v32 }
 0x1ca   :  { %v743_v51 = vpop.f32.mrf.mxu1 }
 0x1cb   :  { %6256 = vmatprep.mubr.msk.f32.mxu0 %vm450_vm2, %v796_v49  ;;  %v744_v52 = vadd.f32 %v6927_v32, %v743_v51  ;;  %v799_v53 = vmax.f32 %v749_v50, 0.0 }
 0x1cc   :  { %6257 = vmatmul.mubr.msk.f32.gmra.mxu0 %vm450_vm2, %v797_v47  ;;  %v6192_v54 = vpop.f32.mrf.mxu1 }
 0x1cd   :  { %v798_v55 = vmax.f32 %v744_v52, 0.0  ;;  %v759_v56 = vadd.f32 %v6192_v54, %v6927_v32 }
 0x1ce   :  { %v753_v57 = vpop.f32.mrf.mxu1 }
 0x1cf   :  { %6259 = vmatprep.mubr.msk.f32.mxu0 %vm450_vm2, %v798_v55  ;;  %v754_v58 = vadd.f32 %v6927_v32, %v753_v57  ;;  %v801_v60 = vmax.f32 %v759_v56, 0.0 }
 0x1d0   :  { %6260 = vmatmul.mubr.msk.f32.gmra.mxu0 %vm450_vm2, %v799_v53  ;;  %v6195_v61 = vpop.f32.mrf.mxu1 }
 0x1d1   :  { %v800_v62 = vmax.f32 %v754_v58, 0.0  ;;  %v769_v63 = vadd.f32 %v6195_v61, %v6927_v32 }
 0x1d2   :  { %v763_v0 = vpop.f32.mrf.mxu1 }
 0x1d3   :  { %6262 = vmatprep.mubr.msk.f32.mxu0 %vm450_vm2, %v800_v62  ;;  %v764_v1 = vadd.f32 %v6927_v32, %v763_v0  ;;  %v803_v2 = vmax.f32 %v769_v63, 0.0 }
 0x1d4   :  { %6263 = vmatmul.mubr.msk.f32.gmra.mxu0 %vm450_vm2, %v801_v60 }
 0x1d5   :  { %v802_v3 = vmax.f32 %v764_v1, 0.0 }
 0x1d7   :  { %6265 = vmatprep.mubr.msk.f32.mxu0 %vm450_vm2, %v802_v3 }
 0x1d8   :  { %6266 = vmatmul.mubr.msk.f32.gmra.mxu0 %vm450_vm2, %v803_v2 }
 0x25c   :  { %v6222_v5 = vpop.f32.mrf.mxu0 }
 0x25d   :  { %v6999_v6 = vadd.f32 %v6222_v5, %v6996_v4 }
 0x25e   :  { %v985_v7 = vpop.f32.mrf.mxu0 }
 0x25f   :  { %11823 = vst [vmem:[#allocation3_spill] sm:$0xff] %v6999_v6  ;;  %v2751_v32 = vsel %vm2747_vm3, %v6999_v6, -inf  ;;  %v1145_v8 = vmul.f32 %v6999_v6, %v6999_v6  ;;  %v7006_v10 = vadd.f32 %v6996_v4, %v985_v7 }
 0x260   :  { %2752 = vmax.xlane.f32.xlu1 %v2751_v32  ;;  %v6225_v9 = vpop.f32.mrf.mxu0 }
 0x261   :  { %11824 = vst [vmem:[#allocation4_spill] sm:$0xff] %v7006_v10  ;;  %v7009_v11 = vadd.f32 %v6225_v9, %v6996_v4  ;;  %v1180_v12 = vsel %vm1176_vm4, %v1145_v8, 0.0  ;;  %v2748_v17 = vsel %vm2747_vm3, %v7006_v10, -inf  ;;  %v1144_v18 = vmul.f32 %v7006_v10, %v7006_v10 }
 0x262   :  { %1181 = vadd.xlane.f32.xlu0 %v1180_v12  ;;  %v995_v13 = vpop.f32.mrf.mxu0 }
 0x263   :  { %11825 = vst [vmem:[#allocation5_spill] sm:$0xff] %v7009_v11  ;;  %v7013_v14 = vadd.f32 %v6996_v4, %v995_v13  ;;  %v2757_v15 = vsel %vm2747_vm3, %v7009_v11, -inf  ;;  %v1147_v16 = vmul.f32 %v7009_v11, %v7009_v11  ;;  %v1177_v23 = vsel %vm1176_vm4, %v1144_v18, 0.0 }
 0x264   :  { %2758 = vmax.xlane.f32.xlu1 %v2757_v15  ;;  %v6228_v19 = vpop.f32.mrf.mxu0 }
 0x265   :  { %11826 = vst [vmem:[#allocation6_spill] sm:$0xff] %v7013_v14  ;;  %v1186_v20 = vsel %vm1176_vm4, %v1147_v16, 0.0  ;;  %v1146_v21 = vmul.f32 %v7013_v14, %v7013_v14  ;;  %v7027_v22 = vadd.f32 %v6228_v19, %v6996_v4  ;;  %v2754_v27 = vsel %vm2747_vm3, %v7013_v14, -inf }
 0x266   :  { %2749 = vmax.xlane.f32.xlu0 %v2748_v17  ;;  %v1005_v24 = vpop.f32.mrf.mxu0 }
 0x267   :  { %11827 = vst [vmem:[#allocation7_spill] sm:$0xff] %v7027_v22  ;;  %v1183_v25 = vsel %vm1176_vm4, %v1146_v21, 0.0  ;;  %v7032_v26 = vadd.f32 %v6996_v4, %v1005_v24  ;;  %v2763_v28 = vsel %vm2747_vm3, %v7027_v22, -inf  ;;  %v1149_v59 = vmul.f32 %v7027_v22, %v7027_v22 }
 0x268   :  { %1187 = vadd.xlane.f32.xlu1 %v1186_v20  ;;  %v6231_v29 = vpop.f32.mrf.mxu0 }
 0x269   :  { %11828 = vst [vmem:[#allocation8_spill] sm:$0xff] %v7032_v26  ;;  %v7041_v30 = vadd.f32 %v6231_v29, %v6996_v4  ;;  %v2760_v33 = vsel %vm2747_vm3, %v7032_v26, -inf  ;;  %v1148_v34 = vmul.f32 %v7032_v26, %v7032_v26  ;;  %v1192_v36 = vsel %vm1176_vm4, %v1149_v59, 0.0 }
 0x26a   :  { %1178 = vadd.xlane.f32.xlu0 %v1177_v23  ;;  %v1015_v35 = vpop.f32.mrf.mxu0 }
 0x26b   :  { %11829 = vst [vmem:[#allocation9_spill] sm:$0xff] %v7041_v30  ;;  %v7049_v37 = vadd.f32 %v6996_v4, %v1015_v35  ;;  %v1189_v38 = vsel %vm1176_vm4, %v1148_v34, 0.0  ;;  %v2769_v39 = vsel %vm2747_vm3, %v7041_v30, -inf  ;;  %v1151_v41 = vmul.f32 %v7041_v30, %v7041_v30 }
 0x26c   :  { %1184 = vadd.xlane.f32.xlu1 %v1183_v25  ;;  %v6234_v40 = vpop.f32.mrf.mxu0 }
 0x26d   :  { %11830 = vst [vmem:[#allocation10_spill] sm:$0xff] %v7049_v37  ;;  %v7057_v42 = vadd.f32 %v6234_v40, %v6996_v4  ;;  %v2766_v43 = vsel %vm2747_vm3, %v7049_v37, -inf  ;;  %v1150_v44 = vmul.f32 %v7049_v37, %v7049_v37  ;;  %v1198_v46 = vsel %vm1176_vm4, %v1151_v41, 0.0 }
 0x26e   :  { %2755 = vmax.xlane.f32.xlu0 %v2754_v27  ;;  %v1025_v45 = vpop.f32.mrf.mxu0 }
 0x26f   :  { %v7065_v47 = vadd.f32 %v6996_v4, %v1025_v45  ;;  %v1195_v48 = vsel %vm1176_vm4, %v1150_v44, 0.0  ;;  %v2775_v49 = vsel %vm2747_vm3, %v7057_v42, -inf  ;;  %v1153_v51 = vmul.f32 %v7057_v42, %v7057_v42 }
 0x270   :  { %2764 = vmax.xlane.f32.xlu1 %v2763_v28  ;;  %v6237_v50 = vpop.f32.mrf.mxu0 }
 0x271   :  { %11831 = vst [vmem:[#allocation11_spill] sm:$0xff] %v7065_v47  ;;  %v7073_v52 = vadd.f32 %v6237_v50, %v6996_v4  ;;  %v2772_v53 = vsel %vm2747_vm3, %v7065_v47, -inf  ;;  %v1152_v54 = vmul.f32 %v7065_v47, %v7065_v47  ;;  %v1204_v56 = vsel %vm1176_vm4, %v1153_v51, 0.0 }
 0x272   :  { %2761 = vmax.xlane.f32.xlu0 %v2760_v33  ;;  %v1035_v55 = vpop.f32.mrf.mxu0 }
 0x273   :  { %v7081_v57 = vadd.f32 %v6996_v4, %v1035_v55  ;;  %v1201_v58 = vsel %vm1176_vm4, %v1152_v54, 0.0  ;;  %v2781_v60 = vsel %vm2747_vm3, %v7073_v52, -inf  ;;  %v1155_v62 = vmul.f32 %v7073_v52, %v7073_v52 }
 0x274   :  { %1193 = vadd.xlane.f32.xlu1 %v1192_v36  ;;  %v6240_v61 = vpop.f32.mrf.mxu0 }
 0x275   :  { %11832 = vst [vmem:[#allocation12_spill] sm:$0xff] %v7081_v57  ;;  %v7089_v63 = vadd.f32 %v6240_v61, %v6996_v4  ;;  %v2778_v0 = vsel %vm2747_vm3, %v7081_v57, -inf  ;;  %v1154_v1 = vmul.f32 %v7081_v57, %v7081_v57  ;;  %v1210_v3 = vsel %vm1176_vm4, %v1155_v62, 0.0 }
 0x276   :  { %1190 = vadd.xlane.f32.xlu0 %v1189_v38  ;;  %v1045_v2 = vpop.f32.mrf.mxu0 }
 0x277   :  { %11833 = vst [vmem:[#allocation13_spill] sm:$0xff] %v7089_v63  ;;  %v7097_v5 = vadd.f32 %v6996_v4, %v1045_v2  ;;  %v1207_v7 = vsel %vm1176_vm4, %v1154_v1, 0.0  ;;  %v2787_v32 = vsel %vm2747_vm3, %v7089_v63, -inf  ;;  %v1157_v9 = vmul.f32 %v7089_v63, %v7089_v63 }
 0x278   :  { %2770 = vmax.xlane.f32.xlu1 %v2769_v39  ;;  %v6243_v8 = vpop.f32.mrf.mxu0 }
 0x279   :  { %11834 = vst [vmem:[#allocation14_spill] sm:$0xff] %v7097_v5  ;;  %v7105_v12 = vadd.f32 %v6243_v8, %v6996_v4  ;;  %v2784_v13 = vsel %vm2747_vm3, %v7097_v5, -inf  ;;  %v1156_v15 = vmul.f32 %v7097_v5, %v7097_v5  ;;  %v1216_v17 = vsel %vm1176_vm4, %v1157_v9, 0.0 }
 0x27a   :  { %2767 = vmax.xlane.f32.xlu0 %v2766_v43  ;;  %v1055_v16 = vpop.f32.mrf.mxu0 }
 0x27b   :  { %11835 = vst [vmem:[#allocation15_spill] sm:$0xff] %v7105_v12  ;;  %v7113_v19 = vadd.f32 %v6996_v4, %v1055_v16  ;;  %v1213_v20 = vsel %vm1176_vm4, %v1156_v15, 0.0  ;;  %v2793_v21 = vsel %vm2747_vm3, %v7105_v12, -inf  ;;  %v1159_v23 = vmul.f32 %v7105_v12, %v7105_v12 }
 0x27c   :  { %1199 = vadd.xlane.f32.xlu1 %v1198_v46  ;;  %v6246_v18 = vpop.f32.mrf.mxu0 }
 0x27d   :  { %11836 = vst [vmem:[#allocation16_spill] sm:$0xff] %v7113_v19  ;;  %v2790_v25 = vsel %vm2747_vm3, %v7113_v19, -inf  ;;  %v7123_v27 = vadd.f32 %v6246_v18, %v6996_v4  ;;  %v1158_v28 = vmul.f32 %v7113_v19, %v7113_v19  ;;  %v1222_v29 = vsel %vm1176_vm4, %v1159_v23, 0.0 }
 0x27e   :  { %1196 = vadd.xlane.f32.xlu0 %v1195_v48  ;;  %v1065_v24 = vpop.f32.mrf.mxu0 }
 0x27f   :  { %11837 = vst [vmem:[#allocation17_spill] sm:$0xff] %v7123_v27  ;;  %v7129_v59 = vadd.f32 %v6996_v4, %v1065_v24  ;;  %v1219_v34 = vsel %vm1176_vm4, %v1158_v28, 0.0  ;;  %v2799_v35 = vsel %vm2747_vm3, %v7123_v27, -inf  ;;  %v1161_v36 = vmul.f32 %v7123_v27, %v7123_v27 }
 0x280   :  { %2776 = vmax.xlane.f32.xlu1 %v2775_v49  ;;  %v6249_v33 = vpop.f32.mrf.mxu0 }
 0x281   :  { %11838 = vst [vmem:[#allocation18_spill] sm:$0xff] %v7129_v59  ;;  %v2796_v38 = vsel %vm2747_vm3, %v7129_v59, -inf  ;;  %v1160_v39 = vmul.f32 %v7129_v59, %v7129_v59  ;;  %v7141_v41 = vadd.f32 %v6249_v33, %v6996_v4  ;;  %v1228_v43 = vsel %vm1176_vm4, %v1161_v36, 0.0 }
 0x282   :  { %2773 = vmax.xlane.f32.xlu0 %v2772_v53  ;;  %v1075_v40 = vpop.f32.mrf.mxu0 }
 0x283   :  { %11839 = vst [vmem:[#allocation19_spill] sm:$0xff] %v7141_v41  ;;  %v7145_v44 = vadd.f32 %v6996_v4, %v1075_v40  ;;  %v1225_v45 = vsel %vm1176_vm4, %v1160_v39, 0.0  ;;  %v2805_v48 = vsel %vm2747_vm3, %v7141_v41, -inf  ;;  %v1163_v49 = vmul.f32 %v7141_v41, %v7141_v41 }
 0x284   :  { %1205 = vadd.xlane.f32.xlu1 %v1204_v56  ;;  %v6252_v46 = vpop.f32.mrf.mxu0 }
 0x285   :  { %11840 = vst [vmem:[#allocation20_spill] sm:$0xff] %v7145_v44  ;;  %v2802_v50 = vsel %vm2747_vm3, %v7145_v44, -inf  ;;  %v1162_v51 = vmul.f32 %v7145_v44, %v7145_v44  ;;  %v7157_v54 = vadd.f32 %v6252_v46, %v6996_v4  ;;  %v1234_v55 = vsel %vm1176_vm4, %v1163_v49, 0.0 }
 0x286   :  { %1202 = vadd.xlane.f32.xlu0 %v1201_v58  ;;  %v1085_v53 = vpop.f32.mrf.mxu0 }
 0x287   :  { %11841 = vst [vmem:[#allocation21_spill] sm:$0xff] %v7157_v54  ;;  %v7161_v56 = vadd.f32 %v6996_v4, %v1085_v53  ;;  %v1231_v58 = vsel %vm1176_vm4, %v1162_v51, 0.0  ;;  %v2811_v61 = vsel %vm2747_vm3, %v7157_v54, -inf  ;;  %v1165_v62 = vmul.f32 %v7157_v54, %v7157_v54 }
 0x288   :  { %2782 = vmax.xlane.f32.xlu1 %v2781_v60  ;;  %v6255_v60 = vpop.f32.mrf.mxu0 }
 0x289   :  { %11842 = vst [vmem:[#allocation22_spill] sm:$0xff] %v7161_v56  ;;  %v1164_v1 = vmul.f32 %v7161_v56, %v7161_v56 }
 0x28a   :  { %2779 = vmax.xlane.f32.xlu0 %v2778_v0  ;;  %v2808_v0 = vsel %vm2747_vm3, %v7161_v56, -inf  ;;  %v1095_v2 = vpop.f32.mrf.mxu0 }
 0x28b   :  { %v1237_v8 = vsel %vm1176_vm4, %v1164_v1, 0.0 }
 0x28c   :  { %1211 = vadd.xlane.f32.xlu1 %v1210_v3  ;;  %v7173_v3 = vadd.f32 %v6255_v60, %v6996_v4  ;;  %v6258_v9 = vpop.f32.mrf.mxu0 }
 0x28e   :  { %1208 = vadd.xlane.f32.xlu0 %v1207_v7  ;;  %11843 = vst [vmem:[#allocation23_spill] sm:$0xff] %v7173_v3  ;;  %v1240_v7 = vsel %vm1176_vm4, %v1165_v62, 0.0  ;;  %v1167_v15 = vmul.f32 %v7173_v3, %v7173_v3  ;;  %v1105_v18 = vpop.f32.mrf.mxu0 }
 0x28f   :  { %v7193_v23 = vadd.f32 %v6996_v4, %v1105_v18 }
 0x290   :  { %2788 = vmax.xlane.f32.xlu1 %v2787_v32  ;;  %v7177_v32 = vadd.f32 %v6996_v4, %v1095_v2 }
 0x291   :  { %11846 = vst [vmem:[#allocation26_spill] sm:$0xff] %v7193_v23  ;;  %v2820_v33 = vsel %vm2747_vm3, %v7193_v23, -inf }
 0x292   :  { %2785 = vmax.xlane.f32.xlu0 %v2784_v13  ;;  %11844 = vst [vmem:[#allocation24_spill] sm:$0xff] %v7177_v32  ;;  %v2817_v13 = vsel %vm2747_vm3, %v7173_v3, -inf  ;;  %v2814_v16 = vsel %vm2747_vm3, %v7177_v32, -inf }
 0x294   :  { %1217 = vadd.xlane.f32.xlu1 %v1216_v17  ;;  %v1166_v17 = vmul.f32 %v7177_v32, %v7177_v32 }
 0x296   :  { %1214 = vadd.xlane.f32.xlu0 %v1213_v20  ;;  %v7189_v20 = vadd.f32 %v6258_v9, %v6996_v4  ;;  %v1243_v24 = vsel %vm1176_vm4, %v1166_v17, 0.0 }
 0x298   :  { %2794 = vmax.xlane.f32.xlu1 %v2793_v21  ;;  %11845 = vst [vmem:[#allocation25_spill] sm:$0xff] %v7189_v20  ;;  %v1246_v21 = vsel %vm1176_vm4, %v1167_v15, 0.0  ;;  %v2823_v28 = vsel %vm2747_vm3, %v7189_v20, -inf }
 0x29a   :  { %2791 = vmax.xlane.f32.xlu0 %v2790_v25  ;;  %v6261_v25 = vpop.f32.mrf.mxu0 }
 0x29b   :  { %v7205_v36 = vadd.f32 %v6261_v25, %v6996_v4 }
 0x29c   :  { %1223 = vadd.xlane.f32.xlu1 %v1222_v29  ;;  %v1169_v29 = vmul.f32 %v7189_v20, %v7189_v20 }
 0x29d   :  { %11847 = vst [vmem:[#allocation27_spill] sm:$0xff] %v7205_v36  ;;  %v1171_v46 = vmul.f32 %v7205_v36, %v7205_v36 }
 0x29e   :  { %1220 = vadd.xlane.f32.xlu0 %v1219_v34  ;;  %v1168_v34 = vmul.f32 %v7193_v23, %v7193_v23 }
 0x29f   :  { %v1258_v53 = vsel %vm1176_vm4, %v1171_v46, 0.0 }
 0x2a0   :  { %2800 = vmax.xlane.f32.xlu1 %v2799_v35  ;;  %v1115_v35 = vpop.f32.mrf.mxu0  ;;  %v1249_v40 = vsel %vm1176_vm4, %v1168_v34, 0.0 }
 0x2a1   :  { %v7209_v39 = vadd.f32 %v6996_v4, %v1115_v35 }
 0x2a2   :  { %2797 = vmax.xlane.f32.xlu0 %v2796_v38  ;;  %v1252_v38 = vsel %vm1176_vm4, %v1169_v29, 0.0 }
 0x2a3   :  { %11848 = vst [vmem:[#allocation28_spill] sm:$0xff] %v7209_v39  ;;  %v1170_v49 = vmul.f32 %v7209_v39, %v7209_v39 }
 0x2a4   :  { %1229 = vadd.xlane.f32.xlu1 %v1228_v43  ;;  %v6264_v43 = vpop.f32.mrf.mxu0 }
 0x2a5   :  { %v7221_v51 = vadd.f32 %v6264_v43, %v6996_v4 }
 0x2a6   :  { %1226 = vadd.xlane.f32.xlu0 %v1225_v45  ;;  %v2829_v45 = vsel %vm2747_vm3, %v7205_v36, -inf }
 0x2a7   :  { %11849 = vst [vmem:[#allocation29_spill] sm:$0xff] %v7221_v51  ;;  %v1173_v62 = vmul.f32 %v7221_v51, %v7221_v51 }
 0x2a8   :  { %2806 = vmax.xlane.f32.xlu1 %v2805_v48  ;;  %v2826_v48 = vsel %vm2747_vm3, %v7209_v39, -inf }
 0x2aa   :  { %2803 = vmax.xlane.f32.xlu0 %v2802_v50  ;;  %v1125_v50 = vpop.f32.mrf.mxu0 }
 0x2ac   :  { %1235 = vadd.xlane.f32.xlu1 %v1234_v55  ;;  %v7225_v55 = vadd.f32 %v6996_v4, %v1125_v50  ;;  %v6267_v60 = vpop.f32.mrf.mxu0 }
 0x2ae   :  { %1232 = vadd.xlane.f32.xlu0 %v1231_v58  ;;  %11850 = vst [vmem:[#allocation30_spill] sm:$0xff] %v7225_v55  ;;  %v1255_v58 = vsel %vm1176_vm4, %v1170_v49, 0.0  ;;  %v1172_v1 = vmul.f32 %v7225_v55, %v7225_v55  ;;  %v1135_v2 = vpop.f32.mrf.mxu0 }
 0x2af   :  { %v7241_v9 = vadd.f32 %v6996_v4, %v1135_v2 }
 0x2b0   :  { %2812 = vmax.xlane.f32.xlu1 %v2811_v61  ;;  %v2835_v61 = vsel %vm2747_vm3, %v7221_v51, -inf }
 0x2b1   :  { %11852 = vst [vmem:[#allocation32_spill] sm:$0xff] %v7241_v9  ;;  %v2838_v17 = vsel %vm2747_vm3, %v7241_v9, -inf  ;;  %v1174_v18 = vmul.f32 %v7241_v9, %v7241_v9 }
 0x2b2   :  { %2809 = vmax.xlane.f32.xlu0 %v2808_v0  ;;  %v2832_v0 = vsel %vm2747_vm3, %v7225_v55, -inf }
 0x2b4   :  { %1241 = vadd.xlane.f32.xlu1 %v1240_v7  ;;  %v7237_v7 = vadd.f32 %v6267_v60, %v6996_v4 }
 0x2b6   :  { %1238 = vadd.xlane.f32.xlu0 %v1237_v8  ;;  %11851 = vst [vmem:[#allocation31_spill] sm:$0xff] %v7237_v7  ;;  %v1264_v8 = vsel %vm1176_vm4, %v1173_v62, 0.0  ;;  %v2841_v15 = vsel %vm2747_vm3, %v7237_v7, -inf }
 0x2b8   :  { %2818 = vmax.xlane.f32.xlu1 %v2817_v13  ;;  %v1261_v13 = vsel %vm1176_vm4, %v1172_v1, 0.0 }
 0x2ba   :  { %2815 = vmax.xlane.f32.xlu0 %v2814_v16  ;;  %v1175_v16 = vmul.f32 %v7237_v7, %v7237_v7 }
 0x2bc   :  { %1247 = vadd.xlane.f32.xlu1 %v1246_v21  ;;  %v1270_v4 = vsel %vm1176_vm4, %v1175_v16, 0.0  ;;  %v1267_v21 = vsel %vm1176_vm4, %v1174_v18, 0.0 }
 0x2be   :  { %1244 = vadd.xlane.f32.xlu0 %v1243_v24  ;;  %v7254_v24 = vpop.permute.xlu0 %2876 }
 0x2c0   :  { %2824 = vmax.xlane.f32.xlu1 %v2823_v28 }
 0x2c2   :  { %2821 = vmax.xlane.f32.xlu0 %v2820_v33 }
 0x2c4   :  { %1253 = vadd.xlane.f32.xlu1 %v1252_v38 }
 0x2c6   :  { %1250 = vadd.xlane.f32.xlu0 %v1249_v40 }
 0x2c8   :  { %2830 = vmax.xlane.f32.xlu1 %v2829_v45 }
 0x2ca   :  { %2827 = vmax.xlane.f32.xlu0 %v2826_v48 }
 0x2cc   :  { %1259 = vadd.xlane.f32.xlu1 %v1258_v53 }
 0x2ce   :  { %1256 = vadd.xlane.f32.xlu0 %v1255_v58 }
 0x2d0   :  { %2836 = vmax.xlane.f32.xlu1 %v2835_v61 }
 0x2d2   :  { %2833 = vmax.xlane.f32.xlu0 %v2832_v0 }
 0x2d4   :  { %1265 = vadd.xlane.f32.xlu1 %v1264_v8 }
 0x2d6   :  { %1262 = vadd.xlane.f32.xlu0 %v1261_v13 }
 0x2d8   :  { %2842 = vmax.xlane.f32.xlu1 %v2841_v15 }
 0x2da   :  { %2839 = vmax.xlane.f32.xlu0 %v2838_v17 }
 0x2dc   :  { %1271 = vadd.xlane.f32.xlu1 %v1270_v4 }
 0x2de   :  { %1268 = vadd.xlane.f32.xlu0 %v1267_v21 }
 0x2e9   :  { %v2753_v25 = vpop.xlane.xlu1 %2752 }
 0x2ea   :  { %vm2845_vm5 = vcmp.eq.f32.partialorder %v6999_v6, %v2753_v25 }
 0x2eb   :  { %v2879_v28 = vsel %vm2845_vm5, %v7254_v24, 4  ;;  %v7258_v29 = vpop.xlane.xlu0 %1181 }
 0x2ec   :  { %v7261_v34 = vsel %vm2747_vm3, %v2879_v28, 2147483647 }
 0x2ed   :  { %v2759_v33 = vpop.xlane.xlu1 %2758  ;;  %11853 = vst [vmem:[#allocation33_spill] sm:$0xff] %v7261_v34  ;;  %v2927_v35 = vshra.s32 %v7261_v34, 16 }
 0x2ee   :  { %vm2847_vm6 = vcmp.eq.f32.partialorder %v7009_v11, %v2759_v33 }
 0x2ef   :  { %v2881_v38 = vsel %vm2847_vm6, %v7254_v24, 4  ;;  %v2750_v40 = vpop.xlane.xlu0 %2749  ;;  %v7267_v43 = vcvt.s32.f32 %v2927_v35 }
 0x2f0   :  { %vm2844_vm7 = vcmp.eq.f32.partialorder %v7006_v10, %v2750_v40  ;;  %v7270_v45 = vsel %vm2747_vm3, %v2881_v38, 2147483647 }
 0x2f1   :  { %11854 = vst [vmem:[#allocation34_spill] sm:$0xff] %v7267_v43  ;;  %11855 = vst [vmem:[#allocation35_spill] sm:$0xff] %v7270_v45  ;;  %v2878_v46 = vsel %vm2844_vm7, %v7254_v24, 4  ;;  %v7273_v48 = vpop.xlane.xlu1 %1187  ;;  %v2957_v49 = vshra.s32 %v7270_v45, 16  ;;  %2930 = vmin.xlane.f32.xlu1 %v7267_v43 }
 0x2f2   :  { %v7280_v58 = vsel %vm2747_vm3, %v2878_v46, 2147483647 }
 0x2f3   :  { %v1179_v50 = vpop.xlane.xlu0 %1178  ;;  %v7277_v53 = vcvt.s32.f32 %v2957_v49  ;;  %11857 = vst [vmem:[#allocation37_spill] sm:$0xff] %v7280_v58  ;;  %v2912_v61 = vshra.s32 %v7280_v58, 16 }
 0x2f4   :  { %6291 = vrsqrt.f32 %v1179_v50  ;;  %vm1275_vm12 = vcmp.eq.f32.partialorder %v1179_v50, inf  ;;  %vm1277_vm13 = vcmp.eq.f32.partialorder %v1179_v50, 0.0 }
 0x2f5   :  { %11856 = vst [vmem:[#allocation36_spill] sm:$0xff] %v7277_v53  ;;  %v7282_v60 = vpop.xlane.xlu1 %1184  ;;  %2960 = vmin.xlane.f32.xlu0 %v7277_v53  ;;  %v7286_v62 = vcvt.s32.f32 %v2912_v61  ;;  %v1278_v61 = vand.u32 2147483648, %v1179_v50 }
 0x2f6   :  { %6293 = vrsqrt.f32 %v7282_v60  ;;  %vm1289_vm1 = vcmp.eq.f32.partialorder %v7282_v60, inf  ;;  %vm1291_vm2 = vcmp.eq.f32.partialorder %v7282_v60, 0.0 }
 0x2f7   :  { %11858 = vst [vmem:[#allocation38_spill] sm:$0xff] %v7286_v62  ;;  %v2756_v0 = vpop.xlane.xlu0 %2755  ;;  %2915 = vmin.xlane.f32.xlu1 %v7286_v62 }
 0x2f8   :  { %vm2846_vm8 = vcmp.eq.f32.partialorder %v7013_v14, %v2756_v0 }
 0x2f9   :  { %v2880_v1 = vsel %vm2846_vm8, %v7254_v24, 4  ;;  %v2765_v2 = vpop.xlane.xlu1 %2764 }
 0x2fa   :  { %vm2849_vm9 = vcmp.eq.f32.partialorder %v7027_v22, %v2765_v2  ;;  %v7293_v8 = vsel %vm2747_vm3, %v2880_v1, 2147483647 }
 0x2fb   :  { %11859 = vst [vmem:[#allocation39_spill] sm:$0xff] %v7293_v8  ;;  %v2883_v13 = vsel %vm2849_vm9, %v7254_v24, 4  ;;  %v2762_v15 = vpop.xlane.xlu0 %2761  ;;  %v2942_v16 = vshra.s32 %v7293_v8, 16 }
 0x2fc   :  { %vm2848_vm10 = vcmp.eq.f32.partialorder %v7032_v26, %v2762_v15  ;;  %v7300_v17 = vsel %vm2747_vm3, %v2883_v13, 2147483647 }
 0x2fd   :  { %11860 = vst [vmem:[#allocation40_spill] sm:$0xff] %v7300_v17  ;;  %v2882_v18 = vsel %vm2848_vm10, %v7254_v24, 4  ;;  %v7303_v4 = vpop.xlane.xlu1 %1193  ;;  %v7305_v21 = vcvt.s32.f32 %v2942_v16  ;;  %v2987_v28 = vshra.s32 %v7300_v17, 16 }
 0x2fe   :  { %v7312_v33 = vsel %vm2747_vm3, %v2882_v18, 2147483647 }
 0x2ff   :  { %11861 = vst [vmem:[#allocation41_spill] sm:$0xff] %v7305_v21  ;;  %2945 = vmin.xlane.f32.xlu1 %v7305_v21  ;;  %v7308_v25 = vpop.xlane.xlu0 %1190  ;;  %11862 = vst [vmem:[#allocation42_spill] sm:$0xff] %v7312_v33  ;;  %v7314_v40 = vcvt.s32.f32 %v2987_v28  ;;  %v2972_v46 = vshra.s32 %v7312_v33, 16 }
 0x300   :  { %vm1303_vm9 = vcmp.eq.f32.partialorder %v7308_v25, inf  ;;  %v1306_v7 = vand.u32 2147483648, %v7308_v25 }
 0x301   :  { %v6292_v35 = vpop.eup %6291  ;;  %v2771_v38 = vpop.xlane.xlu1 %2770  ;;  %11863 = vst [vmem:[#allocation43_spill] sm:$0xff] %v7314_v40  ;;  %v7323_v16 = vcvt.s32.f32 %v2972_v46 }
 0x302   :  { %v1274_v49 = vmul.f32 %v6292_v35, %v1179_v50  ;;  %vm2851_vm11 = vcmp.eq.f32.partialorder %v7041_v30, %v2771_v38 }
 0x303   :  { %v2885_v0 = vsel %vm2851_vm11, %v7254_v24, 4  ;;  %2990 = vmin.xlane.f32.xlu1 %v7314_v40  ;;  %v2768_v1 = vpop.xlane.xlu0 %2767  ;;  %11864 = vst [vmem:[#allocation44_spill] sm:$0xff] %v7323_v16  ;;  %vm1305_vm11 = vcmp.eq.f32.partialorder %v7308_v25, 0.0 }
 0x304   :  { %v1276_v2 = vsel %vm1275_vm12, %v1179_v50, %v1274_v49  ;;  %vm2850_vm14 = vcmp.eq.f32.partialorder %v7049_v37, %v2768_v1  ;;  %v7326_v28 = vsel %vm2747_vm3, %v2885_v0, 2147483647  ;;  %v6294_v49 = vpop.eup %6293 }
 0x305   :  { %v1279_v13 = vsel %vm1277_vm13, %v1278_v61, %v1276_v2  ;;  %v7321_v15 = vpop.xlane.xlu1 %1199  ;;  %v2884_v35 = vsel %vm2850_vm14, %v7254_v24, 4  ;;  %v3017_v1 = vshra.s32 %v7326_v28, 16  ;;  %v1288_v31 = vmul.f32 %v6294_v49, %v7282_v60 }
 0x306   :  { %v1497_v18 = vmax.f32 %v1279_v13, 1e-12  ;;  %v7335_v46 = vsel %vm2747_vm3, %v2884_v35, 2147483647  ;;  %vm1282_vm13 = vcmp.eq.f32.partialorder %v7258_v29, inf  ;;  %vm1284_vm14 = vcmp.eq.f32.partialorder %v7258_v29, 0.0 }
 0x307   :  { %2975 = vmin.xlane.f32.xlu1 %v7323_v16  ;;  %v7330_v38 = vpop.xlane.xlu0 %1196  ;;  %11865 = vst [vmem:[#allocation45_spill] sm:$0xff] %v7335_v46  ;;  %v7338_v0 = vcvt.s32.f32 %v3017_v1  ;;  %v3002_v13 = vshra.s32 %v7335_v46, 16 }
 0x308   :  { %6295 = vrcp.f32 %v1497_v18 }
 0x309   :  { %v2777_v50 = vpop.xlane.xlu1 %2776  ;;  %6297 = vrsqrt.f32 %v7308_v25  ;;  %v7352_v1 = vcvt.s32.f32 %v3002_v13 }
 0x30a   :  { %vm2853_vm15 = vcmp.eq.f32.partialorder %v7057_v42, %v2777_v50  ;;  %6299 = vrsqrt.f32 %v7258_v29 }
 0x30b   :  { %v2887_v61 = vsel %vm2853_vm15, %v7254_v24, 4  ;;  %v2774_v2 = vpop.xlane.xlu0 %2773  ;;  %3020 = vmin.xlane.f32.xlu1 %v7338_v0  ;;  %11866 = vst [vmem:[#allocation46_spill] sm:$0xff] %v7352_v1  ;;  %vm1317_vm15 = vcmp.eq.f32.partialorder %v7330_v38, inf }
 0x30c   :  { %vm2852_vm0 = vcmp.eq.f32.partialorder %v7065_v47, %v2774_v2  ;;  %v7344_v18 = vsel %vm2747_vm3, %v2887_v61, 2147483647  ;;  %v1290_v2 = vsel %vm1289_vm1, %v7282_v60, %v1288_v31  ;;  %v1292_v61 = vand.u32 2147483648, %v7282_v60 }
 0x30d   :  { %v7348_v35 = vpop.xlane.xlu1 %1205  ;;  %v2886_v50 = vsel %vm2852_vm0, %v7254_v24, 4  ;;  %v3047_v49 = vshra.s32 %v7344_v18, 16  ;;  %vm1319_vm0 = vcmp.eq.f32.partialorder %v7330_v38, 0.0 }
 0x30e   :  { %v7361_v33 = vsel %vm2747_vm3, %v2886_v50, 2147483647  ;;  %v1293_v13 = vsel %vm1291_vm2, %v1292_v61, %v1290_v2 }
 0x30f   :  { %v7354_v46 = vpop.xlane.xlu0 %1202  ;;  %3005 = vmin.xlane.f32.xlu1 %v7352_v1  ;;  %v7367_v17 = vcvt.s32.f32 %v3047_v49  ;;  %v3032_v21 = vshra.s32 %v7361_v33, 16  ;;  %v1499_v60 = vmax.f32 %v1293_v13, 1e-12 }
 0x310   :  { %vm1331_vm1 = vcmp.eq.f32.partialorder %v7354_v46, inf  ;;  %vm1333_vm2 = vcmp.eq.f32.partialorder %v7354_v46, 0.0 }
 0x311   :  { %v2783_v16 = vpop.xlane.xlu1 %2782  ;;  %v7378_v2 = vcvt.s32.f32 %v3032_v21  ;;  %6301 = vrcp.f32 %v1499_v60 }
 0x312   :  { %vm2855_vm5 = vcmp.eq.f32.partialorder %v7073_v52, %v2783_v16  ;;  %6303 = vrsqrt.f32 %v7330_v38 }
 0x313   :  { %v2889_v40 = vsel %vm2855_vm5, %v7254_v24, 4  ;;  %v2780_v31 = vpop.xlane.xlu0 %2779  ;;  %3050 = vmin.xlane.f32.xlu1 %v7367_v17 }
 0x314   :  { %vm2854_vm6 = vcmp.eq.f32.partialorder %v7081_v57, %v2780_v31  ;;  %v7372_v1 = vsel %vm2747_vm3, %v2889_v40, 2147483647 }
 0x315   :  { %v6296_v50 = vpop.eup %6295  ;;  %v7375_v8 = vpop.xlane.xlu1 %1211  ;;  %v2888_v16 = vsel %vm2854_vm6, %v7254_v24, 4  ;;  %v3077_v31 = vshra.s32 %v7372_v1, 16 }
 0x316   :  { %v7383_v61 = vmul.f32 %v6296_v50, %v7006_v10  ;;  %v6298_v53 = vpop.eup %6297  ;;  %v7391_v21 = vsel %vm2747_vm3, %v2888_v16, 2147483647 }
 0x317   :  { %v7380_v49 = vpop.xlane.xlu0 %1208  ;;  %3035 = vmin.xlane.f32.xlu1 %v7378_v2  ;;  %11868 = vst [vmem:[#allocation48_spill] sm:$0xff] %v7391_v21  ;;  %v7394_v50 = vcvt.s32.f32 %v3077_v31  ;;  %v3062_v62 = vshra.s32 %v7391_v21, 16  ;;  %v1302_v43 = vmul.f32 %v6298_v53, %v7308_v25  ;;  %v6300_v16 = vpop.eup %6299 }
 0x318   :  { %11867 = vst [vmem:[#allocation47_spill] sm:$0xff] %v7383_v61  ;;  %1625 = vrot.lane.b32.xlu0 %v7383_v61, %s6580_s6  ;;  %vm1345_vm5 = vcmp.eq.f32.partialorder %v7380_v49, inf  ;;  %vm1347_vm6 = vcmp.eq.f32.partialorder %v7380_v49, 0.0 }
 0x319   :  { %v2789_v40 = vpop.xlane.xlu1 %2788  ;;  %v1304_v53 = vsel %vm1303_vm9, %v7308_v25, %v1302_v43  ;;  %vm1296_vm9 = vcmp.eq.f32.partialorder %v7273_v48, inf }
 0x31a   :  { %vm2857_vm7 = vcmp.eq.f32.partialorder %v7089_v63, %v2789_v40  ;;  %v7408_v40 = vcvt.s32.f32 %v3062_v62  ;;  %v1281_v62 = vmul.f32 %v6300_v16, %v7258_v29  ;;  %v1307_v21 = vsel %vm1305_vm11, %v1306_v7, %v1304_v53 }
 0x31b   :  { %v2891_v13 = vsel %vm2857_vm7, %v7254_v24, 4  ;;  %v2786_v45 = vpop.xlane.xlu0 %2785  ;;  %3080 = vmin.xlane.f32.xlu1 %v7394_v50  ;;  %v1501_v7 = vmax.f32 %v1307_v21, 1e-12  ;;  %vm1298_vm11 = vcmp.eq.f32.partialorder %v7273_v48, 0.0 }
 0x31c   :  { %vm2856_vm8 = vcmp.eq.f32.partialorder %v7097_v5, %v2786_v45  ;;  %v7399_v58 = vsel %vm2747_vm3, %v2891_v13, 2147483647  ;;  %4039 = vrot.lane.b32.xlu0 %v7383_v61, %s6581_s15  ;;  %11870 = vst [vmem:[#allocation50_spill] sm:$0xff] %v7408_v40  ;;  %v1283_v25 = vsel %vm1282_vm13, %v7258_v29, %v1281_v62 }
 0x31d   :  { %11869 = vst [vmem:[#allocation49_spill] sm:$0xff] %v7399_v58  ;;  %v7405_v60 = vpop.xlane.xlu1 %1217  ;;  %v2890_v31 = vsel %vm2856_vm8, %v7254_v24, 4  ;;  %v3107_v45 = vshra.s32 %v7399_v58, 16  ;;  %6305 = vrcp.f32 %v1501_v7  ;;  %v1320_v7 = vand.u32 2147483648, %v7330_v38 }
 0x31e   :  { %v7423_v51 = vsel %vm2747_vm3, %v2890_v31, 2147483647 }
 0x31f   :  { %v7410_v34 = vpop.xlane.xlu0 %1214  ;;  %3065 = vmin.xlane.f32.xlu1 %v7408_v40  ;;  %11871 = vst [vmem:[#allocation51_spill] sm:$0xff] %v7423_v51  ;;  %v7427_v63 = vcvt.s32.f32 %v3107_v45  ;;  %v3092_v40 = vshra.s32 %v7423_v51, 16  ;;  %v1285_v45 = vand.u32 2147483648, %v7258_v29 }
 0x320   :  { %4167 = vrot.lane.b32.xlu0 %v7383_v61, %s6582_s16 }
 0x321   :  { %v2795_v13 = vpop.xlane.xlu1 %2794  ;;  %11872 = vst [vmem:[#allocation52_spill] sm:$0xff] %v7427_v63  ;;  %v7441_v53 = vcvt.s32.f32 %v3092_v40 }
 0x322   :  { %vm2859_vm10 = vcmp.eq.f32.partialorder %v7105_v12, %v2795_v13  ;;  %v6302_v13 = vpop.eup %6301 }
 0x323   :  { %v2893_v43 = vsel %vm2859_vm10, %v7254_v24, 4  ;;  %v2792_v58 = vpop.xlane.xlu0 %2791  ;;  %3110 = vmin.xlane.f32.xlu1 %v7427_v63  ;;  %11874 = vst [vmem:[#allocation54_spill] sm:$0xff] %v7441_v53  ;;  %v7454_v21 = vmul.f32 %v6302_v13, %v7013_v14  ;;  %v6304_v29 = vpop.eup %6303  ;;  %vm1359_vm10 = vcmp.eq.f32.partialorder %v7410_v34, inf }
 0x324   :  { %vm2858_vm12 = vcmp.eq.f32.partialorder %v7113_v19, %v2792_v58  ;;  %v7432_v16 = vsel %vm2747_vm3, %v2893_v43, 2147483647  ;;  %4455 = vrot.lane.b32.xlu0 %v7383_v61, %s6583_s17  ;;  %v1286_v43 = vsel %vm1284_vm14, %v1285_v45, %v1283_v25 }
 0x325   :  { %11873 = vst [vmem:[#allocation53_spill] sm:$0xff] %v7432_v16  ;;  %v2892_v31 = vsel %vm2858_vm12, %v7254_v24, 4  ;;  %v3137_v58 = vshra.s32 %v7432_v16, 16  ;;  %11877 = vst [vmem:[#allocation57_spill] sm:$0xff] %v7454_v21  ;;  %v1498_v16 = vmax.f32 %v1286_v43, 1e-12 }
 0x326   :  { %v7449_v62 = vsel %vm2747_vm3, %v2892_v31, 2147483647  ;;  %v1316_v31 = vmul.f32 %v6304_v29, %v7330_v38  ;;  %vm1361_vm12 = vcmp.eq.f32.partialorder %v7410_v34, 0.0 }
 0x327   :  { %3095 = vmin.xlane.f32.xlu1 %v7441_v53  ;;  %11875 = vst [vmem:[#allocation55_spill] sm:$0xff] %v7449_v62  ;;  %v7451_v12 = vcvt.s32.f32 %v3137_v58  ;;  %v3122_v40 = vshra.s32 %v7449_v62, 16  ;;  %6307 = vrcp.f32 %v1498_v16  ;;  %v7473_v13 = vpop.xlane.xlu0 %1220 }
 0x328   :  { %4583 = vrot.lane.b32.xlu0 %v7383_v61, %s6584_s3  ;;  %v1318_v45 = vsel %vm1317_vm15, %v7330_v38, %v1316_v31  ;;  %6309 = vrsqrt.f32 %v7354_v46  ;;  %vm1373_vm13 = vcmp.eq.f32.partialorder %v7473_v13, inf  ;;  %vm1375_vm14 = vcmp.eq.f32.partialorder %v7473_v13, 0.0 }
 0x329   :  { %11876 = vst [vmem:[#allocation56_spill] sm:$0xff] %v7451_v12  ;;  %v7460_v25 = vcvt.s32.f32 %v3122_v40  ;;  %v1321_v58 = vsel %vm1319_vm0, %v1320_v7, %v1318_v45 }
 0x32a   :  { %v6306_v16 = vpop.eup %6305  ;;  %v1503_v43 = vmax.f32 %v1321_v58, 1e-12 }
 0x32b   :  { %3140 = vmin.xlane.f32.xlu1 %v7451_v12  ;;  %11878 = vst [vmem:[#allocation58_spill] sm:$0xff] %v7460_v25  ;;  %v7478_v40 = vmul.f32 %v6306_v16, %v7032_v26  ;;  %v7482_v31 = vpop.xlane.xlu0 %2797 }
 0x32c   :  { %4043 = vrot.lane.b32.xlu0 %v7454_v21, %s6581_s15  ;;  %6311 = vrcp.f32 %v1503_v43  ;;  %v1334_v43 = vand.u32 2147483648, %v7354_v46  ;;  %vm2860_vm8 = vcmp.eq.f32.partialorder %v7129_v59, %v7482_v31 }
 0x32d   :  { %11879 = vst [vmem:[#allocation59_spill] sm:$0xff] %v7478_v40  ;;  %6313 = vrsqrt.f32 %v7380_v49 }
 0x32f   :  { %3125 = vmin.xlane.f32.xlu1 %v7460_v25  ;;  %v7492_v16 = vpop.xlane.xlu0 %1226 }
 0x330   :  { %4171 = vrot.lane.b32.xlu0 %v7454_v21, %s6582_s16  ;;  %vm1387_vm15 = vcmp.eq.f32.partialorder %v7492_v16, inf  ;;  %vm1389_vm0 = vcmp.eq.f32.partialorder %v7492_v16, 0.0 }
 0x334   :  { %4459 = vrot.lane.b32.xlu0 %v7454_v21, %s6583_s17  ;;  %v6308_v29 = vpop.eup %6307 }
 0x335   :  { %v7485_v38 = vmul.f32 %v6308_v29, %v6999_v6  ;;  %v6310_v45 = vpop.eup %6309  ;;  %v7507_v29 = vpop.xlane.xlu0 %2803 }
 0x336   :  { %v1330_v7 = vmul.f32 %v6310_v45, %v7354_v46 }
 0x337   :  { %11880 = vst [vmem:[#allocation60_spill] sm:$0xff] %v7485_v38 }
 0x338   :  { %4587 = vrot.lane.b32.xlu0 %v7454_v21, %s6584_s3  ;;  %v1332_v58 = vsel %vm1331_vm1, %v7354_v46, %v1330_v7 }
 0x339   :  { %v6312_v45 = vpop.eup %6311  ;;  %v1335_v61 = vsel %vm1333_vm2, %v1334_v43, %v1332_v58  ;;  %v7516_v25 = vpop.xlane.xlu0 %1232 }
 0x33a   :  { %v1505_v7 = vmax.f32 %v1335_v61, 1e-12  ;;  %v7514_v6 = vmul.f32 %v6312_v45, %v7049_v37  ;;  %v6314_v46 = vpop.eup %6313  ;;  %vm1401_vm1 = vcmp.eq.f32.partialorder %v7516_v25, inf  ;;  %vm1403_vm2 = vcmp.eq.f32.partialorder %v7516_v25, 0.0 }
 0x33b   :  { %v1344_v61 = vmul.f32 %v6314_v46, %v7380_v49 }
 0x33c   :  { %1633 = vrot.lane.b32.xlu0 %v7478_v40, %s6580_s6  ;;  %11881 = vst [vmem:[#allocation61_spill] sm:$0xff] %v7514_v6  ;;  %6315 = vrcp.f32 %v1505_v7  ;;  %v1348_v7 = vand.u32 2147483648, %v7380_v49 }
 0x33d   :  { %v7524_v58 = vpop.xlane.xlu0 %2809  ;;  %6317 = vrsqrt.f32 %v7273_v48  ;;  %v1346_v43 = vsel %vm1345_vm5, %v7380_v49, %v1344_v61 }
 0x33e   :  { %6319 = vrsqrt.f32 %v7410_v34 }
 0x340   :  { %4047 = vrot.lane.b32.xlu0 %v7478_v40, %s6581_s15  ;;  %1627 = vrot.lane.b32.xlu1 %v7485_v38, %s6580_s6 }
 0x341   :  { %v7533_v45 = vpop.xlane.xlu0 %1238 }
 0x344   :  { %4175 = vrot.lane.b32.xlu0 %v7478_v40, %s6582_s16  ;;  %4041 = vrot.lane.b32.xlu1 %v7485_v38, %s6581_s15 }
 0x345   :  { %v7543_v61 = vpop.xlane.xlu0 %2815 }
 0x348   :  { %4463 = vrot.lane.b32.xlu0 %v7478_v40, %s6583_s17  ;;  %4169 = vrot.lane.b32.xlu1 %v7485_v38, %s6582_s16 }
 0x349   :  { %v6316_v46 = vpop.eup %6315  ;;  %v7551_v49 = vpop.xlane.xlu0 %1244 }
 0x34a   :  { %v7546_v12 = vmul.f32 %v6316_v46, %v7065_v47  ;;  %v6318_v51 = vpop.eup %6317 }
 0x34c   :  { %4591 = vrot.lane.b32.xlu0 %v7478_v40, %s6584_s3  ;;  %4457 = vrot.lane.b32.xlu1 %v7485_v38, %s6583_s17  ;;  %v7538_v40 = vpop.xlane.xlu1 %1223  ;;  %11883 = vst [vmem:[#allocation63_spill] sm:$0xff] %v7546_v12 }
 0x34d   :  { %11882 = vst [vmem:[#allocation62_spill] sm:$0xff] %v7538_v40  ;;  %v1362_v40 = vand.u32 2147483648, %v7410_v34 }
 0x350   :  { %1637 = vrot.lane.b32.xlu0 %v7514_v6, %s6580_s6  ;;  %4585 = vrot.lane.b32.xlu1 %v7485_v38, %s6584_s3  ;;  %v1349_v38 = vsel %vm1347_vm6, %v1348_v7, %v1346_v43  ;;  %v2801_v53 = vpop.xlane.xlu1 %2800  ;;  %v6320_v43 = vpop.eup %6319  ;;  %v1295_v7 = vmul.f32 %v6318_v51, %v7273_v48  ;;  %v1299_v51 = vand.u32 2147483648, %v7273_v48  ;;  %vm1415_vm6 = vcmp.eq.f32.partialorder %v7533_v45, inf }
 0x351   :  { %v1507_v62 = vmax.f32 %v1349_v38, 1e-12  ;;  %vm2861_vm7 = vcmp.eq.f32.partialorder %v7123_v27, %v2801_v53  ;;  %v1358_v46 = vmul.f32 %v6320_v43, %v7410_v34  ;;  %v2894_v53 = vsel %vm2860_vm8, %v7254_v24, 4  ;;  %v7568_v27 = vpop.xlane.xlu0 %2821 }
 0x352   :  { %v2895_v38 = vsel %vm2861_vm7, %v7254_v24, 4  ;;  %vm1417_vm7 = vcmp.eq.f32.partialorder %v7533_v45, 0.0  ;;  %vm1429_vm8 = vcmp.eq.f32.partialorder %v7551_v49, inf }
 0x353   :  { %6321 = vrcp.f32 %v1507_v62  ;;  %v7561_v62 = vsel %vm2747_vm3, %v2895_v38, 2147483647  ;;  %v1360_v43 = vsel %vm1359_vm10, %v7410_v34, %v1358_v46  ;;  %v7577_v38 = vsel %vm2747_vm3, %v2894_v53, 2147483647 }
 0x354   :  { %4051 = vrot.lane.b32.xlu0 %v7514_v6, %s6581_s15  ;;  %11884 = vst [vmem:[#allocation64_spill] sm:$0xff] %v7561_v62  ;;  %v3167_v31 = vshra.s32 %v7561_v62, 16  ;;  %6323 = vrsqrt.f32 %v7473_v13  ;;  %11885 = vst [vmem:[#allocation65_spill] sm:$0xff] %v7577_v38  ;;  %v1363_v63 = vsel %vm1361_vm12, %v1362_v40, %v1360_v43  ;;  %vm2862_vm10 = vcmp.eq.f32.partialorder %v7145_v44, %v7507_v29 }
 0x355   :  { %v7586_v36 = vpop.xlane.xlu0 %1250  ;;  %v1509_v53 = vmax.f32 %v1363_v63, 1e-12  ;;  %vm1310_vm12 = vcmp.eq.f32.partialorder %v7303_v4, inf }
 0x356   :  { %v7583_v62 = vcvt.s32.f32 %v3167_v31 }
 0x358   :  { %4179 = vrot.lane.b32.xlu0 %v7514_v6, %s6582_s16 }
 0x359   :  { %v7599_v34 = vpop.xlane.xlu0 %2827 }
 0x35c   :  { %4467 = vrot.lane.b32.xlu0 %v7514_v6, %s6583_s17 }
 0x35d   :  { %v7604_v31 = vpop.xlane.xlu0 %1256 }
 0x360   :  { %4595 = vrot.lane.b32.xlu0 %v7514_v6, %s6584_s3  ;;  %v1297_v6 = vsel %vm1296_vm9, %v7273_v48, %v1295_v7  ;;  %v6322_v47 = vpop.eup %6321  ;;  %v3152_v48 = vshra.s32 %v7577_v38, 16  ;;  %vm1431_vm9 = vcmp.eq.f32.partialorder %v7551_v49, 0.0 }
 0x361   :  { %v1300_v7 = vsel %vm1298_vm11, %v1299_v51, %v1297_v6  ;;  %v7592_v6 = vmul.f32 %v6322_v47, %v7081_v57  ;;  %v6324_v40 = vpop.eup %6323  ;;  %vm1443_vm11 = vcmp.eq.f32.partialorder %v7586_v36, inf }
 0x362   :  { %v1500_v46 = vmax.f32 %v1300_v7, 1e-12  ;;  %v7594_v51 = vcvt.s32.f32 %v3152_v48  ;;  %v1372_v63 = vmul.f32 %v6324_v40, %v7473_v13  ;;  %v1376_v7 = vand.u32 2147483648, %v7473_v13  ;;  %v7615_v48 = vpop.xlane.xlu0 %2833 }
 0x363   :  { %11886 = vst [vmem:[#allocation66_spill] sm:$0xff] %v7592_v6 }
 0x364   :  { %1641 = vrot.lane.b32.xlu0 %v7546_v12, %s6580_s6  ;;  %11887 = vst [vmem:[#allocation67_spill] sm:$0xff] %v7594_v51  ;;  %6325 = vrcp.f32 %v1500_v46  ;;  %v1374_v47 = vsel %vm1373_vm13, %v7473_v13, %v1372_v63  ;;  %vm1445_vm13 = vcmp.eq.f32.partialorder %v7586_v36, 0.0 }
 0x365   :  { %6327 = vrcp.f32 %v1509_v53  ;;  %v1377_v53 = vsel %vm1375_vm14, %v1376_v7, %v1374_v47  ;;  %vm1312_vm14 = vcmp.eq.f32.partialorder %v7303_v4, 0.0 }
 0x366   :  { %6329 = vrsqrt.f32 %v7492_v16  ;;  %v1511_v63 = vmax.f32 %v1377_v53, 1e-12  ;;  %v7629_v13 = vpop.xlane.xlu0 %1262  ;;  %v1390_v53 = vand.u32 2147483648, %v7492_v16 }
 0x368   :  { %4055 = vrot.lane.b32.xlu0 %v7546_v12, %s6581_s15  ;;  %6331 = vrcp.f32 %v1511_v63 }
 0x369   :  { %6333 = vrsqrt.f32 %v7516_v25 }
 0x36a   :  { %v7637_v7 = vpop.xlane.xlu0 %2839 }
 0x36b   :  { %11891 = vst [vmem:[#allocation71_spill] sm:$0xff] %v7637_v7 }
 0x36c   :  { %4183 = vrot.lane.b32.xlu0 %v7546_v12, %s6582_s16 }
 0x370   :  { %4471 = vrot.lane.b32.xlu0 %v7546_v12, %s6583_s17 }
 0x371   :  { %v6326_v43 = vpop.eup %6325 }
 0x372   :  { %v6328_v46 = vpop.eup %6327  ;;  %v7620_v40 = vmul.f32 %v6326_v43, %v7009_v11  ;;  %v7653_v11 = vpop.xlane.xlu0 %1268 }
 0x373   :  { %v6330_v47 = vpop.eup %6329 }
 0x374   :  { %4599 = vrot.lane.b32.xlu0 %v7546_v12, %s6584_s3  ;;  %3170 = vmin.xlane.f32.xlu1 %v7583_v62  ;;  %11888 = vst [vmem:[#allocation68_spill] sm:$0xff] %v7620_v40  ;;  %v7625_v12 = vmul.f32 %v6328_v46, %v7097_v5  ;;  %v1386_v46 = vmul.f32 %v6330_v47, %v7492_v16 }
 0x375   :  { %v6332_v47 = vpop.eup %6331 }
 0x376   :  { %11889 = vst [vmem:[#allocation69_spill] sm:$0xff] %v7625_v12  ;;  %v1388_v63 = vsel %vm1387_vm15, %v7492_v16, %v1386_v46  ;;  %vm1457_vm15 = vcmp.eq.f32.partialorder %v7604_v31, inf }
 0x377   :  { %v1391_v38 = vsel %vm1389_vm0, %v1390_v53, %v1388_v63  ;;  %v6334_v53 = vpop.eup %6333  ;;  %vm1459_vm0 = vcmp.eq.f32.partialorder %v7604_v31, 0.0 }
 0x378   :  { %1645 = vrot.lane.b32.xlu0 %v7592_v6, %s6580_s6  ;;  %3155 = vmin.xlane.f32.xlu1 %v7594_v51  ;;  %v7627_v51 = vpop.xlane.xlu1 %1229  ;;  %v1513_v16 = vmax.f32 %v1391_v38, 1e-12  ;;  %v1400_v38 = vmul.f32 %v6334_v53, %v7516_v25 }
 0x379   :  { %11890 = vst [vmem:[#allocation70_spill] sm:$0xff] %v7627_v51 }
 0x37a   :  { %6335 = vrcp.f32 %v1513_v16  ;;  %v1402_v16 = vsel %vm1401_vm1, %v7516_v25, %v1400_v38  ;;  %vm1471_vm1 = vcmp.eq.f32.partialorder %v7629_v13, inf }
 0x37b   :  { %6337 = vrsqrt.f32 %v7533_v45 }
 0x37c   :  { %4059 = vrot.lane.b32.xlu0 %v7592_v6, %s6581_s15  ;;  %v2807_v43 = vpop.xlane.xlu1 %2806 }
 0x37d   :  { %vm2863_vm5 = vcmp.eq.f32.partialorder %v7141_v41, %v2807_v43 }
 0x37e   :  { %v7659_v5 = vpop.xlane.xlu0 %2960  ;;  %v2897_v38 = vsel %vm2863_vm5, %v7254_v24, 4  ;;  %vm1485_vm5 = vcmp.eq.f32.partialorder %v7653_v11, inf }
 0x37f   :  { %11893 = vst [vmem:[#allocation73_spill] sm:$0xff] %v7659_v5 }
 0x380   :  { %4187 = vrot.lane.b32.xlu0 %v7592_v6, %s6582_s16 }
 0x384   :  { %4475 = vrot.lane.b32.xlu0 %v7592_v6, %s6583_s17 }
 0x387   :  { %v6336_v53 = vpop.eup %6335 }
 0x388   :  { %4603 = vrot.lane.b32.xlu0 %v7592_v6, %s6584_s3  ;;  %v7650_v6 = vpop.xlane.xlu1 %1235  ;;  %v7701_v51 = vmul.f32 %v6336_v53, %v7129_v59 }
 0x389   :  { %1631 = vrot.lane.b32.xlu1 %v7620_v40, %s6580_s6  ;;  %11892 = vst [vmem:[#allocation72_spill] sm:$0xff] %v7650_v6  ;;  %v7666_v6 = vmul.f32 %v6332_v47, %v7113_v19 }
 0x38a   :  { %v7668_v7 = vpop.permute.xlu0 %1625  ;;  %11900 = vst [vmem:[#allocation80_spill] sm:$0xff] %v7701_v51 }
 0x38b   :  { %11894 = vst [vmem:[#allocation74_spill] sm:$0xff] %v7666_v6 }
 0x38c   :  { %1649 = vrot.lane.b32.xlu0 %v7625_v12, %s6580_s6  ;;  %v7663_v46 = vpop.xlane.xlu1 %2812 }
 0x38d   :  { %4045 = vrot.lane.b32.xlu1 %v7620_v40, %s6581_s15 }
 0x38e   :  { %v7676_v63 = vpop.permute.xlu0 %4039 }
 0x38f   :  { %11896 = vst [vmem:[#allocation76_spill] sm:$0xff] %v7676_v63 }
 0x390   :  { %4063 = vrot.lane.b32.xlu0 %v7625_v12, %s6581_s15 }
 0x391   :  { %4173 = vrot.lane.b32.xlu1 %v7620_v40, %s6582_s16 }
 0x392   :  { %v7688_v5 = vpop.permute.xlu0 %4167 }
 0x393   :  { %11897 = vst [vmem:[#allocation77_spill] sm:$0xff] %v7688_v5  ;;  %v7706_v5 = vsel %vm2747_vm3, %v2897_v38, 2147483647 }
 0x394   :  { %4191 = vrot.lane.b32.xlu0 %v7625_v12, %s6582_s16  ;;  %11901 = vst [vmem:[#allocation81_spill] sm:$0xff] %v7706_v5 }
 0x395   :  { %4461 = vrot.lane.b32.xlu1 %v7620_v40, %s6583_s17 }
 0x398   :  { %4479 = vrot.lane.b32.xlu0 %v7625_v12, %s6583_s17 }
 0x399   :  { %4589 = vrot.lane.b32.xlu1 %v7620_v40, %s6584_s3  ;;  %v7672_v40 = vpop.xlane.xlu1 %1241 }
 0x39a   :  { %11895 = vst [vmem:[#allocation75_spill] sm:$0xff] %v7672_v40 }
 0x39c   :  { %4607 = vrot.lane.b32.xlu0 %v7625_v12, %s6584_s3  ;;  %v1404_v12 = vand.u32 2147483648, %v7516_v25  ;;  %v7698_v25 = vpop.permute.xlu0 %4455 }
 0x39d   :  { %v7682_v47 = vpop.xlane.xlu1 %2818  ;;  %11899 = vst [vmem:[#allocation79_spill] sm:$0xff] %v7698_v25 }
 0x39e   :  { %v1405_v63 = vsel %vm1403_vm2, %v1404_v12, %v1402_v16  ;;  %v6338_v16 = vpop.eup %6337  ;;  %vm1473_vm2 = vcmp.eq.f32.partialorder %v7629_v13, 0.0 }
 0x39f   :  { %v1515_v40 = vmax.f32 %v1405_v63, 1e-12  ;;  %v3197_v63 = vshra.s32 %v7706_v5, 16  ;;  %v1414_v53 = vmul.f32 %v6338_v16, %v7533_v45 }
 0x3a0   :  { %1653 = vrot.lane.b32.xlu0 %v7666_v6, %s6580_s6  ;;  %v7710_v43 = vpop.permute.xlu0 %4583 }
 0x3a1   :  { %v7693_v19 = vpop.xlane.xlu1 %1247  ;;  %6339 = vrcp.f32 %v1515_v40  ;;  %11902 = vst [vmem:[#allocation82_spill] sm:$0xff] %v7710_v43  ;;  %v7720_v38 = vcvt.s32.f32 %v3197_v63  ;;  %v1418_v43 = vand.u32 2147483648, %v7533_v45 }
 0x3a2   :  { %11898 = vst [vmem:[#allocation78_spill] sm:$0xff] %v7693_v19  ;;  %6341 = vrsqrt.f32 %v7551_v49 }
 0x3a3   :  { %11904 = vst [vmem:[#allocation84_spill] sm:$0xff] %v7720_v38 }
 0x3a4   :  { %4067 = vrot.lane.b32.xlu0 %v7666_v6, %s6581_s15  ;;  %v7723_v40 = vpop.permute.xlu0 %4043 }
 0x3a5   :  { %v7708_v12 = vpop.xlane.xlu1 %2824  ;;  %11905 = vst [vmem:[#allocation85_spill] sm:$0xff] %v7723_v40 }
 0x3a8   :  { %4195 = vrot.lane.b32.xlu0 %v7666_v6, %s6582_s16 }
 0x3a9   :  { %v7716_v25 = vpop.xlane.xlu1 %1253 }
 0x3aa   :  { %11903 = vst [vmem:[#allocation83_spill] sm:$0xff] %v7716_v25  ;;  %v7734_v25 = vpop.permute.xlu0 %4171 }
 0x3ab   :  { %11906 = vst [vmem:[#allocation86_spill] sm:$0xff] %v7734_v25 }
 0x3ac   :  { %4483 = vrot.lane.b32.xlu0 %v7666_v6, %s6583_s17 }
 0x3ad   :  { %v7732_v16 = vpop.xlane.xlu1 %2830 }
 0x3ae   :  { %v6340_v63 = vpop.eup %6339 }
 0x3af   :  { %v7739_v41 = vmul.f32 %v6340_v63, %v7145_v44 }
 0x3b0   :  { %4611 = vrot.lane.b32.xlu0 %v7666_v6, %s6584_s3  ;;  %v1416_v6 = vsel %vm1415_vm6, %v7533_v45, %v1414_v53  ;;  %v7745_v45 = vpop.permute.xlu0 %4459  ;;  %vm1487_vm6 = vcmp.eq.f32.partialorder %v7653_v11, 0.0 }
 0x3b1   :  { %v1419_v59 = vsel %vm1417_vm7, %v1418_v43, %v1416_v6  ;;  %11907 = vst [vmem:[#allocation87_spill] sm:$0xff] %v7739_v41  ;;  %v7741_v53 = vpop.xlane.xlu1 %1259  ;;  %11909 = vst [vmem:[#allocation89_spill] sm:$0xff] %v7745_v45  ;;  %v6342_v6 = vpop.eup %6341  ;;  %vm2865_vm7 = vcmp.eq.f32.partialorder %v7157_v54, %v7663_v46 }
 0x3b2   :  { %v1517_v40 = vmax.f32 %v1419_v59, 1e-12  ;;  %11908 = vst [vmem:[#allocation88_spill] sm:$0xff] %v7741_v53  ;;  %v1428_v59 = vmul.f32 %v6342_v6, %v7551_v49 }
 0x3b4   :  { %1657 = vrot.lane.b32.xlu0 %v7701_v51, %s6580_s6  ;;  %6343 = vrcp.f32 %v1517_v40  ;;  %v7754_v63 = vpop.permute.xlu0 %4587  ;;  %v1432_v40 = vand.u32 2147483648, %v7551_v49  ;;  %v1430_v45 = vsel %vm1429_vm8, %v7551_v49, %v1428_v59  ;;  %vm2864_vm8 = vcmp.eq.f32.partialorder %v7161_v56, %v7524_v58 }
 0x3b5   :  { %v7749_v43 = vpop.xlane.xlu1 %2836  ;;  %11910 = vst [vmem:[#allocation90_spill] sm:$0xff] %v7754_v63  ;;  %6345 = vrsqrt.f32 %v7303_v4 }
 0x3b6   :  { %6347 = vrsqrt.f32 %v7586_v36 }
 0x3b8   :  { %4071 = vrot.lane.b32.xlu0 %v7701_v51, %s6581_s15  ;;  %v7768_v6 = vpop.permute.xlu0 %1633 }
 0x3b9   :  { %v7764_v25 = vpop.xlane.xlu1 %1265 }
 0x3ba   :  { %11911 = vst [vmem:[#allocation91_spill] sm:$0xff] %v7764_v25 }
 0x3bc   :  { %4199 = vrot.lane.b32.xlu0 %v7701_v51, %s6582_s16  ;;  %v7777_v49 = vpop.permute.xlu0 %4047 }
 0x3bd   :  { %3200 = vmin.xlane.f32.xlu1 %v7720_v38  ;;  %v7772_v53 = vpop.xlane.xlu1 %2842  ;;  %11914 = vst [vmem:[#allocation94_spill] sm:$0xff] %v7777_v49 }
 0x3be   :  { %11912 = vst [vmem:[#allocation92_spill] sm:$0xff] %v7772_v53 }
 0x3c0   :  { %4487 = vrot.lane.b32.xlu0 %v7701_v51, %s6583_s17 }
 0x3c1   :  { %v6344_v63 = vpop.eup %6343  ;;  %v7781_v19 = vpop.xlane.xlu1 %1271 }
 0x3c2   :  { %v7775_v59 = vmul.f32 %v6344_v63, %v7161_v56  ;;  %v6346_v25 = vpop.eup %6345  ;;  %11915 = vst [vmem:[#allocation95_spill] sm:$0xff] %v7781_v19 }
 0x3c4   :  { %4615 = vrot.lane.b32.xlu0 %v7701_v51, %s6584_s3  ;;  %v1433_v51 = vsel %vm1431_vm9, %v1432_v40, %v1430_v45  ;;  %11913 = vst [vmem:[#allocation93_spill] sm:$0xff] %v7775_v59  ;;  %v6348_v45 = vpop.eup %6347  ;;  %v7785_v40 = vpop.permute.xlu0 %4175  ;;  %vm1324_vm9 = vcmp.eq.f32.partialorder %v7321_v15, inf }
 0x3c5   :  { %11916 = vst [vmem:[#allocation96_spill] sm:$0xff] %v7785_v40  ;;  %v1442_v63 = vmul.f32 %v6348_v45, %v7586_v36  ;;  %v7791_v49 = vpop.xlane.xlu1 %2930  ;;  %v2896_v40 = vsel %vm2862_vm10, %v7254_v24, 4  ;;  %vm1326_vm10 = vcmp.eq.f32.partialorder %v7321_v15, 0.0 }
 0x3c6   :  { %11917 = vst [vmem:[#allocation97_spill] sm:$0xff] %v7791_v49  ;;  %v7812_v44 = vsel %vm2747_vm3, %v2896_v40, 2147483647 }
 0x3c7   :  { %v1444_v29 = vsel %vm1443_vm11, %v7586_v36, %v1442_v63  ;;  %11920 = vst [vmem:[#allocation100_spill] sm:$0xff] %v7812_v44 }
 0x3c8   :  { %1661 = vrot.lane.b32.xlu0 %v7739_v41, %s6580_s6  ;;  %v7806_v49 = vpop.permute.xlu0 %4463 }
 0x3c9   :  { %v7804_v45 = vpop.xlane.xlu1 %2915  ;;  %11919 = vst [vmem:[#allocation99_spill] sm:$0xff] %v7806_v49 }
 0x3ca   :  { %11918 = vst [vmem:[#allocation98_spill] sm:$0xff] %v7804_v45  ;;  %v3182_v45 = vshra.s32 %v7812_v44, 16 }
 0x3cc   :  { %4075 = vrot.lane.b32.xlu0 %v7739_v41, %s6581_s15  ;;  %v7819_v5 = vpop.permute.xlu0 %4591 }
 0x3cd   :  { %v7814_v63 = vpop.xlane.xlu1 %2945  ;;  %11922 = vst [vmem:[#allocation102_spill] sm:$0xff] %v7819_v5 }
 0x3ce   :  { %1629 = vrot.lane.b32.xlu1 %v7454_v21, %s6580_s6  ;;  %v1519_v21 = vmax.f32 %v1433_v51, 1e-12  ;;  %v1309_v51 = vmul.f32 %v6346_v25, %v7303_v4  ;;  %v1446_v25 = vand.u32 2147483648, %v7586_v36  ;;  %11921 = vst [vmem:[#allocation101_spill] sm:$0xff] %v7814_v63 }
 0x3d0   :  { %4203 = vrot.lane.b32.xlu0 %v7739_v41, %s6582_s16  ;;  %6349 = vrcp.f32 %v1519_v21  ;;  %v1311_v21 = vsel %vm1310_vm12, %v7303_v4, %v1309_v51  ;;  %v1447_v38 = vsel %vm1445_vm13, %v1446_v25, %v1444_v29  ;;  %v7831_v40 = vpop.permute.xlu0 %1637  ;;  %v1460_v25 = vand.u32 2147483648, %v7604_v31 }
 0x3d1   :  { %6351 = vrsqrt.f32 %v7604_v31  ;;  %v1521_v49 = vmax.f32 %v1447_v38, 1e-12  ;;  %vm2867_vm12 = vcmp.eq.f32.partialorder %v7173_v3, %v7682_v47  ;;  %vm2866_vm13 = vcmp.eq.f32.partialorder %v7177_v32, %v7543_v61 }
 0x3d4   :  { %4491 = vrot.lane.b32.xlu0 %v7739_v41, %s6583_s17 }
 0x3d8   :  { %4619 = vrot.lane.b32.xlu0 %v7739_v41, %s6584_s3  ;;  %v1313_v41 = vand.u32 2147483648, %v7303_v4  ;;  %v7828_v4 = vpop.xlane.xlu1 %2990 }
 0x3d9   :  { %11925 = vst [vmem:[#allocation105_spill] sm:$0xff] %v7828_v4 }
 0x3da   :  { %v1314_v51 = vsel %vm1312_vm14, %v1313_v41, %v1311_v21  ;;  %v7826_v41 = vcvt.s32.f32 %v3182_v45  ;;  %vm1338_vm14 = vcmp.eq.f32.partialorder %v7348_v35, inf }
 0x3db   :  { %v1502_v36 = vmax.f32 %v1314_v51, 1e-12 }
 0x3dc   :  { %1665 = vrot.lane.b32.xlu0 %v7775_v59, %s6580_s6  ;;  %11924 = vst [vmem:[#allocation104_spill] sm:$0xff] %v7826_v41  ;;  %v7836_v21 = vpop.xlane.xlu1 %2975 }
 0x3dd   :  { %v6350_v19 = vpop.eup %6349  ;;  %6353 = vrcp.f32 %v1502_v36  ;;  %11926 = vst [vmem:[#allocation106_spill] sm:$0xff] %v7836_v21 }
 0x3de   :  { %v7822_v53 = vmul.f32 %v6350_v19, %v7177_v32  ;;  %6355 = vrcp.f32 %v1521_v49  ;;  %v6352_v38 = vpop.eup %6351  ;;  %v7841_v49 = vpop.permute.xlu0 %4051 }
 0x3df   :  { %v1456_v19 = vmul.f32 %v6352_v38, %v7604_v31  ;;  %11927 = vst [vmem:[#allocation107_spill] sm:$0xff] %v7841_v49  ;;  %6357 = vrsqrt.f32 %v7629_v13 }
 0x3e0   :  { %4079 = vrot.lane.b32.xlu0 %v7775_v59, %s6581_s15  ;;  %11923 = vst [vmem:[#allocation103_spill] sm:$0xff] %v7822_v53  ;;  %v7849_v51 = vpop.xlane.xlu1 %3020 }
 0x3e1   :  { %v1458_v29 = vsel %vm1457_vm15, %v7604_v31, %v1456_v19  ;;  %11928 = vst [vmem:[#allocation108_spill] sm:$0xff] %v7849_v51  ;;  %vm3022_vm11 = vcmp.eq.f32.partialorder %v7338_v0, %v7849_v51  ;;  %vm1340_vm15 = vcmp.eq.f32.partialorder %v7348_v35, 0.0 }
 0x3e2   :  { %v1461_v38 = vsel %vm1459_vm0, %v1460_v25, %v1458_v29  ;;  %v7851_v5 = vpop.permute.xlu0 %4179 }
 0x3e3   :  { %11929 = vst [vmem:[#allocation109_spill] sm:$0xff] %v7851_v5  ;;  %v1523_v49 = vmax.f32 %v1461_v38, 1e-12 }
 0x3e4   :  { %4207 = vrot.lane.b32.xlu0 %v7775_v59, %s6582_s16 }
 0x3e5   :  { %6359 = vrcp.f32 %v1523_v49  ;;  %v1474_v49 = vand.u32 2147483648, %v7629_v13 }
 0x3e6   :  { %v7867_v25 = vpop.permute.xlu0 %4467  ;;  %6361 = vrsqrt.f32 %v7653_v11 }
 0x3e7   :  { %11933 = vst [vmem:[#allocation113_spill] sm:$0xff] %v7867_v25 }
 0x3e8   :  { %4495 = vrot.lane.b32.xlu0 %v7775_v59, %s6583_s17 }
 0x3ea   :  { %v6354_v45 = vpop.eup %6353  ;;  %v7876_v38 = vpop.permute.xlu0 %4595 }
 0x3eb   :  { %v6356_v36 = vpop.eup %6355  ;;  %v7856_v19 = vmul.f32 %v6354_v45, %v7027_v22  ;;  %11935 = vst [vmem:[#allocation115_spill] sm:$0xff] %v7876_v38 }
 0x3ec   :  { %4623 = vrot.lane.b32.xlu0 %v7775_v59, %s6584_s3  ;;  %v7859_v31 = vmul.f32 %v6356_v36, %v7193_v23  ;;  %v7861_v59 = vpop.xlane.xlu1 %3005  ;;  %v6358_v29 = vpop.eup %6357 }
 0x3ed   :  { %11930 = vst [vmem:[#allocation110_spill] sm:$0xff] %v7856_v19  ;;  %11932 = vst [vmem:[#allocation112_spill] sm:$0xff] %v7861_v59  ;;  %v1470_v36 = vmul.f32 %v6358_v29, %v7629_v13 }
 0x3ee   :  { %11931 = vst [vmem:[#allocation111_spill] sm:$0xff] %v7859_v31  ;;  %v7893_v29 = vpop.permute.xlu0 %1641 }
 0x3ef   :  { %v1472_v25 = vsel %vm1471_vm1, %v7629_v13, %v1470_v36  ;;  %vm2869_vm1 = vcmp.eq.f32.partialorder %v7189_v20, %v7708_v12 }
 0x3f0   :  { %1669 = vrot.lane.b32.xlu0 %v7822_v53, %s6580_s6  ;;  %v7873_v45 = vpop.xlane.xlu1 %3050 }
 0x3f1   :  { %11934 = vst [vmem:[#allocation114_spill] sm:$0xff] %v7873_v45  ;;  %vm3052_vm0 = vcmp.eq.f32.partialorder %v7367_v17, %v7873_v45 }
 0x3f2   :  { %3185 = vmin.xlane.f32.xlu1 %v7826_v41  ;;  %v6360_v38 = vpop.eup %6359  ;;  %v7904_v59 = vpop.permute.xlu0 %4055 }
 0x3f3   :  { %v7902_v22 = vmul.f32 %v6360_v38, %v7209_v39  ;;  %11939 = vst [vmem:[#allocation119_spill] sm:$0xff] %v7904_v59 }
 0x3f4   :  { %4083 = vrot.lane.b32.xlu0 %v7822_v53, %s6581_s15  ;;  %v7887_v5 = vpop.xlane.xlu1 %3035 }
 0x3f5   :  { %11936 = vst [vmem:[#allocation116_spill] sm:$0xff] %v7887_v5  ;;  %11938 = vst [vmem:[#allocation118_spill] sm:$0xff] %v7902_v22 }
 0x3f8   :  { %4211 = vrot.lane.b32.xlu0 %v7822_v53, %s6582_s16  ;;  %v7899_v36 = vpop.xlane.xlu1 %3080 }
 0x3f9   :  { %11937 = vst [vmem:[#allocation117_spill] sm:$0xff] %v7899_v36 }
 0x3fc   :  { %4499 = vrot.lane.b32.xlu0 %v7822_v53, %s6583_s17  ;;  %v7908_v21 = vpop.xlane.xlu1 %3065 }
 0x3fd   :  { %11940 = vst [vmem:[#allocation120_spill] sm:$0xff] %v7908_v21 }
 0x400   :  { %4627 = vrot.lane.b32.xlu0 %v7822_v53, %s6584_s3  ;;  %v1475_v53 = vsel %vm1473_vm2, %v1474_v49, %v1472_v25  ;;  %v6362_v25 = vpop.eup %6361  ;;  %v7919_v38 = vpop.xlane.xlu1 %3110  ;;  %vm2868_vm2 = vcmp.eq.f32.partialorder %v7193_v23, %v7568_v27 }
 0x401   :  { %v1525_v13 = vmax.f32 %v1475_v53, 1e-12  ;;  %v7913_v53 = vpop.permute.xlu0 %4183  ;;  %v1484_v49 = vmul.f32 %v6362_v25, %v7653_v11  ;;  %11942 = vst [vmem:[#allocation122_spill] sm:$0xff] %v7919_v38  ;;  %v2902_v12 = vsel %vm2868_vm2, %v7254_v24, 4  ;;  %vm2872_vm2 = vcmp.eq.f32.partialorder %v7225_v55, %v7615_v48 }
 0x402   :  { %11941 = vst [vmem:[#allocation121_spill] sm:$0xff] %v7913_v53 }
 0x403   :  { %1635 = vrot.lane.b32.xlu1 %v7856_v19, %s6580_s6  ;;  %6363 = vrcp.f32 %v1525_v13  ;;  %v1488_v13 = vand.u32 2147483648, %v7653_v11  ;;  %v1486_v59 = vsel %vm1485_vm5, %v7653_v11, %v1484_v49  ;;  %vm1352_vm5 = vcmp.eq.f32.partialorder %v7375_v8, inf }
 0x404   :  { %1673 = vrot.lane.b32.xlu0 %v7859_v31, %s6580_s6  ;;  %6365 = vrsqrt.f32 %v7321_v15 }
 0x405   :  { %v1489_v25 = vsel %vm1487_vm6, %v1488_v13, %v1486_v59  ;;  %vm1354_vm6 = vcmp.eq.f32.partialorder %v7375_v8, 0.0 }
 0x406   :  { %v1527_v63 = vmax.f32 %v1489_v25, 1e-12 }
 0x407   :  { %4049 = vrot.lane.b32.xlu1 %v7856_v19, %s6581_s15 }
 0x408   :  { %4087 = vrot.lane.b32.xlu0 %v7859_v31, %s6581_s15  ;;  %6367 = vrcp.f32 %v1527_v63 }
 0x40b   :  { %4177 = vrot.lane.b32.xlu1 %v7856_v19, %s6582_s16 }
 0x40c   :  { %4215 = vrot.lane.b32.xlu0 %v7859_v31, %s6582_s16 }
 0x40f   :  { %4465 = vrot.lane.b32.xlu1 %v7856_v19, %s6583_s17 }
 0x410   :  { %4503 = vrot.lane.b32.xlu0 %v7859_v31, %s6583_s17  ;;  %v6364_v53 = vpop.eup %6363 }
 0x411   :  { %v6366_v4 = vpop.eup %6365  ;;  %v7937_v11 = vmul.f32 %v6364_v53, %v7225_v55  ;;  %v2898_v53 = vsel %vm2864_vm8, %v7254_v24, 4  ;;  %vm3082_vm8 = vcmp.eq.f32.partialorder %v7394_v50, %v7899_v36 }
 0x412   :  { %v1323_v59 = vmul.f32 %v6366_v4, %v7321_v15  ;;  %v7961_v63 = vsel %vm2747_vm3, %v2898_v53, 2147483647 }
 0x413   :  { %4593 = vrot.lane.b32.xlu1 %v7856_v19, %s6584_s3  ;;  %v7928_v19 = vpop.xlane.xlu1 %3095  ;;  %11946 = vst [vmem:[#allocation126_spill] sm:$0xff] %v7937_v11 }
 0x414   :  { %4631 = vrot.lane.b32.xlu0 %v7859_v31, %s6584_s3  ;;  %v7924_v31 = vpop.permute.xlu0 %4471  ;;  %11944 = vst [vmem:[#allocation124_spill] sm:$0xff] %v7928_v19  ;;  %v1325_v4 = vsel %vm1324_vm9, %v7321_v15, %v1323_v59  ;;  %v3212_v59 = vshra.s32 %v7961_v63, 16 }
 0x415   :  { %11943 = vst [vmem:[#allocation123_spill] sm:$0xff] %v7924_v31  ;;  %v2899_v31 = vsel %vm2865_vm7, %v7254_v24, 4  ;;  %v6368_v53 = vpop.eup %6367  ;;  %vm3037_vm7 = vcmp.eq.f32.partialorder %v7378_v2, %v7887_v5 }
 0x416   :  { %v7948_v46 = vsel %vm2747_vm3, %v2899_v31, 2147483647 }
 0x417   :  { %v7945_v13 = vpop.xlane.xlu1 %3140  ;;  %v3227_v58 = vshra.s32 %v7948_v46, 16 }
 0x418   :  { %1677 = vrot.lane.b32.xlu0 %v7902_v22, %s6580_s6  ;;  %v7934_v49 = vpop.permute.xlu0 %4599  ;;  %11947 = vst [vmem:[#allocation127_spill] sm:$0xff] %v7945_v13 }
 0x419   :  { %11945 = vst [vmem:[#allocation125_spill] sm:$0xff] %v7934_v49  ;;  %v1327_v49 = vand.u32 2147483648, %v7321_v15  ;;  %v7969_v41 = vcvt.s32.f32 %v3227_v58  ;;  %v7985_v58 = vmul.f32 %v6368_v53, %v7241_v9 }
 0x41b   :  { %v1328_v31 = vsel %vm1326_vm10, %v1327_v49, %v1325_v4  ;;  %v7977_v49 = vcvt.s32.f32 %v3212_v59  ;;  %11951 = vst [vmem:[#allocation131_spill] sm:$0xff] %v7985_v58  ;;  %vm2870_vm10 = vcmp.eq.f32.partialorder %v7209_v39, %v7599_v34  ;;  %v11977_v34 = vld [vmem:[#allocation48_spill] sm:$0xff] }
 0x41c   :  { %4091 = vrot.lane.b32.xlu0 %v7902_v22, %s6581_s15  ;;  %v7952_v25 = vpop.permute.xlu0 %1645  ;;  %v1504_v44 = vmax.f32 %v1328_v31, 1e-12 }
 0x41e   :  { %6369 = vrcp.f32 %v1504_v44 }
 0x41f   :  { %6371 = vrsqrt.f32 %v7348_v35 }
 0x420   :  { %4219 = vrot.lane.b32.xlu0 %v7902_v22, %s6582_s16  ;;  %v7967_v56 = vpop.permute.xlu0 %4059 }
 0x421   :  { %11949 = vst [vmem:[#allocation129_spill] sm:$0xff] %v7967_v56 }
 0x424   :  { %4507 = vrot.lane.b32.xlu0 %v7902_v22, %s6583_s17  ;;  %v7979_v4 = vpop.permute.xlu0 %4187 }
 0x425   :  { %11950 = vst [vmem:[#allocation130_spill] sm:$0xff] %v7979_v4 }
 0x428   :  { %4635 = vrot.lane.b32.xlu0 %v7902_v22, %s6584_s3  ;;  %v7963_v22 = vpop.xlane.xlu1 %3125  ;;  %v7991_v56 = vpop.permute.xlu0 %4475 }
 0x429   :  { %11948 = vst [vmem:[#allocation128_spill] sm:$0xff] %v7963_v22  ;;  %11953 = vst [vmem:[#allocation133_spill] sm:$0xff] %v7991_v56 }
 0x42b   :  { %v6370_v59 = vpop.eup %6369 }
 0x42c   :  { %1681 = vrot.lane.b32.xlu0 %v7937_v11, %s6580_s6  ;;  %v7975_v15 = vpop.permute.xlu1 %1627  ;;  %v7997_v4 = vpop.permute.xlu0 %4603  ;;  %v8002_v53 = vmul.f32 %v6370_v59, %v7041_v30  ;;  %v1721_v59 = vmul.f32 %v7668_v7, %v7006_v10 }
 0x42d   :  { %11955 = vst [vmem:[#allocation135_spill] sm:$0xff] %v7997_v4  ;;  %v6372_v30 = vpop.eup %6371 }
 0x42e   :  { %11956 = vst [vmem:[#allocation136_spill] sm:$0xff] %v8002_v53 }
 0x430   :  { %4095 = vrot.lane.b32.xlu0 %v7937_v11, %s6581_s15  ;;  %v7987_v31 = vpop.permute.xlu1 %4041  ;;  %v8010_v56 = vpop.permute.xlu0 %1649 }
 0x431   :  { %11952 = vst [vmem:[#allocation132_spill] sm:$0xff] %v7987_v31 }
 0x434   :  { %4223 = vrot.lane.b32.xlu0 %v7937_v11, %s6582_s16  ;;  %v7995_v44 = vpop.permute.xlu1 %4169 }
 0x435   :  { %11954 = vst [vmem:[#allocation134_spill] sm:$0xff] %v7995_v44 }
 0x437   :  { %3230 = vmin.xlane.f32.xlu1 %v7969_v41 }
 0x438   :  { %4511 = vrot.lane.b32.xlu0 %v7937_v11, %s6583_s17  ;;  %v8004_v31 = vpop.permute.xlu1 %4457 }
 0x439   :  { %11957 = vst [vmem:[#allocation137_spill] sm:$0xff] %v8004_v31  ;;  %v8020_v31 = vpop.permute.xlu0 %4063 }
 0x43a   :  { %11959 = vst [vmem:[#allocation139_spill] sm:$0xff] %v8020_v31 }
 0x43b   :  { %3215 = vmin.xlane.f32.xlu1 %v7977_v49 }
 0x43c   :  { %4639 = vrot.lane.b32.xlu0 %v7937_v11, %s6584_s3  ;;  %v8018_v4 = vpop.permute.xlu1 %4585 }
 0x43d   :  { %11958 = vst [vmem:[#allocation138_spill] sm:$0xff] %v8018_v4 }
 0x440   :  { %1685 = vrot.lane.b32.xlu0 %v7985_v58, %s6580_s6  ;;  %v8025_v44 = vpop.xlane.xlu1 %3170 }
 0x441   :  { %11960 = vst [vmem:[#allocation140_spill] sm:$0xff] %v8025_v44 }
 0x444   :  { %4099 = vrot.lane.b32.xlu0 %v7985_v58, %s6581_s15 }
 0x448   :  { %4227 = vrot.lane.b32.xlu0 %v7985_v58, %s6582_s16 }
 0x44c   :  { %4515 = vrot.lane.b32.xlu0 %v7985_v58, %s6583_s17  ;;  %1639 = vrot.lane.b32.xlu1 %v8002_v53, %s6580_s6 }
 0x450   :  { %4643 = vrot.lane.b32.xlu0 %v7985_v58, %s6584_s3  ;;  %4053 = vrot.lane.b32.xlu1 %v8002_v53, %s6581_s15  ;;  %v8029_v58 = vpop.xlane.xlu1 %3155 }
 0x451   :  { %11961 = vst [vmem:[#allocation141_spill] sm:$0xff] %v8029_v58 }
 0x454   :  { %1785 = vrot.lane.b32.xlu0 %v1721_v59, %s6585_s18  ;;  %4181 = vrot.lane.b32.xlu1 %v8002_v53, %s6582_s16  ;;  %v8033_v7 = vpop.permute.xlu1 %1631  ;;  %v3016_v59 = vand.u32 65535, %v7326_v28  ;;  %v1337_v28 = vmul.f32 %v6372_v30, %v7348_v35 }
 0x455   :  { %11962 = vst [vmem:[#allocation142_spill] sm:$0xff] %v8033_v7 }
 0x456   :  { %v3018_v10 = vcvt.s32.f32 %v3016_v59  ;;  %v1339_v47 = vsel %vm1338_vm14, %v7348_v35, %v1337_v28 }
 0x458   :  { %4469 = vrot.lane.b32.xlu1 %v8002_v53, %s6583_s17  ;;  %v8036_v31 = vpop.permute.xlu1 %4045  ;;  %v3023_v11 = vsel %vm3022_vm11, %v3018_v10, inf  ;;  %v2900_v10 = vsel %vm2866_vm13, %v7254_v24, 4  ;;  %vm1366_vm11 = vcmp.eq.f32.partialorder %v7405_v60, inf }
 0x459   :  { %11963 = vst [vmem:[#allocation143_spill] sm:$0xff] %v8036_v31  ;;  %v2901_v31 = vsel %vm2867_vm12, %v7254_v24, 4  ;;  %v8065_v30 = vsel %vm2747_vm3, %v2900_v10, 2147483647  ;;  %vm1368_vm12 = vcmp.eq.f32.partialorder %v7405_v60, 0.0 }
 0x45a   :  { %v8054_v0 = vsel %vm2747_vm3, %v2901_v31, 2147483647 }
 0x45c   :  { %4597 = vrot.lane.b32.xlu1 %v8002_v53, %s6584_s3  ;;  %v8039_v4 = vpop.permute.xlu1 %4173  ;;  %v8045_v53 = vpop.permute.xlu0 %4191 }
 0x45d   :  { %11964 = vst [vmem:[#allocation144_spill] sm:$0xff] %v8039_v4  ;;  %11965 = vst [vmem:[#allocation145_spill] sm:$0xff] %v8045_v53  ;;  %v3242_v4 = vshra.s32 %v8065_v30, 16 }
 0x45f   :  { %v8073_v28 = vcvt.s32.f32 %v3242_v4 }
 0x460   :  { %v8047_v7 = vpop.permute.xlu1 %4461  ;;  %v8077_v10 = vpop.permute.xlu0 %4479 }
 0x461   :  { %11966 = vst [vmem:[#allocation146_spill] sm:$0xff] %v8047_v7  ;;  %v3257_v7 = vshra.s32 %v8054_v0, 16  ;;  %11969 = vst [vmem:[#allocation149_spill] sm:$0xff] %v8077_v10 }
 0x463   :  { %v8069_v53 = vcvt.s32.f32 %v3257_v7 }
 0x464   :  { %v8059_v59 = vpop.permute.xlu1 %4589 }
 0x465   :  { %11967 = vst [vmem:[#allocation147_spill] sm:$0xff] %v8059_v59 }
 0x468   :  { %v8067_v31 = vpop.xlane.xlu1 %3200 }
 0x469   :  { %11968 = vst [vmem:[#allocation148_spill] sm:$0xff] %v8067_v31 }
 0x46c   :  { %v1630_v59 = vpop.permute.xlu1 %1629 }
 0x473   :  { %3024 = vmin.xlane.f32.xlu0 %v3023_v11  ;;  %v1341_v11 = vand.u32 2147483648, %v7348_v35  ;;  %v1723_v35 = vmul.f32 %v1630_v59, %v7013_v14  ;;  %v11992_v14 = vld [vmem:[#allocation56_spill] sm:$0xff] }
 0x475   :  { %v1342_v61 = vsel %vm1340_vm15, %v1341_v11, %v1339_v47  ;;  %v8096_v11 = vpop.permute.xlu0 %4607 }
 0x476   :  { %v1506_v51 = vmax.f32 %v1342_v61, 1e-12  ;;  %11971 = vst [vmem:[#allocation151_spill] sm:$0xff] %v8096_v11  ;;  %v1725_v61 = vmul.f32 %v7768_v6, %v7032_v26 }
 0x478   :  { %6373 = vrcp.f32 %v1506_v51  ;;  %v3046_v51 = vand.u32 65535, %v7344_v18 }
 0x479   :  { %6375 = vrsqrt.f32 %v7375_v8  ;;  %v8104_v17 = vpop.permute.xlu0 %1653 }
 0x47a   :  { %v3048_v4 = vcvt.s32.f32 %v3046_v51 }
 0x47c   :  { %v3053_v59 = vsel %vm3052_vm0, %v3048_v4, inf  ;;  %v1355_v4 = vand.u32 2147483648, %v7375_v8 }
 0x480   :  { %3260 = vmin.xlane.f32.xlu1 %v8069_v53 }
 0x484   :  { %3245 = vmin.xlane.f32.xlu1 %v8073_v28 }
 0x485   :  { %v6374_v47 = vpop.eup %6373 }
 0x486   :  { %v8081_v7 = vmul.f32 %v6374_v47, %v7057_v42  ;;  %v6376_v18 = vpop.eup %6375 }
 0x487   :  { %v1351_v47 = vmul.f32 %v6376_v18, %v7375_v8  ;;  %v8120_v18 = vsel %vm2747_vm3, %v2902_v12, 2147483647  ;;  %v3076_v12 = vand.u32 65535, %v7372_v1  ;;  %v1727_v1 = vmul.f32 %v7831_v40, %v7049_v37 }
 0x488   :  { %11970 = vst [vmem:[#allocation150_spill] sm:$0xff] %v8081_v7  ;;  %v2904_v40 = vsel %vm2870_vm10, %v7254_v24, 4 }
 0x489   :  { %1789 = vrot.lane.b32.xlu0 %v1723_v35, %s6585_s18  ;;  %v2903_v35 = vsel %vm2869_vm1, %v7254_v24, 4  ;;  %v1353_v6 = vsel %vm1352_vm5, %v7375_v8, %v1351_v47  ;;  %v3031_v47 = vand.u32 65535, %v7361_v33  ;;  %vm3142_vm1 = vcmp.eq.f32.partialorder %v11992_v14, %v7945_v13 }
 0x48a   :  { %v8111_v51 = vsel %vm2747_vm3, %v2903_v35, 2147483647  ;;  %v3272_v35 = vshra.s32 %v8120_v18, 16 }
 0x48c   :  { %v8126_v11 = vcvt.s32.f32 %v3272_v35  ;;  %v11976_v35 = vld [vmem:[#allocation27_spill] sm:$0xff] }
 0x48d   :  { %vm2871_vm9 = vcmp.eq.f32.partialorder %v11976_v35, %v7732_v16 }
 0x495   :  { %1643 = vrot.lane.b32.xlu1 %v8081_v7, %s6580_s6 }
 0x499   :  { %4057 = vrot.lane.b32.xlu1 %v8081_v7, %s6581_s15 }
 0x49d   :  { %4185 = vrot.lane.b32.xlu1 %v8081_v7, %s6582_s16 }
 0x4a1   :  { %4473 = vrot.lane.b32.xlu1 %v8081_v7, %s6583_s17 }
 0x4a5   :  { %4601 = vrot.lane.b32.xlu1 %v8081_v7, %s6584_s3 }
 0x4a8   :  { %3054 = vmin.xlane.f32.xlu0 %v3053_v59  ;;  %v3287_v59 = vshra.s32 %v8111_v51, 16 }
 0x4aa   :  { %v8122_v27 = vcvt.s32.f32 %v3287_v59 }
 0x4be   :  { %1793 = vrot.lane.b32.xlu0 %v1725_v61, %s6585_s18  ;;  %v1356_v61 = vsel %vm1354_vm6, %v1355_v4, %v1353_v6  ;;  %v3033_v6 = vcvt.s32.f32 %v3031_v47  ;;  %v8133_v4 = vpop.permute.xlu0 %4067 }
 0x4bf   :  { %v1508_v10 = vmax.f32 %v1356_v61, 1e-12  ;;  %11972 = vst [vmem:[#allocation152_spill] sm:$0xff] %v8133_v4 }
 0x4c0   :  { %v3038_v59 = vsel %vm3037_vm7, %v3033_v6, inf }
 0x4c1   :  { %6377 = vrcp.f32 %v1508_v10  ;;  %v3078_v10 = vcvt.s32.f32 %v3076_v12 }
 0x4c2   :  { %v8142_v2 = vpop.permute.xlu0 %4195  ;;  %6379 = vrsqrt.f32 %v7405_v60 }
 0x4c3   :  { %v3083_v33 = vsel %vm3082_vm8, %v3078_v10, inf  ;;  %11974 = vst [vmem:[#allocation154_spill] sm:$0xff] %v8142_v2  ;;  %v1369_v10 = vand.u32 2147483648, %v7405_v60  ;;  %v11978_v2 = vld [vmem:[#allocation50_spill] sm:$0xff]  ;;  %vm3172_vm8 = vcmp.eq.f32.partialorder %v7583_v62, %v8025_v44  ;;  %v12012_v62 = vld [vmem:[#allocation71_spill] sm:$0xff] }
 0x4c4   :  { %vm3067_vm13 = vcmp.eq.f32.partialorder %v11978_v2, %v7908_v21  ;;  %vm2874_vm10 = vcmp.eq.f32.partialorder %v7241_v9, %v12012_v62  ;;  %v12016_v44 = vld [vmem:[#allocation14_spill] sm:$0xff] }
 0x4c6   :  { %v8154_v50 = vpop.permute.xlu0 %4483 }
 0x4c7   :  { %11975 = vst [vmem:[#allocation155_spill] sm:$0xff] %v8154_v50 }
 0x4c9   :  { %3290 = vmin.xlane.f32.xlu1 %v8122_v27 }
 0x4cd   :  { %3275 = vmin.xlane.f32.xlu1 %v8126_v11 }
 0x4ce   :  { %v6378_v8 = vpop.eup %6377 }
 0x4cf   :  { %v8136_v61 = vmul.f32 %v6378_v8, %v7073_v52  ;;  %v6380_v47 = vpop.eup %6379  ;;  %v2905_v8 = vsel %vm2871_vm9, %v7254_v24, 4 }
 0x4d0   :  { %v1365_v12 = vmul.f32 %v6380_v47, %v7405_v60  ;;  %v8165_v6 = vsel %vm2747_vm3, %v2905_v8, 2147483647  ;;  %v3061_v47 = vand.u32 65535, %v11977_v34 }
 0x4d1   :  { %11973 = vst [vmem:[#allocation153_spill] sm:$0xff] %v8136_v61  ;;  %v3317_v16 = vshra.s32 %v8165_v6, 16 }
 0x4d2   :  { %v3063_v26 = vcvt.s32.f32 %v3061_v47 }
 0x4d3   :  { %v8177_v8 = vcvt.s32.f32 %v3317_v16 }
 0x4dd   :  { %3039 = vmin.xlane.f32.xlu0 %v3038_v59  ;;  %v1367_v59 = vsel %vm1366_vm11, %v7405_v60, %v1365_v12  ;;  %v11979_v12 = vld [vmem:[#allocation49_spill] sm:$0xff]  ;;  %v8184_v60 = vpop.permute.xlu0 %4611 }
 0x4de   :  { %1647 = vrot.lane.b32.xlu1 %v8136_v61, %s6580_s6  ;;  %v3106_v37 = vand.u32 65535, %v11979_v12  ;;  %11980 = vst [vmem:[#allocation48_spill] sm:$0xff] %v8184_v60  ;;  %v11982_v12 = vld [vmem:[#allocation13_spill] sm:$0xff] }
 0x4e0   :  { %v3108_v16 = vcvt.s32.f32 %v3106_v37  ;;  %v11986_v37 = vld [vmem:[#allocation62_spill] sm:$0xff] }
 0x4e1   :  { %3084 = vmin.xlane.f32.xlu0 %v3083_v33  ;;  %v8174_v33 = vsel %vm2747_vm3, %v2904_v40, 2147483647  ;;  %v8191_v2 = vpop.permute.xlu0 %1657  ;;  %vm1380_vm5 = vcmp.eq.f32.partialorder %v11986_v37, inf  ;;  %vm1382_vm6 = vcmp.eq.f32.partialorder %v11986_v37, 0.0 }
 0x4e2   :  { %4061 = vrot.lane.b32.xlu1 %v8136_v61, %s6581_s15  ;;  %v3302_v50 = vshra.s32 %v8174_v33, 16 }
 0x4e4   :  { %v8186_v40 = vcvt.s32.f32 %v3302_v50 }
 0x4e5   :  { %v8202_v50 = vpop.permute.xlu0 %4071 }
 0x4e6   :  { %4189 = vrot.lane.b32.xlu1 %v8136_v61, %s6582_s16  ;;  %11985 = vst [vmem:[#allocation49_spill] sm:$0xff] %v8202_v50  ;;  %v11990_v50 = vld [vmem:[#allocation29_spill] sm:$0xff] }
 0x4e7   :  { %vm2873_vm0 = vcmp.eq.f32.partialorder %v11990_v50, %v7749_v43 }
 0x4ea   :  { %4477 = vrot.lane.b32.xlu1 %v8136_v61, %s6583_s17 }
 0x4ee   :  { %4605 = vrot.lane.b32.xlu1 %v8136_v61, %s6584_s3 }
 0x4f7   :  { %1797 = vrot.lane.b32.xlu0 %v1727_v1, %s6585_s18  ;;  %v1370_v1 = vsel %vm1368_vm12, %v1369_v10, %v1367_v59  ;;  %v3068_v59 = vsel %vm3067_vm13, %v3063_v26, inf  ;;  %v11981_v10 = vld [vmem:[#allocation52_spill] sm:$0xff]  ;;  %v11984_v26 = vld [vmem:[#allocation11_spill] sm:$0xff] }
 0x4f8   :  { %v1510_v4 = vmax.f32 %v1370_v1, 1e-12  ;;  %vm3112_vm14 = vcmp.eq.f32.partialorder %v11981_v10, %v7919_v38 }
 0x4f9   :  { %v3113_v1 = vsel %vm3112_vm14, %v3108_v16, inf  ;;  %v11988_v16 = vld [vmem:[#allocation54_spill] sm:$0xff] }
 0x4fa   :  { %6381 = vrcp.f32 %v1510_v4  ;;  %v1729_v4 = vmul.f32 %v7893_v29, %v11984_v26  ;;  %vm3097_vm15 = vcmp.eq.f32.partialorder %v11988_v16, %v7928_v19  ;;  %v11989_v29 = vld [vmem:[#allocation53_spill] sm:$0xff] }
 0x4fb   :  { %6383 = vrsqrt.f32 %v11986_v37 }
 0x507   :  { %v6382_v34 = vpop.eup %6381 }
 0x508   :  { %v8194_v47 = vmul.f32 %v6382_v34, %v11982_v12  ;;  %v6384_v60 = vpop.eup %6383 }
 0x509   :  { %v1379_v61 = vmul.f32 %v6384_v60, %v11986_v37 }
 0x50a   :  { %11983 = vst [vmem:[#allocation50_spill] sm:$0xff] %v8194_v47 }
 0x50b   :  { %v1381_v14 = vsel %vm1380_vm5, %v11986_v37, %v1379_v61 }
 0x512   :  { %3320 = vmin.xlane.f32.xlu1 %v8177_v8 }
 0x516   :  { %3069 = vmin.xlane.f32.xlu0 %v3068_v59  ;;  %3305 = vmin.xlane.f32.xlu1 %v8186_v40  ;;  %v11987_v59 = vld [vmem:[#allocation51_spill] sm:$0xff] }
 0x517   :  { %v3091_v10 = vand.u32 65535, %v11987_v59 }
 0x519   :  { %v3093_v34 = vcvt.s32.f32 %v3091_v10 }
 0x51a   :  { %3114 = vmin.xlane.f32.xlu0 %v3113_v1  ;;  %v3136_v1 = vand.u32 65535, %v11989_v29  ;;  %v1383_v29 = vand.u32 2147483648, %v11986_v37  ;;  %v1731_v37 = vmul.f32 %v7952_v25, %v7081_v57 }
 0x51b   :  { %v3098_v26 = vsel %vm3097_vm15, %v3093_v34, inf }
 0x51c   :  { %v3138_v59 = vcvt.s32.f32 %v3136_v1 }
 0x51e   :  { %v3143_v10 = vsel %vm3142_vm1, %v3138_v59, inf }
 0x527   :  { %1651 = vrot.lane.b32.xlu1 %v8194_v47, %s6580_s6 }
 0x52b   :  { %4065 = vrot.lane.b32.xlu1 %v8194_v47, %s6581_s15 }
 0x52f   :  { %4193 = vrot.lane.b32.xlu1 %v8194_v47, %s6582_s16 }
 0x530   :  { %1801 = vrot.lane.b32.xlu0 %v1729_v4, %s6585_s18  ;;  %v8218_v4 = vpop.permute.xlu0 %4199 }
 0x531   :  { %11991 = vst [vmem:[#allocation52_spill] sm:$0xff] %v8218_v4 }
 0x533   :  { %4481 = vrot.lane.b32.xlu1 %v8194_v47, %s6583_s17 }
 0x534   :  { %v8229_v43 = vpop.permute.xlu0 %4487 }
 0x535   :  { %11993 = vst [vmem:[#allocation13_spill] sm:$0xff] %v8229_v43 }
 0x537   :  { %4609 = vrot.lane.b32.xlu1 %v8194_v47, %s6584_s3  ;;  %v2907_v47 = vsel %vm2873_vm0, %v7254_v24, 4 }
 0x538   :  { %v8227_v16 = vsel %vm2747_vm3, %v2907_v47, 2147483647  ;;  %v1384_v47 = vsel %vm1382_vm6, %v1383_v29, %v1381_v14 }
 0x539   :  { %v3347_v60 = vshra.s32 %v8227_v16, 16  ;;  %v1512_v59 = vmax.f32 %v1384_v47, 1e-12  ;;  %v11998_v47 = vld [vmem:[#allocation15_spill] sm:$0xff] }
 0x53b   :  { %v8240_v1 = vcvt.s32.f32 %v3347_v60  ;;  %6385 = vrcp.f32 %v1512_v59 }
 0x548   :  { %v6386_v29 = vpop.eup %6385 }
 0x54f   :  { %3099 = vmin.xlane.f32.xlu0 %v3098_v26  ;;  %v2906_v26 = vsel %vm2872_vm2, %v7254_v24, 4 }
 0x550   :  { %v8238_v48 = vsel %vm2747_vm3, %v2906_v26, 2147483647  ;;  %v8253_v26 = vpop.permute.xlu0 %4615 }
 0x551   :  { %v3332_v34 = vshra.s32 %v8238_v48, 16  ;;  %11995 = vst [vmem:[#allocation51_spill] sm:$0xff] %v8253_v26 }
 0x553   :  { %3144 = vmin.xlane.f32.xlu0 %v3143_v10  ;;  %v8244_v10 = vpop.xlane.xlu1 %3185  ;;  %v8246_v61 = vcvt.s32.f32 %v3332_v34  ;;  %v8261_v34 = vmul.f32 %v6386_v29, %v11998_v47  ;;  %v12003_v29 = vld [vmem:[#allocation55_spill] sm:$0xff] }
 0x554   :  { %11994 = vst [vmem:[#allocation62_spill] sm:$0xff] %v8244_v10  ;;  %v8285_v7 = vpop.permute.xlu0 %1661 }
 0x555   :  { %11999 = vst [vmem:[#allocation56_spill] sm:$0xff] %v8261_v34 }
 0x557   :  { %v8249_v43 = vpop.permute.xlu1 %1635 }
 0x558   :  { %v8292_v36 = vpop.permute.xlu0 %4075 }
 0x559   :  { %12007 = vst [vmem:[#allocation55_spill] sm:$0xff] %v8292_v36  ;;  %v2908_v36 = vsel %vm2874_vm10, %v7254_v24, 4 }
 0x55a   :  { %v8317_v62 = vsel %vm2747_vm3, %v2908_v36, 2147483647 }
 0x55b   :  { %3350 = vmin.xlane.f32.xlu1 %v8240_v1  ;;  %v8255_v14 = vpop.permute.xlu1 %4049 }
 0x55c   :  { %11996 = vst [vmem:[#allocation54_spill] sm:$0xff] %v8255_v14  ;;  %v3121_v14 = vand.u32 65535, %v12003_v29  ;;  %v12006_v29 = vld [vmem:[#allocation70_spill] sm:$0xff]  ;;  %v8321_v45 = vpop.permute.xlu0 %4203 }
 0x55d   :  { %6387 = vrsqrt.f32 %v12006_v29  ;;  %vm1394_vm11 = vcmp.eq.f32.partialorder %v12006_v29, inf  ;;  %vm1396_vm12 = vcmp.eq.f32.partialorder %v12006_v29, 0.0  ;;  %12017 = vst [vmem:[#allocation71_spill] sm:$0xff] %v8321_v45 }
 0x55e   :  { %v3123_v4 = vcvt.s32.f32 %v3121_v14  ;;  %v12009_v14 = vld [vmem:[#allocation92_spill] sm:$0xff] }
 0x55f   :  { %3335 = vmin.xlane.f32.xlu1 %v8246_v61  ;;  %v8258_v60 = vpop.permute.xlu1 %4177  ;;  %12015 = vst [vmem:[#allocation92_spill] sm:$0xff] %v8317_v62 }
 0x560   :  { %11997 = vst [vmem:[#allocation53_spill] sm:$0xff] %v8258_v60  ;;  %v12005_v60 = vld [vmem:[#allocation64_spill] sm:$0xff] }
 0x561   :  { %v3166_v57 = vand.u32 65535, %v12005_v60  ;;  %v12010_v60 = vld [vmem:[#allocation31_spill] sm:$0xff] }
 0x562   :  { %vm2875_vm9 = vcmp.eq.f32.partialorder %v12010_v60, %v12009_v14 }
 0x563   :  { %v8265_v59 = vpop.permute.xlu1 %4465  ;;  %v3168_v13 = vcvt.s32.f32 %v3166_v57 }
 0x564   :  { %12000 = vst [vmem:[#allocation156_spill] sm:$0xff] %v8265_v59  ;;  %v12004_v59 = vld [vmem:[#allocation58_spill] sm:$0xff] }
 0x565   :  { %vm3127_vm7 = vcmp.eq.f32.partialorder %v12004_v59, %v7963_v22 }
 0x567   :  { %v8271_v25 = vpop.permute.xlu1 %4593 }
 0x568   :  { %12001 = vst [vmem:[#allocation157_spill] sm:$0xff] %v8271_v25  ;;  %v3128_v25 = vsel %vm3127_vm7, %v3123_v4, inf }
 0x569   :  { %1805 = vrot.lane.b32.xlu0 %v1731_v37, %s6585_s18 }
 0x56a   :  { %v6388_v22 = vpop.eup %6387 }
 0x56b   :  { %v8275_v37 = vpop.xlane.xlu1 %3230  ;;  %v1393_v57 = vmul.f32 %v6388_v22, %v12006_v29 }
 0x56c   :  { %12002 = vst [vmem:[#allocation158_spill] sm:$0xff] %v8275_v37 }
 0x56f   :  { %v8282_v26 = vpop.xlane.xlu1 %3215 }
 0x570   :  { %1655 = vrot.lane.b32.xlu1 %v8261_v34, %s6580_s6 }
 0x573   :  { %v8290_v38 = vpop.permute.xlu1 %1639 }
 0x574   :  { %4069 = vrot.lane.b32.xlu1 %v8261_v34, %s6581_s15 }
 0x577   :  { %v8294_v59 = vpop.permute.xlu1 %4053 }
 0x578   :  { %4197 = vrot.lane.b32.xlu1 %v8261_v34, %s6582_s16  ;;  %12008 = vst [vmem:[#allocation58_spill] sm:$0xff] %v8294_v59  ;;  %v1395_v59 = vsel %vm1394_vm11, %v12006_v29, %v1393_v57 }
 0x57b   :  { %v8298_v4 = vpop.permute.xlu1 %4181 }
 0x57c   :  { %4485 = vrot.lane.b32.xlu1 %v8261_v34, %s6583_s17  ;;  %12011 = vst [vmem:[#allocation64_spill] sm:$0xff] %v8298_v4  ;;  %v12014_v4 = vld [vmem:[#allocation72_spill] sm:$0xff] }
 0x57d   :  { %6389 = vrsqrt.f32 %v12014_v4  ;;  %vm1410_vm13 = vcmp.eq.f32.partialorder %v12014_v4, 0.0 }
 0x57f   :  { %v8310_v14 = vpop.permute.xlu1 %4469 }
 0x580   :  { %4613 = vrot.lane.b32.xlu1 %v8261_v34, %s6584_s3  ;;  %v3173_v34 = vsel %vm3172_vm8, %v3168_v13, inf  ;;  %12013 = vst [vmem:[#allocation70_spill] sm:$0xff] %v8310_v14 }
 0x588   :  { %3129 = vmin.xlane.f32.xlu0 %v3128_v25  ;;  %v2909_v25 = vsel %vm2875_vm9, %v7254_v24, 4  ;;  %v8324_v24 = vpop.permute.xlu1 %4597  ;;  %vm3232_vm9 = vcmp.eq.f32.partialorder %v7969_v41, %v8275_v37  ;;  %v12051_v41 = vld [vmem:[#allocation91_spill] sm:$0xff] }
 0x589   :  { %v8306_v13 = vsel %vm2747_vm3, %v2909_v25, 2147483647  ;;  %v1733_v25 = vmul.f32 %v8010_v56, %v12016_v44  ;;  %12018 = vst [vmem:[#allocation72_spill] sm:$0xff] %v8324_v24  ;;  %vm1408_vm3 = vcmp.eq.f32.partialorder %v12014_v4, inf  ;;  %v12022_v44 = vld [vmem:[#allocation17_spill] sm:$0xff] }
 0x58a   :  { %v3377_v22 = vshra.s32 %v8306_v13, 16  ;;  %v6390_v56 = vpop.eup %6389 }
 0x58c   :  { %3174 = vmin.xlane.f32.xlu0 %v3173_v34  ;;  %v1397_v34 = vand.u32 2147483648, %v12006_v29  ;;  %v8326_v57 = vcvt.s32.f32 %v3377_v22  ;;  %v3362_v29 = vshra.s32 %v8317_v62, 16  ;;  %v8330_v21 = vpop.xlane.xlu1 %3260  ;;  %v1411_v22 = vand.u32 2147483648, %v12014_v4  ;;  %v12030_v62 = vld [vmem:[#allocation84_spill] sm:$0xff] }
 0x58d   :  { %12019 = vst [vmem:[#allocation159_spill] sm:$0xff] %v8330_v21  ;;  %vm3202_vm15 = vcmp.eq.f32.partialorder %v12030_v62, %v8067_v31  ;;  %v12033_v62 = vld [vmem:[#allocation78_spill] sm:$0xff] }
 0x58e   :  { %v1398_v19 = vsel %vm1396_vm12, %v1397_v34, %v1395_v59  ;;  %v8332_v36 = vcvt.s32.f32 %v3362_v29  ;;  %v1407_v34 = vmul.f32 %v6390_v56, %v12014_v4  ;;  %v12025_v56 = vld [vmem:[#allocation65_spill] sm:$0xff]  ;;  %vm1436_vm2 = vcmp.eq.f32.partialorder %v12033_v62, inf }
 0x58f   :  { %v1514_v14 = vmax.f32 %v1398_v19, 1e-12  ;;  %v3151_v55 = vand.u32 65535, %v12025_v56  ;;  %vm1438_vm5 = vcmp.eq.f32.partialorder %v12033_v62, 0.0  ;;  %vm1478_vm12 = vcmp.eq.f32.partialorder %v12051_v41, inf }
 0x590   :  { %12020 = vst [vmem:[#allocation160_spill] sm:$0xff] %v8332_v36  ;;  %v8335_v59 = vpop.xlane.xlu1 %3245  ;;  %v1409_v19 = vsel %vm1408_vm3, %v12014_v4, %v1407_v34  ;;  %v12026_v4 = vld [vmem:[#allocation67_spill] sm:$0xff]  ;;  %vm1480_vm3 = vcmp.eq.f32.partialorder %v12051_v41, 0.0 }
 0x591   :  { %6391 = vrcp.f32 %v1514_v14  ;;  %v1412_v45 = vsel %vm1410_vm13, %v1411_v22, %v1409_v19  ;;  %vm3157_vm14 = vcmp.eq.f32.partialorder %v12026_v4, %v8029_v58  ;;  %v3153_v34 = vcvt.s32.f32 %v3151_v55  ;;  %v12027_v22 = vld [vmem:[#allocation81_spill] sm:$0xff] }
 0x592   :  { %v1516_v24 = vmax.f32 %v1412_v45, 1e-12  ;;  %v3196_v45 = vand.u32 65535, %v12027_v22 }
 0x594   :  { %v8343_v29 = vpop.permute.xlu1 %1643  ;;  %v3198_v56 = vcvt.s32.f32 %v3196_v45 }
 0x596   :  { %v3203_v55 = vsel %vm3202_vm15, %v3198_v56, inf  ;;  %vm3217_vm15 = vcmp.eq.f32.partialorder %v7977_v49, %v8282_v26 }
 0x598   :  { %v8348_v9 = vpop.permute.xlu1 %4057 }
 0x599   :  { %12024 = vst [vmem:[#allocation161_spill] sm:$0xff] %v8348_v9  ;;  %v3158_v9 = vsel %vm3157_vm14, %v3153_v34, inf }
 0x59e   :  { %v6392_v14 = vpop.eup %6391 }
 0x59f   :  { %v8346_v5 = vmul.f32 %v6392_v14, %v12022_v44  ;;  %v8358_v14 = vpop.permute.xlu0 %4491 }
 0x5a0   :  { %12028 = vst [vmem:[#allocation65_spill] sm:$0xff] %v8358_v14 }
 0x5a2   :  { %1809 = vrot.lane.b32.xlu0 %v1733_v25, %s6585_s18  ;;  %v12021_v25 = vld [vmem:[#allocation75_spill] sm:$0xff] }
 0x5a3   :  { %6393 = vrsqrt.f32 %v12021_v25  ;;  %12023 = vst [vmem:[#allocation75_spill] sm:$0xff] %v8346_v5  ;;  %vm1422_vm0 = vcmp.eq.f32.partialorder %v12021_v25, inf  ;;  %v1425_v4 = vand.u32 2147483648, %v12021_v25  ;;  %v8369_v22 = vpop.permute.xlu0 %4619  ;;  %vm1424_vm1 = vcmp.eq.f32.partialorder %v12021_v25, 0.0 }
 0x5a4   :  { %3380 = vmin.xlane.f32.xlu1 %v8326_v57  ;;  %6395 = vrcp.f32 %v1516_v24  ;;  %12031 = vst [vmem:[#allocation81_spill] sm:$0xff] %v8369_v22  ;;  %v12035_v22 = vld [vmem:[#allocation19_spill] sm:$0xff] }
 0x5a5   :  { %6397 = vrsqrt.f32 %v12033_v62 }
 0x5a8   :  { %3365 = vmin.xlane.f32.xlu1 %v8332_v36  ;;  %v8360_v36 = vpop.permute.xlu1 %4185 }
 0x5a9   :  { %12029 = vst [vmem:[#allocation67_spill] sm:$0xff] %v8360_v36 }
 0x5ac   :  { %v8371_v14 = vpop.permute.xlu1 %4473 }
 0x5ad   :  { %12032 = vst [vmem:[#allocation84_spill] sm:$0xff] %v8371_v14 }
 0x5b0   :  { %v6394_v19 = vpop.eup %6393 }
 0x5b1   :  { %v1421_v24 = vmul.f32 %v6394_v19, %v12021_v25  ;;  %v6396_v34 = vpop.eup %6395  ;;  %v8380_v19 = vpop.permute.xlu1 %4601 }
 0x5b2   :  { %12034 = vst [vmem:[#allocation78_spill] sm:$0xff] %v8380_v19  ;;  %v8383_v14 = vmul.f32 %v6396_v34, %v12035_v22  ;;  %v12038_v34 = vld [vmem:[#allocation16_spill] sm:$0xff]  ;;  %v12039_v19 = vld [vmem:[#allocation83_spill] sm:$0xff] }
 0x5b3   :  { %vm1450_vm6 = vcmp.eq.f32.partialorder %v12039_v19, inf  ;;  %vm1452_vm7 = vcmp.eq.f32.partialorder %v12039_v19, 0.0 }
 0x5b4   :  { %12036 = vst [vmem:[#allocation162_spill] sm:$0xff] %v8383_v14 }
 0x5b9   :  { %1659 = vrot.lane.b32.xlu1 %v8346_v5, %s6580_s6 }
 0x5bd   :  { %4073 = vrot.lane.b32.xlu1 %v8346_v5, %s6581_s15 }
 0x5c1   :  { %3159 = vmin.xlane.f32.xlu0 %v3158_v9  ;;  %4201 = vrot.lane.b32.xlu1 %v8346_v5, %s6582_s16  ;;  %v1423_v9 = vsel %vm1422_vm0, %v12021_v25, %v1421_v24  ;;  %v8387_v25 = vpop.xlane.xlu1 %3290  ;;  %v6398_v24 = vpop.eup %6397  ;;  %vm3262_vm0 = vcmp.eq.f32.partialorder %v8069_v53, %v8330_v21 }
 0x5c2   :  { %v1426_v45 = vsel %vm1424_vm1, %v1425_v4, %v1423_v9  ;;  %12037 = vst [vmem:[#allocation163_spill] sm:$0xff] %v8387_v25  ;;  %v1435_v4 = vmul.f32 %v6398_v24, %v12033_v62  ;;  %v1439_v9 = vand.u32 2147483648, %v12033_v62  ;;  %v8405_v24 = vpop.permute.xlu0 %1665  ;;  %vm3247_vm1 = vcmp.eq.f32.partialorder %v8073_v28, %v8335_v59  ;;  %v12076_v28 = vld [vmem:[#allocation33_spill] sm:$0xff] }
 0x5c3   :  { %v1518_v56 = vmax.f32 %v1426_v45, 1e-12  ;;  %v1735_v45 = vmul.f32 %v8104_v17, %v12038_v34 }
 0x5c5   :  { %3204 = vmin.xlane.f32.xlu0 %v3203_v55  ;;  %4489 = vrot.lane.b32.xlu1 %v8346_v5, %s6583_s17  ;;  %6399 = vrcp.f32 %v1518_v56  ;;  %v8391_v55 = vpop.xlane.xlu1 %3275  ;;  %v1437_v56 = vsel %vm1436_vm2, %v12033_v62, %v1435_v4  ;;  %vm3292_vm2 = vcmp.eq.f32.partialorder %v8122_v27, %v8387_v25  ;;  %v12081_v27 = vld [vmem:[#allocation98_spill] sm:$0xff]  ;;  %v12086_v25 = vld [vmem:[#allocation36_spill] sm:$0xff] }
 0x5c6   :  { %6401 = vrsqrt.f32 %v12039_v19  ;;  %v1440_v31 = vsel %vm1438_vm5, %v1439_v9, %v1437_v56 }
 0x5c7   :  { %v1520_v17 = vmax.f32 %v1440_v31, 1e-12 }
 0x5c9   :  { %4617 = vrot.lane.b32.xlu1 %v8346_v5, %s6584_s3  ;;  %v8407_v36 = vpop.permute.xlu1 %1647  ;;  %6403 = vrcp.f32 %v1520_v17  ;;  %v12044_v17 = vld [vmem:[#allocation88_spill] sm:$0xff] }
 0x5ca   :  { %6405 = vrsqrt.f32 %v12044_v17  ;;  %vm1464_vm10 = vcmp.eq.f32.partialorder %v12044_v17, inf  ;;  %vm1466_vm11 = vcmp.eq.f32.partialorder %v12044_v17, 0.0 }
 0x5cd   :  { %1663 = vrot.lane.b32.xlu1 %v8383_v14, %s6580_s6  ;;  %v8415_v62 = vpop.permute.xlu1 %4061 }
 0x5ce   :  { %12041 = vst [vmem:[#allocation164_spill] sm:$0xff] %v8415_v62 }
 0x5d1   :  { %4077 = vrot.lane.b32.xlu1 %v8383_v14, %s6581_s15 }
 0x5d2   :  { %v6400_v5 = vpop.eup %6399 }
 0x5d3   :  { %v8413_v4 = vmul.f32 %v6400_v5, %v7157_v54  ;;  %v6402_v34 = vpop.eup %6401  ;;  %v1453_v5 = vand.u32 2147483648, %v12039_v19 }
 0x5d4   :  { %v1449_v9 = vmul.f32 %v6402_v34, %v12039_v19 }
 0x5d5   :  { %4205 = vrot.lane.b32.xlu1 %v8383_v14, %s6582_s16  ;;  %12040 = vst [vmem:[#allocation83_spill] sm:$0xff] %v8413_v4 }
 0x5d6   :  { %v1451_v56 = vsel %vm1450_vm6, %v12039_v19, %v1449_v9  ;;  %v6404_v62 = vpop.eup %6403  ;;  %v12048_v19 = vld [vmem:[#allocation104_spill] sm:$0xff] }
 0x5d7   :  { %v1454_v34 = vsel %vm1452_vm7, %v1453_v5, %v1451_v56  ;;  %vm3187_vm8 = vcmp.eq.f32.partialorder %v12048_v19, %v8244_v10  ;;  %v3226_v56 = vand.u32 65535, %v7948_v46 }
 0x5d8   :  { %v1522_v39 = vmax.f32 %v1454_v34, 1e-12 }
 0x5d9   :  { %4493 = vrot.lane.b32.xlu1 %v8383_v14, %s6583_s17 }
 0x5da   :  { %6407 = vrcp.f32 %v1522_v39  ;;  %v1467_v39 = vand.u32 2147483648, %v12044_v17 }
 0x5db   :  { %1813 = vrot.lane.b32.xlu0 %v1735_v45, %s6585_s18  ;;  %v8421_v45 = vpop.permute.xlu1 %4189  ;;  %6409 = vrsqrt.f32 %v12051_v41 }
 0x5dc   :  { %12042 = vst [vmem:[#allocation165_spill] sm:$0xff] %v8421_v45 }
 0x5dd   :  { %4621 = vrot.lane.b32.xlu1 %v8383_v14, %s6584_s3  ;;  %v12046_v14 = vld [vmem:[#allocation100_spill] sm:$0xff] }
 0x5de   :  { %v3181_v58 = vand.u32 65535, %v12046_v14  ;;  %v6406_v14 = vpop.eup %6405 }
 0x5df   :  { %v8428_v31 = vpop.permute.xlu1 %4477 }
 0x5e0   :  { %12043 = vst [vmem:[#allocation166_spill] sm:$0xff] %v8428_v31  ;;  %v8441_v31 = vmul.f32 %v6404_v62, %v7173_v3  ;;  %v3183_v5 = vcvt.s32.f32 %v3181_v58  ;;  %v3228_v62 = vcvt.s32.f32 %v3226_v56  ;;  %v1463_v58 = vmul.f32 %v6406_v14, %v12044_v17 }
 0x5e1   :  { %1667 = vrot.lane.b32.xlu1 %v8413_v4, %s6580_s6 }
 0x5e2   :  { %12047 = vst [vmem:[#allocation100_spill] sm:$0xff] %v8441_v31  ;;  %v3233_v19 = vsel %vm3232_vm9, %v3228_v62, inf  ;;  %v1465_v46 = vsel %vm1464_vm10, %v12044_v17, %v1463_v58  ;;  %vm3277_vm9 = vcmp.eq.f32.partialorder %v8126_v11, %v8391_v55 }
 0x5e3   :  { %v8437_v45 = vpop.permute.xlu1 %4605  ;;  %v1468_v56 = vsel %vm1466_vm11, %v1467_v39, %v1465_v46  ;;  %v12055_v46 = vld [vmem:[#allocation18_spill] sm:$0xff] }
 0x5e4   :  { %12045 = vst [vmem:[#allocation88_spill] sm:$0xff] %v8437_v45  ;;  %v3188_v45 = vsel %vm3187_vm8, %v3183_v5, inf  ;;  %v1524_v14 = vmax.f32 %v1468_v56, 1e-12  ;;  %v1737_v56 = vmul.f32 %v8191_v2, %v12055_v46 }
 0x5e5   :  { %4081 = vrot.lane.b32.xlu1 %v8413_v4, %s6581_s15 }
 0x5e6   :  { %6411 = vrcp.f32 %v1524_v14  ;;  %v1481_v14 = vand.u32 2147483648, %v12051_v41 }
 0x5e7   :  { %v8447_v9 = vpop.xlane.xlu1 %3320  ;;  %v6408_v5 = vpop.eup %6407 }
 0x5e8   :  { %v8475_v62 = vmul.f32 %v6408_v5, %v7189_v20  ;;  %v6410_v17 = vpop.eup %6409  ;;  %vm3322_vm10 = vcmp.eq.f32.partialorder %v8177_v8, %v8447_v9  ;;  %v12107_v8 = vld [vmem:[#allocation42_spill] sm:$0xff] }
 0x5e9   :  { %4209 = vrot.lane.b32.xlu1 %v8413_v4, %s6582_s16  ;;  %v1477_v39 = vmul.f32 %v6410_v17, %v12051_v41  ;;  %v12058_v17 = vld [vmem:[#allocation95_spill] sm:$0xff] }
 0x5ea   :  { %12052 = vst [vmem:[#allocation91_spill] sm:$0xff] %v8475_v62  ;;  %6413 = vrsqrt.f32 %v12058_v17  ;;  %vm1492_vm13 = vcmp.eq.f32.partialorder %v12058_v17, inf  ;;  %vm1494_vm14 = vcmp.eq.f32.partialorder %v12058_v17, 0.0 }
 0x5eb   :  { %v8456_v34 = vpop.xlane.xlu1 %3305 }
 0x5ed   :  { %4497 = vrot.lane.b32.xlu1 %v8413_v4, %s6583_s17 }
 0x5f1   :  { %4625 = vrot.lane.b32.xlu1 %v8413_v4, %s6584_s3  ;;  %v8450_v4 = vpop.permute.xlu0 %4079 }
 0x5f2   :  { %12049 = vst [vmem:[#allocation104_spill] sm:$0xff] %v8450_v4 }
 0x5f3   :  { %v6412_v2 = vpop.eup %6411 }
 0x5f5   :  { %1671 = vrot.lane.b32.xlu1 %v8441_v31, %s6580_s6  ;;  %v8459_v10 = vpop.permute.xlu0 %4207 }
 0x5f6   :  { %12050 = vst [vmem:[#allocation167_spill] sm:$0xff] %v8459_v10 }
 0x5f9   :  { %4085 = vrot.lane.b32.xlu1 %v8441_v31, %s6581_s15  ;;  %v8491_v5 = vpop.permute.xlu0 %4495 }
 0x5fa   :  { %3189 = vmin.xlane.f32.xlu0 %v3188_v45  ;;  %v8470_v45 = vpop.permute.xlu1 %1651  ;;  %12056 = vst [vmem:[#allocation170_spill] sm:$0xff] %v8491_v5 }
 0x5fd   :  { %4213 = vrot.lane.b32.xlu1 %v8441_v31, %s6582_s16 }
 0x5fe   :  { %3234 = vmin.xlane.f32.xlu0 %v3233_v19  ;;  %v8477_v19 = vpop.permute.xlu1 %4065 }
 0x5ff   :  { %12053 = vst [vmem:[#allocation168_spill] sm:$0xff] %v8477_v19  ;;  %v1479_v19 = vsel %vm1478_vm12, %v12051_v41, %v1477_v39  ;;  %v6414_v39 = vpop.eup %6413 }
 0x600   :  { %v1482_v10 = vsel %vm1480_vm3, %v1481_v14, %v1479_v19  ;;  %v1491_v14 = vmul.f32 %v6414_v39, %v12058_v17  ;;  %vm3307_vm3 = vcmp.eq.f32.partialorder %v8186_v40, %v8456_v34 }
 0x601   :  { %4501 = vrot.lane.b32.xlu1 %v8441_v31, %s6583_s17 }
 0x602   :  { %v8483_v58 = vpop.permute.xlu1 %4193 }
 0x603   :  { %12054 = vst [vmem:[#allocation169_spill] sm:$0xff] %v8483_v58  ;;  %v8507_v58 = vmul.f32 %v6412_v2, %v11976_v35  ;;  %v1493_v2 = vsel %vm1492_vm13, %v12058_v17, %v1491_v14 }
 0x605   :  { %4629 = vrot.lane.b32.xlu1 %v8441_v31, %s6584_s3  ;;  %12060 = vst [vmem:[#allocation172_spill] sm:$0xff] %v8507_v58  ;;  %v8537_v31 = vpop.permute.xlu0 %4623 }
 0x606   :  { %v8495_v4 = vpop.permute.xlu1 %4481  ;;  %12062 = vst [vmem:[#allocation174_spill] sm:$0xff] %v8537_v31 }
 0x607   :  { %12057 = vst [vmem:[#allocation171_spill] sm:$0xff] %v8495_v4  ;;  %v3211_v4 = vand.u32 65535, %v7961_v63 }
 0x609   :  { %1675 = vrot.lane.b32.xlu1 %v8475_v62, %s6580_s6 }
 0x60a   :  { %v8504_v5 = vpop.permute.xlu1 %4609 }
 0x60b   :  { %12059 = vst [vmem:[#allocation95_spill] sm:$0xff] %v8504_v5 }
 0x60d   :  { %4089 = vrot.lane.b32.xlu1 %v8475_v62, %s6581_s15 }
 0x60e   :  { %v8511_v41 = vpop.xlane.xlu1 %3350 }
 0x60f   :  { %vm3352_vm13 = vcmp.eq.f32.partialorder %v8240_v1, %v8511_v41 }
 0x611   :  { %4217 = vrot.lane.b32.xlu1 %v8475_v62, %s6582_s16 }
 0x612   :  { %v8515_v19 = vpop.xlane.xlu1 %3335 }
 0x614   :  { %1817 = vrot.lane.b32.xlu0 %v1737_v56, %s6585_s18  ;;  %v1526_v56 = vmax.f32 %v1482_v10, 1e-12  ;;  %v1495_v10 = vand.u32 2147483648, %v12058_v17  ;;  %v3213_v17 = vcvt.s32.f32 %v3211_v4 }
 0x615   :  { %4505 = vrot.lane.b32.xlu1 %v8475_v62, %s6583_s17 }
 0x616   :  { %6415 = vrcp.f32 %v1526_v56  ;;  %v8526_v56 = vpop.permute.xlu1 %1655  ;;  %v1496_v39 = vsel %vm1494_vm14, %v1495_v10, %v1493_v2  ;;  %v3218_v63 = vsel %vm3217_vm15, %v3213_v17, inf  ;;  %vm3337_vm15 = vcmp.eq.f32.partialorder %v8246_v61, %v8515_v19 }
 0x617   :  { %v1528_v46 = vmax.f32 %v1496_v39, 1e-12  ;;  %v12068_v39 = vld [vmem:[#allocation20_spill] sm:$0xff] }
 0x618   :  { %v1739_v17 = vmul.f32 %v8285_v7, %v12068_v39  ;;  %v12077_v39 = vld [vmem:[#allocation97_spill] sm:$0xff] }
 0x619   :  { %4633 = vrot.lane.b32.xlu1 %v8475_v62, %s6584_s3  ;;  %v3256_v62 = vand.u32 65535, %v8054_v0  ;;  %6417 = vrcp.f32 %v1528_v46 }
 0x61a   :  { %v8539_v37 = vpop.permute.xlu1 %4069 }
 0x61b   :  { %12063 = vst [vmem:[#allocation175_spill] sm:$0xff] %v8539_v37  ;;  %v3258_v49 = vcvt.s32.f32 %v3256_v62  ;;  %v3286_v37 = vand.u32 65535, %v8111_v51  ;;  %v12078_v51 = vld [vmem:[#allocation34_spill] sm:$0xff] }
 0x61c   :  { %vm2932_vm5 = vcmp.eq.f32.partialorder %v12078_v51, %v12077_v39  ;;  %v12087_v51 = vld [vmem:[#allocation39_spill] sm:$0xff] }
 0x61d   :  { %1679 = vrot.lane.b32.xlu1 %v8507_v58, %s6580_s6  ;;  %v3263_v4 = vsel %vm3262_vm0, %v3258_v49, inf }
 0x61e   :  { %v8549_v0 = vpop.permute.xlu1 %4197 }
 0x61f   :  { %12064 = vst [vmem:[#allocation176_spill] sm:$0xff] %v8549_v0 }
 0x621   :  { %4093 = vrot.lane.b32.xlu1 %v8507_v58, %s6581_s15 }
 0x622   :  { %v8553_v10 = vpop.permute.xlu1 %4485 }
 0x623   :  { %v6416_v5 = vpop.eup %6415  ;;  %12065 = vst [vmem:[#allocation177_spill] sm:$0xff] %v8553_v10  ;;  %v3241_v10 = vand.u32 65535, %v8065_v30 }
 0x624   :  { %v8534_v14 = vmul.f32 %v6416_v5, %v11990_v50  ;;  %v8547_v5 = vpop.permute.xlu0 %1669 }
 0x625   :  { %4221 = vrot.lane.b32.xlu1 %v8507_v58, %s6582_s16 }
 0x626   :  { %12061 = vst [vmem:[#allocation173_spill] sm:$0xff] %v8534_v14  ;;  %v6418_v53 = vpop.eup %6417  ;;  %v8559_v62 = vpop.permute.xlu1 %4613 }
 0x627   :  { %12066 = vst [vmem:[#allocation178_spill] sm:$0xff] %v8559_v62  ;;  %v8562_v46 = vmul.f32 %v6418_v53, %v12010_v60 }
 0x629   :  { %4509 = vrot.lane.b32.xlu1 %v8507_v58, %s6583_s17  ;;  %12067 = vst [vmem:[#allocation179_spill] sm:$0xff] %v8562_v46 }
 0x62d   :  { %4637 = vrot.lane.b32.xlu1 %v8507_v58, %s6584_s3  ;;  %v8566_v2 = vpop.xlane.xlu1 %3380 }
 0x62e   :  { %vm3382_vm0 = vcmp.eq.f32.partialorder %v8326_v57, %v8566_v2 }
 0x631   :  { %1683 = vrot.lane.b32.xlu1 %v8534_v14, %s6580_s6  ;;  %v8574_v49 = vpop.xlane.xlu1 %3365 }
 0x633   :  { %3219 = vmin.xlane.f32.xlu0 %v3218_v63  ;;  %v8572_v63 = vpop.permute.xlu0 %4083 }
 0x634   :  { %12069 = vst [vmem:[#allocation180_spill] sm:$0xff] %v8572_v63 }
 0x635   :  { %4097 = vrot.lane.b32.xlu1 %v8534_v14, %s6581_s15 }
 0x637   :  { %3264 = vmin.xlane.f32.xlu0 %v3263_v4  ;;  %v8581_v4 = vpop.permute.xlu1 %1659  ;;  %v8595_v31 = vpop.permute.xlu0 %4211 }
 0x638   :  { %12073 = vst [vmem:[#allocation184_spill] sm:$0xff] %v8595_v31  ;;  %v12079_v31 = vld [vmem:[#allocation37_spill] sm:$0xff] }
 0x639   :  { %4225 = vrot.lane.b32.xlu1 %v8534_v14, %s6582_s16 }
 0x63b   :  { %v8585_v53 = vpop.permute.xlu1 %4073 }
 0x63c   :  { %12070 = vst [vmem:[#allocation181_spill] sm:$0xff] %v8585_v53  ;;  %v3288_v53 = vcvt.s32.f32 %v3286_v37  ;;  %v12082_v37 = vld [vmem:[#allocation38_spill] sm:$0xff] }
 0x63d   :  { %4513 = vrot.lane.b32.xlu1 %v8534_v14, %s6583_s17  ;;  %vm2917_vm6 = vcmp.eq.f32.partialorder %v12082_v37, %v12081_v27 }
 0x63f   :  { %v8587_v7 = vpop.permute.xlu1 %4201 }
 0x640   :  { %12071 = vst [vmem:[#allocation182_spill] sm:$0xff] %v8587_v7  ;;  %v3293_v7 = vsel %vm3292_vm2, %v3288_v53, inf  ;;  %v12083_v53 = vld [vmem:[#allocation35_spill] sm:$0xff] }
 0x641   :  { %4641 = vrot.lane.b32.xlu1 %v8534_v14, %s6584_s3 }
 0x643   :  { %v8589_v63 = vpop.permute.xlu1 %4489 }
 0x644   :  { %12072 = vst [vmem:[#allocation183_spill] sm:$0xff] %v8589_v63  ;;  %v8601_v63 = vpop.permute.xlu0 %4499 }
 0x645   :  { %1687 = vrot.lane.b32.xlu1 %v8562_v46, %s6580_s6  ;;  %12075 = vst [vmem:[#allocation186_spill] sm:$0xff] %v8601_v63  ;;  %v2956_v63 = vand.u32 65535, %v12083_v53  ;;  %v12091_v53 = vld [vmem:[#allocation22_spill] sm:$0xff] }
 0x647   :  { %v8597_v62 = vpop.permute.xlu1 %4617  ;;  %v2958_v21 = vcvt.s32.f32 %v2956_v63 }
 0x648   :  { %12074 = vst [vmem:[#allocation185_spill] sm:$0xff] %v8597_v62 }
 0x649   :  { %4101 = vrot.lane.b32.xlu1 %v8562_v46, %s6581_s15 }
 0x64b   :  { %v8603_v30 = vpop.permute.xlu1 %1663 }
 0x64d   :  { %1821 = vrot.lane.b32.xlu0 %v1739_v17, %s6585_s18  ;;  %4229 = vrot.lane.b32.xlu1 %v8562_v46, %s6582_s16  ;;  %v3243_v17 = vcvt.s32.f32 %v3241_v10  ;;  %v2926_v10 = vand.u32 65535, %v12076_v28  ;;  %v12085_v28 = vld [vmem:[#allocation73_spill] sm:$0xff] }
 0x64e   :  { %vm2962_vm7 = vcmp.eq.f32.partialorder %v12086_v25, %v12085_v28 }
 0x64f   :  { %v3248_v0 = vsel %vm3247_vm1, %v3243_v17, inf  ;;  %v8609_v62 = vpop.permute.xlu1 %4077 }
 0x650   :  { %12080 = vst [vmem:[#allocation33_spill] sm:$0xff] %v8609_v62  ;;  %v2963_v62 = vsel %vm2962_vm7, %v2958_v21, inf  ;;  %v12094_v21 = vld [vmem:[#allocation3_spill] sm:$0xff] }
 0x651   :  { %4517 = vrot.lane.b32.xlu1 %v8562_v46, %s6583_s17 }
 0x653   :  { %v8614_v14 = vpop.permute.xlu1 %4205 }
 0x654   :  { %12084 = vst [vmem:[#allocation97_spill] sm:$0xff] %v8614_v14 }
 0x655   :  { %4645 = vrot.lane.b32.xlu1 %v8562_v46, %s6584_s3  ;;  %v2911_v46 = vand.u32 65535, %v12079_v31  ;;  %v2941_v31 = vand.u32 65535, %v12087_v51 }
 0x657   :  { %v2943_v37 = vcvt.s32.f32 %v2941_v31 }
 0x66c   :  { %3249 = vmin.xlane.f32.xlu0 %v3248_v0  ;;  %v2928_v0 = vcvt.s32.f32 %v2926_v10  ;;  %v12088_v10 = vld [vmem:[#allocation101_spill] sm:$0xff] }
 0x66e   :  { %v2933_v17 = vsel %vm2932_vm5, %v2928_v0, inf  ;;  %v12089_v0 = vld [vmem:[#allocation41_spill] sm:$0xff] }
 0x66f   :  { %vm2947_vm8 = vcmp.eq.f32.partialorder %v12089_v0, %v12088_v10 }
 0x670   :  { %3294 = vmin.xlane.f32.xlu0 %v3293_v7  ;;  %v2913_v7 = vcvt.s32.f32 %v2911_v46  ;;  %v1741_v46 = vmul.f32 %v8405_v24, %v12091_v53  ;;  %v2948_v14 = vsel %vm2947_vm8, %v2943_v37, inf  ;;  %v3271_v24 = vand.u32 65535, %v8120_v18 }
 0x671   :  { %v3316_v37 = vand.u32 65535, %v8165_v6  ;;  %v12103_v6 = vld [vmem:[#allocation40_spill] sm:$0xff] }
 0x672   :  { %v2918_v58 = vsel %vm2917_vm6, %v2913_v7, inf  ;;  %v8625_v7 = vpop.permute.xlu0 %4627  ;;  %v3273_v0 = vcvt.s32.f32 %v3271_v24  ;;  %vm3525_vm6 = vcmask 31744  }
 0x673   :  { %12092 = vst [vmem:[#allocation37_spill] sm:$0xff] %v8625_v7  ;;  %v12106_v7 = vld [vmem:[#allocation43_spill] sm:$0xff] }
 0x676   :  { %v8640_v31 = vpop.permute.xlu0 %1673 }
 0x679   :  { %2934 = vmin.xlane.f32.xlu1 %v2933_v17  ;;  %v8621_v17 = vpop.permute.xlu1 %4493 }
 0x67a   :  { %12090 = vst [vmem:[#allocation34_spill] sm:$0xff] %v8621_v17 }
 0x67d   :  { %2919 = vmin.xlane.f32.xlu1 %v2918_v58  ;;  %v8628_v25 = vpop.permute.xlu1 %4621 }
 0x67e   :  { %12093 = vst [vmem:[#allocation98_spill] sm:$0xff] %v8628_v25 }
 0x681   :  { %2964 = vmin.xlane.f32.xlu1 %v2963_v62  ;;  %v8630_v58 = vpop.permute.xlu1 %1667  ;;  %v1722_v62 = vmul.f32 %v7975_v15, %v12094_v21  ;;  %v8647_v15 = vpop.permute.xlu0 %4087 }
 0x682   :  { %12098 = vst [vmem:[#allocation36_spill] sm:$0xff] %v8647_v15 }
 0x685   :  { %2949 = vmin.xlane.f32.xlu1 %v2948_v14  ;;  %v8634_v63 = vpop.permute.xlu1 %4081  ;;  %v8653_v17 = vpop.permute.xlu0 %4215 }
 0x686   :  { %1825 = vrot.lane.b32.xlu0 %v1741_v46, %s6585_s18  ;;  %12095 = vst [vmem:[#allocation38_spill] sm:$0xff] %v8634_v63  ;;  %v3278_v46 = vsel %vm3277_vm9, %v3273_v0, inf  ;;  %12100 = vst [vmem:[#allocation101_spill] sm:$0xff] %v8653_v17  ;;  %v2986_v0 = vand.u32 65535, %v12103_v6  ;;  %v12109_v17 = vld [vmem:[#allocation106_spill] sm:$0xff] }
 0x689   :  { %v8637_v51 = vpop.permute.xlu1 %4209  ;;  %v8657_v11 = vpop.permute.xlu0 %4503 }
 0x68a   :  { %12096 = vst [vmem:[#allocation35_spill] sm:$0xff] %v8637_v51  ;;  %12101 = vst [vmem:[#allocation41_spill] sm:$0xff] %v8657_v11  ;;  %v12110_v51 = vld [vmem:[#allocation44_spill] sm:$0xff] }
 0x68b   :  { %vm2977_vm12 = vcmp.eq.f32.partialorder %v12110_v51, %v12109_v17  ;;  %v12115_v51 = vld [vmem:[#allocation5_spill] sm:$0xff] }
 0x68d   :  { %v8642_v14 = vpop.permute.xlu1 %4497  ;;  %v8662_v15 = vpop.permute.xlu0 %4631 }
 0x68e   :  { %12097 = vst [vmem:[#allocation73_spill] sm:$0xff] %v8642_v14  ;;  %12104 = vst [vmem:[#allocation40_spill] sm:$0xff] %v8662_v15 }
 0x691   :  { %v8651_v63 = vpop.permute.xlu1 %4625  ;;  %v8673_v6 = vpop.permute.xlu0 %1677 }
 0x692   :  { %12099 = vst [vmem:[#allocation39_spill] sm:$0xff] %v8651_v63  ;;  %v2988_v63 = vcvt.s32.f32 %v2986_v0 }
 0x695   :  { %v8655_v14 = vpop.permute.xlu1 %1671 }
 0x696   :  { %1787 = vrot.lane.b32.xlu1 %v1722_v62, %s6585_s18  ;;  %v3318_v62 = vcvt.s32.f32 %v3316_v37  ;;  %v2971_v37 = vand.u32 65535, %v12107_v8 }
 0x698   :  { %v3323_v18 = vsel %vm3322_vm10, %v3318_v62, inf  ;;  %v2973_v11 = vcvt.s32.f32 %v2971_v37  ;;  %v12116_v37 = vld [vmem:[#allocation142_spill] sm:$0xff] }
 0x699   :  { %v8659_v24 = vpop.permute.xlu1 %4085 }
 0x69a   :  { %12102 = vst [vmem:[#allocation3_spill] sm:$0xff] %v8659_v24  ;;  %v1743_v24 = vmul.f32 %v8547_v5, %v7177_v32  ;;  %v2978_v15 = vsel %vm2977_vm12, %v2973_v11, inf }
 0x69d   :  { %v8667_v62 = vpop.permute.xlu1 %4213 }
 0x6a1   :  { %v8675_v25 = vpop.permute.xlu1 %4501 }
 0x6a2   :  { %12111 = vst [vmem:[#allocation43_spill] sm:$0xff] %v8675_v25 }
 0x6a5   :  { %3279 = vmin.xlane.f32.xlu0 %v3278_v46  ;;  %v12105_v46 = vld [vmem:[#allocation105_spill] sm:$0xff]  ;;  %v8680_v0 = vpop.permute.xlu1 %4629 }
 0x6a6   :  { %vm2992_vm11 = vcmp.eq.f32.partialorder %v12106_v7, %v12105_v46  ;;  %12108 = vst [vmem:[#allocation105_spill] sm:$0xff] %v8667_v62  ;;  %v8678_v7 = vpop.permute.xlu0 %4091  ;;  %12113 = vst [vmem:[#allocation106_spill] sm:$0xff] %v8680_v0 }
 0x6a7   :  { %12112 = vst [vmem:[#allocation42_spill] sm:$0xff] %v8678_v7  ;;  %v3301_v7 = vand.u32 65535, %v8174_v33 }
 0x6a9   :  { %3324 = vmin.xlane.f32.xlu0 %v3323_v18  ;;  %v2993_v18 = vsel %vm2992_vm11, %v2988_v63, inf  ;;  %v8684_v8 = vpop.permute.xlu1 %1675 }
 0x6aa   :  { %v8682_v63 = vpop.permute.xlu0 %4219 }
 0x6ab   :  { %12114 = vst [vmem:[#allocation44_spill] sm:$0xff] %v8682_v63  ;;  %v3303_v63 = vcvt.s32.f32 %v3301_v7  ;;  %v12125_v7 = vld [vmem:[#allocation45_spill] sm:$0xff] }
 0x6ad   :  { %v8691_v11 = vpop.permute.xlu1 %4089 }
 0x6ae   :  { %v8688_v5 = vpop.permute.xlu0 %4507  ;;  %12118 = vst [vmem:[#allocation142_spill] sm:$0xff] %v8691_v11 }
 0x6af   :  { %12117 = vst [vmem:[#allocation5_spill] sm:$0xff] %v8688_v5  ;;  %v3308_v5 = vsel %vm3307_vm3, %v3303_v63, inf }
 0x6ba   :  { %2994 = vmin.xlane.f32.xlu1 %v2993_v18  ;;  %v1724_v18 = vmul.f32 %v12116_v37, %v12115_v51  ;;  %v3346_v37 = vand.u32 65535, %v8227_v16  ;;  %v3001_v16 = vand.u32 65535, %v12125_v7 }
 0x6bc   :  { %v3003_v1 = vcvt.s32.f32 %v3001_v16 }
 0x6be   :  { %2979 = vmin.xlane.f32.xlu1 %v2978_v15  ;;  %v8693_v15 = vpop.permute.xlu0 %4635 }
 0x6bf   :  { %1829 = vrot.lane.b32.xlu0 %v1743_v24, %s6585_s18  ;;  %12119 = vst [vmem:[#allocation187_spill] sm:$0xff] %v8693_v15  ;;  %v8695_v24 = vpop.permute.xlu1 %4217 }
 0x6c0   :  { %12120 = vst [vmem:[#allocation188_spill] sm:$0xff] %v8695_v24 }
 0x6c2   :  { %v8700_v25 = vpop.permute.xlu0 %1681 }
 0x6c3   :  { %v8703_v0 = vpop.permute.xlu1 %4505 }
 0x6c4   :  { %12121 = vst [vmem:[#allocation189_spill] sm:$0xff] %v8703_v0  ;;  %v12129_v0 = vld [vmem:[#allocation46_spill] sm:$0xff] }
 0x6c6   :  { %v8707_v11 = vpop.permute.xlu0 %4095 }
 0x6c7   :  { %12122 = vst [vmem:[#allocation190_spill] sm:$0xff] %v8707_v11  ;;  %v8709_v33 = vpop.permute.xlu1 %4633  ;;  %v1745_v11 = vmul.f32 %v8640_v31, %v7193_v23 }
 0x6c8   :  { %12123 = vst [vmem:[#allocation191_spill] sm:$0xff] %v8709_v33  ;;  %v12151_v33 = vld [vmem:[#allocation30_spill] sm:$0xff] }
 0x6ca   :  { %v8711_v40 = vpop.permute.xlu0 %4223 }
 0x6cb   :  { %12124 = vst [vmem:[#allocation192_spill] sm:$0xff] %v8711_v40  ;;  %v8713_v24 = vpop.permute.xlu1 %1679 }
 0x6ce   :  { %v8716_v62 = vpop.permute.xlu0 %4511 }
 0x6cf   :  { %1791 = vrot.lane.b32.xlu1 %v1724_v18, %s6585_s18  ;;  %v3348_v18 = vcvt.s32.f32 %v3346_v37  ;;  %12126 = vst [vmem:[#allocation45_spill] sm:$0xff] %v8716_v62  ;;  %v8718_v63 = vpop.permute.xlu1 %4093 }
 0x6d0   :  { %12127 = vst [vmem:[#allocation193_spill] sm:$0xff] %v8718_v63 }
 0x6d1   :  { %v3353_v15 = vsel %vm3352_vm13, %v3348_v18, inf }
 0x6d2   :  { %v8722_v37 = vpop.permute.xlu0 %4639 }
 0x6d6   :  { %v8729_v7 = vpop.permute.xlu0 %1685 }
 0x6da   :  { %v8733_v63 = vpop.permute.xlu0 %4099 }
 0x6db   :  { %12133 = vst [vmem:[#allocation195_spill] sm:$0xff] %v8733_v63  ;;  %v1730_v63 = vmul.f32 %v8343_v29, %v7057_v42 }
 0x6de   :  { %3309 = vmin.xlane.f32.xlu0 %v3308_v5  ;;  %v12128_v5 = vld [vmem:[#allocation112_spill] sm:$0xff] }
 0x6df   :  { %vm3007_vm14 = vcmp.eq.f32.partialorder %v12129_v0, %v12128_v5  ;;  %12130 = vst [vmem:[#allocation112_spill] sm:$0xff] %v8722_v37  ;;  %v12135_v0 = vld [vmem:[#allocation7_spill] sm:$0xff] }
 0x6e0   :  { %v3008_v18 = vsel %vm3007_vm14, %v3003_v1, inf  ;;  %v1726_v16 = vmul.f32 %v8249_v43, %v12135_v0  ;;  %v8739_v1 = vpop.permute.xlu0 %4227  ;;  %v1732_v43 = vmul.f32 %v8407_v36, %v7073_v52 }
 0x6e1   :  { %12136 = vst [vmem:[#allocation7_spill] sm:$0xff] %v8739_v1 }
 0x6e2   :  { %3354 = vmin.xlane.f32.xlu0 %v3353_v15  ;;  %v8724_v15 = vpop.permute.xlu1 %4221 }
 0x6e3   :  { %12131 = vst [vmem:[#allocation46_spill] sm:$0xff] %v8724_v15 }
 0x6e6   :  { %v8731_v62 = vpop.permute.xlu1 %4509 }
 0x6e7   :  { %12132 = vst [vmem:[#allocation194_spill] sm:$0xff] %v8731_v62 }
 0x6ea   :  { %v8735_v40 = vpop.permute.xlu1 %4637 }
 0x6eb   :  { %12134 = vst [vmem:[#allocation196_spill] sm:$0xff] %v8735_v40 }
 0x6ee   :  { %v1684_v37 = vpop.permute.xlu1 %1683 }
 0x6f2   :  { %v8749_v62 = vpop.permute.xlu1 %4097 }
 0x6f3   :  { %3009 = vmin.xlane.f32.xlu1 %v3008_v18  ;;  %v12137_v18 = vld [vmem:[#allocation9_spill] sm:$0xff]  ;;  %12139 = vst [vmem:[#allocation197_spill] sm:$0xff] %v8749_v62 }
 0x6f4   :  { %v1728_v31 = vmul.f32 %v8290_v38, %v12137_v18  ;;  %v1734_v38 = vmul.f32 %v8470_v45, %v11982_v12 }
 0x6f8   :  { %1833 = vrot.lane.b32.xlu0 %v1745_v11, %s6585_s18  ;;  %v8745_v11 = vpop.permute.xlu0 %4515 }
 0x6f9   :  { %12138 = vst [vmem:[#allocation9_spill] sm:$0xff] %v8745_v11 }
 0x6fc   :  { %v8755_v1 = vpop.permute.xlu0 %4643 }
 0x6fd   :  { %12140 = vst [vmem:[#allocation198_spill] sm:$0xff] %v8755_v1 }
 0x700   :  { %v8766_v11 = vpop.permute.xlu0 %1785 }
 0x704   :  { %1795 = vrot.lane.b32.xlu1 %v1726_v16, %s6585_s18  ;;  %v3331_v16 = vand.u32 65535, %v8238_v48  ;;  %v1736_v48 = vmul.f32 %v8526_v56, %v11998_v47  ;;  %v1740_v56 = vmul.f32 %v8603_v30, %v12035_v22  ;;  %v1881_v22 = vsel %vm1176_vm4, %v8766_v11, 0.0 }
 0x705   :  { %v2952_v47 = vcvt.f32.s32 %v12088_v10 }
 0x706   :  { %v3333_v29 = vcvt.s32.f32 %v3331_v16  ;;  %v8775_v16 = vpop.xlane.xlu0 %3024 }
 0x708   :  { %1799 = vrot.lane.b32.xlu1 %v1728_v31, %s6585_s18  ;;  %v8760_v31 = vpop.permute.xlu1 %4225  ;;  %v3338_v36 = vsel %vm3337_vm15, %v3333_v29, inf  ;;  %v1742_v29 = vmul.f32 %v8630_v58, %v7157_v54  ;;  %v12145_v58 = vld [vmem:[#allocation28_spill] sm:$0xff] }
 0x709   :  { %12141 = vst [vmem:[#allocation199_spill] sm:$0xff] %v8760_v31 }
 0x70a   :  { %v8784_v57 = vpop.permute.xlu0 %1789 }
 0x70c   :  { %1803 = vrot.lane.b32.xlu1 %v1730_v63, %s6585_s18  ;;  %v3376_v63 = vand.u32 65535, %v8306_v13  ;;  %v1738_v13 = vmul.f32 %v8581_v4, %v12022_v44  ;;  %v1744_v4 = vmul.f32 %v8655_v14, %v7173_v3 }
 0x70e   :  { %v3378_v45 = vcvt.s32.f32 %v3376_v63  ;;  %v8789_v63 = vpop.xlane.xlu0 %3054 }
 0x710   :  { %1807 = vrot.lane.b32.xlu1 %v1732_v43, %s6585_s18  ;;  %v8772_v43 = vpop.permute.xlu1 %4513  ;;  %v3383_v61 = vsel %vm3382_vm0, %v3378_v45, inf }
 0x711   :  { %12142 = vst [vmem:[#allocation200_spill] sm:$0xff] %v8772_v43  ;;  %v12149_v43 = vld [vmem:[#allocation92_spill] sm:$0xff] }
 0x712   :  { %v8795_v30 = vpop.permute.xlu0 %1793  ;;  %v3361_v62 = vand.u32 65535, %v12149_v43 }
 0x714   :  { %1811 = vrot.lane.b32.xlu1 %v1734_v38, %s6585_s18  ;;  %v8782_v38 = vpop.permute.xlu1 %4641 }
 0x715   :  { %12143 = vst [vmem:[#allocation201_spill] sm:$0xff] %v8782_v38 }
 0x717   :  { %3339 = vmin.xlane.f32.xlu0 %v3338_v36 }
 0x718   :  { %1815 = vrot.lane.b32.xlu1 %v1736_v48, %s6585_s18  ;;  %v1688_v36 = vpop.permute.xlu1 %1687  ;;  %v1746_v48 = vmul.f32 %v8684_v8, %v7189_v20  ;;  %v1750_v8 = vmul.f32 %v1684_v37, %v11990_v50 }
 0x71b   :  { %3384 = vmin.xlane.f32.xlu0 %v3383_v61  ;;  %v1747_v61 = vmul.f32 %v8673_v6, %v12145_v58 }
 0x71c   :  { %1819 = vrot.lane.b32.xlu1 %v1738_v13, %s6585_s18  ;;  %v8799_v45 = vpop.permute.xlu1 %4101  ;;  %v8804_v13 = vpop.xlane.xlu0 %3039 }
 0x71d   :  { %12144 = vst [vmem:[#allocation202_spill] sm:$0xff] %v8799_v45 }
 0x720   :  { %1823 = vrot.lane.b32.xlu1 %v1740_v56, %s6585_s18  ;;  %v1748_v56 = vmul.f32 %v8713_v24, %v11976_v35  ;;  %v8808_v14 = vpop.permute.xlu1 %4229 }
 0x721   :  { %12146 = vst [vmem:[#allocation203_spill] sm:$0xff] %v8808_v14 }
 0x724   :  { %1827 = vrot.lane.b32.xlu1 %v1742_v29, %s6585_s18  ;;  %v8813_v29 = vpop.xlane.xlu0 %3084  ;;  %v8817_v6 = vpop.permute.xlu1 %4517 }
 0x725   :  { %12147 = vst [vmem:[#allocation204_spill] sm:$0xff] %v8817_v6 }
 0x728   :  { %1831 = vrot.lane.b32.xlu1 %v1744_v4, %s6585_s18  ;;  %v1752_v4 = vmul.f32 %v1688_v36, %v12010_v60  ;;  %v8822_v24 = vpop.permute.xlu1 %4645  ;;  %v12150_v36 = vld [vmem:[#allocation160_spill] sm:$0xff] }
 0x729   :  { %12148 = vst [vmem:[#allocation205_spill] sm:$0xff] %v8822_v24  ;;  %vm3367_vm1 = vcmp.eq.f32.partialorder %v12150_v36, %v8574_v49  ;;  %v1749_v36 = vmul.f32 %v8700_v25, %v12151_v33 }
 0x72c   :  { %1835 = vrot.lane.b32.xlu1 %v1746_v48, %s6585_s18  ;;  %v8820_v48 = vpop.permute.xlu0 %1797 }
 0x730   :  { %1839 = vrot.lane.b32.xlu1 %v1748_v56, %s6585_s18  ;;  %v8824_v45 = vpop.xlane.xlu0 %3069  ;;  %v8826_v56 = vpop.xlane.xlu1 %2934 }
 0x731   :  { %1837 = vrot.lane.b32.xlu0 %v1747_v61, %s6585_s18 }
 0x734   :  { %1843 = vrot.lane.b32.xlu1 %v1750_v8, %s6585_s18  ;;  %v8828_v61 = vpop.xlane.xlu0 %3114  ;;  %v2920_v37 = vpop.xlane.xlu1 %2919 }
 0x738   :  { %1847 = vrot.lane.b32.xlu1 %v1752_v4, %s6585_s18  ;;  %v8831_v8 = vpop.permute.xlu0 %1801  ;;  %v8835_v6 = vpop.xlane.xlu1 %2964  ;;  %v3363_v4 = vcvt.s32.f32 %v3361_v62  ;;  %v12152_v62 = vld [vmem:[#allocation32_spill] sm:$0xff] }
 0x73a   :  { %v3368_v24 = vsel %vm3367_vm1, %v3363_v4, inf }
 0x73c   :  { %v8837_v14 = vpop.xlane.xlu0 %3099  ;;  %v2950_v1 = vpop.xlane.xlu1 %2949 }
 0x740   :  { %v8839_v38 = vpop.xlane.xlu0 %3144  ;;  %v1788_v31 = vpop.permute.xlu1 %1787 }
 0x741   :  { %v1884_v43 = vsel %vm1176_vm4, %v1788_v31, 0.0 }
 0x744   :  { %v8841_v40 = vpop.permute.xlu0 %1805  ;;  %v8856_v50 = vpop.xlane.xlu1 %2994 }
 0x748   :  { %v8844_v15 = vpop.xlane.xlu0 %3129 }
 0x74c   :  { %v8848_v60 = vpop.xlane.xlu0 %3174 }
 0x750   :  { %3369 = vmin.xlane.f32.xlu0 %v3368_v24  ;;  %v1751_v24 = vmul.f32 %v8729_v7, %v12152_v62  ;;  %v8854_v4 = vpop.permute.xlu0 %1809  ;;  %v2922_v7 = vcvt.f32.s32 %v12081_v27  ;;  %v2921_v62 = vcvt.f32.s32 %v2920_v37  ;;  %v2951_v37 = vcvt.f32.s32 %v2950_v1 }
 0x751   :  { %v1887_v1 = vsel %vm1176_vm4, %v8784_v57, 0.0  ;;  %v1893_v57 = vsel %vm1176_vm4, %v8795_v30, 0.0  ;;  %v1899_v30 = vsel %vm1176_vm4, %v8820_v48, 0.0  ;;  %v1905_v48 = vsel %vm1176_vm4, %v8831_v8, 0.0 }
 0x752   :  { %v2923_v3 = vshll.u32 %v2922_v7, 16  ;;  %v12153_v7 = vld [vmem:[#allocation2_spill] sm:$0xff]  ;;  %v1911_v8 = vsel %vm1176_vm4, %v8841_v40, 0.0 }
 0x754   :  { %v8858_v31 = vpop.xlane.xlu0 %3159  ;;  %v2924_v54 = vadd.s32 %v2923_v3, %v2921_v62  ;;  %v2953_v3 = vshll.u32 %v2952_v47, 16  ;;  %v2982_v47 = vcvt.f32.s32 %v12109_v17 }
 0x756   :  { %vm3390_vm2 = vcmp.eq.s32.totalorder %v12153_v7, %v2924_v54  ;;  %v2954_v62 = vadd.s32 %v2953_v3, %v2951_v37  ;;  %v8891_v54 = vld [vmem:[%s11553_s7] ss:$0 sm:$0xff]  ;;  %s6587_s7 = smov 32  }
 0x758   :  { %v8860_v58 = vpop.xlane.xlu0 %3204  ;;  %vm3392_vm5 = vcmp.eq.s32.totalorder %v12153_v7, %v2954_v62  ;;  %v3012_v62 = vcvt.f32.s32 %v12128_v5 }
 0x75c   :  { %1885 = vadd.xlane.f32.xlu1 %v1884_v43  ;;  %v2980_v43 = vpop.xlane.xlu1 %2979  ;;  %v8862_v25 = vpop.permute.xlu0 %1813 }
 0x75d   :  { %v2981_v37 = vcvt.f32.s32 %v2980_v43 }
 0x760   :  { %v1792_v35 = vpop.permute.xlu1 %1791 }
 0x766   :  { %1841 = vrot.lane.b32.xlu0 %v1749_v36, %s6585_s18  ;;  %v8866_v36 = vpop.xlane.xlu0 %3189 }
 0x76a   :  { %1845 = vrot.lane.b32.xlu0 %v1751_v24, %s6585_s18  ;;  %v8870_v20 = vpop.xlane.xlu0 %3234 }
 0x77c   :  { %v8864_v33 = vpop.xlane.xlu1 %3009 }
 0x780   :  { %v1796_v23 = vpop.permute.xlu1 %1795 }
 0x781   :  { %v1896_v24 = vsel %vm1176_vm4, %v1796_v23, 0.0  ;;  %v8877_v23 = vpop.permute.xlu0 %1817 }
 0x782   :  { %1897 = vadd.xlane.f32.xlu1 %v1896_v24  ;;  %v1890_v24 = vsel %vm1176_vm4, %v1792_v35, 0.0 }
 0x784   :  { %v1800_v32 = vpop.permute.xlu1 %1799 }
 0x785   :  { %v1902_v53 = vsel %vm1176_vm4, %v1800_v32, 0.0  ;;  %v8882_v11 = vpop.xlane.xlu0 %3219 }
 0x786   :  { %1903 = vadd.xlane.f32.xlu1 %v1902_v53 }
 0x788   :  { %v1804_v44 = vpop.permute.xlu1 %1803 }
 0x789   :  { %1882 = vadd.xlane.f32.xlu0 %v1881_v22  ;;  %v1908_v27 = vsel %vm1176_vm4, %v1804_v44, 0.0  ;;  %v6586_v22 = vmov 0.0   ;;  %v2937_v44 = vcvt.f32.s32 %v12077_v39  ;;  %v8900_v3 = vpop.xlane.xlu0 %3264 }
 0x78a   :  { %1909 = vadd.xlane.f32.xlu1 %v1908_v27  ;;  %v5908_v10 = vsel %vm3390_vm2, 1.0, %v6586_v22  ;;  %v2936_v27 = vcvt.f32.s32 %v8826_v56 }
 0x78b   :  { %v2938_v39 = vshll.u32 %v2937_v44, 16  ;;  %v2967_v44 = vcvt.f32.s32 %v12085_v28  ;;  %v3011_v28 = vcvt.f32.s32 %v8864_v33  ;;  %v2997_v33 = vcvt.f32.s32 %v12105_v46 }
 0x78c   :  { %v1808_v32 = vpop.permute.xlu1 %1807  ;;  %v3041_v46 = vcvt.f32.s32 %v8804_v13 }
 0x78d   :  { %1891 = vadd.xlane.f32.xlu0 %v1890_v24  ;;  %v1914_v53 = vsel %vm1176_vm4, %v1808_v32, 0.0  ;;  %v3493_v32 = vmul.f32 %v8891_v54, %v5908_v10  ;;  %v2939_v17 = vadd.s32 %v2938_v39, %v2936_v27  ;;  %v5910_v10 = vsel %vm3392_vm5, 1.0, %v6586_v22 }
 0x78e   :  { %1915 = vadd.xlane.f32.xlu1 %v1914_v53  ;;  %v2983_v53 = vshll.u32 %v2982_v47, 16  ;;  %v3495_v27 = vmul.f32 %v8891_v54, %v5910_v10  ;;  %v12154_v10 = vld [vmem:[#allocation116_spill] sm:$0xff] }
 0x78f   :  { %v3526_v56 = vsel %vm3525_vm6, %v3493_v32, 0.0  ;;  %vm3391_vm7 = vcmp.eq.s32.totalorder %v12153_v7, %v2939_v17  ;;  %v2968_v32 = vshll.u32 %v2967_v44, 16  ;;  %v3042_v44 = vcvt.f32.s32 %v12154_v10 }
 0x790   :  { %v1812_v35 = vpop.permute.xlu1 %1811  ;;  %v2984_v43 = vadd.s32 %v2983_v53, %v2981_v37  ;;  %v5909_v5 = vsel %vm3391_vm7, 1.0, %v6586_v22  ;;  %v3532_v37 = vsel %vm3525_vm6, %v3495_v27, 0.0 }
 0x791   :  { %1888 = vadd.xlane.f32.xlu0 %v1887_v1  ;;  %v1920_v24 = vsel %vm1176_vm4, %v1812_v35, 0.0  ;;  %v2966_v35 = vcvt.f32.s32 %v8835_v6  ;;  %v3013_v6 = vshll.u32 %v3012_v62, 16 }
 0x792   :  { %1921 = vadd.xlane.f32.xlu1 %v1920_v24  ;;  %v8912_v24 = vpop.permute.xlu0 %1821  ;;  %vm3394_vm8 = vcmp.eq.s32.totalorder %v12153_v7, %v2984_v43  ;;  %v2996_v43 = vcvt.f32.s32 %v8856_v50  ;;  %v3043_v50 = vshll.u32 %v3042_v44, 16 }
 0x793   :  { %v2969_v39 = vadd.s32 %v2968_v32, %v2966_v35  ;;  %v5912_v17 = vsel %vm3394_vm8, 1.0, %v6586_v22  ;;  %v2998_v35 = vshll.u32 %v2997_v33, 16 }
 0x794   :  { %v1816_v1 = vpop.permute.xlu1 %1815  ;;  %v3497_v62 = vmul.f32 %v8891_v54, %v5912_v17  ;;  %v3044_v13 = vadd.s32 %v3043_v50, %v3041_v46  ;;  %v12156_v17 = vld [vmem:[#allocation120_spill] sm:$0xff]  ;;  %v12157_v50 = vld [vmem:[#allocation114_spill] sm:$0xff] }
 0x795   :  { %1894 = vadd.xlane.f32.xlu0 %v1893_v57  ;;  %v1926_v47 = vsel %vm1176_vm4, %v1816_v1, 0.0  ;;  %v3494_v1 = vmul.f32 %v8891_v54, %v5909_v5  ;;  %vm3393_vm9 = vcmp.eq.s32.totalorder %v12153_v7, %v2969_v39  ;;  %v2999_v32 = vadd.s32 %v2998_v35, %v2996_v43 }
 0x796   :  { %3527 = vadd.xlane.f32.xlu1 %v3526_v56  ;;  %v8920_v57 = vpop.xlane.xlu0 %3249  ;;  %v3014_v56 = vadd.s32 %v3013_v6, %v3011_v28  ;;  %v5911_v27 = vsel %vm3393_vm9, 1.0, %v6586_v22  ;;  %v3538_v28 = vsel %vm3525_vm6, %v3497_v62, 0.0  ;;  %v12155_v6 = vld [vmem:[#allocation108_spill] sm:$0xff]  ;;  %v3072_v33 = vcvt.f32.s32 %v12156_v17 }
 0x797   :  { %v3027_v39 = vcvt.f32.s32 %v12155_v6  ;;  %vm3395_vm11 = vcmp.eq.s32.totalorder %v12153_v7, %v2999_v32  ;;  %v3071_v43 = vcvt.f32.s32 %v8824_v45  ;;  %vm3398_vm12 = vcmp.eq.s32.totalorder %v12153_v7, %v3044_v13 }
 0x798   :  { %v1820_v53 = vpop.permute.xlu1 %1819  ;;  %vm3396_vm10 = vcmp.eq.s32.totalorder %v12153_v7, %v3014_v56  ;;  %v3026_v56 = vcvt.f32.s32 %v8775_v16  ;;  %v3073_v16 = vshll.u32 %v3072_v33, 16  ;;  %v3057_v32 = vcvt.f32.s32 %v12157_v50 }
 0x799   :  { %1900 = vadd.xlane.f32.xlu0 %v1899_v30  ;;  %v1932_v30 = vsel %vm1176_vm4, %v1820_v53, 0.0  ;;  %v5914_v5 = vsel %vm3396_vm10, 1.0, %v6586_v22  ;;  %v3496_v53 = vmul.f32 %v8891_v54, %v5911_v27  ;;  %v3028_v44 = vshll.u32 %v3027_v39, 16 }
 0x79a   :  { %1927 = vadd.xlane.f32.xlu1 %v1926_v47  ;;  %v3529_v47 = vsel %vm3525_vm6, %v3494_v1, 0.0  ;;  %v8935_v40 = vpop.xlane.xlu0 %3294  ;;  %v3499_v1 = vmul.f32 %v8891_v54, %v5914_v5  ;;  %v5916_v27 = vsel %vm3398_vm12, 1.0, %v6586_v22  ;;  %v3074_v45 = vadd.s32 %v3073_v16, %v3071_v43  ;;  %v12158_v5 = vld [vmem:[#allocation124_spill] sm:$0xff] }
 0x79b   :  { %v3029_v62 = vadd.s32 %v3028_v44, %v3026_v56  ;;  %v3102_v6 = vcvt.f32.s32 %v12158_v5  ;;  %v3056_v39 = vcvt.f32.s32 %v8789_v63  ;;  %v3101_v17 = vcvt.f32.s32 %v8837_v14 }
 0x79c   :  { %v3544_v35 = vsel %vm3525_vm6, %v3499_v1, 0.0  ;;  %vm3400_vm13 = vcmp.eq.s32.totalorder %v12153_v7, %v3074_v45  ;;  %v1929_v16 = vsel %vm1176_vm4, %v8877_v23, 0.0 }
 0x79d   :  { %1906 = vadd.xlane.f32.xlu0 %v1905_v48  ;;  %v1824_v48 = vpop.permute.xlu1 %1823  ;;  %vm3397_vm3 = vcmp.eq.s32.totalorder %v12153_v7, %v3029_v62  ;;  %v3103_v63 = vshll.u32 %v3102_v6, 16  ;;  %v5918_v43 = vsel %vm3400_vm13, 1.0, %v6586_v22 }
 0x79e   :  { %3533 = vadd.xlane.f32.xlu1 %v3532_v37  ;;  %v1917_v37 = vsel %vm1176_vm4, %v8854_v4, 0.0  ;;  %v8949_v10 = vpop.permute.xlu0 %1825  ;;  %v3535_v4 = vsel %vm3525_vm6, %v3496_v53, 0.0  ;;  %v3058_v53 = vshll.u32 %v3057_v32, 16  ;;  %v5915_v56 = vsel %vm3397_vm3, 1.0, %v6586_v22 }
 0x79f   :  { %v3104_v14 = vadd.s32 %v3103_v63, %v3101_v17  ;;  %v3500_v62 = vmul.f32 %v8891_v54, %v5915_v56  ;;  %v3503_v32 = vmul.f32 %v8891_v54, %v5918_v43  ;;  %v1935_v56 = vsel %vm1176_vm4, %v8912_v24, 0.0 }
 0x7a1   :  { %1912 = vadd.xlane.f32.xlu0 %v1911_v8  ;;  %v1938_v8 = vsel %vm1176_vm4, %v1824_v48, 0.0  ;;  %v3547_v23 = vsel %vm3525_vm6, %v3500_v62, 0.0  ;;  %vm3402_vm15 = vcmp.eq.s32.totalorder %v12153_v7, %v3104_v14  ;;  %v3161_v14 = vcvt.f32.s32 %v8858_v31 }
 0x7a2   :  { %1933 = vadd.xlane.f32.xlu1 %v1932_v30  ;;  %v5913_v30 = vsel %vm3395_vm11, 1.0, %v6586_v22  ;;  %v8956_v46 = vpop.xlane.xlu0 %3279 }
 0x7a3   :  { %v3498_v48 = vmul.f32 %v8891_v54, %v5913_v30 }
 0x7a5   :  { %3530 = vadd.xlane.f32.xlu0 %v3529_v47  ;;  %v1828_v47 = vpop.permute.xlu1 %1827  ;;  %v3541_v33 = vsel %vm3525_vm6, %v3498_v48, 0.0  ;;  %v3131_v48 = vcvt.f32.s32 %v8844_v15 }
 0x7a6   :  { %3539 = vadd.xlane.f32.xlu1 %v3538_v28  ;;  %v1923_v28 = vsel %vm1176_vm4, %v8862_v25, 0.0  ;;  %v1944_v13 = vsel %vm1176_vm4, %v1828_v47, 0.0  ;;  %v8971_v25 = vpop.xlane.xlu0 %3324 }
 0x7a9   :  { %1918 = vadd.xlane.f32.xlu0 %v1917_v37  ;;  %v3501_v37 = vmul.f32 %v8891_v54, %v5916_v27  ;;  %v1832_v44 = vpop.permute.xlu1 %1831  ;;  %v3086_v27 = vcvt.f32.s32 %v8813_v29 }
 0x7aa   :  { %1939 = vadd.xlane.f32.xlu1 %v1938_v8  ;;  %v3059_v8 = vadd.s32 %v3058_v53, %v3056_v39  ;;  %v1950_v50 = vsel %vm1176_vm4, %v1832_v44, 0.0  ;;  %v8985_v45 = vpop.permute.xlu0 %1829  ;;  %v3556_v39 = vsel %vm3525_vm6, %v3503_v32, 0.0 }
 0x7ab   :  { %v3550_v1 = vsel %vm3525_vm6, %v3501_v37, 0.0 }
 0x7ac   :  { %vm3399_vm14 = vcmp.eq.s32.totalorder %v12153_v7, %v3059_v8  ;;  %v3116_v8 = vcvt.f32.s32 %v8828_v61 }
 0x7ad   :  { %3536 = vadd.xlane.f32.xlu0 %v3535_v4  ;;  %v12159_v4 = vld [vmem:[#allocation117_spill] sm:$0xff]  ;;  %v5917_v5 = vsel %vm3399_vm14, 1.0, %v6586_v22  ;;  %v1836_v17 = vpop.permute.xlu1 %1835 }
 0x7ae   :  { %3545 = vadd.xlane.f32.xlu1 %v3544_v35  ;;  %v3087_v30 = vcvt.f32.s32 %v12159_v4  ;;  %v12160_v35 = vld [vmem:[#allocation128_spill] sm:$0xff]  ;;  %v8993_v53 = vpop.xlane.xlu0 %3309  ;;  %v3502_v63 = vmul.f32 %v8891_v54, %v5917_v5  ;;  %v1956_v43 = vsel %vm1176_vm4, %v1836_v17, 0.0  ;;  %v3146_v5 = vcvt.f32.s32 %v8839_v38 }
 0x7af   :  { %v3132_v47 = vcvt.f32.s32 %v12160_v35 }
 0x7b1   :  { %1924 = vadd.xlane.f32.xlu0 %v1923_v28  ;;  %v3088_v28 = vshll.u32 %v3087_v30, 16  ;;  %v3133_v29 = vshll.u32 %v3132_v47, 16  ;;  %v1840_v32 = vpop.permute.xlu1 %1839 }
 0x7b2   :  { %1945 = vadd.xlane.f32.xlu1 %v1944_v13  ;;  %v12161_v13 = vld [vmem:[#allocation122_spill] sm:$0xff]  ;;  %v9007_v62 = vpop.xlane.xlu0 %3354 }
 0x7b3   :  { %v3089_v6 = vadd.s32 %v3088_v28, %v3086_v27  ;;  %v3117_v37 = vcvt.f32.s32 %v12161_v13  ;;  %v3134_v15 = vadd.s32 %v3133_v29, %v3131_v48  ;;  %v12163_v27 = vld [vmem:[#allocation127_spill] sm:$0xff]  ;;  %v1941_v48 = vsel %vm1176_vm4, %v8949_v10, 0.0  ;;  %v12164_v29 = vld [vmem:[#allocation62_spill] sm:$0xff] }
 0x7b5   :  { %3542 = vadd.xlane.f32.xlu0 %v3541_v33  ;;  %v5920_v33 = vsel %vm3402_vm15, 1.0, %v6586_v22  ;;  %vm3401_vm0 = vcmp.eq.s32.totalorder %v12153_v7, %v3089_v6  ;;  %v3118_v30 = vshll.u32 %v3117_v37, 16  ;;  %vm3404_vm1 = vcmp.eq.s32.totalorder %v12153_v7, %v3134_v15 }
 0x7b6   :  { %3551 = vadd.xlane.f32.xlu1 %v3550_v1  ;;  %v12162_v1 = vld [vmem:[#allocation141_spill] sm:$0xff]  ;;  %v3505_v4 = vmul.f32 %v8891_v54, %v5920_v33  ;;  %v5919_v61 = vsel %vm3401_vm0, 1.0, %v6586_v22  ;;  %v5922_v28 = vsel %vm3404_vm1, 1.0, %v6586_v22  ;;  %v3192_v6 = vcvt.f32.s32 %v12164_v29  ;;  %v1834_v17 = vpop.permute.xlu0 %1833 }
 0x7b7   :  { %v3162_v44 = vcvt.f32.s32 %v12162_v1  ;;  %v3119_v24 = vadd.s32 %v3118_v30, %v3116_v8  ;;  %v3507_v13 = vmul.f32 %v8891_v54, %v5922_v28  ;;  %v3191_v33 = vcvt.f32.s32 %v8866_v36  ;;  %v12165_v1 = vld [vmem:[#allocation140_spill] sm:$0xff] }
 0x7b8   :  { %v3562_v47 = vsel %vm3525_vm6, %v3505_v4, 0.0  ;;  %v1844_v4 = vpop.permute.xlu1 %1843  ;;  %v3251_v28 = vcvt.f32.s32 %v8920_v57 }
 0x7b9   :  { %1930 = vadd.xlane.f32.xlu0 %v1929_v16  ;;  %v3553_v16 = vsel %vm3525_vm6, %v3502_v63, 0.0  ;;  %v3163_v35 = vshll.u32 %v3162_v44, 16  ;;  %vm3403_vm2 = vcmp.eq.s32.totalorder %v12153_v7, %v3119_v24  ;;  %v3222_v63 = vcvt.f32.s32 %v8282_v26 }
 0x7ba   :  { %1951 = vadd.xlane.f32.xlu1 %v1950_v50  ;;  %v3147_v50 = vcvt.f32.s32 %v12163_v27  ;;  %v5921_v15 = vsel %vm3403_vm2, 1.0, %v6586_v22  ;;  %v3568_v8 = vsel %vm3525_vm6, %v3507_v13, 0.0  ;;  %v3177_v44 = vcvt.f32.s32 %v12165_v1 }
 0x7bb   :  { %v3164_v31 = vadd.s32 %v3163_v35, %v3161_v14  ;;  %v3506_v36 = vmul.f32 %v8891_v54, %v5921_v15  ;;  %v1947_v24 = vsel %vm1176_vm4, %v8985_v45, 0.0  ;;  %v3176_v26 = vcvt.f32.s32 %v8848_v60 }
 0x7bc   :  { %v3148_v37 = vshll.u32 %v3147_v50, 16  ;;  %v3252_v35 = vcvt.f32.s32 %v8335_v59  ;;  %v3178_v50 = vshll.u32 %v3177_v44, 16  ;;  %v3282_v60 = vcvt.f32.s32 %v8391_v55 }
 0x7bd   :  { %3548 = vadd.xlane.f32.xlu0 %v3547_v23  ;;  %v3504_v23 = vmul.f32 %v8891_v54, %v5919_v61  ;;  %vm3406_vm5 = vcmp.eq.s32.totalorder %v12153_v7, %v3164_v31  ;;  %v3223_v61 = vshll.u32 %v3222_v63, 16  ;;  %v1953_v55 = vsel %vm1176_vm4, %v1834_v17, 0.0 }
 0x7be   :  { %3557 = vadd.xlane.f32.xlu1 %v3556_v39  ;;  %v1962_v39 = vsel %vm1176_vm4, %v1840_v32, 0.0  ;;  %v3149_v38 = vadd.s32 %v3148_v37, %v3146_v5  ;;  %v5924_v30 = vsel %vm3406_vm5, 1.0, %v6586_v22  ;;  %v3565_v32 = vsel %vm3525_vm6, %v3506_v36, 0.0  ;;  %v12166_v5 = vld [vmem:[#allocation148_spill] sm:$0xff] }
 0x7bf   :  { %v3559_v10 = vsel %vm3525_vm6, %v3504_v23, 0.0  ;;  %v3509_v27 = vmul.f32 %v8891_v54, %v5924_v30  ;;  %v3179_v31 = vadd.s32 %v3178_v50, %v3176_v26  ;;  %v3253_v59 = vshll.u32 %v3252_v35, 16 }
 0x7c0   :  { %vm3405_vm7 = vcmp.eq.s32.totalorder %v12153_v7, %v3149_v38  ;;  %v3207_v29 = vcvt.f32.s32 %v12166_v5  ;;  %v3281_v37 = vcvt.f32.s32 %v8956_v46  ;;  %v3206_v15 = vcvt.f32.s32 %v8860_v58 }
 0x7c1   :  { %1936 = vadd.xlane.f32.xlu0 %v1935_v56  ;;  %v3193_v56 = vshll.u32 %v3192_v6, 16  ;;  %v5923_v45 = vsel %vm3405_vm7, 1.0, %v6586_v22  ;;  %v3574_v23 = vsel %vm3525_vm6, %v3509_v27, 0.0  ;;  %v1848_v6 = vpop.permute.xlu1 %1847  ;;  %v3254_v13 = vadd.s32 %v3253_v59, %v3251_v28 }
 0x7c2   :  { %1957 = vadd.xlane.f32.xlu1 %v1956_v43  ;;  %v9028_v43 = vpop.xlane.xlu0 %3339  ;;  %vm3407_vm10 = vcmp.eq.s32.totalorder %v12153_v7, %v3179_v31  ;;  %v1974_v38 = vsel %vm1176_vm4, %v1848_v6, 0.0  ;;  %v3208_v63 = vshll.u32 %v3207_v29, 16  ;;  %v3311_v44 = vcvt.f32.s32 %v8993_v53 }
 0x7c3   :  { %v3194_v14 = vadd.s32 %v3193_v56, %v3191_v33  ;;  %v3283_v33 = vshll.u32 %v3282_v60, 16  ;;  %vm3412_vm11 = vcmp.eq.s32.totalorder %v12153_v7, %v3254_v13  ;;  %v3372_v50 = vcvt.f32.s32 %v8574_v49  ;;  %v12168_v60 = vld [vmem:[#allocation159_spill] sm:$0xff] }
 0x7c4   :  { %v3209_v36 = vadd.s32 %v3208_v63, %v3206_v15  ;;  %v5930_v53 = vsel %vm3412_vm11, 1.0, %v6586_v22  ;;  %v3267_v31 = vcvt.f32.s32 %v12168_v60  ;;  %v3296_v63 = vcvt.f32.s32 %v8935_v40 }
 0x7c5   :  { %3554 = vadd.xlane.f32.xlu0 %v3553_v16  ;;  %v3221_v16 = vcvt.f32.s32 %v8882_v11  ;;  %vm3408_vm8 = vcmp.eq.s32.totalorder %v12153_v7, %v3194_v14  ;;  %v3284_v1 = vadd.s32 %v3283_v33, %v3281_v37  ;;  %v3515_v28 = vmul.f32 %v8891_v54, %v5930_v53 }
 0x7c6   :  { %3563 = vadd.xlane.f32.xlu1 %v3562_v47  ;;  %v1968_v47 = vsel %vm1176_vm4, %v1844_v4, 0.0  ;;  %v5926_v57 = vsel %vm3408_vm8, 1.0, %v6586_v22  ;;  %v5925_v4 = vsel %vm3407_vm10, 1.0, %v6586_v22  ;;  %vm3409_vm3 = vcmp.eq.s32.totalorder %v12153_v7, %v3209_v36 }
 0x7c7   :  { %v3224_v11 = vadd.s32 %v3223_v61, %v3221_v16  ;;  %v3511_v56 = vmul.f32 %v8891_v54, %v5926_v57  ;;  %v12167_v16 = vld [vmem:[#allocation158_spill] sm:$0xff]  ;;  %v3510_v61 = vmul.f32 %v8891_v54, %v5925_v4  ;;  %vm3414_vm12 = vcmp.eq.s32.totalorder %v12153_v7, %v3284_v1 }
 0x7c8   :  { %v3373_v49 = vshll.u32 %v3372_v50, 16  ;;  %v5927_v29 = vsel %vm3409_vm3, 1.0, %v6586_v22  ;;  %v3592_v57 = vsel %vm3525_vm6, %v3515_v28, 0.0  ;;  %v3268_v37 = vshll.u32 %v3267_v31, 16 }
 0x7c9   :  { %1942 = vadd.xlane.f32.xlu0 %v1941_v48  ;;  %v9045_v48 = vpop.xlane.xlu0 %3384  ;;  %vm3410_vm9 = vcmp.eq.s32.totalorder %v12153_v7, %v3224_v11  ;;  %v3580_v30 = vsel %vm3525_vm6, %v3511_v56, 0.0  ;;  %v3577_v5 = vsel %vm3525_vm6, %v3510_v61, 0.0  ;;  %v3512_v56 = vmul.f32 %v8891_v54, %v5927_v29 }
 0x7ca   :  { %1963 = vadd.xlane.f32.xlu1 %v1962_v39  ;;  %v3508_v39 = vmul.f32 %v8891_v54, %v5923_v45  ;;  %v5928_v17 = vsel %vm3410_vm9, 1.0, %v6586_v22  ;;  %v3326_v36 = vcvt.f32.s32 %v8971_v25 }
 0x7cb   :  { %v3513_v14 = vmul.f32 %v8891_v54, %v5928_v17  ;;  %v3583_v4 = vsel %vm3525_vm6, %v3512_v56, 0.0  ;;  %v12171_v56 = vld [vmem:[#allocation68_spill] sm:$0xff] }
 0x7cc   :  { %v3571_v46 = vsel %vm3525_vm6, %v3508_v39, 0.0  ;;  %v3266_v39 = vcvt.f32.s32 %v8900_v3 }
 0x7cd   :  { %3560 = vadd.xlane.f32.xlu0 %v3559_v10  ;;  %v3312_v10 = vcvt.f32.s32 %v8456_v34  ;;  %v3342_v34 = vcvt.f32.s32 %v8515_v19  ;;  %v3586_v11 = vsel %vm3525_vm6, %v3513_v14, 0.0 }
 0x7ce   :  { %3569 = vadd.xlane.f32.xlu1 %v3568_v8  ;;  %v1838_v8 = vpop.permute.xlu0 %1837  ;;  %v3269_v3 = vadd.s32 %v3268_v37, %v3266_v39 }
 0x7cf   :  { %v3313_v58 = vshll.u32 %v3312_v10, 16  ;;  %v1959_v19 = vsel %vm1176_vm4, %v1838_v8, 0.0  ;;  %v3343_v27 = vshll.u32 %v3342_v34, 16 }
 0x7d0   :  { %vm3413_vm1 = vcmp.eq.s32.totalorder %v12153_v7, %v3269_v3 }
 0x7d1   :  { %1948 = vadd.xlane.f32.xlu0 %v1947_v24  ;;  %v3237_v24 = vcvt.f32.s32 %v12167_v16  ;;  %v3314_v35 = vadd.s32 %v3313_v58, %v3311_v44  ;;  %v3327_v44 = vcvt.f32.s32 %v8447_v9  ;;  %v5931_v53 = vsel %vm3413_vm1, 1.0, %v6586_v22 }
 0x7d2   :  { %1969 = vadd.xlane.f32.xlu1 %v1968_v47  ;;  %v3341_v47 = vcvt.f32.s32 %v9028_v43  ;;  %v5932_v43 = vsel %vm3414_vm12, 1.0, %v6586_v22 }
 0x7d3   :  { %v3238_v45 = vshll.u32 %v3237_v24, 16  ;;  %vm3416_vm13 = vcmp.eq.s32.totalorder %v12153_v7, %v3314_v35  ;;  %v3517_v13 = vmul.f32 %v8891_v54, %v5932_v43  ;;  %v3328_v16 = vshll.u32 %v3327_v44, 16 }
 0x7d4   :  { %v3344_v59 = vadd.s32 %v3343_v27, %v3341_v47  ;;  %v5934_v10 = vsel %vm3416_vm13, 1.0, %v6586_v22  ;;  %v3357_v24 = vcvt.f32.s32 %v8511_v41  ;;  %v3356_v35 = vcvt.f32.s32 %v9007_v62 }
 0x7d5   :  { %3566 = vadd.xlane.f32.xlu0 %v3565_v32  ;;  %v3236_v32 = vcvt.f32.s32 %v8870_v20  ;;  %v3598_v8 = vsel %vm3525_vm6, %v3517_v13, 0.0  ;;  %v3329_v25 = vadd.s32 %v3328_v16, %v3326_v36  ;;  %v3387_v41 = vcvt.f32.s32 %v8566_v2  ;;  %v12170_v13 = vld [vmem:[#allocation60_spill] sm:$0xff] }
 0x7d6   :  { %3575 = vadd.xlane.f32.xlu1 %v3574_v23  ;;  %vm3418_vm14 = vcmp.eq.s32.totalorder %v12153_v7, %v3344_v59  ;;  %v3358_v27 = vshll.u32 %v3357_v24, 16  ;;  %v12177_v24 = vld [vmem:[#allocation61_spill] sm:$0xff] }
 0x7d7   :  { %v3239_v6 = vadd.s32 %v3238_v45, %v3236_v32  ;;  %v5936_v1 = vsel %vm3418_vm14, 1.0, %v6586_v22  ;;  %v3516_v32 = vmul.f32 %v8891_v54, %v5931_v53  ;;  %v3386_v45 = vcvt.f32.s32 %v9045_v48  ;;  %v12178_v53 = vld [vmem:[#allocation150_spill] sm:$0xff] }
 0x7d8   :  { %v3521_v14 = vmul.f32 %v8891_v54, %v5936_v1  ;;  %v3359_v28 = vadd.s32 %v3358_v27, %v3356_v35  ;;  %vm3417_vm5 = vcmp.eq.s32.totalorder %v12153_v7, %v3329_v25  ;;  %v3388_v60 = vshll.u32 %v3387_v41, 16  ;;  %v12180_v41 = vld [vmem:[#allocation153_spill] sm:$0xff] }
 0x7d9   :  { %1954 = vadd.xlane.f32.xlu0 %v1953_v55  ;;  %v3370_v26 = vpop.xlane.xlu0 %3369  ;;  %v12169_v55 = vld [vmem:[#allocation163_spill] sm:$0xff]  ;;  %vm3411_vm15 = vcmp.eq.s32.totalorder %v12153_v7, %v3239_v6  ;;  %v3595_v31 = vsel %vm3525_vm6, %v3516_v32, 0.0  ;;  %v5935_v43 = vsel %vm3417_vm5, 1.0, %v6586_v22 }
 0x7da   :  { %1975 = vadd.xlane.f32.xlu1 %v1974_v38  ;;  %v3371_v23 = vcvt.f32.s32 %v3370_v26  ;;  %v3297_v33 = vcvt.f32.s32 %v12169_v55  ;;  %v5929_v58 = vsel %vm3411_vm15, 1.0, %v6586_v22  ;;  %v3610_v47 = vsel %vm3525_vm6, %v3521_v14, 0.0  ;;  %v12176_v14 = vld [vmem:[#allocation136_spill] sm:$0xff] }
 0x7db   :  { %v3514_v61 = vmul.f32 %v8891_v54, %v5929_v58  ;;  %v3389_v59 = vadd.s32 %v3388_v60, %v3386_v45  ;;  %vm3419_vm7 = vcmp.eq.s32.totalorder %v12153_v7, %v3359_v28  ;;  %v3520_v48 = vmul.f32 %v8891_v54, %v5935_v43  ;;  %v12175_v58 = vld [vmem:[#allocation59_spill] sm:$0xff] }
 0x7dc   :  { %v3374_v15 = vadd.s32 %v3373_v49, %v3371_v23  ;;  %v3298_v17 = vshll.u32 %v3297_v33, 16 }
 0x7dd   :  { %3572 = vadd.xlane.f32.xlu0 %v3571_v46  ;;  %v1842_v20 = vpop.permute.xlu0 %1841  ;;  %v3519_v46 = vmul.f32 %v8891_v54, %v5934_v10  ;;  %v3589_v50 = vsel %vm3525_vm6, %v3514_v61, 0.0  ;;  %vm3421_vm8 = vcmp.eq.s32.totalorder %v12153_v7, %v3389_v59  ;;  %v3607_v49 = vsel %vm3525_vm6, %v3520_v48, 0.0 }
 0x7de   :  { %3581 = vadd.xlane.f32.xlu1 %v3580_v30  ;;  %v1965_v38 = vsel %vm1176_vm4, %v1842_v20, 0.0  ;;  %vm3420_vm0 = vcmp.eq.s32.totalorder %v12153_v7, %v3374_v15  ;;  %v3299_v34 = vadd.s32 %v3298_v17, %v3296_v63  ;;  %v5939_v29 = vsel %vm3421_vm8, 1.0, %v6586_v22  ;;  %v12173_v17 = vld [vmem:[#allocation47_spill] sm:$0xff] }
 0x7df   :  { %v3604_v30 = vsel %vm3525_vm6, %v3519_v46, 0.0  ;;  %v5938_v9 = vsel %vm3420_vm0, 1.0, %v6586_v22 }
 0x7e0   :  { %vm3415_vm2 = vcmp.eq.s32.totalorder %v12153_v7, %v3299_v34 }
 0x7e1   :  { %1960 = vadd.xlane.f32.xlu0 %v1959_v19  ;;  %v1846_v40 = vpop.permute.xlu0 %1845  ;;  %v3523_v19 = vmul.f32 %v8891_v54, %v5938_v9 }
 0x7e2   :  { %3587 = vadd.xlane.f32.xlu1 %v3586_v11  ;;  %v1971_v26 = vsel %vm1176_vm4, %v1846_v40, 0.0  ;;  %v5933_v11 = vsel %vm3415_vm2, 1.0, %v6586_v22 }
 0x7e3   :  { %v3616_v62 = vsel %vm3525_vm6, %v3523_v19, 0.0  ;;  %v3518_v2 = vmul.f32 %v8891_v54, %v5933_v11  ;;  %v12181_v11 = vld [vmem:[#allocation66_spill] sm:$0xff] }
 0x7e5   :  { %3578 = vadd.xlane.f32.xlu0 %v3577_v5  ;;  %v3601_v23 = vsel %vm3525_vm6, %v3518_v2, 0.0  ;;  %v5937_v5 = vsel %vm3419_vm7, 1.0, %v6586_v22  ;;  %v1886_v6 = vpop.xlane.xlu1 %1885 }
 0x7e6   :  { %3593 = vadd.xlane.f32.xlu1 %v3592_v57  ;;  %v3522_v20 = vmul.f32 %v8891_v54, %v5937_v5  ;;  %v3524_v57 = vmul.f32 %v8891_v54, %v5939_v29  ;;  %v1978_v37 = vmul.f32 %v1886_v6, %v12170_v13  ;;  %v12172_v54 = vld [vmem:[#allocation57_spill] sm:$0xff]  ;;  %v12184_v6 = vld [vmem:[#allocation56_spill] sm:$0xff] }
 0x7e8   :  { %v3613_v39 = vsel %vm3525_vm6, %v3522_v20, 0.0  ;;  %v3619_v55 = vsel %vm3525_vm6, %v3524_v57, 0.0 }
 0x7e9   :  { %1966 = vadd.xlane.f32.xlu0 %v1965_v38 }
 0x7ea   :  { %3599 = vadd.xlane.f32.xlu1 %v3598_v8 }
 0x7ed   :  { %3584 = vadd.xlane.f32.xlu0 %v3583_v4  ;;  %v12174_v4 = vld [vmem:[#allocation110_spill] sm:$0xff] }
 0x7ee   :  { %3605 = vadd.xlane.f32.xlu1 %v3604_v30 }
 0x7f1   :  { %1972 = vadd.xlane.f32.xlu0 %v1971_v26 }
 0x7f2   :  { %3611 = vadd.xlane.f32.xlu1 %v3610_v47  ;;  %v12179_v47 = vld [vmem:[#allocation63_spill] sm:$0xff] }
 0x7f5   :  { %3590 = vadd.xlane.f32.xlu0 %v3589_v50 }
 0x7f6   :  { %3617 = vadd.xlane.f32.xlu1 %v3616_v62  ;;  %v12182_v62 = vld [vmem:[#allocation50_spill] sm:$0xff] }
 0x7f9   :  { %3596 = vadd.xlane.f32.xlu0 %v3595_v31 }
 0x7fd   :  { %3602 = vadd.xlane.f32.xlu0 %v3601_v23 }
 0x801   :  { %3608 = vadd.xlane.f32.xlu0 %v3607_v49  ;;  %v12183_v49 = vld [vmem:[#allocation69_spill] sm:$0xff] }
 0x805   :  { %3614 = vadd.xlane.f32.xlu0 %v3613_v39 }
 0x807   :  { %2043 = vrot.lane.b32.xlu1 %v1978_v37, %s6580_s6 }
 0x809   :  { %3620 = vadd.xlane.f32.xlu0 %v3619_v55 }
 0x80b   :  { %v1898_v7 = vpop.xlane.xlu1 %1897 }
 0x80c   :  { %v1982_v34 = vmul.f32 %v1898_v7, %v12174_v4 }
 0x80f   :  { %v1904_v33 = vpop.xlane.xlu1 %1903 }
 0x810   :  { %v1984_v9 = vmul.f32 %v1904_v33, %v12176_v14 }
 0x812   :  { %v1883_v10 = vpop.xlane.xlu0 %1882 }
 0x813   :  { %v1910_v15 = vpop.xlane.xlu1 %1909  ;;  %v1977_v1 = vmul.f32 %v1883_v10, %v12173_v17  ;;  %v12185_v10 = vld [vmem:[#allocation74_spill] sm:$0xff] }
 0x814   :  { %v1986_v25 = vmul.f32 %v1910_v15, %v12178_v53 }
 0x816   :  { %v1892_v38 = vpop.xlane.xlu0 %1891 }
 0x817   :  { %v1980_v22 = vmul.f32 %v1892_v38, %v12171_v56  ;;  %v1916_v63 = vpop.xlane.xlu1 %1915 }
 0x818   :  { %v1988_v50 = vmul.f32 %v1916_v63, %v12180_v41 }
 0x819   :  { %2047 = vrot.lane.b32.xlu1 %v1980_v22, %s6580_s6 }
 0x81a   :  { %v1889_v3 = vpop.xlane.xlu0 %1888 }
 0x81b   :  { %v1979_v8 = vmul.f32 %v1889_v3, %v12172_v54  ;;  %v1922_v46 = vpop.xlane.xlu1 %1921 }
 0x81c   :  { %v1990_v60 = vmul.f32 %v1922_v46, %v12182_v62  ;;  %v12186_v46 = vld [vmem:[#allocation75_spill] sm:$0xff] }
 0x81d   :  { %2045 = vrot.lane.b32.xlu1 %v1979_v8, %s6580_s6 }
 0x81e   :  { %v1895_v44 = vpop.xlane.xlu0 %1894 }
 0x81f   :  { %2041 = vrot.lane.b32.xlu0 %v1977_v1, %s6580_s6  ;;  %v3528_v40 = vpop.xlane.xlu1 %3527  ;;  %v1981_v36 = vmul.f32 %v1895_v44, %v12175_v58 }
 0x820   :  { %v3622_v31 = vmul.f32 %v3528_v40, %v12173_v17  ;;  %v12187_v40 = vld [vmem:[#allocation80_spill] sm:$0xff] }
 0x821   :  { %2051 = vrot.lane.b32.xlu1 %v1982_v34, %s6580_s6 }
 0x822   :  { %v1901_v30 = vpop.xlane.xlu0 %1900  ;;  %v3655_v48 = vmul.f32 0.5, %v3622_v31 }
 0x823   :  { %2049 = vrot.lane.b32.xlu0 %v1981_v36, %s6580_s6  ;;  %v1928_v16 = vpop.xlane.xlu1 %1927  ;;  %v1983_v26 = vmul.f32 %v1901_v30, %v12177_v24 }
 0x824   :  { %v1992_v39 = vmul.f32 %v1928_v16, %v12184_v6 }
 0x825   :  { %2055 = vrot.lane.b32.xlu1 %v1984_v9, %s6580_s6 }
 0x826   :  { %v1907_v61 = vpop.xlane.xlu0 %1906 }
 0x827   :  { %2053 = vrot.lane.b32.xlu0 %v1983_v26, %s6580_s6  ;;  %v3534_v35 = vpop.xlane.xlu1 %3533  ;;  %v1985_v19 = vmul.f32 %v1907_v61, %v12179_v47 }
 0x828   :  { %v3624_v7 = vmul.f32 %v3534_v35, %v12172_v54  ;;  %v12188_v35 = vld [vmem:[#allocation162_spill] sm:$0xff] }
 0x829   :  { %2059 = vrot.lane.b32.xlu1 %v1986_v25, %s6580_s6 }
 0x82a   :  { %v1913_v27 = vpop.xlane.xlu0 %1912  ;;  %v3657_v63 = vmul.f32 0.5, %v3624_v7 }
 0x82b   :  { %2057 = vrot.lane.b32.xlu0 %v1985_v19, %s6580_s6  ;;  %v1934_v32 = vpop.xlane.xlu1 %1933  ;;  %v1987_v28 = vmul.f32 %v1913_v27, %v12181_v11 }
 0x82c   :  { %v1994_v1 = vmul.f32 %v1934_v32, %v12186_v46  ;;  %v12189_v32 = vld [vmem:[#allocation87_spill] sm:$0xff] }
 0x82d   :  { %2063 = vrot.lane.b32.xlu1 %v1988_v50, %s6580_s6 }
 0x82e   :  { %v3531_v45 = vpop.xlane.xlu0 %3530 }
 0x82f   :  { %v3623_v2 = vmul.f32 %v3531_v45, %v12170_v13  ;;  %2061 = vrot.lane.b32.xlu0 %v1987_v28, %s6580_s6  ;;  %v3540_v43 = vpop.xlane.xlu1 %3539 }
 0x830   :  { %v3626_v44 = vmul.f32 %v3540_v43, %v12175_v58 }
 0x831   :  { %v3656_v59 = vmul.f32 0.5, %v3623_v2  ;;  %2067 = vrot.lane.b32.xlu1 %v1990_v60, %s6580_s6 }
 0x832   :  { %v1919_v23 = vpop.xlane.xlu0 %1918  ;;  %v3659_v16 = vmul.f32 0.5, %v3626_v44 }
 0x833   :  { %3721 = vrot.lane.b32.xlu0 %v3656_v59, %s6587_s7  ;;  %v1940_v5 = vpop.xlane.xlu1 %1939  ;;  %v1989_v20 = vmul.f32 %v1919_v23, %v12183_v49  ;;  %v12190_v23 = vld [vmem:[#allocation83_spill] sm:$0xff] }
 0x834   :  { %v1996_v19 = vmul.f32 %v1940_v5, %v12188_v35 }
 0x835   :  { %3719 = vrot.lane.b32.xlu1 %v3655_v48, %s6587_s7 }
 0x836   :  { %v3537_v29 = vpop.xlane.xlu0 %3536 }
 0x837   :  { %v3625_v57 = vmul.f32 %v3537_v29, %v12171_v56  ;;  %2065 = vrot.lane.b32.xlu0 %v1989_v20, %s6580_s6  ;;  %v3546_v37 = vpop.xlane.xlu1 %3545  ;;  %v12191_v29 = vld [vmem:[#allocation93_spill] sm:$0xff] }
 0x838   :  { %v3628_v27 = vmul.f32 %v3546_v37, %v12177_v24 }
 0x839   :  { %2071 = vrot.lane.b32.xlu1 %v1992_v39, %s6580_s6  ;;  %v3658_v33 = vmul.f32 0.5, %v3625_v57 }
 0x83a   :  { %v1925_v55 = vpop.xlane.xlu0 %1924  ;;  %v3661_v31 = vmul.f32 0.5, %v3628_v27  ;;  %v12195_v27 = vld [vmem:[#allocation111_spill] sm:$0xff] }
 0x83b   :  { %v1991_v15 = vmul.f32 %v1925_v55, %v12185_v10  ;;  %v1946_v38 = vpop.xlane.xlu1 %1945 }
 0x83c   :  { %v1998_v48 = vmul.f32 %v1946_v38, %v12190_v23  ;;  %v12192_v38 = vld [vmem:[#allocation100_spill] sm:$0xff] }
 0x83d   :  { %3725 = vrot.lane.b32.xlu1 %v3658_v33, %s6587_s7  ;;  %2069 = vrot.lane.b32.xlu0 %v1991_v15, %s6580_s6 }
 0x83e   :  { %v3543_v22 = vpop.xlane.xlu0 %3542 }
 0x83f   :  { %v3552_v3 = vpop.xlane.xlu1 %3551  ;;  %v3627_v34 = vmul.f32 %v3543_v22, %v12174_v4 }
 0x840   :  { %v3630_v5 = vmul.f32 %v3552_v3, %v12179_v47 }
 0x841   :  { %3723 = vrot.lane.b32.xlu1 %v3657_v63, %s6587_s7  ;;  %v3660_v26 = vmul.f32 0.5, %v3627_v34 }
 0x842   :  { %v1931_v8 = vpop.xlane.xlu0 %1930  ;;  %v3663_v55 = vmul.f32 0.5, %v3630_v5 }
 0x843   :  { %v1993_v36 = vmul.f32 %v1931_v8, %v12187_v40  ;;  %v1952_v30 = vpop.xlane.xlu1 %1951  ;;  %v12193_v8 = vld [vmem:[#allocation103_spill] sm:$0xff] }
 0x844   :  { %v2000_v22 = vmul.f32 %v1952_v30, %v12192_v38 }
 0x845   :  { %2075 = vrot.lane.b32.xlu1 %v1994_v1, %s6580_s6  ;;  %2073 = vrot.lane.b32.xlu0 %v1993_v36, %s6580_s6 }
 0x846   :  { %v3549_v9 = vpop.xlane.xlu0 %3548 }
 0x847   :  { %v3558_v61 = vpop.xlane.xlu1 %3557  ;;  %v3629_v50 = vmul.f32 %v3549_v9, %v12176_v14 }
 0x848   :  { %v3632_v63 = vmul.f32 %v3558_v61, %v12181_v11 }
 0x849   :  { %3729 = vrot.lane.b32.xlu1 %v3660_v26, %s6587_s7  ;;  %3727 = vrot.lane.b32.xlu0 %v3659_v16, %s6587_s7  ;;  %v3662_v2 = vmul.f32 0.5, %v3629_v50  ;;  %v12194_v26 = vld [vmem:[#allocation91_spill] sm:$0xff] }
 0x84a   :  { %v1937_v25 = vpop.xlane.xlu0 %1936  ;;  %v3665_v36 = vmul.f32 0.5, %v3632_v63 }
 0x84b   :  { %v1995_v28 = vmul.f32 %v1937_v25, %v12189_v32  ;;  %v1958_v45 = vpop.xlane.xlu1 %1957 }
 0x84c   :  { %v2002_v61 = vmul.f32 %v1958_v45, %v12194_v26 }
 0x84d   :  { %2079 = vrot.lane.b32.xlu1 %v1996_v19, %s6580_s6  ;;  %2077 = vrot.lane.b32.xlu0 %v1995_v28, %s6580_s6 }
 0x84e   :  { %v3555_v60 = vpop.xlane.xlu0 %3554 }
 0x84f   :  { %v3564_v43 = vpop.xlane.xlu1 %3563  ;;  %v3631_v20 = vmul.f32 %v3555_v60, %v12178_v53 }
 0x850   :  { %v3634_v25 = vmul.f32 %v3564_v43, %v12183_v49 }
 0x851   :  { %3733 = vrot.lane.b32.xlu1 %v3662_v2, %s6587_s7  ;;  %3731 = vrot.lane.b32.xlu0 %v3661_v31, %s6587_s7  ;;  %v3664_v7 = vmul.f32 0.5, %v3631_v20 }
 0x852   :  { %v1943_v59 = vpop.xlane.xlu0 %1942  ;;  %v3667_v31 = vmul.f32 0.5, %v3634_v25 }
 0x853   :  { %v1997_v39 = vmul.f32 %v1943_v59, %v12191_v29  ;;  %v1964_v57 = vpop.xlane.xlu1 %1963 }
 0x855   :  { %2083 = vrot.lane.b32.xlu1 %v1998_v48, %s6580_s6  ;;  %2081 = vrot.lane.b32.xlu0 %v1997_v39, %s6580_s6  ;;  %v12196_v48 = vld [vmem:[#allocation172_spill] sm:$0xff]  ;;  %v12197_v39 = vld [vmem:[#allocation118_spill] sm:$0xff] }
 0x856   :  { %v3561_v37 = vpop.xlane.xlu0 %3560  ;;  %v2004_v43 = vmul.f32 %v1964_v57, %v12196_v48 }
 0x857   :  { %v3570_v33 = vpop.xlane.xlu1 %3569  ;;  %v3633_v3 = vmul.f32 %v3561_v37, %v12180_v41 }
 0x858   :  { %v3636_v5 = vmul.f32 %v3570_v33, %v12185_v10 }
 0x859   :  { %3737 = vrot.lane.b32.xlu1 %v3664_v7, %s6587_s7  ;;  %3735 = vrot.lane.b32.xlu0 %v3663_v55, %s6587_s7  ;;  %v3666_v9 = vmul.f32 0.5, %v3633_v3  ;;  %v12198_v3 = vld [vmem:[#allocation173_spill] sm:$0xff] }
 0x85a   :  { %v1949_v15 = vpop.xlane.xlu0 %1948 }
 0x85b   :  { %v1999_v1 = vmul.f32 %v1949_v15, %v12193_v8  ;;  %v1970_v44 = vpop.xlane.xlu1 %1969  ;;  %v3669_v15 = vmul.f32 0.5, %v3636_v5 }
 0x85c   :  { %v2006_v33 = vmul.f32 %v1970_v44, %v12198_v3 }
 0x85d   :  { %2087 = vrot.lane.b32.xlu1 %v2000_v22, %s6580_s6  ;;  %2085 = vrot.lane.b32.xlu0 %v1999_v1, %s6580_s6 }
 0x85e   :  { %v3567_v34 = vpop.xlane.xlu0 %3566 }
 0x85f   :  { %v3576_v16 = vpop.xlane.xlu1 %3575  ;;  %v3635_v19 = vmul.f32 %v3567_v34, %v12182_v62 }
 0x860   :  { %v3638_v1 = vmul.f32 %v3576_v16, %v12187_v40 }
 0x861   :  { %3741 = vrot.lane.b32.xlu1 %v3666_v9, %s6587_s7  ;;  %3739 = vrot.lane.b32.xlu0 %v3665_v36, %s6587_s7  ;;  %v3668_v2 = vmul.f32 0.5, %v3635_v19  ;;  %v12199_v36 = vld [vmem:[#allocation126_spill] sm:$0xff] }
 0x862   :  { %v1955_v30 = vpop.xlane.xlu0 %1954  ;;  %v3671_v25 = vmul.f32 0.5, %v3638_v1 }
 0x863   :  { %v2001_v50 = vmul.f32 %v1955_v30, %v12195_v27  ;;  %v1976_v28 = vpop.xlane.xlu1 %1975 }
 0x865   :  { %2091 = vrot.lane.b32.xlu1 %v2002_v61, %s6580_s6  ;;  %2089 = vrot.lane.b32.xlu0 %v2001_v50, %s6580_s6 }
 0x866   :  { %v3573_v60 = vpop.xlane.xlu0 %3572 }
 0x867   :  { %v3582_v59 = vpop.xlane.xlu1 %3581  ;;  %v3637_v20 = vmul.f32 %v3573_v60, %v12184_v6  ;;  %v12200_v60 = vld [vmem:[#allocation179_spill] sm:$0xff] }
 0x868   :  { %v2008_v16 = vmul.f32 %v1976_v28, %v12200_v60 }
 0x869   :  { %3745 = vrot.lane.b32.xlu1 %v3668_v2, %s6587_s7  ;;  %3743 = vrot.lane.b32.xlu0 %v3667_v31, %s6587_s7  ;;  %v3670_v22 = vmul.f32 0.5, %v3637_v20  ;;  %v3640_v31 = vmul.f32 %v3582_v59, %v12189_v32 }
 0x86a   :  { %v1961_v45 = vpop.xlane.xlu0 %1960 }
 0x86b   :  { %v2003_v37 = vmul.f32 %v1961_v45, %v12197_v39  ;;  %v3588_v55 = vpop.xlane.xlu1 %3587  ;;  %v12201_v45 = vld [vmem:[#allocation131_spill] sm:$0xff] }
 0x86d   :  { %2095 = vrot.lane.b32.xlu1 %v2004_v43, %s6580_s6  ;;  %2093 = vrot.lane.b32.xlu0 %v2003_v37, %s6580_s6  ;;  %v3673_v37 = vmul.f32 0.5, %v3640_v31 }
 0x86e   :  { %v3579_v7 = vpop.xlane.xlu0 %3578 }
 0x86f   :  { %v3594_v63 = vpop.xlane.xlu1 %3593  ;;  %v3639_v34 = vmul.f32 %v3579_v7, %v12186_v46  ;;  %v3642_v7 = vmul.f32 %v3588_v55, %v12191_v29 }
 0x871   :  { %3749 = vrot.lane.b32.xlu1 %v3670_v22, %s6587_s7  ;;  %3747 = vrot.lane.b32.xlu0 %v3669_v15, %s6587_s7  ;;  %v3672_v19 = vmul.f32 0.5, %v3639_v34  ;;  %v3675_v59 = vmul.f32 0.5, %v3642_v7 }
 0x872   :  { %v1967_v57 = vpop.xlane.xlu0 %1966 }
 0x873   :  { %v2005_v9 = vmul.f32 %v1967_v57, %v12199_v36  ;;  %v3600_v30 = vpop.xlane.xlu1 %3599 }
 0x875   :  { %2099 = vrot.lane.b32.xlu1 %v2006_v33, %s6580_s6  ;;  %2097 = vrot.lane.b32.xlu0 %v2005_v9, %s6580_s6  ;;  %v3644_v33 = vmul.f32 %v3594_v63, %v12193_v8 }
 0x876   :  { %v3585_v61 = vpop.xlane.xlu0 %3584 }
 0x877   :  { %v3606_v50 = vpop.xlane.xlu1 %3605  ;;  %v3641_v2 = vmul.f32 %v3585_v61, %v12188_v35  ;;  %v3677_v9 = vmul.f32 0.5, %v3644_v33  ;;  %v3646_v61 = vmul.f32 %v3600_v30, %v12195_v27 }
 0x878   :  { %v3648_v31 = vmul.f32 %v3606_v50, %v12197_v39 }
 0x879   :  { %3753 = vrot.lane.b32.xlu1 %v3672_v19, %s6587_s7  ;;  %3751 = vrot.lane.b32.xlu0 %v3671_v25, %s6587_s7  ;;  %v3674_v15 = vmul.f32 0.5, %v3641_v2 }
 0x87a   :  { %v1973_v44 = vpop.xlane.xlu0 %1972 }
 0x87b   :  { %v2007_v43 = vmul.f32 %v1973_v44, %v12201_v45  ;;  %v3612_v5 = vpop.xlane.xlu1 %3611 }
 0x87c   :  { %v3650_v7 = vmul.f32 %v3612_v5, %v12199_v36 }
 0x87d   :  { %2103 = vrot.lane.b32.xlu1 %v2008_v16, %s6580_s6  ;;  %2101 = vrot.lane.b32.xlu0 %v2007_v43, %s6580_s6  ;;  %v3679_v16 = vmul.f32 0.5, %v3646_v61 }
 0x87e   :  { %v3591_v20 = vpop.xlane.xlu0 %3590 }
 0x87f   :  { %v3643_v22 = vmul.f32 %v3591_v20, %v12190_v23  ;;  %v3618_v57 = vpop.xlane.xlu1 %3617 }
 0x880   :  { %v3652_v33 = vmul.f32 %v3618_v57, %v12201_v45 }
 0x881   :  { %3757 = vrot.lane.b32.xlu1 %v3674_v15, %s6587_s7  ;;  %3755 = vrot.lane.b32.xlu0 %v3673_v37, %s6587_s7  ;;  %v3676_v1 = vmul.f32 0.5, %v3643_v22  ;;  %v3681_v37 = vmul.f32 0.5, %v3648_v31 }
 0x882   :  { %v3597_v28 = vpop.xlane.xlu0 %3596 }
 0x883   :  { %v3645_v34 = vmul.f32 %v3597_v28, %v12192_v38  ;;  %v2044_v19 = vpop.permute.xlu1 %2043 }
 0x884   :  { %v9261_v61 = vsub.f32 %v12094_v21, %v2044_v19 }
 0x885   :  { %3759 = vrot.lane.b32.xlu0 %v3675_v59, %s6587_s7  ;;  %3761 = vrot.lane.b32.xlu1 %v3676_v1, %s6587_s7  ;;  %v3678_v25 = vmul.f32 0.5, %v3645_v34  ;;  %v3683_v59 = vmul.f32 0.5, %v3650_v7 }
 0x886   :  { %v3603_v55 = vpop.xlane.xlu0 %3602  ;;  %v2170_v31 = vmul.f32 %v9261_v61, %v9261_v61 }
 0x887   :  { %v3647_v44 = vmul.f32 %v3603_v55, %v12194_v26 }
 0x889   :  { %3763 = vrot.lane.b32.xlu0 %v3677_v9, %s6587_s7  ;;  %3765 = vrot.lane.b32.xlu1 %v3678_v25, %s6587_s7  ;;  %v3680_v2 = vmul.f32 0.5, %v3647_v44  ;;  %v3685_v9 = vmul.f32 0.5, %v3652_v33  ;;  %v12202_v44 = vld [vmem:[#allocation4_spill] sm:$0xff] }
 0x88a   :  { %v3609_v63 = vpop.xlane.xlu0 %3608 }
 0x88b   :  { %v3649_v43 = vmul.f32 %v3609_v63, %v12196_v48  ;;  %v2048_v20 = vpop.permute.xlu1 %2047 }
 0x88d   :  { %3767 = vrot.lane.b32.xlu0 %v3679_v16, %s6587_s7  ;;  %3769 = vrot.lane.b32.xlu1 %v3680_v2, %s6587_s7  ;;  %v3682_v15 = vmul.f32 0.5, %v3649_v43  ;;  %v9271_v2 = vsub.f32 %v12115_v51, %v2048_v20  ;;  %v12203_v43 = vld [vmem:[#allocation6_spill] sm:$0xff]  ;;  %v12204_v20 = vld [vmem:[#allocation8_spill] sm:$0xff] }
 0x88e   :  { %v3615_v30 = vpop.xlane.xlu0 %3614 }
 0x88f   :  { %v3651_v22 = vmul.f32 %v3615_v30, %v12198_v3  ;;  %v2046_v28 = vpop.permute.xlu1 %2045  ;;  %v2172_v7 = vmul.f32 %v9271_v2, %v9271_v2 }
 0x890   :  { %v9274_v30 = vsub.f32 %v12203_v43, %v2046_v28 }
 0x891   :  { %3771 = vrot.lane.b32.xlu0 %v3681_v37, %s6587_s7  ;;  %3773 = vrot.lane.b32.xlu1 %v3682_v15, %s6587_s7  ;;  %v3684_v1 = vmul.f32 0.5, %v3651_v22 }
 0x892   :  { %v3621_v50 = vpop.xlane.xlu0 %3620  ;;  %v2171_v15 = vmul.f32 %v9274_v30, %v9274_v30 }
 0x893   :  { %v3653_v34 = vmul.f32 %v3621_v50, %v12200_v60  ;;  %v2052_v55 = vpop.permute.xlu1 %2051 }
 0x894   :  { %v9285_v51 = vsub.f32 %v12135_v0, %v2052_v55  ;;  %v12205_v0 = vld [vmem:[#allocation10_spill] sm:$0xff] }
 0x895   :  { %3775 = vrot.lane.b32.xlu0 %v3683_v59, %s6587_s7  ;;  %3777 = vrot.lane.b32.xlu1 %v3684_v1, %s6587_s7  ;;  %v3686_v25 = vmul.f32 0.5, %v3653_v34 }
 0x896   :  { %v2042_v5 = vpop.permute.xlu0 %2041  ;;  %v2174_v59 = vmul.f32 %v9285_v51, %v9285_v51 }
 0x897   :  { %v9264_v63 = vsub.f32 %v12202_v44, %v2042_v5  ;;  %v2056_v16 = vpop.permute.xlu1 %2055  ;;  %v12206_v44 = vld [vmem:[#allocation11_spill] sm:$0xff] }
 0x898   :  { %v9295_v33 = vsub.f32 %v12137_v18, %v2056_v16 }
 0x899   :  { %3779 = vrot.lane.b32.xlu0 %v3685_v9, %s6587_s7  ;;  %3781 = vrot.lane.b32.xlu1 %v3686_v25, %s6587_s7  ;;  %v2169_v21 = vmul.f32 %v9264_v63, %v9264_v63 }
 0x89a   :  { %v2050_v57 = vpop.permute.xlu0 %2049  ;;  %v2176_v9 = vmul.f32 %v9295_v33, %v9295_v33 }
 0x89b   :  { %v2060_v19 = vpop.permute.xlu1 %2059  ;;  %v9288_v22 = vsub.f32 %v12204_v20, %v2050_v57 }
 0x89c   :  { %v9307_v25 = vsub.f32 %v7057_v42, %v2060_v19  ;;  %v12207_v19 = vld [vmem:[#allocation12_spill] sm:$0xff] }
 0x89d   :  { %2235 = vrot.lane.b32.xlu1 %v2170_v31, %s6585_s18  ;;  %2233 = vrot.lane.b32.xlu0 %v2169_v21, %s6585_s18  ;;  %v2173_v1 = vmul.f32 %v9288_v22, %v9288_v22 }
 0x89e   :  { %v2054_v37 = vpop.permute.xlu0 %2053  ;;  %v2178_v43 = vmul.f32 %v9307_v25, %v9307_v25 }
 0x89f   :  { %v2064_v28 = vpop.permute.xlu1 %2063  ;;  %v9300_v34 = vsub.f32 %v12205_v0, %v2054_v37 }
 0x8a0   :  { %v9323_v42 = vsub.f32 %v7073_v52, %v2064_v28  ;;  %v12208_v28 = vld [vmem:[#allocation14_spill] sm:$0xff] }
 0x8a1   :  { %2239 = vrot.lane.b32.xlu1 %v2172_v7, %s6585_s18  ;;  %2237 = vrot.lane.b32.xlu0 %v2171_v15, %s6585_s18  ;;  %v2175_v18 = vmul.f32 %v9300_v34, %v9300_v34 }
 0x8a2   :  { %v2058_v50 = vpop.permute.xlu0 %2057  ;;  %v2180_v20 = vmul.f32 %v9323_v42, %v9323_v42 }
 0x8a3   :  { %v2068_v55 = vpop.permute.xlu1 %2067  ;;  %v9312_v16 = vsub.f32 %v12206_v44, %v2058_v50 }
 0x8a4   :  { %v9335_v50 = vsub.f32 %v11982_v12, %v2068_v55  ;;  %v12210_v55 = vld [vmem:[#allocation16_spill] sm:$0xff] }
 0x8a5   :  { %2243 = vrot.lane.b32.xlu1 %v2174_v59, %s6585_s18  ;;  %2241 = vrot.lane.b32.xlu0 %v2173_v1, %s6585_s18  ;;  %v2177_v21 = vmul.f32 %v9312_v16, %v9312_v16 }
 0x8a6   :  { %v2062_v5 = vpop.permute.xlu0 %2061 }
 0x8a7   :  { %v9314_v57 = vpop.permute.xlu1 %3719  ;;  %v9328_v37 = vsub.f32 %v12207_v19, %v2062_v5  ;;  %v2182_v5 = vmul.f32 %v9335_v50, %v9335_v50 }
 0x8a9   :  { %2247 = vrot.lane.b32.xlu1 %v2176_v9, %s6585_s18  ;;  %2245 = vrot.lane.b32.xlu0 %v2175_v18, %s6585_s18  ;;  %v2179_v52 = vmul.f32 %v9328_v37, %v9328_v37  ;;  %v12209_v9 = vld [vmem:[#allocation15_spill] sm:$0xff] }
 0x8aa   :  { %v9318_v31 = vpop.permute.xlu0 %3721 }
 0x8ab   :  { %v2072_v7 = vpop.permute.xlu1 %2071 }
 0x8ac   :  { %v9349_v18 = vsub.f32 %v12209_v9, %v2072_v7 }
 0x8ad   :  { %2251 = vrot.lane.b32.xlu1 %v2178_v43, %s6585_s18  ;;  %2249 = vrot.lane.b32.xlu0 %v2177_v21, %s6585_s18 }
 0x8ae   :  { %v2066_v15 = vpop.permute.xlu0 %2065  ;;  %v2184_v21 = vmul.f32 %v9349_v18, %v9349_v18 }
 0x8af   :  { %v9340_v59 = vsub.f32 %v12208_v28, %v2066_v15  ;;  %v9342_v1 = vpop.permute.xlu1 %3725  ;;  %v12212_v28 = vld [vmem:[#allocation18_spill] sm:$0xff] }
 0x8b1   :  { %2255 = vrot.lane.b32.xlu1 %v2180_v20, %s6585_s18  ;;  %2253 = vrot.lane.b32.xlu0 %v2179_v52, %s6585_s18  ;;  %v2181_v12 = vmul.f32 %v9340_v59, %v9340_v59  ;;  %v12211_v20 = vld [vmem:[#allocation17_spill] sm:$0xff] }
 0x8b2   :  { %v2070_v0 = vpop.permute.xlu0 %2069 }
 0x8b3   :  { %v9354_v44 = vsub.f32 %v12210_v55, %v2070_v0  ;;  %v9356_v43 = vpop.permute.xlu1 %3723 }
 0x8b5   :  { %2259 = vrot.lane.b32.xlu1 %v2182_v5, %s6585_s18  ;;  %2257 = vrot.lane.b32.xlu0 %v2181_v12, %s6585_s18  ;;  %v2183_v19 = vmul.f32 %v9354_v44, %v9354_v44 }
 0x8b7   :  { %v2076_v7 = vpop.permute.xlu1 %2075  ;;  %v2074_v15 = vpop.permute.xlu0 %2073 }
 0x8b8   :  { %v9365_v52 = vsub.f32 %v12211_v20, %v2076_v7  ;;  %v9368_v0 = vsub.f32 %v12212_v28, %v2074_v15  ;;  %v12213_v20 = vld [vmem:[#allocation19_spill] sm:$0xff] }
 0x8b9   :  { %2263 = vrot.lane.b32.xlu1 %v2184_v21, %s6585_s18  ;;  %2261 = vrot.lane.b32.xlu0 %v2183_v19, %s6585_s18  ;;  %v12214_v19 = vld [vmem:[#allocation20_spill] sm:$0xff] }
 0x8ba   :  { %v2186_v5 = vmul.f32 %v9365_v52, %v9365_v52  ;;  %v2185_v9 = vmul.f32 %v9368_v0, %v9368_v0 }
 0x8bb   :  { %v9376_v12 = vpop.permute.xlu1 %3729  ;;  %v9378_v55 = vpop.permute.xlu0 %3727 }
 0x8bd   :  { %2267 = vrot.lane.b32.xlu1 %v2186_v5, %s6585_s18  ;;  %2265 = vrot.lane.b32.xlu0 %v2185_v9, %s6585_s18 }
 0x8bf   :  { %v2080_v7 = vpop.permute.xlu1 %2079  ;;  %v2078_v15 = vpop.permute.xlu0 %2077 }
 0x8c0   :  { %v9383_v21 = vsub.f32 %v12213_v20, %v2080_v7  ;;  %v9386_v28 = vsub.f32 %v12214_v19, %v2078_v15  ;;  %v12217_v7 = vld [vmem:[#allocation21_spill] sm:$0xff]  ;;  %v12218_v15 = vld [vmem:[#allocation22_spill] sm:$0xff] }
 0x8c2   :  { %v2188_v60 = vmul.f32 %v9383_v21, %v9383_v21  ;;  %v2187_v45 = vmul.f32 %v9386_v28, %v9386_v28 }
 0x8c3   :  { %v9392_v3 = vpop.permute.xlu1 %3733  ;;  %v9394_v36 = vpop.permute.xlu0 %3731 }
 0x8c4   :  { %12215 = vst [vmem:[#allocation92_spill] sm:$0xff] %v9392_v3  ;;  %12216 = vst [vmem:[#allocation160_spill] sm:$0xff] %v9394_v36  ;;  %2271 = vrot.lane.b32.xlu1 %v2188_v60, %s6585_s18  ;;  %2269 = vrot.lane.b32.xlu0 %v2187_v45, %s6585_s18 }
 0x8c7   :  { %v2084_v5 = vpop.permute.xlu1 %2083  ;;  %v2082_v9 = vpop.permute.xlu0 %2081 }
 0x8c8   :  { %v9399_v20 = vsub.f32 %v12217_v7, %v2084_v5  ;;  %v9402_v19 = vsub.f32 %v12218_v15, %v2082_v9  ;;  %v12221_v5 = vld [vmem:[#allocation23_spill] sm:$0xff]  ;;  %v12222_v9 = vld [vmem:[#allocation24_spill] sm:$0xff] }
 0x8ca   :  { %v2190_v48 = vmul.f32 %v9399_v20, %v9399_v20  ;;  %v2189_v39 = vmul.f32 %v9402_v19, %v9402_v19 }
 0x8cb   :  { %v9408_v26 = vpop.permute.xlu1 %3737  ;;  %v9410_v27 = vpop.permute.xlu0 %3735 }
 0x8cc   :  { %12219 = vst [vmem:[#allocation2_spill] sm:$0xff] %v9408_v26  ;;  %12220 = vst [vmem:[#allocation116_spill] sm:$0xff] %v9410_v27  ;;  %2275 = vrot.lane.b32.xlu1 %v2190_v48, %s6585_s18  ;;  %2273 = vrot.lane.b32.xlu0 %v2189_v39, %s6585_s18 }
 0x8cf   :  { %v2088_v60 = vpop.permute.xlu1 %2087  ;;  %v2086_v45 = vpop.permute.xlu0 %2085 }
 0x8d0   :  { %v9415_v7 = vsub.f32 %v12221_v5, %v2088_v60  ;;  %v9418_v15 = vsub.f32 %v12222_v9, %v2086_v45  ;;  %v12225_v60 = vld [vmem:[#allocation25_spill] sm:$0xff]  ;;  %v12226_v45 = vld [vmem:[#allocation26_spill] sm:$0xff] }
 0x8d2   :  { %v2192_v38 = vmul.f32 %v9415_v7, %v9415_v7  ;;  %v2191_v8 = vmul.f32 %v9418_v15, %v9418_v15 }
 0x8d3   :  { %v9424_v23 = vpop.permute.xlu1 %3741  ;;  %v9426_v35 = vpop.permute.xlu0 %3739 }
 0x8d4   :  { %12223 = vst [vmem:[#allocation108_spill] sm:$0xff] %v9424_v23  ;;  %12224 = vst [vmem:[#allocation120_spill] sm:$0xff] %v9426_v35  ;;  %2279 = vrot.lane.b32.xlu1 %v2192_v38, %s6585_s18  ;;  %2277 = vrot.lane.b32.xlu0 %v2191_v8, %s6585_s18 }
 0x8d7   :  { %v2092_v48 = vpop.permute.xlu1 %2091  ;;  %v2090_v39 = vpop.permute.xlu0 %2089 }
 0x8d8   :  { %v9431_v5 = vsub.f32 %v12225_v60, %v2092_v48  ;;  %v9434_v9 = vsub.f32 %v12226_v45, %v2090_v39  ;;  %v12229_v48 = vld [vmem:[#allocation27_spill] sm:$0xff]  ;;  %v12230_v39 = vld [vmem:[#allocation28_spill] sm:$0xff] }
 0x8da   :  { %v2194_v29 = vmul.f32 %v9431_v5, %v9431_v5  ;;  %v2193_v46 = vmul.f32 %v9434_v9, %v9434_v9 }
 0x8db   :  { %v9440_v32 = vpop.permute.xlu1 %3745  ;;  %v9442_v6 = vpop.permute.xlu0 %3743 }
 0x8dc   :  { %12227 = vst [vmem:[#allocation114_spill] sm:$0xff] %v9440_v32  ;;  %12228 = vst [vmem:[#allocation124_spill] sm:$0xff] %v9442_v6  ;;  %2283 = vrot.lane.b32.xlu1 %v2194_v29, %s6585_s18  ;;  %2281 = vrot.lane.b32.xlu0 %v2193_v46, %s6585_s18 }
 0x8df   :  { %v2096_v38 = vpop.permute.xlu1 %2095  ;;  %v2094_v8 = vpop.permute.xlu0 %2093 }
 0x8e0   :  { %v9447_v60 = vsub.f32 %v12229_v48, %v2096_v38  ;;  %v9450_v45 = vsub.f32 %v12230_v39, %v2094_v8  ;;  %v12233_v38 = vld [vmem:[#allocation29_spill] sm:$0xff]  ;;  %v12234_v8 = vld [vmem:[#allocation30_spill] sm:$0xff] }
 0x8e2   :  { %v2196_v40 = vmul.f32 %v9447_v60, %v9447_v60  ;;  %v2195_v62 = vmul.f32 %v9450_v45, %v9450_v45 }
 0x8e3   :  { %v9456_v10 = vpop.permute.xlu1 %3749  ;;  %v9458_v41 = vpop.permute.xlu0 %3747 }
 0x8e4   :  { %12231 = vst [vmem:[#allocation117_spill] sm:$0xff] %v9456_v10  ;;  %12232 = vst [vmem:[#allocation128_spill] sm:$0xff] %v9458_v41  ;;  %2287 = vrot.lane.b32.xlu1 %v2196_v40, %s6585_s18  ;;  %2285 = vrot.lane.b32.xlu0 %v2195_v62, %s6585_s18 }
 0x8e7   :  { %v2100_v46 = vpop.permute.xlu1 %2099  ;;  %v2098_v29 = vpop.permute.xlu0 %2097 }
 0x8e8   :  { %v9463_v48 = vsub.f32 %v12233_v38, %v2100_v46  ;;  %v9466_v39 = vsub.f32 %v12234_v8, %v2098_v29  ;;  %v12237_v46 = vld [vmem:[#allocation31_spill] sm:$0xff]  ;;  %v12238_v29 = vld [vmem:[#allocation32_spill] sm:$0xff] }
 0x8ea   :  { %v2198_v49 = vmul.f32 %v9463_v48, %v9463_v48  ;;  %v2197_v53 = vmul.f32 %v9466_v39, %v9466_v39 }
 0x8eb   :  { %v9472_v11 = vpop.permute.xlu1 %3753  ;;  %v9474_v14 = vpop.permute.xlu0 %3751 }
 0x8ec   :  { %12235 = vst [vmem:[#allocation122_spill] sm:$0xff] %v9472_v11  ;;  %12236 = vst [vmem:[#allocation141_spill] sm:$0xff] %v9474_v14  ;;  %2291 = vrot.lane.b32.xlu1 %v2198_v49, %s6585_s18  ;;  %2289 = vrot.lane.b32.xlu0 %v2197_v53, %s6585_s18 }
 0x8ef   :  { %v2104_v62 = vpop.permute.xlu1 %2103  ;;  %v2102_v40 = vpop.permute.xlu0 %2101 }
 0x8f0   :  { %v9479_v38 = vsub.f32 %v12237_v46, %v2104_v62  ;;  %v9482_v8 = vsub.f32 %v12238_v29, %v2102_v40 }
 0x8f2   :  { %v2200_v47 = vmul.f32 %v9479_v38, %v9479_v38  ;;  %v2199_v4 = vmul.f32 %v9482_v8, %v9482_v8 }
 0x8f3   :  { %v9488_v24 = vpop.permute.xlu1 %3757  ;;  %v9490_v56 = vpop.permute.xlu0 %3755 }
 0x8f4   :  { %12239 = vst [vmem:[#allocation127_spill] sm:$0xff] %v9488_v24  ;;  %12240 = vst [vmem:[#allocation62_spill] sm:$0xff] %v9490_v56  ;;  %2295 = vrot.lane.b32.xlu1 %v2200_v47, %s6585_s18  ;;  %2293 = vrot.lane.b32.xlu0 %v2199_v4, %s6585_s18 }
 0x8f7   :  { %v9494_v53 = vpop.permute.xlu1 %3761  ;;  %v9496_v49 = vpop.permute.xlu0 %3759 }
 0x8f8   :  { %12241 = vst [vmem:[#allocation140_spill] sm:$0xff] %v9494_v53  ;;  %12242 = vst [vmem:[#allocation148_spill] sm:$0xff] %v9496_v49 }
 0x8fb   :  { %v9498_v62 = vpop.permute.xlu1 %3765  ;;  %v9500_v40 = vpop.permute.xlu0 %3763 }
 0x8fc   :  { %12243 = vst [vmem:[#allocation158_spill] sm:$0xff] %v9498_v62  ;;  %12244 = vst [vmem:[#allocation159_spill] sm:$0xff] %v9500_v40 }
 0x8ff   :  { %v9502_v46 = vpop.permute.xlu1 %3769  ;;  %v9504_v29 = vpop.permute.xlu0 %3767 }
 0x900   :  { %12245 = vst [vmem:[#allocation163_spill] sm:$0xff] %v9502_v46  ;;  %12246 = vst [vmem:[#allocation4_spill] sm:$0xff] %v9504_v29 }
 0x903   :  { %v9506_v58 = vpop.permute.xlu1 %3773  ;;  %v9508_v13 = vpop.permute.xlu0 %3771 }
 0x904   :  { %12247 = vst [vmem:[#allocation6_spill] sm:$0xff] %v9506_v58  ;;  %12248 = vst [vmem:[#allocation8_spill] sm:$0xff] %v9508_v13 }
 0x907   :  { %v9510_v54 = vpop.permute.xlu1 %3777  ;;  %v9512_v47 = vpop.permute.xlu0 %3775 }
 0x908   :  { %12249 = vst [vmem:[#allocation10_spill] sm:$0xff] %v9510_v54  ;;  %12250 = vst [vmem:[#allocation11_spill] sm:$0xff] %v9512_v47 }
 0x90b   :  { %v9514_v4 = vpop.permute.xlu1 %3781  ;;  %v9516_v17 = vpop.permute.xlu0 %3779 }
 0x90c   :  { %12251 = vst [vmem:[#allocation12_spill] sm:$0xff] %v9514_v4  ;;  %12252 = vst [vmem:[#allocation14_spill] sm:$0xff] %v9516_v17 }
 0x90f   :  { %v2236_v53 = vpop.permute.xlu1 %2235  ;;  %v2234_v62 = vpop.permute.xlu0 %2233 }
 0x910   :  { %v2329_v40 = vsel %vm1176_vm4, %v2234_v62, 0.0  ;;  %v2332_v54 = vsel %vm1176_vm4, %v2236_v53, 0.0 }
 0x913   :  { %v2240_v49 = vpop.permute.xlu1 %2239  ;;  %2330 = vadd.xlane.f32.xlu0 %v2329_v40  ;;  %v2238_v46 = vpop.permute.xlu0 %2237 }
 0x914   :  { %v2338_v29 = vsel %vm1176_vm4, %v2240_v49, 0.0  ;;  %v2335_v47 = vsel %vm1176_vm4, %v2238_v46, 0.0 }
 0x917   :  { %v2244_v58 = vpop.permute.xlu1 %2243  ;;  %2339 = vadd.xlane.f32.xlu0 %v2338_v29  ;;  %v2242_v13 = vpop.permute.xlu0 %2241 }
 0x918   :  { %2333 = vadd.xlane.f32.xlu1 %v2332_v54  ;;  %v2344_v24 = vsel %vm1176_vm4, %v2244_v58, 0.0  ;;  %v2341_v62 = vsel %vm1176_vm4, %v2242_v13, 0.0 }
 0x91b   :  { %v2248_v4 = vpop.permute.xlu1 %2247  ;;  %2336 = vadd.xlane.f32.xlu0 %v2335_v47  ;;  %v2246_v17 = vpop.permute.xlu0 %2245 }
 0x91c   :  { %2345 = vadd.xlane.f32.xlu1 %v2344_v24  ;;  %v2350_v49 = vsel %vm1176_vm4, %v2248_v4, 0.0  ;;  %v2347_v29 = vsel %vm1176_vm4, %v2246_v17, 0.0 }
 0x91f   :  { %v2252_v40 = vpop.permute.xlu1 %2251  ;;  %2342 = vadd.xlane.f32.xlu0 %v2341_v62  ;;  %v2250_v56 = vpop.permute.xlu0 %2249 }
 0x920   :  { %2351 = vadd.xlane.f32.xlu1 %v2350_v49  ;;  %v2356_v46 = vsel %vm1176_vm4, %v2252_v40, 0.0  ;;  %v2353_v47 = vsel %vm1176_vm4, %v2250_v56, 0.0 }
 0x923   :  { %v2256_v53 = vpop.permute.xlu1 %2255  ;;  %2348 = vadd.xlane.f32.xlu0 %v2347_v29  ;;  %v2254_v54 = vpop.permute.xlu0 %2253 }
 0x924   :  { %2357 = vadd.xlane.f32.xlu1 %v2356_v46  ;;  %v2362_v13 = vsel %vm1176_vm4, %v2256_v53, 0.0  ;;  %v2359_v62 = vsel %vm1176_vm4, %v2254_v54, 0.0 }
 0x927   :  { %v2260_v58 = vpop.permute.xlu1 %2259  ;;  %2354 = vadd.xlane.f32.xlu0 %v2353_v47  ;;  %v2258_v24 = vpop.permute.xlu0 %2257 }
 0x928   :  { %2363 = vadd.xlane.f32.xlu1 %v2362_v13  ;;  %v2368_v17 = vsel %vm1176_vm4, %v2260_v58, 0.0  ;;  %v2365_v29 = vsel %vm1176_vm4, %v2258_v24, 0.0 }
 0x92b   :  { %v2264_v4 = vpop.permute.xlu1 %2263  ;;  %2360 = vadd.xlane.f32.xlu0 %v2359_v62  ;;  %v2262_v49 = vpop.permute.xlu0 %2261 }
 0x92c   :  { %2369 = vadd.xlane.f32.xlu1 %v2368_v17  ;;  %v2374_v40 = vsel %vm1176_vm4, %v2264_v4, 0.0  ;;  %v2371_v46 = vsel %vm1176_vm4, %v2262_v49, 0.0 }
 0x92f   :  { %2366 = vadd.xlane.f32.xlu0 %v2365_v29  ;;  %v2268_v56 = vpop.permute.xlu1 %2267  ;;  %v2266_v47 = vpop.permute.xlu0 %2265 }
 0x930   :  { %2375 = vadd.xlane.f32.xlu1 %v2374_v40  ;;  %v2380_v53 = vsel %vm1176_vm4, %v2268_v56, 0.0  ;;  %v2377_v13 = vsel %vm1176_vm4, %v2266_v47, 0.0 }
 0x933   :  { %2372 = vadd.xlane.f32.xlu0 %v2371_v46 }
 0x934   :  { %2381 = vadd.xlane.f32.xlu1 %v2380_v53 }
 0x936   :  { %v2272_v54 = vpop.permute.xlu1 %2271  ;;  %v2270_v58 = vpop.permute.xlu0 %2269 }
 0x937   :  { %2378 = vadd.xlane.f32.xlu0 %v2377_v13  ;;  %v2386_v62 = vsel %vm1176_vm4, %v2272_v54, 0.0  ;;  %v2383_v24 = vsel %vm1176_vm4, %v2270_v58, 0.0 }
 0x938   :  { %2387 = vadd.xlane.f32.xlu1 %v2386_v62 }
 0x93b   :  { %2384 = vadd.xlane.f32.xlu0 %v2383_v24 }
 0x93e   :  { %v2276_v4 = vpop.permute.xlu1 %2275  ;;  %v2274_v17 = vpop.permute.xlu0 %2273 }
 0x93f   :  { %v2392_v49 = vsel %vm1176_vm4, %v2276_v4, 0.0  ;;  %v2389_v29 = vsel %vm1176_vm4, %v2274_v17, 0.0 }
 0x940   :  { %2393 = vadd.xlane.f32.xlu1 %v2392_v49  ;;  %2390 = vadd.xlane.f32.xlu0 %v2389_v29 }
 0x946   :  { %v2280_v40 = vpop.permute.xlu1 %2279  ;;  %v2278_v56 = vpop.permute.xlu0 %2277 }
 0x947   :  { %v2398_v46 = vsel %vm1176_vm4, %v2280_v40, 0.0  ;;  %v2395_v47 = vsel %vm1176_vm4, %v2278_v56, 0.0 }
 0x948   :  { %2399 = vadd.xlane.f32.xlu1 %v2398_v46  ;;  %2396 = vadd.xlane.f32.xlu0 %v2395_v47 }
 0x94e   :  { %v2284_v53 = vpop.permute.xlu1 %2283  ;;  %v2282_v54 = vpop.permute.xlu0 %2281 }
 0x94f   :  { %v2404_v13 = vsel %vm1176_vm4, %v2284_v53, 0.0  ;;  %v2401_v58 = vsel %vm1176_vm4, %v2282_v54, 0.0 }
 0x950   :  { %2405 = vadd.xlane.f32.xlu1 %v2404_v13  ;;  %2402 = vadd.xlane.f32.xlu0 %v2401_v58 }
 0x956   :  { %v2288_v62 = vpop.permute.xlu1 %2287  ;;  %v2286_v24 = vpop.permute.xlu0 %2285 }
 0x957   :  { %v2410_v4 = vsel %vm1176_vm4, %v2288_v62, 0.0  ;;  %v2407_v17 = vsel %vm1176_vm4, %v2286_v24, 0.0 }
 0x958   :  { %2411 = vadd.xlane.f32.xlu1 %v2410_v4  ;;  %2408 = vadd.xlane.f32.xlu0 %v2407_v17 }
 0x95e   :  { %v2292_v49 = vpop.permute.xlu1 %2291  ;;  %v2290_v29 = vpop.permute.xlu0 %2289 }
 0x95f   :  { %v2416_v40 = vsel %vm1176_vm4, %v2292_v49, 0.0  ;;  %v2413_v56 = vsel %vm1176_vm4, %v2290_v29, 0.0 }
 0x960   :  { %2417 = vadd.xlane.f32.xlu1 %v2416_v40  ;;  %2414 = vadd.xlane.f32.xlu0 %v2413_v56 }
 0x966   :  { %v2296_v46 = vpop.permute.xlu1 %2295  ;;  %v2294_v47 = vpop.permute.xlu0 %2293 }
 0x967   :  { %v2422_v53 = vsel %vm1176_vm4, %v2296_v46, 0.0  ;;  %v2419_v54 = vsel %vm1176_vm4, %v2294_v47, 0.0 }
 0x968   :  { %2423 = vadd.xlane.f32.xlu1 %v2422_v53  ;;  %2420 = vadd.xlane.f32.xlu0 %v2419_v54 }
 0x99c   :  { %v2331_v13 = vpop.xlane.xlu0 %2330 }
 0x99d   :  { %6419 = vrsqrt.f32 %v2331_v13  ;;  %vm2427_vm6 = vcmp.eq.f32.partialorder %v2331_v13, inf  ;;  %v2430_v29 = vand.u32 2147483648, %v2331_v13  ;;  %vm2429_vm9 = vcmp.eq.f32.partialorder %v2331_v13, 0.0 }
 0x9a0   :  { %v2340_v58 = vpop.xlane.xlu0 %2339 }
 0x9a1   :  { %v2334_v62 = vpop.xlane.xlu1 %2333  ;;  %vm2448_vm13 = vcmp.eq.f32.partialorder %v2340_v58, inf  ;;  %vm2450_vm14 = vcmp.eq.f32.partialorder %v2340_v58, 0.0 }
 0x9a2   :  { %6421 = vrsqrt.f32 %v2334_v62  ;;  %vm2434_vm10 = vcmp.eq.f32.partialorder %v2334_v62, inf  ;;  %v2437_v53 = vand.u32 2147483648, %v2334_v62  ;;  %vm2436_vm11 = vcmp.eq.f32.partialorder %v2334_v62, 0.0 }
 0x9a4   :  { %v2337_v24 = vpop.xlane.xlu0 %2336 }
 0x9a5   :  { %6423 = vrsqrt.f32 %v2337_v24  ;;  %vm2441_vm12 = vcmp.eq.f32.partialorder %v2337_v24, inf  ;;  %vm2443_vm3 = vcmp.eq.f32.partialorder %v2337_v24, 0.0 }
 0x9a6   :  { %6425 = vrsqrt.f32 %v2340_v58 }
 0x9a8   :  { %v2343_v10 = vpop.xlane.xlu0 %2342 }
 0x9a9   :  { %vm2455_vm15 = vcmp.eq.f32.partialorder %v2343_v10, inf  ;;  %vm2457_vm0 = vcmp.eq.f32.partialorder %v2343_v10, 0.0 }
 0x9aa   :  { %v6420_v4 = vpop.eup %6419 }
 0x9ab   :  { %v2426_v17 = vmul.f32 %v6420_v4, %v2331_v13 }
 0x9ad   :  { %v2428_v49 = vsel %vm2427_vm6, %v2331_v13, %v2426_v17  ;;  %v2346_v17 = vpop.xlane.xlu1 %2345 }
 0x9ae   :  { %v2431_v56 = vsel %vm2429_vm9, %v2430_v29, %v2428_v49  ;;  %v2444_v49 = vand.u32 2147483648, %v2337_v24  ;;  %vm2462_vm1 = vcmp.eq.f32.partialorder %v2346_v17, inf  ;;  %vm2464_vm2 = vcmp.eq.f32.partialorder %v2346_v17, 0.0 }
 0x9af   :  { %v6422_v40 = vpop.eup %6421  ;;  %v2649_v54 = vmax.f32 %v2431_v56, 1e-12 }
 0x9b0   :  { %v2433_v46 = vmul.f32 %v6422_v40, %v2334_v62 }
 0x9b1   :  { %6427 = vrcp.f32 %v2649_v54 }
 0x9b2   :  { %v2435_v47 = vsel %vm2434_vm10, %v2334_v62, %v2433_v46  ;;  %v6424_v14 = vpop.eup %6423  ;;  %6429 = vrsqrt.f32 %v2343_v10  ;;  %v2451_v62 = vand.u32 2147483648, %v2340_v58 }
 0x9b3   :  { %v2438_v11 = vsel %vm2436_vm11, %v2437_v53, %v2435_v47  ;;  %v2440_v32 = vmul.f32 %v6424_v14, %v2337_v24  ;;  %v6426_v4 = vpop.eup %6425  ;;  %v9550_v14 = vpop.xlane.xlu0 %2348 }
 0x9b4   :  { %v2650_v41 = vmax.f32 %v2438_v11, 1e-12  ;;  %v2447_v6 = vmul.f32 %v6426_v4, %v2340_v58  ;;  %vm2469_vm5 = vcmp.eq.f32.partialorder %v9550_v14, inf  ;;  %vm2471_vm7 = vcmp.eq.f32.partialorder %v9550_v14, 0.0 }
 0x9b5   :  { %v2442_v13 = vsel %vm2441_vm12, %v2337_v24, %v2440_v32 }
 0x9b6   :  { %6431 = vrcp.f32 %v2650_v41  ;;  %v2445_v29 = vsel %vm2443_vm3, %v2444_v49, %v2442_v13  ;;  %v2449_v40 = vsel %vm2448_vm13, %v2340_v58, %v2447_v6  ;;  %v9558_v58 = vpop.xlane.xlu1 %2351  ;;  %v2458_v49 = vand.u32 2147483648, %v2343_v10 }
 0x9b7   :  { %6433 = vrsqrt.f32 %v2346_v17  ;;  %v2651_v56 = vmax.f32 %v2445_v29, 1e-12  ;;  %v2452_v47 = vsel %vm2450_vm14, %v2451_v62, %v2449_v40  ;;  %v12253_v29 = vld [vmem:[#allocation77_spill] sm:$0xff]  ;;  %vm2476_vm8 = vcmp.eq.f32.partialorder %v9558_v58, inf }
 0x9b8   :  { %v2652_v53 = vmax.f32 %v2452_v47, 1e-12  ;;  %vm2478_vm6 = vcmp.eq.f32.partialorder %v9558_v58, 0.0 }
 0x9b9   :  { %6435 = vrcp.f32 %v2651_v56 }
 0x9ba   :  { %6437 = vrsqrt.f32 %v9550_v14 }
 0x9bb   :  { %6439 = vrcp.f32 %v2652_v53 }
 0x9bc   :  { %6441 = vrsqrt.f32 %v9558_v58 }
 0x9be   :  { %v6428_v46 = vpop.eup %6427 }
 0x9bf   :  { %v6430_v11 = vpop.eup %6429  ;;  %v9553_v41 = vmul.f32 %v6428_v46, %v9264_v63  ;;  %v2465_v46 = vand.u32 2147483648, %v2346_v17 }
 0x9c0   :  { %v2454_v54 = vmul.f32 %v6430_v11, %v2343_v10  ;;  %v12254_v11 = vld [vmem:[#allocation82_spill] sm:$0xff] }
 0x9c1   :  { %5449 = vrot.lane.b32.xlu0 %v9553_v41, %s6580_s6  ;;  %v3847_v24 = vmul.f32 0.1034, %v9553_v41  ;;  %v4263_v40 = vmul.f32 %v12253_v29, %v9553_v41  ;;  %v4679_v53 = vmul.f32 %v12254_v11, %v9553_v41 }
 0x9c2   :  { %v2456_v63 = vsel %vm2455_vm15, %v2343_v10, %v2454_v54  ;;  %v12255_v10 = vld [vmem:[#allocation134_spill] sm:$0xff] }
 0x9c3   :  { %v6432_v32 = vpop.eup %6431 }
 0x9c4   :  { %v6434_v6 = vpop.eup %6433  ;;  %v9562_v4 = vmul.f32 %v6432_v32, %v9261_v61  ;;  %v2459_v61 = vsel %vm2457_vm0, %v2458_v49, %v2456_v63  ;;  %v12256_v49 = vld [vmem:[#allocation138_spill] sm:$0xff] }
 0x9c5   :  { %v2461_v13 = vmul.f32 %v6434_v6, %v2346_v17  ;;  %3911 = vrot.lane.b32.xlu0 %v3847_v24, %s6588_s21  ;;  %v2653_v47 = vmax.f32 %v2459_v61, 1e-12 }
 0x9c6   :  { %5451 = vrot.lane.b32.xlu1 %v9562_v4, %s6580_s6  ;;  %v3848_v62 = vmul.f32 0.1034, %v9562_v4  ;;  %v4264_v32 = vmul.f32 %v12255_v10, %v9562_v4  ;;  %v6436_v54 = vpop.eup %6435  ;;  %v4680_v29 = vmul.f32 %v12256_v49, %v9562_v4 }
 0x9c7   :  { %v2463_v56 = vsel %vm2462_vm1, %v2346_v17, %v2461_v13  ;;  %v6438_v24 = vpop.eup %6437  ;;  %v9579_v13 = vpop.xlane.xlu0 %2354  ;;  %6443 = vrcp.f32 %v2653_v47  ;;  %v9582_v17 = vmul.f32 %v6436_v54, %v9274_v30 }
 0x9c8   :  { %v2466_v6 = vsel %vm2464_vm2, %v2465_v46, %v2463_v56  ;;  %6445 = vrsqrt.f32 %v9579_v13  ;;  %v9591_v56 = vpop.xlane.xlu1 %2357  ;;  %vm2483_vm9 = vcmp.eq.f32.partialorder %v9579_v13, inf  ;;  %vm2485_vm10 = vcmp.eq.f32.partialorder %v9579_v13, 0.0 }
 0x9c9   :  { %4327 = vrot.lane.b32.xlu0 %v4263_v40, %s6589_s22  ;;  %v2654_v63 = vmax.f32 %v2466_v6, 1e-12  ;;  %v6440_v40 = vpop.eup %6439  ;;  %v3849_v30 = vmul.f32 0.1034, %v9582_v17  ;;  %vm2490_vm11 = vcmp.eq.f32.partialorder %v9591_v56, inf  ;;  %vm2492_vm12 = vcmp.eq.f32.partialorder %v9591_v56, 0.0 }
 0x9ca   :  { %3913 = vrot.lane.b32.xlu1 %v3848_v62, %s6588_s21  ;;  %v2468_v62 = vmul.f32 %v6438_v24, %v9550_v14  ;;  %v6442_v61 = vpop.eup %6441  ;;  %v9595_v46 = vmul.f32 %v6440_v40, %v9271_v2  ;;  %v12257_v2 = vld [vmem:[#allocation86_spill] sm:$0xff]  ;;  %v2479_v24 = vand.u32 2147483648, %v9558_v58 }
 0x9cb   :  { %6447 = vrcp.f32 %v2654_v63  ;;  %v2475_v47 = vmul.f32 %v6442_v61, %v9558_v58  ;;  %v4265_v10 = vmul.f32 %v12257_v2, %v9582_v17 }
 0x9cc   :  { %v2470_v11 = vsel %vm2469_vm5, %v9550_v14, %v2468_v62  ;;  %6449 = vrsqrt.f32 %v9591_v56 }
 0x9cd   :  { %4743 = vrot.lane.b32.xlu0 %v4679_v53, %s6581_s15  ;;  %v2472_v53 = vand.u32 2147483648, %v9550_v14  ;;  %v2477_v6 = vsel %vm2476_vm8, %v9558_v58, %v2475_v47  ;;  %v12258_v14 = vld [vmem:[#allocation90_spill] sm:$0xff]  ;;  %v9621_v47 = vpop.xlane.xlu0 %2360 }
 0x9ce   :  { %4329 = vrot.lane.b32.xlu1 %v4264_v32, %s6589_s22  ;;  %v3850_v32 = vmul.f32 0.1034, %v9595_v46  ;;  %v4681_v49 = vmul.f32 %v12258_v14, %v9582_v17  ;;  %v2480_v61 = vsel %vm2478_vm6, %v2479_v24, %v2477_v6  ;;  %v9633_v6 = vpop.xlane.xlu1 %2363  ;;  %vm2497_vm3 = vcmp.eq.f32.partialorder %v9621_v47, inf }
 0x9cf   :  { %v2473_v54 = vsel %vm2471_vm7, %v2472_v53, %v2470_v11  ;;  %v2656_v11 = vmax.f32 %v2480_v61, 1e-12  ;;  %v12260_v53 = vld [vmem:[#allocation147_spill] sm:$0xff]  ;;  %vm2499_vm13 = vcmp.eq.f32.partialorder %v9621_v47, 0.0  ;;  %vm2504_vm14 = vcmp.eq.f32.partialorder %v9633_v6, inf }
 0x9d0   :  { %v2655_v63 = vmax.f32 %v2473_v54, 1e-12  ;;  %v4682_v2 = vmul.f32 %v12260_v53, %v9595_v46  ;;  %vm2506_vm15 = vcmp.eq.f32.partialorder %v9633_v6, 0.0 }
 0x9d1   :  { %5453 = vrot.lane.b32.xlu0 %v9582_v17, %s6580_s6 }
 0x9d2   :  { %4745 = vrot.lane.b32.xlu1 %v4680_v29, %s6581_s15  ;;  %v12259_v29 = vld [vmem:[#allocation144_spill] sm:$0xff]  ;;  %6451 = vrcp.f32 %v2655_v63 }
 0x9d3   :  { %v4266_v40 = vmul.f32 %v12259_v29, %v9595_v46  ;;  %6453 = vrsqrt.f32 %v9621_v47 }
 0x9d4   :  { %v6444_v62 = vpop.eup %6443  ;;  %6455 = vrcp.f32 %v2656_v11 }
 0x9d5   :  { %3915 = vrot.lane.b32.xlu0 %v3849_v30, %s6588_s21  ;;  %v6446_v30 = vpop.eup %6445  ;;  %v9624_v58 = vmul.f32 %v6444_v62, %v9288_v22  ;;  %6457 = vrsqrt.f32 %v9633_v6 }
 0x9d6   :  { %5455 = vrot.lane.b32.xlu1 %v9595_v46, %s6580_s6 }
 0x9d7   :  { %v3851_v22 = vmul.f32 0.1034, %v9624_v58 }
 0x9d9   :  { %4331 = vrot.lane.b32.xlu0 %v4265_v10, %s6589_s22  ;;  %v6448_v10 = vpop.eup %6447 }
 0x9da   :  { %3917 = vrot.lane.b32.xlu1 %v3850_v32, %s6588_s21  ;;  %v2482_v32 = vmul.f32 %v6446_v30, %v9579_v13  ;;  %v6450_v54 = vpop.eup %6449  ;;  %v9637_v24 = vmul.f32 %v6448_v10, %v9285_v51  ;;  %v12261_v51 = vld [vmem:[#allocation96_spill] sm:$0xff]  ;;  %v2493_v30 = vand.u32 2147483648, %v9591_v56 }
 0x9db   :  { %v2489_v63 = vmul.f32 %v6450_v54, %v9591_v56  ;;  %v4267_v29 = vmul.f32 %v12261_v51, %v9624_v58 }
 0x9dc   :  { %v2484_v14 = vsel %vm2483_vm9, %v9579_v13, %v2482_v32 }
 0x9dd   :  { %4747 = vrot.lane.b32.xlu0 %v4681_v49, %s6581_s15  ;;  %v2486_v49 = vand.u32 2147483648, %v9579_v13  ;;  %v2491_v61 = vsel %vm2490_vm11, %v9591_v56, %v2489_v63  ;;  %v12262_v13 = vld [vmem:[#allocation102_spill] sm:$0xff]  ;;  %v9663_v63 = vpop.xlane.xlu0 %2366 }
 0x9de   :  { %4333 = vrot.lane.b32.xlu1 %v4266_v40, %s6589_s22  ;;  %v3852_v40 = vmul.f32 0.1034, %v9637_v24  ;;  %v4683_v53 = vmul.f32 %v12262_v13, %v9624_v58  ;;  %v2494_v54 = vsel %vm2492_vm12, %v2493_v30, %v2491_v61  ;;  %v9675_v61 = vpop.xlane.xlu1 %2369  ;;  %vm2511_vm0 = vcmp.eq.f32.partialorder %v9663_v63, inf }
 0x9df   :  { %v2487_v62 = vsel %vm2485_vm10, %v2486_v49, %v2484_v14  ;;  %v6452_v32 = vpop.eup %6451  ;;  %v2658_v14 = vmax.f32 %v2494_v54, 1e-12  ;;  %v12264_v49 = vld [vmem:[#allocation157_spill] sm:$0xff]  ;;  %vm2513_vm1 = vcmp.eq.f32.partialorder %v9663_v63, 0.0  ;;  %vm2518_vm2 = vcmp.eq.f32.partialorder %v9675_v61, inf }
 0x9e0   :  { %v2657_v11 = vmax.f32 %v2487_v62, 1e-12  ;;  %v9666_v56 = vmul.f32 %v6452_v32, %v9300_v34  ;;  %v4684_v51 = vmul.f32 %v12264_v49, %v9637_v24  ;;  %vm2520_vm5 = vcmp.eq.f32.partialorder %v9675_v61, 0.0 }
 0x9e1   :  { %5457 = vrot.lane.b32.xlu0 %v9624_v58, %s6580_s6 }
 0x9e2   :  { %4749 = vrot.lane.b32.xlu1 %v4682_v2, %s6581_s15  ;;  %v12263_v2 = vld [vmem:[#allocation53_spill] sm:$0xff]  ;;  %6459 = vrcp.f32 %v2657_v11  ;;  %v3853_v34 = vmul.f32 0.1034, %v9666_v56 }
 0x9e3   :  { %v4268_v10 = vmul.f32 %v12263_v2, %v9637_v24  ;;  %6461 = vrsqrt.f32 %v9663_v63 }
 0x9e4   :  { %6463 = vrcp.f32 %v2658_v14 }
 0x9e5   :  { %3919 = vrot.lane.b32.xlu0 %v3851_v22, %s6588_s21  ;;  %v6454_v22 = vpop.eup %6453  ;;  %6465 = vrsqrt.f32 %v9675_v61 }
 0x9e6   :  { %5459 = vrot.lane.b32.xlu1 %v9637_v24, %s6580_s6 }
 0x9e9   :  { %4335 = vrot.lane.b32.xlu0 %v4267_v29, %s6589_s22  ;;  %v6456_v29 = vpop.eup %6455 }
 0x9ea   :  { %3921 = vrot.lane.b32.xlu1 %v3852_v40, %s6588_s21  ;;  %v2496_v40 = vmul.f32 %v6454_v22, %v9621_v47  ;;  %v6458_v62 = vpop.eup %6457  ;;  %v9679_v30 = vmul.f32 %v6456_v29, %v9295_v33  ;;  %v12266_v33 = vld [vmem:[#allocation109_spill] sm:$0xff]  ;;  %v2507_v22 = vand.u32 2147483648, %v9633_v6 }
 0x9eb   :  { %v2503_v11 = vmul.f32 %v6458_v62, %v9633_v6  ;;  %v4269_v2 = vmul.f32 %v12266_v33, %v9666_v56 }
 0x9ec   :  { %12265 = vst [vmem:[#allocation15_spill] sm:$0xff] %v9679_v30  ;;  %v2498_v13 = vsel %vm2497_vm3, %v9621_v47, %v2496_v40 }
 0x9ed   :  { %4751 = vrot.lane.b32.xlu0 %v4683_v53, %s6581_s15  ;;  %v2500_v53 = vand.u32 2147483648, %v9621_v47  ;;  %v2505_v54 = vsel %vm2504_vm14, %v9633_v6, %v2503_v11  ;;  %v12267_v47 = vld [vmem:[#allocation115_spill] sm:$0xff]  ;;  %v9705_v11 = vpop.xlane.xlu0 %2372 }
 0x9ee   :  { %4337 = vrot.lane.b32.xlu1 %v4268_v10, %s6589_s22  ;;  %v3854_v10 = vmul.f32 0.1034, %v9679_v30  ;;  %v4685_v49 = vmul.f32 %v12267_v47, %v9666_v56  ;;  %v2508_v62 = vsel %vm2506_vm15, %v2507_v22, %v2505_v54  ;;  %v9717_v54 = vpop.xlane.xlu1 %2375  ;;  %vm2525_vm7 = vcmp.eq.f32.partialorder %v9705_v11, inf }
 0x9ef   :  { %v2501_v32 = vsel %vm2499_vm13, %v2500_v53, %v2498_v13  ;;  %v6460_v40 = vpop.eup %6459  ;;  %v2660_v13 = vmax.f32 %v2508_v62, 1e-12  ;;  %v12270_v53 = vld [vmem:[#allocation72_spill] sm:$0xff]  ;;  %vm2527_vm8 = vcmp.eq.f32.partialorder %v9705_v11, 0.0  ;;  %vm2532_vm6 = vcmp.eq.f32.partialorder %v9717_v54, inf }
 0x9f0   :  { %v2659_v14 = vmax.f32 %v2501_v32, 1e-12  ;;  %v9708_v6 = vmul.f32 %v6460_v40, %v9312_v16  ;;  %v4686_v33 = vmul.f32 %v12270_v53, %v9679_v30  ;;  %vm2534_vm9 = vcmp.eq.f32.partialorder %v9717_v54, 0.0 }
 0x9f1   :  { %5461 = vrot.lane.b32.xlu0 %v9666_v56, %s6580_s6 }
 0x9f2   :  { %4753 = vrot.lane.b32.xlu1 %v4684_v51, %s6581_s15  ;;  %v12268_v51 = vld [vmem:[#allocation64_spill] sm:$0xff]  ;;  %6467 = vrcp.f32 %v2659_v14  ;;  %12269 = vst [vmem:[#allocation16_spill] sm:$0xff] %v9708_v6  ;;  %v3855_v16 = vmul.f32 0.1034, %v9708_v6 }
 0x9f3   :  { %v4270_v29 = vmul.f32 %v12268_v51, %v9679_v30  ;;  %6469 = vrsqrt.f32 %v9705_v11 }
 0x9f4   :  { %6471 = vrcp.f32 %v2660_v13 }
 0x9f5   :  { %3923 = vrot.lane.b32.xlu0 %v3853_v34, %s6588_s21  ;;  %v6462_v34 = vpop.eup %6461  ;;  %6473 = vrsqrt.f32 %v9717_v54 }
 0x9f6   :  { %5463 = vrot.lane.b32.xlu1 %v9679_v30, %s6580_s6 }
 0x9f9   :  { %4339 = vrot.lane.b32.xlu0 %v4269_v2, %s6589_s22  ;;  %v6464_v2 = vpop.eup %6463 }
 0x9fa   :  { %3925 = vrot.lane.b32.xlu1 %v3854_v10, %s6588_s21  ;;  %v2510_v10 = vmul.f32 %v6462_v34, %v9663_v63  ;;  %v6466_v32 = vpop.eup %6465  ;;  %v9721_v22 = vmul.f32 %v6464_v2, %v9307_v25  ;;  %v12272_v25 = vld [vmem:[#allocation121_spill] sm:$0xff]  ;;  %v2521_v34 = vand.u32 2147483648, %v9675_v61 }
 0x9fb   :  { %v2517_v14 = vmul.f32 %v6466_v32, %v9675_v61  ;;  %v4271_v51 = vmul.f32 %v12272_v25, %v9708_v6 }
 0x9fc   :  { %12271 = vst [vmem:[#allocation17_spill] sm:$0xff] %v9721_v22  ;;  %v2512_v47 = vsel %vm2511_vm0, %v9663_v63, %v2510_v10 }
 0x9fd   :  { %4755 = vrot.lane.b32.xlu0 %v4685_v49, %s6581_s15  ;;  %v2514_v49 = vand.u32 2147483648, %v9663_v63  ;;  %v2519_v62 = vsel %vm2518_vm2, %v9675_v61, %v2517_v14  ;;  %v12273_v63 = vld [vmem:[#allocation125_spill] sm:$0xff]  ;;  %v9747_v14 = vpop.xlane.xlu0 %2378 }
 0x9fe   :  { %4341 = vrot.lane.b32.xlu1 %v4270_v29, %s6589_s22  ;;  %v3856_v29 = vmul.f32 0.1034, %v9721_v22  ;;  %v4687_v53 = vmul.f32 %v12273_v63, %v9708_v6  ;;  %v2522_v32 = vsel %vm2520_vm5, %v2521_v34, %v2519_v62  ;;  %v9759_v62 = vpop.xlane.xlu1 %2381  ;;  %vm2539_vm10 = vcmp.eq.f32.partialorder %v9747_v14, inf }
 0x9ff   :  { %v2515_v40 = vsel %vm2513_vm1, %v2514_v49, %v2512_v47  ;;  %v6468_v10 = vpop.eup %6467  ;;  %v2662_v47 = vmax.f32 %v2522_v32, 1e-12  ;;  %v12276_v49 = vld [vmem:[#allocation78_spill] sm:$0xff]  ;;  %vm2541_vm11 = vcmp.eq.f32.partialorder %v9747_v14, 0.0  ;;  %vm2546_vm12 = vcmp.eq.f32.partialorder %v9759_v62, inf }
 0xa00   :  { %v2661_v13 = vmax.f32 %v2515_v40, 1e-12  ;;  %v9750_v61 = vmul.f32 %v6468_v10, %v9328_v37  ;;  %v4688_v25 = vmul.f32 %v12276_v49, %v9721_v22  ;;  %vm2548_vm3 = vcmp.eq.f32.partialorder %v9759_v62, 0.0 }
 0xa01   :  { %5465 = vrot.lane.b32.xlu0 %v9708_v6, %s6580_s6 }
 0xa02   :  { %4757 = vrot.lane.b32.xlu1 %v4686_v33, %s6581_s15  ;;  %v12274_v33 = vld [vmem:[#allocation67_spill] sm:$0xff]  ;;  %6475 = vrcp.f32 %v2661_v13  ;;  %12275 = vst [vmem:[#allocation18_spill] sm:$0xff] %v9750_v61  ;;  %v3857_v37 = vmul.f32 0.1034, %v9750_v61 }
 0xa03   :  { %v4272_v2 = vmul.f32 %v12274_v33, %v9721_v22  ;;  %6477 = vrsqrt.f32 %v9747_v14  ;;  %v2528_v33 = vand.u32 2147483648, %v9705_v11 }
 0xa04   :  { %6479 = vrcp.f32 %v2662_v47  ;;  %v2535_v47 = vand.u32 2147483648, %v9717_v54 }
 0xa05   :  { %3927 = vrot.lane.b32.xlu0 %v3855_v16, %s6588_s21  ;;  %v6470_v16 = vpop.eup %6469  ;;  %6481 = vrsqrt.f32 %v9759_v62 }
 0xa06   :  { %5467 = vrot.lane.b32.xlu1 %v9721_v22, %s6580_s6 }
 0xa09   :  { %4343 = vrot.lane.b32.xlu0 %v4271_v51, %s6589_s22  ;;  %v6472_v51 = vpop.eup %6471 }
 0xa0a   :  { %3929 = vrot.lane.b32.xlu1 %v3856_v29, %s6588_s21  ;;  %v2524_v29 = vmul.f32 %v6470_v16, %v9705_v11  ;;  %v6474_v40 = vpop.eup %6473  ;;  %v9763_v34 = vmul.f32 %v6472_v51, %v9323_v42  ;;  %v12278_v42 = vld [vmem:[#allocation130_spill] sm:$0xff]  ;;  %v12279_v51 = vld [vmem:[#allocation135_spill] sm:$0xff] }
 0xa0b   :  { %v2531_v13 = vmul.f32 %v6474_v40, %v9717_v54  ;;  %v12280_v40 = vld [vmem:[#allocation165_spill] sm:$0xff] }
 0xa0c   :  { %12277 = vst [vmem:[#allocation19_spill] sm:$0xff] %v9763_v34  ;;  %v2526_v63 = vsel %vm2525_vm7, %v9705_v11, %v2524_v29  ;;  %v3858_v10 = vmul.f32 0.1034, %v9763_v34  ;;  %v9785_v11 = vpop.xlane.xlu1 %2387  ;;  %v4689_v29 = vmul.f32 %v12279_v51, %v9750_v61 }
 0xa0d   :  { %4759 = vrot.lane.b32.xlu0 %v4687_v53, %s6581_s15  ;;  %v9769_v53 = vpop.xlane.xlu0 %2384  ;;  %v2529_v32 = vsel %vm2527_vm8, %v2528_v33, %v2526_v63  ;;  %v2533_v16 = vsel %vm2532_vm6, %v9717_v54, %v2531_v13  ;;  %vm2560_vm15 = vcmp.eq.f32.partialorder %v9785_v11, inf  ;;  %vm2562_vm0 = vcmp.eq.f32.partialorder %v9785_v11, 0.0 }
 0xa0e   :  { %4345 = vrot.lane.b32.xlu1 %v4272_v2, %s6589_s22  ;;  %v4273_v2 = vmul.f32 %v12278_v42, %v9750_v61  ;;  %v2663_v49 = vmax.f32 %v2529_v32, 1e-12  ;;  %v2536_v63 = vsel %vm2534_vm9, %v2535_v47, %v2533_v16  ;;  %v12282_v32 = vld [vmem:[#allocation88_spill] sm:$0xff]  ;;  %vm2553_vm13 = vcmp.eq.f32.partialorder %v9769_v53, inf }
 0xa0f   :  { %v6476_v13 = vpop.eup %6475  ;;  %v2664_v42 = vmax.f32 %v2536_v63, 1e-12  ;;  %v4690_v51 = vmul.f32 %v12282_v32, %v9763_v34  ;;  %v12284_v32 = vld [vmem:[#allocation145_spill] sm:$0xff]  ;;  %vm2555_vm14 = vcmp.eq.f32.partialorder %v9769_v53, 0.0 }
 0xa10   :  { %v6478_v33 = vpop.eup %6477  ;;  %6483 = vrcp.f32 %v2663_v49  ;;  %v9795_v54 = vpop.xlane.xlu1 %2393 }
 0xa11   :  { %5469 = vrot.lane.b32.xlu0 %v9750_v61, %s6580_s6  ;;  %v2538_v16 = vmul.f32 %v6478_v33, %v9747_v14  ;;  %6485 = vrsqrt.f32 %v9769_v53  ;;  %v2542_v33 = vand.u32 2147483648, %v9747_v14  ;;  %vm2574_vm5 = vcmp.eq.f32.partialorder %v9795_v54, inf }
 0xa12   :  { %4761 = vrot.lane.b32.xlu1 %v4688_v25, %s6581_s15  ;;  %v9787_v25 = vpop.xlane.xlu0 %2390  ;;  %6487 = vrcp.f32 %v2664_v42  ;;  %vm2576_vm7 = vcmp.eq.f32.partialorder %v9795_v54, 0.0 }
 0xa13   :  { %v2540_v63 = vsel %vm2539_vm10, %v9747_v14, %v2538_v16  ;;  %6489 = vrsqrt.f32 %v9785_v11  ;;  %v2549_v14 = vand.u32 2147483648, %v9759_v62  ;;  %vm2567_vm1 = vcmp.eq.f32.partialorder %v9787_v25, inf }
 0xa14   :  { %v9809_v49 = vpop.xlane.xlu1 %2399  ;;  %v2543_v16 = vsel %vm2541_vm11, %v2542_v33, %v2540_v63  ;;  %v12286_v63 = vld [vmem:[#allocation169_spill] sm:$0xff]  ;;  %vm2569_vm2 = vcmp.eq.f32.partialorder %v9787_v25, 0.0 }
 0xa15   :  { %3931 = vrot.lane.b32.xlu0 %v3857_v37, %s6588_s21  ;;  %v4274_v37 = vmul.f32 %v12280_v40, %v9763_v34  ;;  %v6480_v40 = vpop.eup %6479  ;;  %vm2588_vm9 = vcmp.eq.f32.partialorder %v9809_v49, inf  ;;  %vm2590_vm10 = vcmp.eq.f32.partialorder %v9809_v49, 0.0 }
 0xa16   :  { %5471 = vrot.lane.b32.xlu1 %v9763_v34, %s6580_s6  ;;  %v6482_v47 = vpop.eup %6481 }
 0xa18   :  { %v9826_v42 = vpop.xlane.xlu1 %2405 }
 0xa19   :  { %4347 = vrot.lane.b32.xlu0 %v4273_v2, %s6589_s22  ;;  %v9797_v2 = vpop.xlane.xlu0 %2396 }
 0xa1a   :  { %3933 = vrot.lane.b32.xlu1 %v3858_v10, %s6588_s21  ;;  %v9800_v10 = vmul.f32 %v6476_v13, %v9340_v59  ;;  %v2545_v13 = vmul.f32 %v6482_v47, %v9759_v62  ;;  %vm2581_vm8 = vcmp.eq.f32.partialorder %v9797_v2, inf  ;;  %vm2583_vm6 = vcmp.eq.f32.partialorder %v9797_v2, 0.0 }
 0xa1c   :  { %12281 = vst [vmem:[#allocation20_spill] sm:$0xff] %v9800_v10  ;;  %v3859_v59 = vmul.f32 0.1034, %v9800_v10  ;;  %v2547_v47 = vsel %vm2546_vm12, %v9759_v62, %v2545_v13  ;;  %v9839_v23 = vpop.xlane.xlu1 %2411 }
 0xa1d   :  { %4763 = vrot.lane.b32.xlu0 %v4689_v29, %s6581_s15  ;;  %v9811_v29 = vpop.xlane.xlu0 %2402  ;;  %v6484_v13 = vpop.eup %6483  ;;  %v2550_v61 = vsel %vm2548_vm3, %v2549_v14, %v2547_v47  ;;  %vm2602_vm3 = vcmp.eq.f32.partialorder %v9826_v42, inf }
 0xa1e   :  { %4349 = vrot.lane.b32.xlu1 %v4274_v37, %s6589_s22  ;;  %v9815_v37 = vmul.f32 %v6480_v40, %v9335_v50  ;;  %v9854_v26 = vmul.f32 %v6484_v13, %v9354_v44  ;;  %vm2595_vm11 = vcmp.eq.f32.partialorder %v9811_v29, inf  ;;  %vm2597_vm12 = vcmp.eq.f32.partialorder %v9811_v29, 0.0 }
 0xa20   :  { %12283 = vst [vmem:[#allocation21_spill] sm:$0xff] %v9815_v37  ;;  %v3860_v40 = vmul.f32 0.1034, %v9815_v37  ;;  %v4276_v33 = vmul.f32 %v12286_v63, %v9815_v37  ;;  %v9849_v62 = vpop.xlane.xlu1 %2417  ;;  %12287 = vst [vmem:[#allocation22_spill] sm:$0xff] %v9854_v26  ;;  %v3861_v44 = vmul.f32 0.1034, %v9854_v26 }
 0xa21   :  { %5473 = vrot.lane.b32.xlu0 %v9800_v10, %s6580_s6  ;;  %v9828_v50 = vpop.xlane.xlu0 %2408 }
 0xa22   :  { %4765 = vrot.lane.b32.xlu1 %v4690_v51, %s6581_s15  ;;  %v4275_v51 = vmul.f32 %v12284_v32, %v9800_v10  ;;  %v12285_v32 = vld [vmem:[#allocation151_spill] sm:$0xff] }
 0xa23   :  { %v4691_v34 = vmul.f32 %v12285_v32, %v9800_v10  ;;  %v12288_v32 = vld [vmem:[#allocation95_spill] sm:$0xff] }
 0xa24   :  { %v4692_v10 = vmul.f32 %v12288_v32, %v9815_v37 }
 0xa25   :  { %3935 = vrot.lane.b32.xlu0 %v3859_v59, %s6588_s21  ;;  %v2665_v59 = vmax.f32 %v2543_v16, 1e-12  ;;  %v9841_v35 = vpop.xlane.xlu0 %2414 }
 0xa26   :  { %5475 = vrot.lane.b32.xlu1 %v9815_v37, %s6580_s6 }
 0xa27   :  { %6491 = vrcp.f32 %v2665_v59 }
 0xa28   :  { %6493 = vrsqrt.f32 %v9787_v25 }
 0xa29   :  { %4351 = vrot.lane.b32.xlu0 %v4275_v51, %s6589_s22  ;;  %v6486_v51 = vpop.eup %6485  ;;  %v9851_v16 = vpop.xlane.xlu0 %2420 }
 0xa2a   :  { %3937 = vrot.lane.b32.xlu1 %v3860_v40, %s6588_s21  ;;  %v2666_v40 = vmax.f32 %v2550_v61, 1e-12  ;;  %v6488_v63 = vpop.eup %6487  ;;  %v2552_v47 = vmul.f32 %v6486_v51, %v9769_v53 }
 0xa2b   :  { %v6490_v61 = vpop.eup %6489  ;;  %v9869_v59 = vmul.f32 %v6488_v63, %v9349_v18 }
 0xa2c   :  { %6495 = vrcp.f32 %v2666_v40  ;;  %v2554_v13 = vsel %vm2553_vm13, %v9769_v53, %v2552_v47  ;;  %v12292_v40 = vld [vmem:[#allocation154_spill] sm:$0xff]  ;;  %vm2604_vm13 = vcmp.eq.f32.partialorder %v9826_v42, 0.0 }
 0xa2d   :  { %4767 = vrot.lane.b32.xlu0 %v4691_v34, %s6581_s15  ;;  %v9863_v34 = vpop.xlane.xlu1 %2423  ;;  %12290 = vst [vmem:[#allocation24_spill] sm:$0xff] %v9869_v59  ;;  %6497 = vrsqrt.f32 %v9795_v54  ;;  %v4277_v32 = vmul.f32 %v12292_v40, %v9854_v26  ;;  %v3862_v63 = vmul.f32 0.1034, %v9869_v59  ;;  %v12293_v40 = vld [vmem:[#allocation48_spill] sm:$0xff] }
 0xa2e   :  { %4353 = vrot.lane.b32.xlu1 %v4276_v33, %s6589_s22  ;;  %v2559_v33 = vmul.f32 %v6490_v61, %v9785_v11  ;;  %v4693_v37 = vmul.f32 %v12293_v40, %v9854_v26  ;;  %v12296_v40 = vld [vmem:[#allocation178_spill] sm:$0xff] }
 0xa30   :  { %v2561_v61 = vsel %vm2560_vm15, %v9785_v11, %v2559_v33  ;;  %vm2611_vm15 = vcmp.eq.f32.partialorder %v9828_v50, 0.0 }
 0xa31   :  { %5477 = vrot.lane.b32.xlu0 %v9854_v26, %s6580_s6  ;;  %v4694_v26 = vmul.f32 %v12296_v40, %v9869_v59 }
 0xa32   :  { %4769 = vrot.lane.b32.xlu1 %v4692_v10, %s6581_s15  ;;  %v2556_v10 = vand.u32 2147483648, %v9769_v53  ;;  %v2563_v53 = vand.u32 2147483648, %v9785_v11 }
 0xa33   :  { %v9865_v14 = vpop.permute.xlu0 %5449 }
 0xa34   :  { %12289 = vst [vmem:[#allocation23_spill] sm:$0xff] %v9865_v14  ;;  %v2557_v47 = vsel %vm2555_vm14, %v2556_v10, %v2554_v13  ;;  %v12294_v13 = vld [vmem:[#allocation176_spill] sm:$0xff]  ;;  %v6492_v33 = vpop.eup %6491  ;;  %v2564_v27 = vsel %vm2562_vm0, %v2563_v53, %v2561_v61  ;;  %vm2609_vm14 = vcmp.eq.f32.partialorder %v9828_v50, inf  ;;  %vm2616_vm0 = vcmp.eq.f32.partialorder %v9839_v23, inf }
 0xa35   :  { %3939 = vrot.lane.b32.xlu0 %v3861_v44, %s6588_s21  ;;  %v2667_v44 = vmax.f32 %v2557_v47, 1e-12  ;;  %v4278_v10 = vmul.f32 %v12294_v13, %v9869_v59  ;;  %v9908_v22 = vmul.f32 %v6492_v33, %v9368_v0 }
 0xa36   :  { %5479 = vrot.lane.b32.xlu1 %v9869_v59, %s6580_s6 }
 0xa37   :  { %v9880_v51 = vpop.permute.xlu0 %3911  ;;  %6499 = vrcp.f32 %v2667_v44  ;;  %12295 = vst [vmem:[#allocation26_spill] sm:$0xff] %v9908_v22  ;;  %v3863_v0 = vmul.f32 0.1034, %v9908_v22 }
 0xa38   :  { %v9882_v18 = vpop.permute.xlu1 %5451  ;;  %6501 = vrsqrt.f32 %v9797_v2 }
 0xa39   :  { %12291 = vst [vmem:[#allocation25_spill] sm:$0xff] %v9882_v18  ;;  %4355 = vrot.lane.b32.xlu0 %v4277_v32, %s6589_s22  ;;  %v6494_v32 = vpop.eup %6493 }
 0xa3a   :  { %3941 = vrot.lane.b32.xlu1 %v3862_v63, %s6588_s21  ;;  %v2668_v63 = vmax.f32 %v2564_v27, 1e-12  ;;  %v6496_v13 = vpop.eup %6495  ;;  %v2566_v61 = vmul.f32 %v6494_v32, %v9787_v25 }
 0xa3b   :  { %v9893_v18 = vpop.permute.xlu0 %4327  ;;  %v6498_v27 = vpop.eup %6497  ;;  %v9923_v44 = vmul.f32 %v6496_v13, %v9365_v52 }
 0xa3c   :  { %v9895_v14 = vpop.permute.xlu1 %3913  ;;  %6503 = vrcp.f32 %v2668_v63  ;;  %v2568_v33 = vsel %vm2567_vm1, %v9787_v25, %v2566_v61  ;;  %v12300_v63 = vld [vmem:[#allocation52_spill] sm:$0xff]  ;;  %vm2618_vm1 = vcmp.eq.f32.partialorder %v9839_v23, 0.0 }
 0xa3d   :  { %4771 = vrot.lane.b32.xlu0 %v4693_v37, %s6581_s15  ;;  %12298 = vst [vmem:[#allocation28_spill] sm:$0xff] %v9923_v44  ;;  %6505 = vrsqrt.f32 %v9809_v49  ;;  %v4279_v40 = vmul.f32 %v12300_v63, %v9908_v22  ;;  %v3864_v13 = vmul.f32 0.1034, %v9923_v44  ;;  %v12301_v63 = vld [vmem:[#allocation51_spill] sm:$0xff] }
 0xa3e   :  { %4357 = vrot.lane.b32.xlu1 %v4278_v10, %s6589_s22  ;;  %v2573_v10 = vmul.f32 %v6498_v27, %v9795_v54  ;;  %v4695_v59 = vmul.f32 %v12301_v63, %v9908_v22  ;;  %v12304_v63 = vld [vmem:[#allocation185_spill] sm:$0xff] }
 0xa3f   :  { %v9903_v11 = vpop.permute.xlu0 %4743 }
 0xa40   :  { %v9905_v47 = vpop.permute.xlu1 %4329  ;;  %v2575_v27 = vsel %vm2574_vm5, %v9795_v54, %v2573_v10  ;;  %vm2625_vm5 = vcmp.eq.f32.partialorder %v9841_v35, 0.0 }
 0xa41   :  { %5481 = vrot.lane.b32.xlu0 %v9908_v22, %s6580_s6  ;;  %v4696_v22 = vmul.f32 %v12304_v63, %v9923_v44 }
 0xa42   :  { %4773 = vrot.lane.b32.xlu1 %v4694_v26, %s6581_s15  ;;  %v2570_v26 = vand.u32 2147483648, %v9787_v25  ;;  %v2577_v25 = vand.u32 2147483648, %v9795_v54 }
 0xa43   :  { %v9917_v37 = vpop.permute.xlu0 %5453 }
 0xa44   :  { %12297 = vst [vmem:[#allocation27_spill] sm:$0xff] %v9917_v37  ;;  %v9919_v53 = vpop.permute.xlu1 %4745  ;;  %v2571_v61 = vsel %vm2569_vm2, %v2570_v26, %v2568_v33  ;;  %v12302_v33 = vld [vmem:[#allocation182_spill] sm:$0xff]  ;;  %v6500_v10 = vpop.eup %6499  ;;  %v2578_v6 = vsel %vm2576_vm7, %v2577_v25, %v2575_v27  ;;  %vm2623_vm2 = vcmp.eq.f32.partialorder %v9841_v35, inf  ;;  %vm2630_vm7 = vcmp.eq.f32.partialorder %v9849_v62, inf }
 0xa45   :  { %3943 = vrot.lane.b32.xlu0 %v3863_v0, %s6588_s21  ;;  %v2669_v0 = vmax.f32 %v2571_v61, 1e-12  ;;  %v4280_v26 = vmul.f32 %v12302_v33, %v9923_v44  ;;  %v9962_v3 = vmul.f32 %v6500_v10, %v9386_v28 }
 0xa46   :  { %5483 = vrot.lane.b32.xlu1 %v9923_v44, %s6580_s6 }
 0xa47   :  { %v9934_v32 = vpop.permute.xlu0 %3915  ;;  %6507 = vrcp.f32 %v2669_v0  ;;  %12303 = vst [vmem:[#allocation30_spill] sm:$0xff] %v9962_v3  ;;  %v3865_v28 = vmul.f32 0.1034, %v9962_v3 }
 0xa48   :  { %v9936_v52 = vpop.permute.xlu1 %5455  ;;  %6509 = vrsqrt.f32 %v9811_v29 }
 0xa49   :  { %12299 = vst [vmem:[#allocation29_spill] sm:$0xff] %v9936_v52  ;;  %4359 = vrot.lane.b32.xlu0 %v4279_v40, %s6589_s22  ;;  %v6502_v40 = vpop.eup %6501 }
 0xa4a   :  { %3945 = vrot.lane.b32.xlu1 %v3864_v13, %s6588_s21  ;;  %v2670_v13 = vmax.f32 %v2578_v6, 1e-12  ;;  %v6504_v33 = vpop.eup %6503  ;;  %v2580_v27 = vmul.f32 %v6502_v40, %v9797_v2 }
 0xa4b   :  { %v9947_v52 = vpop.permute.xlu0 %4331  ;;  %v6506_v6 = vpop.eup %6505  ;;  %v9977_v0 = vmul.f32 %v6504_v33, %v9383_v21 }
 0xa4c   :  { %v9949_v37 = vpop.permute.xlu1 %3917  ;;  %6511 = vrcp.f32 %v2670_v13  ;;  %v2582_v10 = vsel %vm2581_vm8, %v9797_v2, %v2580_v27  ;;  %v12308_v13 = vld [vmem:[#allocation71_spill] sm:$0xff]  ;;  %vm2632_vm8 = vcmp.eq.f32.partialorder %v9849_v62, 0.0 }
 0xa4d   :  { %4775 = vrot.lane.b32.xlu0 %v4695_v59, %s6581_s15  ;;  %12306 = vst [vmem:[#allocation32_spill] sm:$0xff] %v9977_v0  ;;  %6513 = vrsqrt.f32 %v9826_v42  ;;  %v4281_v63 = vmul.f32 %v12308_v13, %v9962_v3  ;;  %v3866_v33 = vmul.f32 0.1034, %v9977_v0  ;;  %v12309_v13 = vld [vmem:[#allocation81_spill] sm:$0xff] }
 0xa4e   :  { %4361 = vrot.lane.b32.xlu1 %v4280_v26, %s6589_s22  ;;  %v2587_v26 = vmul.f32 %v6506_v6, %v9809_v49  ;;  %v4697_v44 = vmul.f32 %v12309_v13, %v9962_v3  ;;  %v12312_v13 = vld [vmem:[#allocation98_spill] sm:$0xff] }
 0xa4f   :  { %v9957_v54 = vpop.permute.xlu0 %4747 }
 0xa50   :  { %v9959_v61 = vpop.permute.xlu1 %4333  ;;  %v2589_v6 = vsel %vm2588_vm9, %v9809_v49, %v2587_v26  ;;  %vm2639_vm9 = vcmp.eq.f32.partialorder %v9851_v16, 0.0 }
 0xa51   :  { %5485 = vrot.lane.b32.xlu0 %v9962_v3, %s6580_s6  ;;  %v4698_v3 = vmul.f32 %v12312_v13, %v9977_v0 }
 0xa52   :  { %4777 = vrot.lane.b32.xlu1 %v4696_v22, %s6581_s15  ;;  %v2584_v22 = vand.u32 2147483648, %v9797_v2  ;;  %v2591_v2 = vand.u32 2147483648, %v9809_v49 }
 0xa53   :  { %v9971_v59 = vpop.permute.xlu0 %5457 }
 0xa54   :  { %12305 = vst [vmem:[#allocation31_spill] sm:$0xff] %v9971_v59  ;;  %v9973_v25 = vpop.permute.xlu1 %4749  ;;  %v2585_v27 = vsel %vm2583_vm6, %v2584_v22, %v2582_v10  ;;  %v12310_v10 = vld [vmem:[#allocation97_spill] sm:$0xff]  ;;  %v6508_v26 = vpop.eup %6507  ;;  %v2592_v36 = vsel %vm2590_vm10, %v2591_v2, %v2589_v6  ;;  %vm2637_vm6 = vcmp.eq.f32.partialorder %v9851_v16, inf  ;;  %vm2644_vm10 = vcmp.eq.f32.partialorder %v9863_v34, inf }
 0xa55   :  { %3947 = vrot.lane.b32.xlu0 %v3865_v28, %s6588_s21  ;;  %v2671_v28 = vmax.f32 %v2585_v27, 1e-12  ;;  %v4282_v22 = vmul.f32 %v12310_v10, %v9977_v0  ;;  %v10016_v30 = vmul.f32 %v6508_v26, %v9402_v19 }
 0xa56   :  { %5487 = vrot.lane.b32.xlu1 %v9977_v0, %s6580_s6 }
 0xa57   :  { %v9988_v40 = vpop.permute.xlu0 %3919  ;;  %6515 = vrcp.f32 %v2671_v28  ;;  %12311 = vst [vmem:[#allocation82_spill] sm:$0xff] %v10016_v30  ;;  %v3867_v19 = vmul.f32 0.1034, %v10016_v30 }
 0xa58   :  { %v9990_v21 = vpop.permute.xlu1 %5459  ;;  %6517 = vrsqrt.f32 %v9828_v50 }
 0xa59   :  { %12307 = vst [vmem:[#allocation77_spill] sm:$0xff] %v9990_v21  ;;  %4363 = vrot.lane.b32.xlu0 %v4281_v63, %s6589_s22  ;;  %v6510_v63 = vpop.eup %6509 }
 0xa5a   :  { %3949 = vrot.lane.b32.xlu1 %v3866_v33, %s6588_s21  ;;  %v2672_v33 = vmax.f32 %v2592_v36, 1e-12  ;;  %v6512_v10 = vpop.eup %6511  ;;  %v2594_v6 = vmul.f32 %v6510_v63, %v9811_v29 }
 0xa5b   :  { %v10001_v21 = vpop.permute.xlu0 %4335  ;;  %v6514_v36 = vpop.eup %6513  ;;  %v10031_v28 = vmul.f32 %v6512_v10, %v9399_v20 }
 0xa5c   :  { %v10003_v59 = vpop.permute.xlu1 %3921  ;;  %6519 = vrcp.f32 %v2672_v33  ;;  %v2596_v26 = vsel %vm2595_vm11, %v9811_v29, %v2594_v6  ;;  %v12317_v33 = vld [vmem:[#allocation167_spill] sm:$0xff]  ;;  %vm2646_vm11 = vcmp.eq.f32.partialorder %v9863_v34, 0.0 }
 0xa5d   :  { %4779 = vrot.lane.b32.xlu0 %v4697_v44, %s6581_s15  ;;  %12314 = vst [vmem:[#allocation138_spill] sm:$0xff] %v10031_v28  ;;  %6521 = vrsqrt.f32 %v9839_v23  ;;  %v4283_v13 = vmul.f32 %v12317_v33, %v10016_v30  ;;  %v3868_v10 = vmul.f32 0.1034, %v10031_v28  ;;  %v12319_v33 = vld [vmem:[#allocation174_spill] sm:$0xff] }
 0xa5e   :  { %4365 = vrot.lane.b32.xlu1 %v4282_v22, %s6589_s22  ;;  %v2601_v22 = vmul.f32 %v6514_v36, %v9826_v42  ;;  %v4699_v0 = vmul.f32 %v12319_v33, %v10016_v30  ;;  %v12322_v33 = vld [vmem:[#allocation39_spill] sm:$0xff] }
 0xa5f   :  { %v10011_v49 = vpop.permute.xlu0 %4751 }
 0xa60   :  { %v10013_v27 = vpop.permute.xlu1 %4337  ;;  %v2603_v36 = vsel %vm2602_vm3, %v9826_v42, %v2601_v22  ;;  %vm5256_vm3 = vcmask 15360  }
 0xa61   :  { %5489 = vrot.lane.b32.xlu0 %v10016_v30, %s6580_s6  ;;  %v4700_v30 = vmul.f32 %v12322_v33, %v10031_v28 }
 0xa62   :  { %4781 = vrot.lane.b32.xlu1 %v4698_v3, %s6581_s15  ;;  %v2598_v3 = vand.u32 2147483648, %v9811_v29  ;;  %v2605_v29 = vand.u32 2147483648, %v9826_v42 }
 0xa63   :  { %v10025_v44 = vpop.permute.xlu0 %5461 }
 0xa64   :  { %12313 = vst [vmem:[#allocation134_spill] sm:$0xff] %v10025_v44  ;;  %v10027_v2 = vpop.permute.xlu1 %4753  ;;  %v2599_v6 = vsel %vm2597_vm12, %v2598_v3, %v2596_v26  ;;  %v12320_v26 = vld [vmem:[#allocation35_spill] sm:$0xff]  ;;  %v6516_v22 = vpop.eup %6515  ;;  %vm5223_vm12 = vcmask 7168  }
 0xa65   :  { %3951 = vrot.lane.b32.xlu0 %v3867_v19, %s6588_s21  ;;  %v2673_v19 = vmax.f32 %v2599_v6, 1e-12  ;;  %v4284_v3 = vmul.f32 %v12320_v26, %v10031_v28 }
 0xa66   :  { %5491 = vrot.lane.b32.xlu1 %v10031_v28, %s6580_s6 }
 0xa67   :  { %v10042_v63 = vpop.permute.xlu0 %3923  ;;  %6523 = vrcp.f32 %v2673_v19 }
 0xa68   :  { %12315 = vst [vmem:[#allocation86_spill] sm:$0xff] %v10042_v63  ;;  %v10044_v20 = vpop.permute.xlu1 %5463  ;;  %v2606_v63 = vsel %vm2604_vm13, %v2605_v29, %v2603_v36  ;;  %6525 = vrsqrt.f32 %v9841_v35  ;;  %vm5705_vm13 = vcmask 48128  }
 0xa69   :  { %12316 = vst [vmem:[#allocation90_spill] sm:$0xff] %v10044_v20  ;;  %4367 = vrot.lane.b32.xlu0 %v4283_v13, %s6589_s22  ;;  %v6518_v13 = vpop.eup %6517 }
 0xa6a   :  { %3953 = vrot.lane.b32.xlu1 %v3868_v10, %s6588_s21  ;;  %v2674_v10 = vmax.f32 %v2606_v63, 1e-12  ;;  %v6520_v26 = vpop.eup %6519  ;;  %v2608_v36 = vmul.f32 %v6518_v13, %v9828_v50 }
 0xa6b   :  { %v10055_v20 = vpop.permute.xlu0 %4339  ;;  %v10085_v19 = vmul.f32 %v6520_v26, %v9415_v7 }
 0xa6c   :  { %v10057_v44 = vpop.permute.xlu1 %3925  ;;  %6527 = vrcp.f32 %v2674_v10  ;;  %v12327_v10 = vld [vmem:[#allocation184_spill] sm:$0xff] }
 0xa6d   :  { %12318 = vst [vmem:[#allocation144_spill] sm:$0xff] %v10057_v44  ;;  %4783 = vrot.lane.b32.xlu0 %v4699_v0, %s6581_s15  ;;  %v10070_v44 = vmul.f32 %v6516_v22, %v9418_v15  ;;  %v6522_v0 = vpop.eup %6521  ;;  %12324 = vst [vmem:[#allocation102_spill] sm:$0xff] %v10085_v19  ;;  %v2610_v22 = vsel %vm2609_vm14, %v9828_v50, %v2608_v36  ;;  %6529 = vrsqrt.f32 %v9849_v62  ;;  %v3870_v26 = vmul.f32 0.1034, %v10085_v19 }
 0xa6e   :  { %4369 = vrot.lane.b32.xlu1 %v4284_v3, %s6589_s22  ;;  %v2615_v3 = vmul.f32 %v6522_v0, %v9839_v23  ;;  %vm5738_vm14 = vcmask 72704  }
 0xa6f   :  { %v10065_v42 = vpop.permute.xlu0 %4755  ;;  %12321 = vst [vmem:[#allocation147_spill] sm:$0xff] %v10070_v44  ;;  %v3869_v15 = vmul.f32 0.1034, %v10070_v44  ;;  %v4285_v33 = vmul.f32 %v12327_v10, %v10070_v44  ;;  %v12329_v10 = vld [vmem:[#allocation37_spill] sm:$0xff] }
 0xa70   :  { %v10067_v6 = vpop.permute.xlu1 %4341  ;;  %v2617_v0 = vsel %vm2616_vm0, %v9839_v23, %v2615_v3  ;;  %v4701_v28 = vmul.f32 %v12329_v10, %v10070_v44  ;;  %v12332_v10 = vld [vmem:[#allocation106_spill] sm:$0xff] }
 0xa71   :  { %5493 = vrot.lane.b32.xlu0 %v10070_v44, %s6580_s6  ;;  %v4702_v44 = vmul.f32 %v12332_v10, %v10085_v19 }
 0xa72   :  { %4785 = vrot.lane.b32.xlu1 %v4700_v30, %s6581_s15  ;;  %v2612_v30 = vand.u32 2147483648, %v9828_v50  ;;  %v2619_v50 = vand.u32 2147483648, %v9839_v23 }
 0xa73   :  { %v10079_v63 = vpop.permute.xlu0 %5465 }
 0xa74   :  { %12323 = vst [vmem:[#allocation96_spill] sm:$0xff] %v10079_v63  ;;  %v10081_v29 = vpop.permute.xlu1 %4757  ;;  %v2613_v36 = vsel %vm2611_vm15, %v2612_v30, %v2610_v22  ;;  %v12330_v22 = vld [vmem:[#allocation105_spill] sm:$0xff]  ;;  %v6524_v3 = vpop.eup %6523  ;;  %vm5771_vm15 = vcmask 97280  }
 0xa75   :  { %3955 = vrot.lane.b32.xlu0 %v3869_v15, %s6588_s21  ;;  %v2675_v15 = vmax.f32 %v2613_v36, 1e-12  ;;  %v4286_v30 = vmul.f32 %v12330_v22, %v10085_v19 }
 0xa76   :  { %5495 = vrot.lane.b32.xlu1 %v10085_v19, %s6580_s6 }
 0xa77   :  { %v10096_v13 = vpop.permute.xlu0 %3927  ;;  %6531 = vrcp.f32 %v2675_v15 }
 0xa78   :  { %12325 = vst [vmem:[#allocation53_spill] sm:$0xff] %v10096_v13  ;;  %v10098_v7 = vpop.permute.xlu1 %5467  ;;  %v2620_v13 = vsel %vm2618_vm1, %v2619_v50, %v2617_v0  ;;  %6533 = vrsqrt.f32 %v9851_v16 }
 0xa79   :  { %12326 = vst [vmem:[#allocation157_spill] sm:$0xff] %v10098_v7  ;;  %4371 = vrot.lane.b32.xlu0 %v4285_v33, %s6589_s22  ;;  %v6526_v33 = vpop.eup %6525 }
 0xa7a   :  { %3957 = vrot.lane.b32.xlu1 %v3870_v26, %s6588_s21  ;;  %v2676_v26 = vmax.f32 %v2620_v13, 1e-12  ;;  %v6528_v22 = vpop.eup %6527  ;;  %v2622_v0 = vmul.f32 %v6526_v33, %v9841_v35 }
 0xa7b   :  { %v10109_v7 = vpop.permute.xlu0 %4343  ;;  %v10139_v15 = vmul.f32 %v6528_v22, %v9431_v5 }
 0xa7c   :  { %v10111_v63 = vpop.permute.xlu1 %3929  ;;  %6535 = vrcp.f32 %v2676_v26  ;;  %v12337_v26 = vld [vmem:[#allocation101_spill] sm:$0xff] }
 0xa7d   :  { %12328 = vst [vmem:[#allocation109_spill] sm:$0xff] %v10111_v63  ;;  %4787 = vrot.lane.b32.xlu0 %v4701_v28, %s6581_s15  ;;  %v10124_v63 = vmul.f32 %v6524_v3, %v9434_v9  ;;  %v6530_v28 = vpop.eup %6529  ;;  %12334 = vst [vmem:[#allocation72_spill] sm:$0xff] %v10139_v15  ;;  %v2624_v3 = vsel %vm2623_vm2, %v9841_v35, %v2622_v0  ;;  %6537 = vrsqrt.f32 %v9863_v34  ;;  %v3872_v22 = vmul.f32 0.1034, %v10139_v15 }
 0xa7e   :  { %4373 = vrot.lane.b32.xlu1 %v4286_v30, %s6589_s22  ;;  %v2629_v30 = vmul.f32 %v6530_v28, %v9849_v62 }
 0xa7f   :  { %v10119_v23 = vpop.permute.xlu0 %4759  ;;  %12331 = vst [vmem:[#allocation115_spill] sm:$0xff] %v10124_v63  ;;  %v3871_v9 = vmul.f32 0.1034, %v10124_v63  ;;  %v4287_v10 = vmul.f32 %v12337_v26, %v10124_v63  ;;  %v12339_v26 = vld [vmem:[#allocation40_spill] sm:$0xff] }
 0xa80   :  { %v10121_v36 = vpop.permute.xlu1 %4345  ;;  %v2631_v28 = vsel %vm2630_vm7, %v9849_v62, %v2629_v30  ;;  %v4703_v19 = vmul.f32 %v12339_v26, %v10124_v63  ;;  %v12342_v26 = vld [vmem:[#allocation191_spill] sm:$0xff] }
 0xa81   :  { %5497 = vrot.lane.b32.xlu0 %v10124_v63, %s6580_s6  ;;  %v4704_v63 = vmul.f32 %v12342_v26, %v10139_v15 }
 0xa82   :  { %4789 = vrot.lane.b32.xlu1 %v4702_v44, %s6581_s15  ;;  %v2626_v44 = vand.u32 2147483648, %v9841_v35  ;;  %v2633_v35 = vand.u32 2147483648, %v9849_v62 }
 0xa83   :  { %v10133_v13 = vpop.permute.xlu0 %5469 }
 0xa84   :  { %12333 = vst [vmem:[#allocation64_spill] sm:$0xff] %v10133_v13  ;;  %v10135_v50 = vpop.permute.xlu1 %4761  ;;  %v2627_v0 = vsel %vm2625_vm5, %v2626_v44, %v2624_v3  ;;  %v12340_v3 = vld [vmem:[#allocation188_spill] sm:$0xff]  ;;  %v6532_v30 = vpop.eup %6531 }
 0xa85   :  { %3959 = vrot.lane.b32.xlu0 %v3871_v9, %s6588_s21  ;;  %v2677_v9 = vmax.f32 %v2627_v0, 1e-12  ;;  %v4288_v44 = vmul.f32 %v12340_v3, %v10139_v15 }
 0xa86   :  { %5499 = vrot.lane.b32.xlu1 %v10139_v15, %s6580_s6 }
 0xa87   :  { %v10150_v33 = vpop.permute.xlu0 %3931  ;;  %6539 = vrcp.f32 %v2677_v9 }
 0xa88   :  { %12335 = vst [vmem:[#allocation121_spill] sm:$0xff] %v10150_v33  ;;  %v10152_v5 = vpop.permute.xlu1 %5471  ;;  %v2634_v33 = vsel %vm2632_vm8, %v2633_v35, %v2631_v28 }
 0xa89   :  { %12336 = vst [vmem:[#allocation125_spill] sm:$0xff] %v10152_v5  ;;  %4375 = vrot.lane.b32.xlu0 %v4287_v10, %s6589_s22  ;;  %v6534_v10 = vpop.eup %6533 }
 0xa8a   :  { %3961 = vrot.lane.b32.xlu1 %v3872_v22, %s6588_s21  ;;  %v2678_v22 = vmax.f32 %v2634_v33, 1e-12  ;;  %v6536_v3 = vpop.eup %6535  ;;  %v2636_v28 = vmul.f32 %v6534_v10, %v9851_v16 }
 0xa8b   :  { %v10163_v5 = vpop.permute.xlu0 %4347  ;;  %v10192_v9 = vmul.f32 %v6536_v3, %v9447_v60  ;;  %v12347_v60 = vld [vmem:[#allocation44_spill] sm:$0xff] }
 0xa8c   :  { %v10165_v13 = vpop.permute.xlu1 %3933  ;;  %6541 = vrcp.f32 %v2678_v22 }
 0xa8d   :  { %12338 = vst [vmem:[#allocation67_spill] sm:$0xff] %v10165_v13  ;;  %4791 = vrot.lane.b32.xlu0 %v4703_v19, %s6581_s15  ;;  %v10178_v13 = vmul.f32 %v6532_v30, %v9450_v45  ;;  %v6538_v19 = vpop.eup %6537  ;;  %12344 = vst [vmem:[#allocation135_spill] sm:$0xff] %v10192_v9  ;;  %v2638_v30 = vsel %vm2637_vm6, %v9851_v16, %v2636_v28  ;;  %v3874_v3 = vmul.f32 0.1034, %v10192_v9 }
 0xa8e   :  { %4377 = vrot.lane.b32.xlu1 %v4288_v44, %s6589_s22  ;;  %v2643_v44 = vmul.f32 %v6538_v19, %v9863_v34 }
 0xa8f   :  { %v10173_v62 = vpop.permute.xlu0 %4763  ;;  %12341 = vst [vmem:[#allocation78_spill] sm:$0xff] %v10178_v13  ;;  %v3873_v45 = vmul.f32 0.1034, %v10178_v13  ;;  %v4289_v26 = vmul.f32 %v12347_v60, %v10178_v13  ;;  %v12349_v60 = vld [vmem:[#allocation187_spill] sm:$0xff] }
 0xa90   :  { %v10175_v0 = vpop.permute.xlu1 %4349  ;;  %v2645_v19 = vsel %vm2644_vm10, %v9863_v34, %v2643_v44  ;;  %v4705_v15 = vmul.f32 %v12349_v60, %v10178_v13  ;;  %v12352_v60 = vld [vmem:[#allocation196_spill] sm:$0xff] }
 0xa91   :  { %5501 = vrot.lane.b32.xlu0 %v10178_v13, %s6580_s6  ;;  %v4706_v13 = vmul.f32 %v12352_v60, %v10192_v9  ;;  %v12360_v60 = vld [vmem:[#allocation199_spill] sm:$0xff] }
 0xa92   :  { %4793 = vrot.lane.b32.xlu1 %v4704_v63, %s6581_s15  ;;  %v2640_v63 = vand.u32 2147483648, %v9851_v16  ;;  %v2647_v16 = vand.u32 2147483648, %v9863_v34 }
 0xa93   :  { %v10186_v33 = vpop.permute.xlu0 %5473 }
 0xa94   :  { %12343 = vst [vmem:[#allocation130_spill] sm:$0xff] %v10186_v33  ;;  %v10188_v35 = vpop.permute.xlu1 %4765  ;;  %v2641_v28 = vsel %vm2639_vm9, %v2640_v63, %v2638_v30  ;;  %v12350_v30 = vld [vmem:[#allocation46_spill] sm:$0xff]  ;;  %v6540_v44 = vpop.eup %6539 }
 0xa95   :  { %3963 = vrot.lane.b32.xlu0 %v3873_v45, %s6588_s21  ;;  %v2679_v45 = vmax.f32 %v2641_v28, 1e-12  ;;  %v4290_v63 = vmul.f32 %v12350_v30, %v10192_v9  ;;  %v10230_v28 = vmul.f32 %v6540_v44, %v9466_v39  ;;  %v12359_v44 = vld [vmem:[#allocation112_spill] sm:$0xff] }
 0xa96   :  { %5503 = vrot.lane.b32.xlu1 %v10192_v9, %s6580_s6 }
 0xa97   :  { %v10202_v10 = vpop.permute.xlu0 %3935  ;;  %6543 = vrcp.f32 %v2679_v45  ;;  %12351 = vst [vmem:[#allocation151_spill] sm:$0xff] %v10230_v28 }
 0xa98   :  { %12345 = vst [vmem:[#allocation165_spill] sm:$0xff] %v10202_v10  ;;  %v10204_v22 = vpop.permute.xlu1 %5475  ;;  %v2648_v10 = vsel %vm2646_vm11, %v2647_v16, %v2645_v19  ;;  %v3875_v19 = vmul.f32 0.1034, %v10230_v28 }
 0xa99   :  { %12346 = vst [vmem:[#allocation88_spill] sm:$0xff] %v10204_v22  ;;  %4379 = vrot.lane.b32.xlu0 %v4289_v26, %s6589_s22  ;;  %v2680_v26 = vmax.f32 %v2648_v10, 1e-12 }
 0xa9a   :  { %3965 = vrot.lane.b32.xlu1 %v3874_v3, %s6588_s21 }
 0xa9b   :  { %v10215_v22 = vpop.permute.xlu0 %4351  ;;  %6545 = vrcp.f32 %v2680_v26  ;;  %v4707_v26 = vmul.f32 %v12359_v44, %v10230_v28 }
 0xa9c   :  { %v10217_v33 = vpop.permute.xlu1 %3937 }
 0xa9d   :  { %12348 = vst [vmem:[#allocation145_spill] sm:$0xff] %v10217_v33  ;;  %4795 = vrot.lane.b32.xlu0 %v4705_v15, %s6581_s15  ;;  %v6542_v33 = vpop.eup %6541 }
 0xa9e   :  { %4381 = vrot.lane.b32.xlu1 %v4290_v63, %s6589_s22  ;;  %v10243_v16 = vmul.f32 %v6542_v33, %v9463_v48 }
 0xa9f   :  { %v10225_v34 = vpop.permute.xlu0 %4767 }
 0xaa0   :  { %v10227_v3 = vpop.permute.xlu1 %4353  ;;  %12354 = vst [vmem:[#allocation95_spill] sm:$0xff] %v10243_v16  ;;  %v3876_v63 = vmul.f32 0.1034, %v10243_v16 }
 0xaa1   :  { %5505 = vrot.lane.b32.xlu0 %v10230_v28, %s6580_s6 }
 0xaa2   :  { %4797 = vrot.lane.b32.xlu1 %v4706_v13, %s6581_s15  ;;  %v12357_v13 = vld [vmem:[#allocation192_spill] sm:$0xff] }
 0xaa3   :  { %v10237_v15 = vpop.permute.xlu0 %5477  ;;  %v4291_v30 = vmul.f32 %v12357_v13, %v10230_v28  ;;  %v12371_v28 = vld [vmem:[#allocation203_spill] sm:$0xff] }
 0xaa4   :  { %12353 = vst [vmem:[#allocation169_spill] sm:$0xff] %v10237_v15  ;;  %v10239_v10 = vpop.permute.xlu1 %4769  ;;  %v12362_v15 = vld [vmem:[#allocation201_spill] sm:$0xff] }
 0xaa5   :  { %3967 = vrot.lane.b32.xlu0 %v3875_v19, %s6588_s21  ;;  %v4292_v19 = vmul.f32 %v12360_v60, %v10243_v16  ;;  %v4708_v9 = vmul.f32 %v12362_v15, %v10243_v16 }
 0xaa6   :  { %5507 = vrot.lane.b32.xlu1 %v10243_v16, %s6580_s6 }
 0xaa7   :  { %v10248_v39 = vpop.permute.xlu0 %3939 }
 0xaa8   :  { %12355 = vst [vmem:[#allocation154_spill] sm:$0xff] %v10248_v39  ;;  %v10250_v45 = vpop.permute.xlu1 %5479 }
 0xaa9   :  { %12356 = vst [vmem:[#allocation48_spill] sm:$0xff] %v10250_v45  ;;  %4383 = vrot.lane.b32.xlu0 %v4291_v30, %s6589_s22  ;;  %v6544_v45 = vpop.eup %6543 }
 0xaaa   :  { %3969 = vrot.lane.b32.xlu1 %v3876_v63, %s6588_s21  ;;  %v10272_v63 = vmul.f32 %v6544_v45, %v9482_v8 }
 0xaab   :  { %v10257_v48 = vpop.permute.xlu0 %4355 }
 0xaac   :  { %v10259_v33 = vpop.permute.xlu1 %3941  ;;  %12361 = vst [vmem:[#allocation178_spill] sm:$0xff] %v10272_v63  ;;  %v3877_v60 = vmul.f32 0.1034, %v10272_v63 }
 0xaad   :  { %12358 = vst [vmem:[#allocation176_spill] sm:$0xff] %v10259_v33  ;;  %4799 = vrot.lane.b32.xlu0 %v4707_v26, %s6581_s15  ;;  %v6546_v33 = vpop.eup %6545 }
 0xaae   :  { %4385 = vrot.lane.b32.xlu1 %v4292_v19, %s6589_s22  ;;  %v10285_v19 = vmul.f32 %v6546_v33, %v9479_v38 }
 0xaaf   :  { %v10267_v13 = vpop.permute.xlu0 %4771 }
 0xab0   :  { %v10269_v30 = vpop.permute.xlu1 %4357 }
 0xab1   :  { %5509 = vrot.lane.b32.xlu0 %v10272_v63, %s6580_s6 }
 0xab2   :  { %4801 = vrot.lane.b32.xlu1 %v4708_v9, %s6581_s15  ;;  %v12367_v9 = vld [vmem:[#allocation7_spill] sm:$0xff] }
 0xab3   :  { %v10279_v44 = vpop.permute.xlu0 %5481  ;;  %v4293_v45 = vmul.f32 %v12367_v9, %v10272_v63 }
 0xab4   :  { %12363 = vst [vmem:[#allocation52_spill] sm:$0xff] %v10279_v44  ;;  %v10281_v26 = vpop.permute.xlu1 %4773  ;;  %v3878_v44 = vmul.f32 0.1034, %v10285_v19 }
 0xab5   :  { %12364 = vst [vmem:[#allocation51_spill] sm:$0xff] %v10281_v26  ;;  %3971 = vrot.lane.b32.xlu0 %v3877_v60, %s6588_s21  ;;  %v12370_v60 = vld [vmem:[#allocation198_spill] sm:$0xff] }
 0xab6   :  { %5511 = vrot.lane.b32.xlu1 %v10285_v19, %s6580_s6  ;;  %v4709_v16 = vmul.f32 %v12370_v60, %v10272_v63  ;;  %v12374_v60 = vld [vmem:[#allocation79_spill] sm:$0xff] }
 0xab7   :  { %v10290_v8 = vpop.permute.xlu0 %3943  ;;  %v4551_v63 = vmul.f32 %v12374_v60, %v9553_v41 }
 0xab8   :  { %12365 = vst [vmem:[#allocation182_spill] sm:$0xff] %v10290_v8  ;;  %v10292_v15 = vpop.permute.xlu1 %5483  ;;  %v4294_v8 = vmul.f32 %v12371_v28, %v10285_v19  ;;  %v12375_v28 = vld [vmem:[#allocation132_spill] sm:$0xff] }
 0xab9   :  { %12366 = vst [vmem:[#allocation185_spill] sm:$0xff] %v10292_v15  ;;  %4387 = vrot.lane.b32.xlu0 %v4293_v45, %s6589_s22  ;;  %v12372_v15 = vld [vmem:[#allocation76_spill] sm:$0xff]  ;;  %v4136_v26 = vmul.f32 %v12375_v28, %v9562_v4 }
 0xaba   :  { %3973 = vrot.lane.b32.xlu1 %v3878_v44, %s6588_s21  ;;  %v4135_v39 = vmul.f32 %v12372_v15, %v9553_v41  ;;  %v12377_v15 = vld [vmem:[#allocation137_spill] sm:$0xff] }
 0xabb   :  { %v10299_v38 = vpop.permute.xlu0 %4359 }
 0xabc   :  { %12368 = vst [vmem:[#allocation71_spill] sm:$0xff] %v10299_v38  ;;  %v10301_v33 = vpop.permute.xlu1 %3945  ;;  %v4423_v9 = vsub.f32 %v4135_v39, %v9893_v18  ;;  %v4839_v18 = vsub.f32 %v4551_v63, %v9903_v11  ;;  %v6547_v11 = vld [vmem:[%s11547_s0] sm:$0xff] }
 0xabd   :  { %12369 = vst [vmem:[#allocation81_spill] sm:$0xff] %v10301_v33  ;;  %4803 = vrot.lane.b32.xlu0 %v4709_v16, %s6581_s15  ;;  %v12373_v33 = vld [vmem:[#allocation205_spill] sm:$0xff]  ;;  %v4424_v16 = vsub.f32 %v4136_v26, %v9905_v47  ;;  %v3815_v47 = vadd.f32 %v6547_v11, %v9314_v57 }
 0xabe   :  { %4389 = vrot.lane.b32.xlu1 %v4294_v8, %s6589_s22  ;;  %v4710_v38 = vmul.f32 %v12373_v33, %v10285_v19  ;;  %v4552_v33 = vmul.f32 %v12377_v15, %v9562_v4 }
 0xabf   :  { %v10312_v44 = vpop.permute.xlu0 %4775  ;;  %v4007_v4 = vsub.f32 %v3815_v47, %v9880_v51 }
 0xac0   :  { %v10314_v45 = vpop.permute.xlu1 %4361  ;;  %v4840_v41 = vsub.f32 %v4552_v33, %v9919_v53  ;;  %v6548_v53 = vld [vmem:[%s11547_s0 + $0x8] sm:$0xff] }
 0xac1   :  { %4903 = vrot.lane.b32.xlu0 %v4423_v9, %s6590_s1  ;;  %v3816_v28 = vadd.f32 %v6548_v53, %v9318_v31  ;;  %v12381_v31 = vld [vmem:[#allocation143_spill] sm:$0xff]  ;;  %v12383_v53 = vld [vmem:[#allocation146_spill] sm:$0xff] }
 0xac2   :  { %4805 = vrot.lane.b32.xlu1 %v4710_v38, %s6581_s15  ;;  %v4138_v47 = vmul.f32 %v12381_v31, %v9595_v46  ;;  %v12385_v31 = vld [vmem:[#allocation94_spill] sm:$0xff] }
 0xac3   :  { %v10326_v39 = vpop.permute.xlu0 %5485  ;;  %v4008_v57 = vsub.f32 %v3816_v28, %v9895_v14  ;;  %v4554_v28 = vmul.f32 %v12383_v53, %v9595_v46  ;;  %v12386_v53 = vld [vmem:[#allocation99_spill] sm:$0xff] }
 0xac4   :  { %12376 = vst [vmem:[#allocation97_spill] sm:$0xff] %v10326_v39  ;;  %v10328_v8 = vpop.permute.xlu1 %4777  ;;  %v4426_v14 = vsub.f32 %v4138_v47, %v9959_v61  ;;  %v4139_v47 = vmul.f32 %v12385_v31, %v9624_v58  ;;  %v12453_v39 = vld [vmem:[#allocation49_spill] sm:$0xff] }
 0xac5   :  { %5031 = vrot.lane.b32.xlu0 %v4839_v18, %s6590_s1  ;;  %v12379_v18 = vld [vmem:[#allocation85_spill] sm:$0xff] }
 0xac6   :  { %4905 = vrot.lane.b32.xlu1 %v4424_v16, %s6590_s1  ;;  %v4137_v15 = vmul.f32 %v12379_v18, %v9582_v17 }
 0xac7   :  { %v10335_v60 = vpop.permute.xlu0 %3947 }
 0xac8   :  { %v10337_v38 = vpop.permute.xlu1 %5487  ;;  %v4425_v51 = vsub.f32 %v4137_v15, %v9947_v52 }
 0xac9   :  { %12378 = vst [vmem:[#allocation98_spill] sm:$0xff] %v10337_v38  ;;  %5127 = vrot.lane.b32.xlu0 %v4423_v9, %s6589_s22  ;;  %v12443_v38 = vld [vmem:[#allocation24_spill] sm:$0xff] }
 0xaca   :  { %5033 = vrot.lane.b32.xlu1 %v4840_v41, %s6590_s1  ;;  %v12380_v41 = vld [vmem:[#allocation89_spill] sm:$0xff] }
 0xacb   :  { %v10346_v63 = vpop.permute.xlu0 %4363  ;;  %v4553_v11 = vmul.f32 %v12380_v41, %v9582_v17  ;;  %v4842_v17 = vsub.f32 %v4554_v28, %v9973_v25  ;;  %v6550_v25 = vld [vmem:[%s11547_s0 + $0x18] sm:$0xff]  ;;  %v4555_v28 = vmul.f32 %v12386_v53, %v9624_v58  ;;  %v12391_v53 = vld [vmem:[#allocation107_spill] sm:$0xff] }
 0xacc   :  { %v10348_v26 = vpop.permute.xlu1 %3949 }
 0xacd   :  { %5577 = vrot.lane.b32.xlu0 %v4007_v4, %s6591_s27 }
 0xace   :  { %5129 = vrot.lane.b32.xlu1 %v4424_v16, %s6589_s22  ;;  %v4841_v16 = vsub.f32 %v4553_v11, %v9957_v54  ;;  %v6549_v54 = vld [vmem:[%s11547_s0 + $0x10] sm:$0xff]  ;;  %v3818_v11 = vadd.f32 %v6550_v25, %v9342_v1  ;;  %v12387_v1 = vld [vmem:[#allocation54_spill] sm:$0xff] }
 0xacf   :  { %v10360_v9 = vpop.permute.xlu0 %4779  ;;  %v3817_v61 = vadd.f32 %v6549_v54, %v9356_v43 }
 0xad0   :  { %v10362_v33 = vpop.permute.xlu1 %4365  ;;  %v4010_v43 = vsub.f32 %v3818_v11, %v9949_v37 }
 0xad1   :  { %4907 = vrot.lane.b32.xlu0 %v4425_v51, %s6590_s1  ;;  %v4009_v46 = vsub.f32 %v3817_v61, %v9934_v32  ;;  %v4427_v32 = vsub.f32 %v4139_v47, %v10001_v21  ;;  %v12389_v61 = vld [vmem:[#allocation156_spill] sm:$0xff] }
 0xad2   :  { %5579 = vrot.lane.b32.xlu1 %v4008_v57, %s6591_s27 }
 0xad3   :  { %v10372_v4 = vpop.permute.xlu0 %5489 }
 0xad4   :  { %12382 = vst [vmem:[#allocation167_spill] sm:$0xff] %v10372_v4  ;;  %v10374_v52 = vpop.permute.xlu1 %4781  ;;  %v12452_v4 = vld [vmem:[#allocation26_spill] sm:$0xff] }
 0xad5   :  { %5035 = vrot.lane.b32.xlu0 %v4841_v16, %s6590_s1 }
 0xad6   :  { %4909 = vrot.lane.b32.xlu1 %v4426_v14, %s6590_s1 }
 0xad7   :  { %v10381_v18 = vpop.permute.xlu0 %3951 }
 0xad8   :  { %v10383_v15 = vpop.permute.xlu1 %5491 }
 0xad9   :  { %12384 = vst [vmem:[#allocation174_spill] sm:$0xff] %v10383_v15  ;;  %5131 = vrot.lane.b32.xlu0 %v4425_v51, %s6589_s22 }
 0xada   :  { %5037 = vrot.lane.b32.xlu1 %v4842_v17, %s6590_s1  ;;  %v4140_v17 = vmul.f32 %v12387_v1, %v9637_v24 }
 0xadb   :  { %v10392_v57 = vpop.permute.xlu0 %4367 }
 0xadc   :  { %v10394_v41 = vpop.permute.xlu1 %3953  ;;  %v4428_v37 = vsub.f32 %v4140_v17, %v10013_v27  ;;  %v12392_v17 = vld [vmem:[#allocation113_spill] sm:$0xff] }
 0xadd   :  { %5581 = vrot.lane.b32.xlu0 %v4009_v46, %s6591_s27  ;;  %v4556_v46 = vmul.f32 %v12389_v61, %v9637_v24  ;;  %v12393_v61 = vld [vmem:[#allocation15_spill] sm:$0xff] }
 0xade   :  { %5133 = vrot.lane.b32.xlu1 %v4426_v14, %s6589_s22  ;;  %v4843_v14 = vsub.f32 %v4555_v28, %v10011_v49  ;;  %v6551_v49 = vld [vmem:[%s11547_s0 + $0x20] sm:$0xff]  ;;  %v4141_v28 = vmul.f32 %v12391_v53, %v9666_v56 }
 0xadf   :  { %v10406_v51 = vpop.permute.xlu0 %4783  ;;  %v4844_v58 = vsub.f32 %v4556_v46, %v10027_v2  ;;  %v3819_v27 = vadd.f32 %v6551_v49, %v9378_v55  ;;  %v6552_v2 = vld [vmem:[%s11547_s0 + $0x28] sm:$0xff]  ;;  %v12396_v49 = vld [vmem:[#allocation70_spill] sm:$0xff] }
 0xae0   :  { %v10408_v16 = vpop.permute.xlu1 %4369  ;;  %v12399_v53 = vld [vmem:[#allocation86_spill] sm:$0xff] }
 0xae1   :  { %4911 = vrot.lane.b32.xlu0 %v4427_v32, %s6590_s1  ;;  %v4011_v24 = vsub.f32 %v3819_v27, %v9988_v40  ;;  %v4429_v40 = vsub.f32 %v4141_v28, %v10055_v20  ;;  %v4558_v27 = vmul.f32 %v12396_v49, %v12393_v61 }
 0xae2   :  { %5583 = vrot.lane.b32.xlu1 %v4010_v43, %s6591_s27  ;;  %v3820_v43 = vadd.f32 %v6552_v2, %v9376_v12  ;;  %v12394_v12 = vld [vmem:[#allocation58_spill] sm:$0xff] }
 0xae3   :  { %v10418_v54 = vpop.permute.xlu0 %5493  ;;  %v4142_v46 = vmul.f32 %v12394_v12, %v12393_v61  ;;  %v12401_v12 = vld [vmem:[#allocation16_spill] sm:$0xff] }
 0xae4   :  { %12388 = vst [vmem:[#allocation35_spill] sm:$0xff] %v10418_v54  ;;  %v10420_v21 = vpop.permute.xlu1 %4785  ;;  %v4012_v55 = vsub.f32 %v3820_v43, %v10003_v59  ;;  %v12429_v54 = vld [vmem:[#allocation21_spill] sm:$0xff] }
 0xae5   :  { %5039 = vrot.lane.b32.xlu0 %v4843_v14, %s6590_s1  ;;  %v4557_v14 = vmul.f32 %v12392_v17, %v9666_v56  ;;  %v4430_v59 = vsub.f32 %v4142_v46, %v10067_v6  ;;  %v4846_v56 = vsub.f32 %v4558_v27, %v10081_v29  ;;  %v12398_v6 = vld [vmem:[#allocation160_spill] sm:$0xff]  ;;  %v6554_v29 = vld [vmem:[%s11547_s0 + $0x38] sm:$0xff]  ;;  %v12402_v46 = vld [vmem:[#allocation119_spill] sm:$0xff] }
 0xae6   :  { %4913 = vrot.lane.b32.xlu1 %v4428_v37, %s6590_s1 }
 0xae7   :  { %v10427_v25 = vpop.permute.xlu0 %3955 }
 0xae8   :  { %v10429_v11 = vpop.permute.xlu1 %5495 }
 0xae9   :  { %12390 = vst [vmem:[#allocation39_spill] sm:$0xff] %v10429_v11  ;;  %5135 = vrot.lane.b32.xlu0 %v4427_v32, %s6589_s22 }
 0xaea   :  { %5041 = vrot.lane.b32.xlu1 %v4844_v58, %s6590_s1 }
 0xaeb   :  { %v10438_v31 = vpop.permute.xlu0 %4371 }
 0xaec   :  { %v10440_v47 = vpop.permute.xlu1 %3957 }
 0xaed   :  { %5585 = vrot.lane.b32.xlu0 %v4011_v24, %s6591_s27 }
 0xaee   :  { %5137 = vrot.lane.b32.xlu1 %v4428_v37, %s6589_s22  ;;  %v4845_v37 = vsub.f32 %v4557_v14, %v10065_v42  ;;  %v6553_v42 = vld [vmem:[%s11547_s0 + $0x30] sm:$0xff] }
 0xaef   :  { %v10452_v32 = vpop.permute.xlu0 %4787  ;;  %v3821_v43 = vadd.f32 %v6553_v42, %v12398_v6  ;;  %v12400_v14 = vld [vmem:[#allocation92_spill] sm:$0xff]  ;;  %v12404_v6 = vld [vmem:[#allocation123_spill] sm:$0xff] }
 0xaf0   :  { %v10454_v1 = vpop.permute.xlu1 %4373  ;;  %v3822_v61 = vadd.f32 %v6554_v29, %v12400_v14  ;;  %v12406_v29 = vld [vmem:[#allocation161_spill] sm:$0xff] }
 0xaf1   :  { %4915 = vrot.lane.b32.xlu0 %v4429_v40, %s6590_s1  ;;  %v4013_v28 = vsub.f32 %v3821_v43, %v12399_v53  ;;  %v4559_v43 = vmul.f32 %v12404_v6, %v12401_v12  ;;  %v12405_v53 = vld [vmem:[#allocation17_spill] sm:$0xff] }
 0xaf2   :  { %5587 = vrot.lane.b32.xlu1 %v4012_v55, %s6591_s27  ;;  %v4144_v14 = vmul.f32 %v12406_v29, %v12405_v53 }
 0xaf3   :  { %v10464_v58 = vpop.permute.xlu0 %5497 }
 0xaf4   :  { %12395 = vst [vmem:[#allocation184_spill] sm:$0xff] %v10464_v58  ;;  %v10466_v20 = vpop.permute.xlu1 %4789  ;;  %v12417_v58 = vld [vmem:[#allocation19_spill] sm:$0xff] }
 0xaf5   :  { %5043 = vrot.lane.b32.xlu0 %v4845_v37, %s6590_s1  ;;  %v4143_v37 = vmul.f32 %v12402_v46, %v12401_v12  ;;  %v12408_v46 = vld [vmem:[#allocation84_spill] sm:$0xff] }
 0xaf6   :  { %4917 = vrot.lane.b32.xlu1 %v4430_v59, %s6590_s1 }
 0xaf7   :  { %v10473_v24 = vpop.permute.xlu0 %3959  ;;  %v4431_v27 = vsub.f32 %v4143_v37, %v10109_v7  ;;  %v4560_v37 = vmul.f32 %v12408_v46, %v12405_v53 }
 0xaf8   :  { %v10475_v2 = vpop.permute.xlu1 %5499 }
 0xaf9   :  { %12397 = vst [vmem:[#allocation37_spill] sm:$0xff] %v10475_v2  ;;  %5139 = vrot.lane.b32.xlu0 %v4429_v40, %s6589_s22  ;;  %v12403_v40 = vld [vmem:[#allocation144_spill] sm:$0xff]  ;;  %v4848_v12 = vsub.f32 %v4560_v37, %v10135_v50  ;;  %v6556_v50 = vld [vmem:[%s11547_s0 + $0x48] sm:$0xff]  ;;  %v12413_v37 = vld [vmem:[#allocation18_spill] sm:$0xff] }
 0xafa   :  { %5045 = vrot.lane.b32.xlu1 %v4846_v56, %s6590_s1  ;;  %v4014_v49 = vsub.f32 %v3822_v61, %v12403_v40 }
 0xafb   :  { %v10484_v55 = vpop.permute.xlu0 %4375 }
 0xafc   :  { %v10486_v17 = vpop.permute.xlu1 %3961 }
 0xafd   :  { %5589 = vrot.lane.b32.xlu0 %v4013_v28, %s6591_s27  ;;  %v4432_v28 = vsub.f32 %v4144_v14, %v10121_v36  ;;  %v12410_v36 = vld [vmem:[#allocation116_spill] sm:$0xff] }
 0xafe   :  { %5141 = vrot.lane.b32.xlu1 %v4430_v59, %s6589_s22  ;;  %v4847_v59 = vsub.f32 %v4559_v43, %v10119_v23  ;;  %v6555_v23 = vld [vmem:[%s11547_s0 + $0x40] sm:$0xff]  ;;  %v12411_v43 = vld [vmem:[#allocation53_spill] sm:$0xff] }
 0xaff   :  { %v10498_v56 = vpop.permute.xlu0 %4791  ;;  %v3823_v6 = vadd.f32 %v6555_v23, %v12410_v36 }
 0xb00   :  { %v10500_v42 = vpop.permute.xlu1 %4377 }
 0xb01   :  { %4919 = vrot.lane.b32.xlu0 %v4431_v27, %s6590_s1  ;;  %v4015_v53 = vsub.f32 %v3823_v6, %v12411_v43  ;;  %v12416_v43 = vld [vmem:[#allocation133_spill] sm:$0xff] }
 0xb02   :  { %5591 = vrot.lane.b32.xlu1 %v4014_v49, %s6591_s27  ;;  %v4561_v2 = vmul.f32 %v12416_v43, %v12413_v37 }
 0xb03   :  { %v10510_v61 = vpop.permute.xlu0 %5501 }
 0xb04   :  { %12407 = vst [vmem:[#allocation105_spill] sm:$0xff] %v10510_v61  ;;  %v10512_v7 = vpop.permute.xlu1 %4793 }
 0xb05   :  { %5047 = vrot.lane.b32.xlu0 %v4847_v59, %s6590_s1  ;;  %v12412_v59 = vld [vmem:[#allocation2_spill] sm:$0xff] }
 0xb06   :  { %4921 = vrot.lane.b32.xlu1 %v4432_v28, %s6590_s1  ;;  %v3824_v46 = vadd.f32 %v6556_v50, %v12412_v59  ;;  %v12418_v50 = vld [vmem:[#allocation164_spill] sm:$0xff] }
 0xb07   :  { %v10519_v40 = vpop.permute.xlu0 %3963  ;;  %v4146_v59 = vmul.f32 %v12418_v50, %v12417_v58 }
 0xb08   :  { %v10521_v49 = vpop.permute.xlu1 %5503 }
 0xb09   :  { %12409 = vst [vmem:[#allocation106_spill] sm:$0xff] %v10521_v49  ;;  %5143 = vrot.lane.b32.xlu0 %v4431_v27, %s6589_s22  ;;  %v12414_v49 = vld [vmem:[#allocation129_spill] sm:$0xff] }
 0xb0a   :  { %5049 = vrot.lane.b32.xlu1 %v4848_v12, %s6590_s1  ;;  %v4145_v61 = vmul.f32 %v12414_v49, %v12413_v37  ;;  %v12415_v27 = vld [vmem:[#allocation109_spill] sm:$0xff]  ;;  %v4434_v49 = vsub.f32 %v4146_v59, %v10175_v0  ;;  %v12422_v0 = vld [vmem:[#allocation120_spill] sm:$0xff] }
 0xb0b   :  { %v10530_v29 = vpop.permute.xlu0 %4379  ;;  %v4016_v12 = vsub.f32 %v3824_v46, %v12415_v27 }
 0xb0c   :  { %v10532_v14 = vpop.permute.xlu1 %3965  ;;  %v4433_v23 = vsub.f32 %v4145_v61, %v10163_v5  ;;  %v12420_v61 = vld [vmem:[#allocation166_spill] sm:$0xff] }
 0xb0d   :  { %5593 = vrot.lane.b32.xlu0 %v4015_v53, %s6591_s27  ;;  %v4562_v46 = vmul.f32 %v12420_v61, %v12417_v58  ;;  %v12423_v58 = vld [vmem:[#allocation121_spill] sm:$0xff] }
 0xb0e   :  { %5145 = vrot.lane.b32.xlu1 %v4432_v28, %s6589_s22  ;;  %v4849_v28 = vsub.f32 %v4561_v2, %v10173_v62  ;;  %v6557_v62 = vld [vmem:[%s11547_s0 + $0x50] sm:$0xff] }
 0xb0f   :  { %v10544_v36 = vpop.permute.xlu0 %4795  ;;  %v4850_v37 = vsub.f32 %v4562_v46, %v10188_v35  ;;  %v3825_v2 = vadd.f32 %v6557_v62, %v12422_v0  ;;  %v6558_v35 = vld [vmem:[%s11547_s0 + $0x58] sm:$0xff]  ;;  %v12425_v46 = vld [vmem:[#allocation20_spill] sm:$0xff] }
 0xb10   :  { %v10546_v6 = vpop.permute.xlu1 %4381 }
 0xb11   :  { %4923 = vrot.lane.b32.xlu0 %v4433_v23, %s6590_s1  ;;  %v4017_v43 = vsub.f32 %v3825_v2, %v12423_v58  ;;  %v12428_v58 = vld [vmem:[#allocation149_spill] sm:$0xff] }
 0xb12   :  { %5595 = vrot.lane.b32.xlu1 %v4016_v12, %s6591_s27  ;;  %v4563_v11 = vmul.f32 %v12428_v58, %v12425_v46 }
 0xb13   :  { %v10556_v53 = vpop.permute.xlu0 %5505 }
 0xb14   :  { %12419 = vst [vmem:[#allocation101_spill] sm:$0xff] %v10556_v53  ;;  %v10558_v5 = vpop.permute.xlu1 %4797 }
 0xb15   :  { %5051 = vrot.lane.b32.xlu0 %v4849_v28, %s6590_s1  ;;  %v12424_v28 = vld [vmem:[#allocation108_spill] sm:$0xff] }
 0xb16   :  { %4925 = vrot.lane.b32.xlu1 %v4434_v49, %s6590_s1  ;;  %v3826_v61 = vadd.f32 %v6558_v35, %v12424_v28  ;;  %v12430_v35 = vld [vmem:[#allocation168_spill] sm:$0xff] }
 0xb17   :  { %v10565_v27 = vpop.permute.xlu0 %3967  ;;  %v4148_v28 = vmul.f32 %v12430_v35, %v12429_v54 }
 0xb18   :  { %v10567_v12 = vpop.permute.xlu1 %5507 }
 0xb19   :  { %12421 = vst [vmem:[#allocation40_spill] sm:$0xff] %v10567_v12  ;;  %5147 = vrot.lane.b32.xlu0 %v4433_v23, %s6589_s22  ;;  %v12426_v12 = vld [vmem:[#allocation139_spill] sm:$0xff] }
 0xb1a   :  { %5053 = vrot.lane.b32.xlu1 %v4850_v37, %s6590_s1  ;;  %v4147_v53 = vmul.f32 %v12426_v12, %v12425_v46  ;;  %v12427_v23 = vld [vmem:[#allocation67_spill] sm:$0xff]  ;;  %v4436_v12 = vsub.f32 %v4148_v28, %v10227_v3  ;;  %v12435_v3 = vld [vmem:[#allocation124_spill] sm:$0xff] }
 0xb1b   :  { %v10576_v50 = vpop.permute.xlu0 %4383  ;;  %v4018_v37 = vsub.f32 %v3826_v61, %v12427_v23 }
 0xb1c   :  { %v10578_v59 = vpop.permute.xlu1 %3969  ;;  %v4435_v62 = vsub.f32 %v4147_v53, %v10215_v22  ;;  %v12432_v53 = vld [vmem:[#allocation171_spill] sm:$0xff] }
 0xb1d   :  { %5597 = vrot.lane.b32.xlu0 %v4017_v43, %s6591_s27  ;;  %v4564_v61 = vmul.f32 %v12432_v53, %v12429_v54  ;;  %v12436_v54 = vld [vmem:[#allocation165_spill] sm:$0xff] }
 0xb1e   :  { %5149 = vrot.lane.b32.xlu1 %v4434_v49, %s6589_s22  ;;  %v4851_v49 = vsub.f32 %v4563_v11, %v10225_v34  ;;  %v6559_v34 = vld [vmem:[%s11547_s0 + $0x60] sm:$0xff] }
 0xb1f   :  { %v10590_v0 = vpop.permute.xlu0 %4799  ;;  %v4852_v46 = vsub.f32 %v4564_v61, %v10239_v10  ;;  %v3827_v11 = vadd.f32 %v6559_v34, %v12435_v3  ;;  %v6560_v10 = vld [vmem:[%s11547_s0 + $0x68] sm:$0xff]  ;;  %v12439_v61 = vld [vmem:[#allocation22_spill] sm:$0xff] }
 0xb20   :  { %v10592_v2 = vpop.permute.xlu1 %4385 }
 0xb21   :  { %4927 = vrot.lane.b32.xlu0 %v4435_v62, %s6590_s1  ;;  %v4019_v58 = vsub.f32 %v3827_v11, %v12436_v54  ;;  %v12442_v54 = vld [vmem:[#allocation155_spill] sm:$0xff] }
 0xb22   :  { %5599 = vrot.lane.b32.xlu1 %v4018_v37, %s6591_s27  ;;  %v4565_v15 = vmul.f32 %v12442_v54, %v12439_v61 }
 0xb23   :  { %v10602_v43 = vpop.permute.xlu0 %5509 }
 0xb24   :  { %12431 = vst [vmem:[#allocation188_spill] sm:$0xff] %v10602_v43  ;;  %v10604_v22 = vpop.permute.xlu1 %4801 }
 0xb25   :  { %5055 = vrot.lane.b32.xlu0 %v4851_v49, %s6590_s1  ;;  %v12438_v49 = vld [vmem:[#allocation114_spill] sm:$0xff] }
 0xb26   :  { %4929 = vrot.lane.b32.xlu1 %v4436_v12, %s6590_s1  ;;  %v3828_v53 = vadd.f32 %v6560_v10, %v12438_v49  ;;  %v12444_v10 = vld [vmem:[#allocation175_spill] sm:$0xff] }
 0xb27   :  { %v10611_v23 = vpop.permute.xlu0 %3971  ;;  %v4150_v49 = vmul.f32 %v12444_v10, %v12443_v38 }
 0xb28   :  { %12433 = vst [vmem:[#allocation191_spill] sm:$0xff] %v10611_v23  ;;  %v10613_v37 = vpop.permute.xlu1 %5511  ;;  %v12457_v23 = vld [vmem:[#allocation13_spill] sm:$0xff] }
 0xb29   :  { %12434 = vst [vmem:[#allocation44_spill] sm:$0xff] %v10613_v37  ;;  %5151 = vrot.lane.b32.xlu0 %v4435_v62, %s6589_s22  ;;  %v12440_v37 = vld [vmem:[#allocation152_spill] sm:$0xff]  ;;  %v12441_v62 = vld [vmem:[#allocation145_spill] sm:$0xff] }
 0xb2a   :  { %5057 = vrot.lane.b32.xlu1 %v4852_v46, %s6590_s1  ;;  %v4149_v43 = vmul.f32 %v12440_v37, %v12439_v61  ;;  %v4020_v46 = vsub.f32 %v3828_v53, %v12441_v62  ;;  %v4438_v37 = vsub.f32 %v4150_v49, %v10269_v30  ;;  %v12446_v61 = vld [vmem:[#allocation51_spill] sm:$0xff]  ;;  %v12448_v30 = vld [vmem:[#allocation128_spill] sm:$0xff] }
 0xb2b   :  { %v10622_v35 = vpop.permute.xlu0 %4387 }
 0xb2c   :  { %v10624_v28 = vpop.permute.xlu1 %3973  ;;  %v4437_v34 = vsub.f32 %v4149_v43, %v10257_v48  ;;  %v12445_v43 = vld [vmem:[#allocation177_spill] sm:$0xff] }
 0xb2d   :  { %12437 = vst [vmem:[#allocation187_spill] sm:$0xff] %v10624_v28  ;;  %5601 = vrot.lane.b32.xlu0 %v4019_v58, %s6591_s27  ;;  %v4566_v53 = vmul.f32 %v12445_v43, %v12443_v38  ;;  %v12449_v38 = vld [vmem:[#allocation154_spill] sm:$0xff]  ;;  %v6562_v43 = vld [vmem:[%s11547_s0 + $0x78] sm:$0xff]  ;;  %v4151_v28 = vmul.f32 %v12453_v39, %v12452_v4 }
 0xb2e   :  { %5153 = vrot.lane.b32.xlu1 %v4436_v12, %s6589_s22  ;;  %v4853_v12 = vsub.f32 %v4565_v15, %v10267_v13  ;;  %v6561_v13 = vld [vmem:[%s11547_s0 + $0x70] sm:$0xff] }
 0xb2f   :  { %v10636_v3 = vpop.permute.xlu0 %4803  ;;  %v4854_v62 = vsub.f32 %v4566_v53, %v12446_v61  ;;  %v3829_v15 = vadd.f32 %v6561_v13, %v12448_v30  ;;  %v12451_v53 = vld [vmem:[#allocation117_spill] sm:$0xff]  ;;  %v12455_v13 = vld [vmem:[#allocation71_spill] sm:$0xff] }
 0xb30   :  { %v10638_v11 = vpop.permute.xlu1 %4389  ;;  %v3830_v61 = vadd.f32 %v6562_v43, %v12451_v53  ;;  %v4439_v30 = vsub.f32 %v4151_v28, %v12455_v13  ;;  %v12459_v43 = vld [vmem:[#allocation181_spill] sm:$0xff] }
 0xb31   :  { %4931 = vrot.lane.b32.xlu0 %v4437_v34, %s6590_s1  ;;  %v4021_v10 = vsub.f32 %v3829_v15, %v12449_v38 }
 0xb32   :  { %5603 = vrot.lane.b32.xlu1 %v4020_v46, %s6591_s27 }
 0xb33   :  { %v10648_v58 = vpop.permute.xlu0 %4903 }
 0xb34   :  { %v10650_v48 = vpop.permute.xlu1 %4805 }
 0xb35   :  { %5059 = vrot.lane.b32.xlu0 %v4853_v12, %s6590_s1 }
 0xb36   :  { %4933 = vrot.lane.b32.xlu1 %v4438_v37, %s6590_s1 }
 0xb37   :  { %v10657_v54 = vpop.permute.xlu0 %5031 }
 0xb38   :  { %v10659_v46 = vpop.permute.xlu1 %4905 }
 0xb39   :  { %12447 = vst [vmem:[#allocation46_spill] sm:$0xff] %v10659_v46  ;;  %5155 = vrot.lane.b32.xlu0 %v4437_v34, %s6589_s22  ;;  %v12454_v34 = vld [vmem:[#allocation176_spill] sm:$0xff]  ;;  %v4567_v46 = vmul.f32 %v12457_v23, %v12452_v4 }
 0xb3a   :  { %5061 = vrot.lane.b32.xlu1 %v4854_v62, %s6590_s1  ;;  %v4022_v62 = vsub.f32 %v3830_v61, %v12454_v34  ;;  %v12461_v61 = vld [vmem:[#allocation183_spill] sm:$0xff] }
 0xb3b   :  { %v10668_v49 = vpop.permute.xlu0 %5127  ;;  %v4855_v39 = vsub.f32 %v4567_v46, %v10312_v44  ;;  %v6563_v44 = vld [vmem:[%s11547_s0 + $0x80] sm:$0xff] }
 0xb3c   :  { %v10670_v12 = vpop.permute.xlu1 %5033 }
 0xb3d   :  { %12450 = vst [vmem:[#allocation196_spill] sm:$0xff] %v10670_v12  ;;  %5605 = vrot.lane.b32.xlu0 %v4021_v10, %s6591_s27  ;;  %v12458_v12 = vld [vmem:[#allocation28_spill] sm:$0xff] }
 0xb3e   :  { %5157 = vrot.lane.b32.xlu1 %v4438_v37, %s6589_s22  ;;  %v4152_v53 = vmul.f32 %v12459_v43, %v12458_v12  ;;  %v4568_v34 = vmul.f32 %v12461_v61, %v12458_v12  ;;  %v12464_v12 = vld [vmem:[#allocation182_spill] sm:$0xff] }
 0xb3f   :  { %v10682_v15 = vpop.permute.xlu0 %5577 }
 0xb40   :  { %12456 = vst [vmem:[#allocation192_spill] sm:$0xff] %v10682_v15  ;;  %v10684_v38 = vpop.permute.xlu1 %5129  ;;  %v4440_v37 = vsub.f32 %v4152_v53, %v10314_v45  ;;  %v4856_v4 = vsub.f32 %v4568_v34, %v10328_v8  ;;  %v12463_v45 = vld [vmem:[#allocation141_spill] sm:$0xff]  ;;  %v6564_v8 = vld [vmem:[%s11547_s0 + $0x88] sm:$0xff]  ;;  %v12467_v34 = vld [vmem:[#allocation30_spill] sm:$0xff] }
 0xb41   :  { %4935 = vrot.lane.b32.xlu0 %v4439_v30, %s6590_s1  ;;  %v3831_v46 = vadd.f32 %v6563_v44, %v12463_v45 }
 0xb42   :  { %5607 = vrot.lane.b32.xlu1 %v4022_v62, %s6591_s27 }
 0xb43   :  { %v10694_v10 = vpop.permute.xlu0 %4907  ;;  %v4023_v13 = vsub.f32 %v3831_v46, %v12464_v12  ;;  %v12471_v12 = vld [vmem:[#allocation65_spill] sm:$0xff] }
 0xb44   :  { %v10696_v28 = vpop.permute.xlu1 %5579 }
 0xb45   :  { %12460 = vst [vmem:[#allocation112_spill] sm:$0xff] %v10696_v28  ;;  %5063 = vrot.lane.b32.xlu0 %v4855_v39, %s6590_s1  ;;  %v12466_v39 = vld [vmem:[#allocation122_spill] sm:$0xff]  ;;  %v12468_v28 = vld [vmem:[#allocation55_spill] sm:$0xff] }
 0xb46   :  { %4937 = vrot.lane.b32.xlu1 %v4440_v37, %s6590_s1  ;;  %v3832_v61 = vadd.f32 %v6564_v8, %v12466_v39  ;;  %v4153_v15 = vmul.f32 %v12468_v28, %v12467_v34  ;;  %v12473_v8 = vld [vmem:[#allocation33_spill] sm:$0xff] }
 0xb47   :  { %v10703_v23 = vpop.permute.xlu0 %5035 }
 0xb48   :  { %v10705_v62 = vpop.permute.xlu1 %4909  ;;  %v4441_v44 = vsub.f32 %v4153_v15, %v10346_v63  ;;  %v12475_v15 = vld [vmem:[#allocation34_spill] sm:$0xff] }
 0xb49   :  { %12462 = vst [vmem:[#allocation199_spill] sm:$0xff] %v10705_v62  ;;  %5159 = vrot.lane.b32.xlu0 %v4439_v30, %s6589_s22  ;;  %v12469_v30 = vld [vmem:[#allocation81_spill] sm:$0xff]  ;;  %v4569_v62 = vmul.f32 %v12471_v12, %v12467_v34 }
 0xb4a   :  { %5065 = vrot.lane.b32.xlu1 %v4856_v4, %s6590_s1  ;;  %v4024_v4 = vsub.f32 %v3832_v61, %v12469_v30 }
 0xb4b   :  { %v10714_v43 = vpop.permute.xlu0 %5131 }
 0xb4c   :  { %v10716_v53 = vpop.permute.xlu1 %5037 }
 0xb4d   :  { %12465 = vst [vmem:[#allocation201_spill] sm:$0xff] %v10716_v53  ;;  %5609 = vrot.lane.b32.xlu0 %v4023_v13, %s6591_s27  ;;  %v12472_v53 = vld [vmem:[#allocation32_spill] sm:$0xff] }
 0xb4e   :  { %5161 = vrot.lane.b32.xlu1 %v4440_v37, %s6589_s22  ;;  %v4154_v39 = vmul.f32 %v12473_v8, %v12472_v53  ;;  %v4857_v37 = vsub.f32 %v4569_v62, %v10360_v9  ;;  %v4570_v61 = vmul.f32 %v12475_v15, %v12472_v53  ;;  %v6565_v9 = vld [vmem:[%s11547_s0 + $0x90] sm:$0xff]  ;;  %v12478_v15 = vld [vmem:[#allocation82_spill] sm:$0xff] }
 0xb4f   :  { %v10728_v45 = vpop.permute.xlu0 %5581 }
 0xb50   :  { %12470 = vst [vmem:[#allocation7_spill] sm:$0xff] %v10728_v45  ;;  %v10730_v46 = vpop.permute.xlu1 %5133  ;;  %v4442_v28 = vsub.f32 %v4154_v39, %v10362_v33  ;;  %v4858_v34 = vsub.f32 %v4570_v61, %v10374_v52  ;;  %v12476_v33 = vld [vmem:[#allocation62_spill] sm:$0xff]  ;;  %v6566_v52 = vld [vmem:[%s11547_s0 + $0x98] sm:$0xff]  ;;  %v12477_v39 = vld [vmem:[#allocation127_spill] sm:$0xff] }
 0xb51   :  { %4939 = vrot.lane.b32.xlu0 %v4441_v44, %s6590_s1  ;;  %v3833_v62 = vadd.f32 %v6565_v9, %v12476_v33  ;;  %v12479_v61 = vld [vmem:[#allocation104_spill] sm:$0xff]  ;;  %v12481_v33 = vld [vmem:[#allocation170_spill] sm:$0xff] }
 0xb52   :  { %5611 = vrot.lane.b32.xlu1 %v4024_v4, %s6591_s27  ;;  %v12482_v45 = vld [vmem:[#allocation138_spill] sm:$0xff] }
 0xb53   :  { %v10740_v13 = vpop.permute.xlu0 %4911  ;;  %v4025_v53 = vsub.f32 %v3833_v62, %v10335_v60  ;;  %v4571_v62 = vmul.f32 %v12481_v33, %v12478_v15 }
 0xb54   :  { %v10742_v63 = vpop.permute.xlu1 %5583 }
 0xb55   :  { %12474 = vst [vmem:[#allocation198_spill] sm:$0xff] %v10742_v63  ;;  %5067 = vrot.lane.b32.xlu0 %v4857_v37, %s6590_s1  ;;  %v3834_v37 = vadd.f32 %v6566_v52, %v12477_v39  ;;  %v4155_v63 = vmul.f32 %v12479_v61, %v12478_v15  ;;  %v12483_v52 = vld [vmem:[#allocation38_spill] sm:$0xff] }
 0xb56   :  { %4941 = vrot.lane.b32.xlu1 %v4442_v28, %s6590_s1  ;;  %v4156_v39 = vmul.f32 %v12483_v52, %v12482_v45 }
 0xb57   :  { %v10749_v30 = vpop.permute.xlu0 %5039  ;;  %v4443_v60 = vsub.f32 %v4155_v63, %v10392_v57  ;;  %v12485_v63 = vld [vmem:[#allocation73_spill] sm:$0xff] }
 0xb58   :  { %v10751_v4 = vpop.permute.xlu1 %4913 }
 0xb59   :  { %5163 = vrot.lane.b32.xlu0 %v4441_v44, %s6589_s22  ;;  %v4026_v44 = vsub.f32 %v3834_v37, %v10348_v26  ;;  %v4444_v26 = vsub.f32 %v4156_v39, %v10408_v16  ;;  %v4572_v37 = vmul.f32 %v12485_v63, %v12482_v45  ;;  %v12486_v16 = vld [vmem:[#allocation148_spill] sm:$0xff]  ;;  %v12488_v63 = vld [vmem:[#allocation147_spill] sm:$0xff] }
 0xb5a   :  { %5069 = vrot.lane.b32.xlu1 %v4858_v34, %s6590_s1  ;;  %v12487_v39 = vld [vmem:[#allocation140_spill] sm:$0xff] }
 0xb5b   :  { %v10760_v12 = vpop.permute.xlu0 %5135  ;;  %v4860_v15 = vsub.f32 %v4572_v37, %v10420_v21  ;;  %v6568_v21 = vld [vmem:[%s11547_s0 + $0xa8] sm:$0xff]  ;;  %v12489_v37 = vld [vmem:[#allocation180_spill] sm:$0xff] }
 0xb5c   :  { %v10762_v8 = vpop.permute.xlu1 %5041 }
 0xb5d   :  { %5613 = vrot.lane.b32.xlu0 %v4025_v53, %s6591_s27 }
 0xb5e   :  { %5165 = vrot.lane.b32.xlu1 %v4442_v28, %s6589_s22  ;;  %v4859_v28 = vsub.f32 %v4571_v62, %v10406_v51  ;;  %v6567_v51 = vld [vmem:[%s11547_s0 + $0xa0] sm:$0xff] }
 0xb5f   :  { %v10774_v34 = vpop.permute.xlu0 %5585  ;;  %v3835_v33 = vadd.f32 %v6567_v51, %v12486_v16  ;;  %v12491_v16 = vld [vmem:[#allocation186_spill] sm:$0xff] }
 0xb60   :  { %12480 = vst [vmem:[#allocation203_spill] sm:$0xff] %v10774_v34  ;;  %v10776_v9 = vpop.permute.xlu1 %5137  ;;  %v12492_v34 = vld [vmem:[#allocation102_spill] sm:$0xff] }
 0xb61   :  { %4943 = vrot.lane.b32.xlu0 %v4443_v60, %s6590_s1  ;;  %v4027_v45 = vsub.f32 %v3835_v33, %v10381_v18  ;;  %v4573_v33 = vmul.f32 %v12491_v16, %v12488_v63 }
 0xb62   :  { %5615 = vrot.lane.b32.xlu1 %v4026_v44, %s6591_s27 }
 0xb63   :  { %v10786_v53 = vpop.permute.xlu0 %4915 }
 0xb64   :  { %v10788_v57 = vpop.permute.xlu1 %5587 }
 0xb65   :  { %12484 = vst [vmem:[#allocation76_spill] sm:$0xff] %v10788_v57  ;;  %5071 = vrot.lane.b32.xlu0 %v4859_v28, %s6590_s1  ;;  %v3836_v28 = vadd.f32 %v6568_v21, %v12487_v39  ;;  %v4157_v57 = vmul.f32 %v12489_v37, %v12488_v63  ;;  %v12493_v21 = vld [vmem:[#allocation3_spill] sm:$0xff] }
 0xb66   :  { %4945 = vrot.lane.b32.xlu1 %v4444_v26, %s6590_s1  ;;  %v4158_v39 = vmul.f32 %v12493_v21, %v12492_v34 }
 0xb67   :  { %v10795_v61 = vpop.permute.xlu0 %5043  ;;  %v4445_v18 = vsub.f32 %v4157_v57, %v10438_v31  ;;  %v12495_v57 = vld [vmem:[#allocation43_spill] sm:$0xff] }
 0xb68   :  { %v10797_v44 = vpop.permute.xlu1 %4917 }
 0xb69   :  { %5167 = vrot.lane.b32.xlu0 %v4443_v60, %s6589_s22  ;;  %v4028_v60 = vsub.f32 %v3836_v28, %v10394_v41  ;;  %v4446_v41 = vsub.f32 %v4158_v39, %v10454_v1  ;;  %v4574_v28 = vmul.f32 %v12495_v57, %v12492_v34  ;;  %v12496_v1 = vld [vmem:[#allocation159_spill] sm:$0xff]  ;;  %v12497_v39 = vld [vmem:[#allocation158_spill] sm:$0xff] }
 0xb6a   :  { %5073 = vrot.lane.b32.xlu1 %v4860_v15, %s6590_s1  ;;  %v12498_v57 = vld [vmem:[#allocation115_spill] sm:$0xff] }
 0xb6b   :  { %v10806_v62 = vpop.permute.xlu0 %5139  ;;  %v4862_v63 = vsub.f32 %v4574_v28, %v10466_v20  ;;  %v6570_v20 = vld [vmem:[%s11547_s0 + $0xb8] sm:$0xff]  ;;  %v12499_v28 = vld [vmem:[#allocation36_spill] sm:$0xff] }
 0xb6c   :  { %v10808_v52 = vpop.permute.xlu1 %5045 }
 0xb6d   :  { %5617 = vrot.lane.b32.xlu0 %v4027_v45, %s6591_s27 }
 0xb6e   :  { %5169 = vrot.lane.b32.xlu1 %v4444_v26, %s6589_s22  ;;  %v4861_v26 = vsub.f32 %v4573_v33, %v10452_v32  ;;  %v6569_v32 = vld [vmem:[%s11547_s0 + $0xb0] sm:$0xff] }
 0xb6f   :  { %v10820_v15 = vpop.permute.xlu0 %5589  ;;  %v3837_v16 = vadd.f32 %v6569_v32, %v12496_v1  ;;  %v12501_v1 = vld [vmem:[#allocation41_spill] sm:$0xff] }
 0xb70   :  { %12490 = vst [vmem:[#allocation205_spill] sm:$0xff] %v10820_v15  ;;  %v10822_v51 = vpop.permute.xlu1 %5141  ;;  %v12502_v15 = vld [vmem:[#allocation72_spill] sm:$0xff] }
 0xb71   :  { %4947 = vrot.lane.b32.xlu0 %v4445_v18, %s6590_s1  ;;  %v4029_v34 = vsub.f32 %v3837_v16, %v10427_v25  ;;  %v4575_v16 = vmul.f32 %v12501_v1, %v12498_v57 }
 0xb72   :  { %5619 = vrot.lane.b32.xlu1 %v4028_v60, %s6591_s27 }
 0xb73   :  { %v10832_v45 = vpop.permute.xlu0 %4919 }
 0xb74   :  { %v10834_v31 = vpop.permute.xlu1 %5591 }
 0xb75   :  { %12494 = vst [vmem:[#allocation79_spill] sm:$0xff] %v10834_v31  ;;  %5075 = vrot.lane.b32.xlu0 %v4861_v26, %s6590_s1  ;;  %v3838_v26 = vadd.f32 %v6570_v20, %v12497_v39  ;;  %v4159_v31 = vmul.f32 %v12499_v28, %v12498_v57  ;;  %v12503_v20 = vld [vmem:[#allocation142_spill] sm:$0xff] }
 0xb76   :  { %4949 = vrot.lane.b32.xlu1 %v4446_v41, %s6590_s1  ;;  %v4160_v39 = vmul.f32 %v12503_v20, %v12502_v15 }
 0xb77   :  { %v10841_v37 = vpop.permute.xlu0 %5047  ;;  %v4447_v25 = vsub.f32 %v4159_v31, %v10484_v55  ;;  %v12505_v31 = vld [vmem:[#allocation189_spill] sm:$0xff] }
 0xb78   :  { %v10843_v60 = vpop.permute.xlu1 %4921 }
 0xb79   :  { %5171 = vrot.lane.b32.xlu0 %v4445_v18, %s6589_s22  ;;  %v4030_v18 = vsub.f32 %v3838_v26, %v10440_v47  ;;  %v4448_v47 = vsub.f32 %v4160_v39, %v10500_v42  ;;  %v4576_v26 = vmul.f32 %v12505_v31, %v12502_v15  ;;  %v12506_v42 = vld [vmem:[#allocation4_spill] sm:$0xff]  ;;  %v12507_v39 = vld [vmem:[#allocation163_spill] sm:$0xff]  ;;  %v12508_v31 = vld [vmem:[#allocation78_spill] sm:$0xff] }
 0xb7a   :  { %5077 = vrot.lane.b32.xlu1 %v4862_v63, %s6590_s1 }
 0xb7b   :  { %v10852_v33 = vpop.permute.xlu0 %5143  ;;  %v4864_v57 = vsub.f32 %v4576_v26, %v10512_v7  ;;  %v6572_v7 = vld [vmem:[%s11547_s0 + $0xc8] sm:$0xff]  ;;  %v12509_v26 = vld [vmem:[#allocation42_spill] sm:$0xff] }
 0xb7c   :  { %v10854_v21 = vpop.permute.xlu1 %5049 }
 0xb7d   :  { %5621 = vrot.lane.b32.xlu0 %v4029_v34, %s6591_s27 }
 0xb7e   :  { %5173 = vrot.lane.b32.xlu1 %v4446_v41, %s6589_s22  ;;  %v4863_v41 = vsub.f32 %v4575_v16, %v10498_v56  ;;  %v6571_v56 = vld [vmem:[%s11547_s0 + $0xc0] sm:$0xff] }
 0xb7f   :  { %v10866_v63 = vpop.permute.xlu0 %5593  ;;  %v3839_v1 = vadd.f32 %v6571_v56, %v12506_v42  ;;  %v12511_v42 = vld [vmem:[#allocation5_spill] sm:$0xff] }
 0xb80   :  { %12500 = vst [vmem:[#allocation132_spill] sm:$0xff] %v10866_v63  ;;  %v10868_v32 = vpop.permute.xlu1 %5145  ;;  %v12512_v63 = vld [vmem:[#allocation135_spill] sm:$0xff] }
 0xb81   :  { %4951 = vrot.lane.b32.xlu0 %v4447_v25, %s6590_s1  ;;  %v4031_v15 = vsub.f32 %v3839_v1, %v10473_v24  ;;  %v4577_v1 = vmul.f32 %v12511_v42, %v12508_v31 }
 0xb82   :  { %5623 = vrot.lane.b32.xlu1 %v4030_v18, %s6591_s27 }
 0xb83   :  { %v10878_v34 = vpop.permute.xlu0 %4923 }
 0xb84   :  { %v10880_v55 = vpop.permute.xlu1 %5595 }
 0xb85   :  { %12504 = vst [vmem:[#allocation137_spill] sm:$0xff] %v10880_v55  ;;  %5079 = vrot.lane.b32.xlu0 %v4863_v41, %s6590_s1  ;;  %v3840_v41 = vadd.f32 %v6572_v7, %v12507_v39  ;;  %v4161_v55 = vmul.f32 %v12509_v26, %v12508_v31  ;;  %v12513_v7 = vld [vmem:[#allocation193_spill] sm:$0xff] }
 0xb86   :  { %4953 = vrot.lane.b32.xlu1 %v4448_v47, %s6590_s1  ;;  %v4162_v39 = vmul.f32 %v12513_v7, %v12512_v63 }
 0xb87   :  { %v10887_v28 = vpop.permute.xlu0 %5051  ;;  %v4449_v24 = vsub.f32 %v4161_v55, %v10530_v29  ;;  %v12515_v55 = vld [vmem:[#allocation194_spill] sm:$0xff] }
 0xb88   :  { %v10889_v18 = vpop.permute.xlu1 %4925 }
 0xb89   :  { %5175 = vrot.lane.b32.xlu0 %v4447_v25, %s6589_s22  ;;  %v4032_v25 = vsub.f32 %v3840_v41, %v10486_v17  ;;  %v4450_v17 = vsub.f32 %v4162_v39, %v10546_v6  ;;  %v4578_v41 = vmul.f32 %v12515_v55, %v12512_v63  ;;  %v12516_v6 = vld [vmem:[#allocation8_spill] sm:$0xff]  ;;  %v12517_v39 = vld [vmem:[#allocation6_spill] sm:$0xff]  ;;  %v12518_v55 = vld [vmem:[#allocation151_spill] sm:$0xff] }
 0xb8a   :  { %5081 = vrot.lane.b32.xlu1 %v4864_v57, %s6590_s1 }
 0xb8b   :  { %v10898_v16 = vpop.permute.xlu0 %5147  ;;  %v4866_v31 = vsub.f32 %v4578_v41, %v10558_v5  ;;  %v6574_v5 = vld [vmem:[%s11547_s0 + $0xd8] sm:$0xff]  ;;  %v12519_v41 = vld [vmem:[#allocation190_spill] sm:$0xff] }
 0xb8c   :  { %v10900_v20 = vpop.permute.xlu1 %5053 }
 0xb8d   :  { %5625 = vrot.lane.b32.xlu0 %v4031_v15, %s6591_s27 }
 0xb8e   :  { %5177 = vrot.lane.b32.xlu1 %v4448_v47, %s6589_s22  ;;  %v4865_v47 = vsub.f32 %v4577_v1, %v10544_v36  ;;  %v6573_v36 = vld [vmem:[%s11547_s0 + $0xd0] sm:$0xff] }
 0xb8f   :  { %v10912_v57 = vpop.permute.xlu0 %5597  ;;  %v3841_v42 = vadd.f32 %v6573_v36, %v12516_v6  ;;  %v12520_v6 = vld [vmem:[#allocation45_spill] sm:$0xff] }
 0xb90   :  { %12510 = vst [vmem:[#allocation85_spill] sm:$0xff] %v10912_v57  ;;  %v10914_v56 = vpop.permute.xlu1 %5149  ;;  %v12521_v57 = vld [vmem:[#allocation95_spill] sm:$0xff] }
 0xb91   :  { %4955 = vrot.lane.b32.xlu0 %v4449_v24, %s6590_s1  ;;  %v4033_v63 = vsub.f32 %v3841_v42, %v10519_v40  ;;  %v4579_v42 = vmul.f32 %v12520_v6, %v12518_v55 }
 0xb92   :  { %5627 = vrot.lane.b32.xlu1 %v4032_v25, %s6591_s27 }
 0xb93   :  { %v10924_v15 = vpop.permute.xlu0 %4927 }
 0xb94   :  { %v10926_v29 = vpop.permute.xlu1 %5599 }
 0xb95   :  { %12514 = vst [vmem:[#allocation89_spill] sm:$0xff] %v10926_v29  ;;  %5083 = vrot.lane.b32.xlu0 %v4865_v47, %s6590_s1  ;;  %v3842_v47 = vadd.f32 %v6574_v5, %v12517_v39  ;;  %v4163_v29 = vmul.f32 %v12519_v41, %v12518_v55  ;;  %v12522_v5 = vld [vmem:[#allocation197_spill] sm:$0xff] }
 0xb96   :  { %4957 = vrot.lane.b32.xlu1 %v4450_v17, %s6590_s1  ;;  %v4164_v39 = vmul.f32 %v12522_v5, %v12521_v57 }
 0xb97   :  { %v10933_v26 = vpop.permute.xlu0 %5055  ;;  %v4451_v40 = vsub.f32 %v4163_v29, %v10576_v50  ;;  %v12524_v29 = vld [vmem:[#allocation200_spill] sm:$0xff] }
 0xb98   :  { %v10935_v25 = vpop.permute.xlu1 %4929 }
 0xb99   :  { %5179 = vrot.lane.b32.xlu0 %v4449_v24, %s6589_s22  ;;  %v4034_v24 = vsub.f32 %v3842_v47, %v10532_v14  ;;  %v4452_v14 = vsub.f32 %v4164_v39, %v10592_v2  ;;  %v4580_v47 = vmul.f32 %v12524_v29, %v12521_v57  ;;  %v12525_v2 = vld [vmem:[#allocation11_spill] sm:$0xff]  ;;  %v12526_v39 = vld [vmem:[#allocation10_spill] sm:$0xff] }
 0xb9a   :  { %5085 = vrot.lane.b32.xlu1 %v4866_v31, %s6590_s1  ;;  %v12527_v29 = vld [vmem:[#allocation178_spill] sm:$0xff] }
 0xb9b   :  { %v10944_v1 = vpop.permute.xlu0 %5151  ;;  %v4868_v55 = vsub.f32 %v4580_v47, %v10604_v22  ;;  %v6576_v22 = vld [vmem:[%s11547_s0 + $0xe8] sm:$0xff] }
 0xb9c   :  { %v10946_v7 = vpop.permute.xlu1 %5057  ;;  %v12528_v47 = vld [vmem:[#allocation195_spill] sm:$0xff] }
 0xb9d   :  { %5629 = vrot.lane.b32.xlu0 %v4033_v63, %s6591_s27 }
 0xb9e   :  { %5181 = vrot.lane.b32.xlu1 %v4450_v17, %s6589_s22  ;;  %v4867_v17 = vsub.f32 %v4579_v42, %v10590_v0  ;;  %v6575_v0 = vld [vmem:[%s11547_s0 + $0xe0] sm:$0xff] }
 0xb9f   :  { %v10958_v31 = vpop.permute.xlu0 %5601  ;;  %v3843_v6 = vadd.f32 %v6575_v0, %v12525_v2  ;;  %v12529_v2 = vld [vmem:[#allocation9_spill] sm:$0xff] }
 0xba0   :  { %v10960_v36 = vpop.permute.xlu1 %5153 }
 0xba1   :  { %4959 = vrot.lane.b32.xlu0 %v4451_v40, %s6590_s1  ;;  %v4035_v57 = vsub.f32 %v3843_v6, %v10565_v27  ;;  %v4581_v6 = vmul.f32 %v12529_v2, %v12527_v29  ;;  %v12532_v2 = vld [vmem:[#allocation196_spill] sm:$0xff] }
 0xba2   :  { %5631 = vrot.lane.b32.xlu1 %v4034_v24, %s6591_s27 }
 0xba3   :  { %v10970_v63 = vpop.permute.xlu0 %4931 }
 0xba4   :  { %v10972_v50 = vpop.permute.xlu1 %5603 }
 0xba5   :  { %12523 = vst [vmem:[#allocation143_spill] sm:$0xff] %v10972_v50  ;;  %5087 = vrot.lane.b32.xlu0 %v4867_v17, %s6590_s1  ;;  %v3844_v17 = vadd.f32 %v6576_v22, %v12526_v39  ;;  %v4165_v50 = vmul.f32 %v12528_v47, %v12527_v29  ;;  %v12530_v22 = vld [vmem:[#allocation202_spill] sm:$0xff] }
 0xba6   :  { %4961 = vrot.lane.b32.xlu1 %v4452_v14, %s6590_s1  ;;  %v4166_v39 = vmul.f32 %v12530_v22, %v10285_v19  ;;  %v5226_v22 = vsel %vm5223_vm12, %v10694_v10, %v10703_v23  ;;  %v5228_v10 = vsel %vm5223_vm12, %v10740_v13, %v10749_v30  ;;  %v5230_v13 = vsel %vm5223_vm12, %v10786_v53, %v10795_v61 }
 0xba7   :  { %v10979_v41 = vpop.permute.xlu0 %5059  ;;  %v4453_v27 = vsub.f32 %v4165_v50, %v10622_v35  ;;  %v12531_v50 = vld [vmem:[#allocation204_spill] sm:$0xff] }
 0xba8   :  { %v10981_v24 = vpop.permute.xlu1 %4933 }
 0xba9   :  { %5183 = vrot.lane.b32.xlu0 %v4451_v40, %s6589_s22  ;;  %v4036_v40 = vsub.f32 %v3844_v17, %v10578_v59  ;;  %v4454_v59 = vsub.f32 %v4166_v39, %v10638_v11  ;;  %v4582_v17 = vmul.f32 %v12531_v50, %v10285_v19  ;;  %v5224_v19 = vsel %vm5223_vm12, %v10648_v58, %v10657_v54 }
 0xbaa   :  { %5089 = vrot.lane.b32.xlu1 %v4868_v55, %s6590_s1 }
 0xbab   :  { %v10990_v42 = vpop.permute.xlu0 %5155  ;;  %v4870_v29 = vsub.f32 %v4582_v17, %v10650_v48  ;;  %v5257_v48 = vsel %vm5256_vm3, %v5224_v19, %v10668_v49  ;;  %v5259_v49 = vsel %vm5256_vm3, %v5226_v22, %v10714_v43  ;;  %v5261_v43 = vsel %vm5256_vm3, %v5228_v10, %v10760_v12 }
 0xbac   :  { %v10992_v5 = vpop.permute.xlu1 %5061  ;;  %v5263_v12 = vsel %vm5256_vm3, %v5230_v13, %v10806_v62 }
 0xbad   :  { %5633 = vrot.lane.b32.xlu0 %v4035_v57, %s6591_s27 }
 0xbae   :  { %5185 = vrot.lane.b32.xlu1 %v4452_v14, %s6589_s22  ;;  %v4869_v14 = vsub.f32 %v4581_v6, %v10636_v3  ;;  %v12533_v6 = vld [vmem:[#allocation46_spill] sm:$0xff] }
 0xbaf   :  { %v11004_v55 = vpop.permute.xlu0 %5605 }
 0xbb0   :  { %v11006_v0 = vpop.permute.xlu1 %5157 }
 0xbb1   :  { %4963 = vrot.lane.b32.xlu0 %v4453_v27, %s6590_s1 }
 0xbb2   :  { %5635 = vrot.lane.b32.xlu1 %v4036_v40, %s6591_s27 }
 0xbb3   :  { %v11016_v57 = vpop.permute.xlu0 %4935 }
 0xbb4   :  { %v11018_v35 = vpop.permute.xlu1 %5607 }
 0xbb5   :  { %5091 = vrot.lane.b32.xlu0 %v4869_v14, %s6590_s1  ;;  %v12534_v14 = vld [vmem:[#allocation201_spill] sm:$0xff] }
 0xbb6   :  { %4965 = vrot.lane.b32.xlu1 %v4454_v59, %s6590_s1 }
 0xbb7   :  { %v11025_v47 = vpop.permute.xlu0 %5063 }
 0xbb8   :  { %v11027_v40 = vpop.permute.xlu1 %4937 }
 0xbb9   :  { %5187 = vrot.lane.b32.xlu0 %v4453_v27, %s6589_s22  ;;  %v5225_v27 = vsel %vm5223_vm12, %v12533_v6, %v12532_v2 }
 0xbba   :  { %5093 = vrot.lane.b32.xlu1 %v4870_v29, %s6590_s1  ;;  %v5258_v39 = vsel %vm5256_vm3, %v5225_v27, %v10684_v38  ;;  %v5229_v29 = vsel %vm5223_vm12, %v10751_v4, %v10762_v8  ;;  %v5231_v4 = vsel %vm5223_vm12, %v10797_v44, %v10808_v52  ;;  %v5232_v8 = vsel %vm5223_vm12, %v10832_v45, %v10841_v37 }
 0xbbb   :  { %v11034_v3 = vpop.permute.xlu0 %5159  ;;  %v5265_v62 = vsel %vm5256_vm3, %v5232_v8, %v10852_v33  ;;  %v5233_v44 = vsel %vm5223_vm12, %v10843_v60, %v10854_v21  ;;  %v5234_v52 = vsel %vm5223_vm12, %v10878_v34, %v10887_v28  ;;  %v5235_v60 = vsel %vm5223_vm12, %v10889_v18, %v10900_v20 }
 0xbbc   :  { %v11036_v11 = vpop.permute.xlu1 %5065  ;;  %v5267_v33 = vsel %vm5256_vm3, %v5234_v52, %v10898_v16  ;;  %v5236_v21 = vsel %vm5223_vm12, %v10924_v15, %v10933_v26  ;;  %v5237_v18 = vsel %vm5223_vm12, %v10935_v25, %v10946_v7  ;;  %v5238_v20 = vsel %vm5223_vm12, %v10970_v63, %v10979_v41 }
 0xbbd   :  { %5321 = vrot.lane.b32.xlu0 %v5257_v48, %s6580_s6  ;;  %v5269_v16 = vsel %vm5256_vm3, %v5236_v21, %v10944_v1  ;;  %v5271_v1 = vsel %vm5256_vm3, %v5238_v20, %v10990_v42  ;;  %v5239_v25 = vsel %vm5223_vm12, %v10981_v24, %v10992_v5  ;;  %v5240_v7 = vsel %vm5223_vm12, %v11016_v57, %v11025_v47 }
 0xbbe   :  { %5189 = vrot.lane.b32.xlu1 %v4454_v59, %s6589_s22  ;;  %v12535_v59 = vld [vmem:[#allocation199_spill] sm:$0xff]  ;;  %v5273_v42 = vsel %vm5256_vm3, %v5240_v7, %v11034_v3  ;;  %v5241_v24 = vsel %vm5223_vm12, %v11027_v40, %v11036_v11 }
 0xbbf   :  { %v11048_v58 = vpop.permute.xlu0 %5609  ;;  %v5227_v50 = vsel %vm5223_vm12, %v12535_v59, %v12534_v14 }
 0xbc0   :  { %v11050_v54 = vpop.permute.xlu1 %5161  ;;  %v5260_v38 = vsel %vm5256_vm3, %v5227_v50, %v10730_v46  ;;  %v5262_v46 = vsel %vm5256_vm3, %v5229_v29, %v10776_v9  ;;  %v5264_v9 = vsel %vm5256_vm3, %v5231_v4, %v10822_v51  ;;  %v5266_v51 = vsel %vm5256_vm3, %v5233_v44, %v10868_v32 }
 0xbc1   :  { %5325 = vrot.lane.b32.xlu0 %v5259_v49, %s6580_s6  ;;  %v5268_v32 = vsel %vm5256_vm3, %v5235_v60, %v10914_v56  ;;  %v5270_v56 = vsel %vm5256_vm3, %v5237_v18, %v10960_v36  ;;  %v5272_v36 = vsel %vm5256_vm3, %v5239_v25, %v11006_v0  ;;  %v5274_v47 = vsel %vm5256_vm3, %v5241_v24, %v11050_v54 }
 0xbc2   :  { %5323 = vrot.lane.b32.xlu1 %v5258_v39, %s6580_s6 }
 0xbc3   :  { %v4940_v23 = vpop.permute.xlu0 %4939 }
 0xbc4   :  { %v11064_v17 = vpop.permute.xlu1 %5611 }
 0xbc5   :  { %5329 = vrot.lane.b32.xlu0 %v5261_v43, %s6580_s6 }
 0xbc6   :  { %5327 = vrot.lane.b32.xlu1 %v5260_v38, %s6580_s6 }
 0xbc7   :  { %v5068_v30 = vpop.permute.xlu0 %5067 }
 0xbc8   :  { %v4942_v19 = vpop.permute.xlu1 %4941  ;;  %v5242_v5 = vsel %vm5223_vm12, %v4940_v23, %v5068_v30 }
 0xbc9   :  { %5333 = vrot.lane.b32.xlu0 %v5263_v12, %s6580_s6 }
 0xbca   :  { %5331 = vrot.lane.b32.xlu1 %v5262_v46, %s6580_s6 }
 0xbcb   :  { %v5164_v53 = vpop.permute.xlu0 %5163 }
 0xbcc   :  { %v5070_v61 = vpop.permute.xlu1 %5069  ;;  %v5275_v0 = vsel %vm5256_vm3, %v5242_v5, %v5164_v53 }
 0xbcd   :  { %5337 = vrot.lane.b32.xlu0 %v5265_v62, %s6580_s6  ;;  %v5243_v3 = vsel %vm5223_vm12, %v4942_v19, %v5070_v61 }
 0xbce   :  { %5335 = vrot.lane.b32.xlu1 %v5264_v9, %s6580_s6 }
 0xbcf   :  { %v11102_v45 = vpop.permute.xlu0 %5613 }
 0xbd0   :  { %v5166_v37 = vpop.permute.xlu1 %5165 }
 0xbd1   :  { %5341 = vrot.lane.b32.xlu0 %v5267_v33, %s6580_s6  ;;  %v5276_v11 = vsel %vm5256_vm3, %v5243_v3, %v5166_v37 }
 0xbd2   :  { %5339 = vrot.lane.b32.xlu1 %v5266_v51, %s6580_s6 }
 0xbd3   :  { %v4944_v34 = vpop.permute.xlu0 %4943 }
 0xbd4   :  { %v11116_v28 = vpop.permute.xlu1 %5615 }
 0xbd5   :  { %5345 = vrot.lane.b32.xlu0 %v5269_v16, %s6580_s6 }
 0xbd6   :  { %5343 = vrot.lane.b32.xlu1 %v5268_v32, %s6580_s6 }
 0xbd7   :  { %v5072_v15 = vpop.permute.xlu0 %5071 }
 0xbd8   :  { %v4946_v26 = vpop.permute.xlu1 %4945  ;;  %v5244_v2 = vsel %vm5223_vm12, %v4944_v34, %v5072_v15 }
 0xbd9   :  { %5349 = vrot.lane.b32.xlu0 %v5271_v1, %s6580_s6 }
 0xbda   :  { %5347 = vrot.lane.b32.xlu1 %v5270_v56, %s6580_s6 }
 0xbdb   :  { %v5168_v63 = vpop.permute.xlu0 %5167 }
 0xbdc   :  { %v5074_v41 = vpop.permute.xlu1 %5073  ;;  %v5277_v27 = vsel %vm5256_vm3, %v5244_v2, %v5168_v63 }
 0xbdd   :  { %5353 = vrot.lane.b32.xlu0 %v5273_v42, %s6580_s6  ;;  %v5245_v22 = vsel %vm5223_vm12, %v4946_v26, %v5074_v41 }
 0xbde   :  { %5351 = vrot.lane.b32.xlu1 %v5272_v36, %s6580_s6 }
 0xbdf   :  { %v11152_v48 = vpop.permute.xlu0 %5617 }
 0xbe0   :  { %v5170_v57 = vpop.permute.xlu1 %5169 }
 0xbe1   :  { %5357 = vrot.lane.b32.xlu0 %v5275_v0, %s6580_s6  ;;  %v5278_v49 = vsel %vm5256_vm3, %v5245_v22, %v5170_v57 }
 0xbe2   :  { %5355 = vrot.lane.b32.xlu1 %v5274_v47, %s6580_s6 }
 0xbe3   :  { %v4948_v6 = vpop.permute.xlu0 %4947 }
 0xbe4   :  { %v11161_v40 = vpop.permute.xlu1 %5619 }
 0xbe5   :  { %5361 = vrot.lane.b32.xlu0 %v5277_v27, %s6580_s6 }
 0xbe6   :  { %5359 = vrot.lane.b32.xlu1 %v5276_v11, %s6580_s6 }
 0xbe7   :  { %v5076_v54 = vpop.permute.xlu0 %5075 }
 0xbe8   :  { %v4950_v39 = vpop.permute.xlu1 %4949  ;;  %v5246_v14 = vsel %vm5223_vm12, %v4948_v6, %v5076_v54  ;;  %v6577_v54 = vld [vmem:[%s11547_s0 + $0xf0] sm:$0xff] }
 0xbea   :  { %5363 = vrot.lane.b32.xlu1 %v5278_v49, %s6580_s6 }
 0xbeb   :  { %v5172_v59 = vpop.permute.xlu0 %5171 }
 0xbec   :  { %v5078_v50 = vpop.permute.xlu1 %5077  ;;  %v5279_v10 = vsel %vm5256_vm3, %v5246_v14, %v5172_v59  ;;  %v12537_v14 = vld [vmem:[#allocation191_spill] sm:$0xff] }
 0xbed   :  { %5365 = vrot.lane.b32.xlu0 %v5279_v10, %s6580_s6  ;;  %v5247_v23 = vsel %vm5223_vm12, %v4950_v39, %v5078_v50  ;;  %v12536_v39 = vld [vmem:[#allocation14_spill] sm:$0xff] }
 0xbee   :  { %v3845_v49 = vadd.f32 %v6577_v54, %v12536_v39 }
 0xbef   :  { %v11174_v38 = vpop.permute.xlu0 %5621 }
 0xbf0   :  { %v5174_v43 = vpop.permute.xlu1 %5173  ;;  %v4037_v59 = vsub.f32 %v3845_v49, %v12537_v14  ;;  %v12555_v14 = vld [vmem:[#allocation61_spill] sm:$0xff] }
 0xbf1   :  { %v5280_v29 = vsel %vm5256_vm3, %v5247_v23, %v5174_v43  ;;  %v12538_v43 = vld [vmem:[#allocation47_spill] sm:$0xff] }
 0xbf2   :  { %5367 = vrot.lane.b32.xlu1 %v5280_v29, %s6580_s6 }
 0xbf3   :  { %v4952_v13 = vpop.permute.xlu0 %4951 }
 0xbf4   :  { %v11178_v30 = vpop.permute.xlu1 %5623 }
 0xbf7   :  { %v5080_v19 = vpop.permute.xlu0 %5079 }
 0xbf8   :  { %v4954_v46 = vpop.permute.xlu1 %4953  ;;  %v5248_v12 = vsel %vm5223_vm12, %v4952_v13, %v5080_v19  ;;  %v6578_v19 = vld [vmem:[%s11547_s0 + $0xf8] sm:$0xff] }
 0xbfb   :  { %v5176_v4 = vpop.permute.xlu0 %5175 }
 0xbfc   :  { %v5082_v8 = vpop.permute.xlu1 %5081  ;;  %v5281_v53 = vsel %vm5256_vm3, %v5248_v12, %v5176_v4  ;;  %v12540_v4 = vld [vmem:[#allocation23_spill] sm:$0xff] }
 0xbfd   :  { %5369 = vrot.lane.b32.xlu0 %v5281_v53, %s6580_s6  ;;  %v5249_v61 = vsel %vm5223_vm12, %v4954_v46, %v5082_v8  ;;  %v12539_v46 = vld [vmem:[#allocation12_spill] sm:$0xff] }
 0xbfe   :  { %v3846_v12 = vadd.f32 %v6578_v19, %v12539_v46  ;;  %v12541_v53 = vld [vmem:[#allocation192_spill] sm:$0xff]  ;;  %v12559_v19 = vld [vmem:[#allocation205_spill] sm:$0xff] }
 0xbff   :  { %v11184_v9 = vpop.permute.xlu0 %5625 }
 0xc00   :  { %v5178_v62 = vpop.permute.xlu1 %5177 }
 0xc01   :  { %v5282_v44 = vsel %vm5256_vm3, %v5249_v61, %v5178_v62  ;;  %v12542_v62 = vld [vmem:[#allocation187_spill] sm:$0xff] }
 0xc02   :  { %5371 = vrot.lane.b32.xlu1 %v5282_v44, %s6580_s6  ;;  %v4038_v44 = vsub.f32 %v3846_v12, %v12542_v62  ;;  %v12560_v12 = vld [vmem:[#allocation76_spill] sm:$0xff] }
 0xc03   :  { %v4956_v52 = vpop.permute.xlu0 %4955 }
 0xc04   :  { %v11188_v37 = vpop.permute.xlu1 %5627 }
 0xc07   :  { %v5084_v51 = vpop.permute.xlu0 %5083 }
 0xc08   :  { %v4958_v33 = vpop.permute.xlu1 %4957  ;;  %v5250_v60 = vsel %vm5223_vm12, %v4956_v52, %v5084_v51 }
 0xc0b   :  { %v5180_v21 = vpop.permute.xlu0 %5179 }
 0xc0c   :  { %v5086_v34 = vpop.permute.xlu1 %5085  ;;  %v5283_v32 = vsel %vm5256_vm3, %v5250_v60, %v5180_v21  ;;  %v12544_v21 = vld [vmem:[#allocation60_spill] sm:$0xff] }
 0xc0d   :  { %5373 = vrot.lane.b32.xlu0 %v5283_v32, %s6580_s6  ;;  %v5251_v16 = vsel %vm5223_vm12, %v4958_v33, %v5086_v34  ;;  %v12543_v33 = vld [vmem:[#allocation57_spill] sm:$0xff]  ;;  %v12545_v32 = vld [vmem:[#allocation27_spill] sm:$0xff] }
 0xc0f   :  { %v11194_v18 = vpop.permute.xlu0 %5629 }
 0xc10   :  { %v5182_v20 = vpop.permute.xlu1 %5181 }
 0xc11   :  { %v5284_v15 = vsel %vm5256_vm3, %v5251_v16, %v5182_v20  ;;  %v12546_v20 = vld [vmem:[#allocation25_spill] sm:$0xff] }
 0xc12   :  { %5375 = vrot.lane.b32.xlu1 %v5284_v15, %s6580_s6 }
 0xc13   :  { %v4960_v26 = vpop.permute.xlu0 %4959 }
 0xc14   :  { %v11198_v56 = vpop.permute.xlu1 %5631 }
 0xc17   :  { %v5088_v1 = vpop.permute.xlu0 %5087 }
 0xc18   :  { %v4962_v25 = vpop.permute.xlu1 %4961  ;;  %v5252_v7 = vsel %vm5223_vm12, %v4960_v26, %v5088_v1  ;;  %v12547_v26 = vld [vmem:[#allocation7_spill] sm:$0xff] }
 0xc1b   :  { %v5184_v63 = vpop.permute.xlu0 %5183 }
 0xc1c   :  { %v5090_v41 = vpop.permute.xlu1 %5089  ;;  %v5285_v36 = vsel %vm5256_vm3, %v5252_v7, %v5184_v63 }
 0xc1d   :  { %5377 = vrot.lane.b32.xlu0 %v5285_v36, %s6580_s6  ;;  %v5253_v42 = vsel %vm5223_vm12, %v4962_v25, %v5090_v41  ;;  %v12548_v25 = vld [vmem:[#allocation112_spill] sm:$0xff]  ;;  %v12549_v36 = vld [vmem:[#allocation59_spill] sm:$0xff] }
 0xc1f   :  { %v11204_v24 = vpop.permute.xlu0 %5633 }
 0xc20   :  { %v5186_v5 = vpop.permute.xlu1 %5185 }
 0xc21   :  { %v5286_v57 = vsel %vm5256_vm3, %v5253_v42, %v5186_v5  ;;  %v12550_v5 = vld [vmem:[#allocation68_spill] sm:$0xff] }
 0xc22   :  { %5379 = vrot.lane.b32.xlu1 %v5286_v57, %s6580_s6 }
 0xc23   :  { %v4964_v47 = vpop.permute.xlu0 %4963 }
 0xc24   :  { %v11208_v0 = vpop.permute.xlu1 %5635 }
 0xc27   :  { %v5092_v3 = vpop.permute.xlu0 %5091 }
 0xc28   :  { %v4966_v2 = vpop.permute.xlu1 %4965  ;;  %v5254_v6 = vsel %vm5223_vm12, %v4964_v47, %v5092_v3  ;;  %v12551_v47 = vld [vmem:[#allocation31_spill] sm:$0xff] }
 0xc2b   :  { %v5188_v11 = vpop.permute.xlu0 %5187 }
 0xc2c   :  { %v5094_v27 = vpop.permute.xlu1 %5093  ;;  %v5287_v22 = vsel %vm5256_vm3, %v5254_v6, %v5188_v11  ;;  %v12553_v11 = vld [vmem:[#allocation203_spill] sm:$0xff] }
 0xc2d   :  { %5381 = vrot.lane.b32.xlu0 %v5287_v22, %s6580_s6  ;;  %v5255_v50 = vsel %vm5223_vm12, %v4966_v2, %v5094_v27  ;;  %v12552_v2 = vld [vmem:[#allocation29_spill] sm:$0xff]  ;;  %v12554_v22 = vld [vmem:[#allocation198_spill] sm:$0xff] }
 0xc2f   :  { %v5322_v10 = vpop.permute.xlu0 %5321 }
 0xc30   :  { %v5190_v23 = vpop.permute.xlu1 %5189  ;;  %v5673_v29 = vsel %vm1176_vm4, %v12538_v43, %v5322_v10 }
 0xc31   :  { %v5288_v13 = vsel %vm5256_vm3, %v5255_v50, %v5190_v23  ;;  %v5706_v8 = vsel %vm5705_vm13, %v5673_v29, %v12540_v4  ;;  %5637 = vrot.lane.b32.xlu0 %v4037_v59, %s6591_s27  ;;  %v12556_v50 = vld [vmem:[#allocation110_spill] sm:$0xff]  ;;  %v12558_v29 = vld [vmem:[#allocation77_spill] sm:$0xff] }
 0xc32   :  { %5383 = vrot.lane.b32.xlu1 %v5288_v13, %s6580_s6  ;;  %v5739_v61 = vsel %vm5738_vm14, %v5706_v8, %v12541_v53  ;;  %v12557_v23 = vld [vmem:[#allocation134_spill] sm:$0xff] }
 0xc33   :  { %5772 = vst.msk [vmem:[%s11554_s8] sm:$0xff] %vm5771_vm15, %v5739_v61  ;;  %v5326_v52 = vpop.permute.xlu0 %5325  ;;  %v12561_v61 = vld [vmem:[#allocation63_spill] sm:$0xff] }
 0xc34   :  { %v5324_v51 = vpop.permute.xlu1 %5323  ;;  %v5675_v60 = vsel %vm1176_vm4, %v12543_v33, %v5326_v52 }
 0xc35   :  { %v5674_v34 = vsel %vm1176_vm4, %v12544_v21, %v5324_v51  ;;  %v5708_v16 = vsel %vm5705_vm13, %v5675_v60, %v12545_v32  ;;  %v12563_v51 = vld [vmem:[#allocation96_spill] sm:$0xff]  ;;  %v12564_v60 = vld [vmem:[#allocation90_spill] sm:$0xff] }
 0xc36   :  { %v5707_v15 = vsel %vm5705_vm13, %v5674_v34, %v12546_v20  ;;  %5639 = vrot.lane.b32.xlu1 %v4038_v44, %s6591_s27  ;;  %v5741_v1 = vsel %vm5738_vm14, %v5708_v16, %v12547_v26  ;;  %v12562_v44 = vld [vmem:[#allocation136_spill] sm:$0xff]  ;;  %v12566_v16 = vld [vmem:[#allocation79_spill] sm:$0xff] }
 0xc37   :  { %v5740_v7 = vsel %vm5738_vm14, %v5707_v15, %v12548_v25  ;;  %5774 = vst.msk [vmem:[%s11554_s8 + $0x10] sm:$0xff] %vm5771_vm15, %v5741_v1  ;;  %v5330_v63 = vpop.permute.xlu0 %5329  ;;  %v12565_v34 = vld [vmem:[#allocation132_spill] sm:$0xff]  ;;  %v12567_v1 = vld [vmem:[#allocation66_spill] sm:$0xff] }
 0xc38   :  { %5773 = vst.msk [vmem:[%s11554_s8 + $0x8] sm:$0xff] %vm5771_vm15, %v5740_v7  ;;  %v5328_v41 = vpop.permute.xlu1 %5327  ;;  %v5677_v42 = vsel %vm1176_vm4, %v12549_v36, %v5330_v63  ;;  %v12568_v7 = vld [vmem:[#allocation150_spill] sm:$0xff] }
 0xc39   :  { %v5676_v57 = vsel %vm1176_vm4, %v12550_v5, %v5328_v41  ;;  %v5710_v3 = vsel %vm5705_vm13, %v5677_v42, %v12551_v47  ;;  %v12569_v41 = vld [vmem:[#allocation64_spill] sm:$0xff]  ;;  %v12570_v42 = vld [vmem:[#allocation157_spill] sm:$0xff] }
 0xc3a   :  { %v5709_v6 = vsel %vm5705_vm13, %v5676_v57, %v12552_v2  ;;  %v5743_v27 = vsel %vm5738_vm14, %v5710_v3, %v12553_v11  ;;  %v12571_v57 = vld [vmem:[#allocation85_spill] sm:$0xff] }
 0xc3b   :  { %v5742_v54 = vsel %vm5738_vm14, %v5709_v6, %v12554_v22  ;;  %5776 = vst.msk [vmem:[%s11554_s8 + $0x20] sm:$0xff] %vm5771_vm15, %v5743_v27  ;;  %v5334_v39 = vpop.permute.xlu0 %5333  ;;  %v12572_v3 = vld [vmem:[#allocation137_spill] sm:$0xff] }
 0xc3c   :  { %5775 = vst.msk [vmem:[%s11554_s8 + $0x18] sm:$0xff] %vm5771_vm15, %v5742_v54  ;;  %v5332_v49 = vpop.permute.xlu1 %5331  ;;  %v5679_v59 = vsel %vm1176_vm4, %v12555_v14, %v5334_v39  ;;  %v12573_v27 = vld [vmem:[#allocation69_spill] sm:$0xff] }
 0xc3d   :  { %v5678_v10 = vsel %vm1176_vm4, %v12556_v50, %v5332_v49  ;;  %v5712_v43 = vsel %vm5705_vm13, %v5679_v59, %v12557_v23  ;;  %v12574_v54 = vld [vmem:[#allocation153_spill] sm:$0xff]  ;;  %v12575_v49 = vld [vmem:[#allocation130_spill] sm:$0xff] }
 0xc3e   :  { %v5711_v13 = vsel %vm5705_vm13, %v5678_v10, %v12558_v29  ;;  %v5745_v46 = vsel %vm5738_vm14, %v5712_v43, %v12559_v19  ;;  %v12576_v59 = vld [vmem:[#allocation125_spill] sm:$0xff]  ;;  %v12578_v19 = vld [vmem:[#allocation74_spill] sm:$0xff] }
 0xc3f   :  { %v5744_v4 = vsel %vm5738_vm14, %v5711_v13, %v12560_v12  ;;  %5778 = vst.msk [vmem:[%s11554_s8 + $0x30] sm:$0xff] %vm5771_vm15, %v5745_v46  ;;  %v5338_v8 = vpop.permute.xlu0 %5337  ;;  %v12577_v23 = vld [vmem:[#allocation89_spill] sm:$0xff]  ;;  %v12579_v12 = vld [vmem:[#allocation50_spill] sm:$0xff] }
 0xc40   :  { %5777 = vst.msk [vmem:[%s11554_s8 + $0x28] sm:$0xff] %vm5771_vm15, %v5744_v4  ;;  %v5336_v53 = vpop.permute.xlu1 %5335  ;;  %v5681_v62 = vsel %vm1176_vm4, %v12561_v61, %v5338_v8  ;;  %v12580_v4 = vld [vmem:[#allocation169_spill] sm:$0xff] }
 0xc41   :  { %v5680_v52 = vsel %vm1176_vm4, %v12562_v44, %v5336_v53  ;;  %v5714_v33 = vsel %vm5705_vm13, %v5681_v62, %v12563_v51  ;;  %v12581_v53 = vld [vmem:[#allocation88_spill] sm:$0xff]  ;;  %v12582_v44 = vld [vmem:[#allocation143_spill] sm:$0xff] }
 0xc42   :  { %v5713_v21 = vsel %vm5705_vm13, %v5680_v52, %v12564_v60  ;;  %v5747_v32 = vsel %vm5738_vm14, %v5714_v33, %v12565_v34  ;;  %v12583_v60 = vld [vmem:[#allocation80_spill] sm:$0xff] }
 0xc43   :  { %v5746_v20 = vsel %vm5738_vm14, %v5713_v21, %v12566_v16  ;;  %5780 = vst.msk [vmem:[%s11554_s8 + $0x40] sm:$0xff] %vm5771_vm15, %v5747_v32  ;;  %v5342_v15 = vpop.permute.xlu0 %5341  ;;  %v12584_v34 = vld [vmem:[#allocation56_spill] sm:$0xff] }
 0xc44   :  { %5779 = vst.msk [vmem:[%s11554_s8 + $0x38] sm:$0xff] %vm5771_vm15, %v5746_v20  ;;  %v5340_v26 = vpop.permute.xlu1 %5339  ;;  %v5683_v25 = vsel %vm1176_vm4, %v12567_v1, %v5342_v15  ;;  %v12585_v32 = vld [vmem:[#allocation52_spill] sm:$0xff] }
 0xc45   :  { %v5682_v63 = vsel %vm1176_vm4, %v12568_v7, %v5340_v26  ;;  %v5716_v36 = vsel %vm5705_vm13, %v5683_v25, %v12569_v41  ;;  %v12586_v20 = vld [vmem:[#allocation48_spill] sm:$0xff] }
 0xc46   :  { %v5715_v5 = vsel %vm5705_vm13, %v5682_v63, %v12570_v42  ;;  %v5749_v47 = vsel %vm5738_vm14, %v5716_v36, %v12571_v57  ;;  %v12587_v63 = vld [vmem:[#allocation87_spill] sm:$0xff]  ;;  %v12589_v42 = vld [vmem:[#allocation97_spill] sm:$0xff] }
 0xc47   :  { %v5748_v2 = vsel %vm5738_vm14, %v5715_v5, %v12572_v3  ;;  %5782 = vst.msk [vmem:[%s11554_s8 + $0x50] sm:$0xff] %vm5771_vm15, %v5749_v47  ;;  %v5346_v6 = vpop.permute.xlu0 %5345  ;;  %v12588_v36 = vld [vmem:[#allocation75_spill] sm:$0xff]  ;;  %v12590_v5 = vld [vmem:[#allocation185_spill] sm:$0xff] }
 0xc48   :  { %5781 = vst.msk [vmem:[%s11554_s8 + $0x48] sm:$0xff] %vm5771_vm15, %v5748_v2  ;;  %v5344_v11 = vpop.permute.xlu1 %5343  ;;  %v5685_v22 = vsel %vm1176_vm4, %v12573_v27, %v5346_v6 }
 0xc49   :  { %v5684_v39 = vsel %vm1176_vm4, %v12574_v54, %v5344_v11  ;;  %v5718_v14 = vsel %vm5705_vm13, %v5685_v22, %v12575_v49  ;;  %v12591_v11 = vld [vmem:[#allocation93_spill] sm:$0xff]  ;;  %v12592_v22 = vld [vmem:[#allocation162_spill] sm:$0xff]  ;;  %v12593_v54 = vld [vmem:[#allocation167_spill] sm:$0xff] }
 0xc4a   :  { %v5717_v50 = vsel %vm5705_vm13, %v5684_v39, %v12576_v59  ;;  %v5751_v10 = vsel %vm5738_vm14, %v5718_v14, %v10958_v31  ;;  %v12594_v39 = vld [vmem:[#allocation98_spill] sm:$0xff] }
 0xc4b   :  { %v5750_v43 = vsel %vm5738_vm14, %v5717_v50, %v12577_v23  ;;  %5784 = vst.msk [vmem:[%s11554_s8 + $0x60] sm:$0xff] %vm5771_vm15, %v5751_v10  ;;  %v5350_v29 = vpop.permute.xlu0 %5349  ;;  %v12595_v10 = vld [vmem:[#allocation83_spill] sm:$0xff] }
 0xc4c   :  { %5783 = vst.msk [vmem:[%s11554_s8 + $0x58] sm:$0xff] %vm5771_vm15, %v5750_v43  ;;  %v5348_v13 = vpop.permute.xlu1 %5347  ;;  %v5687_v46 = vsel %vm1176_vm4, %v12578_v19, %v5350_v29  ;;  %v12596_v43 = vld [vmem:[#allocation174_spill] sm:$0xff] }
 0xc4d   :  { %v5686_v31 = vsel %vm1176_vm4, %v12579_v12, %v5348_v13  ;;  %v5720_v8 = vsel %vm5705_vm13, %v5687_v46, %v12580_v4  ;;  %v12597_v13 = vld [vmem:[#allocation103_spill] sm:$0xff]  ;;  %v12599_v4 = vld [vmem:[#allocation100_spill] sm:$0xff] }
 0xc4e   :  { %v5719_v61 = vsel %vm5705_vm13, %v5686_v31, %v12581_v53  ;;  %v5753_v62 = vsel %vm5738_vm14, %v5720_v8, %v11004_v55  ;;  %v12598_v46 = vld [vmem:[#allocation35_spill] sm:$0xff] }
 0xc4f   :  { %v5752_v52 = vsel %vm5738_vm14, %v5719_v61, %v12582_v44  ;;  %5786 = vst.msk [vmem:[%s11554_s8 + $0x70] sm:$0xff] %vm5771_vm15, %v5753_v62  ;;  %v5354_v51 = vpop.permute.xlu0 %5353  ;;  %v12600_v53 = vld [vmem:[#allocation39_spill] sm:$0xff] }
 0xc50   :  { %5785 = vst.msk [vmem:[%s11554_s8 + $0x68] sm:$0xff] %vm5771_vm15, %v5752_v52  ;;  %v5352_v33 = vpop.permute.xlu1 %5351  ;;  %v5689_v21 = vsel %vm1176_vm4, %v12583_v60, %v5354_v51  ;;  %v12601_v44 = vld [vmem:[#allocation111_spill] sm:$0xff]  ;;  %v12602_v51 = vld [vmem:[#allocation184_spill] sm:$0xff] }
 0xc51   :  { %v5688_v55 = vsel %vm1176_vm4, %v12584_v34, %v5352_v33  ;;  %v5722_v16 = vsel %vm5705_vm13, %v5689_v21, %v12585_v32  ;;  %v12603_v21 = vld [vmem:[#allocation91_spill] sm:$0xff] }
 0xc52   :  { %v5721_v15 = vsel %vm5705_vm13, %v5688_v55, %v12586_v20  ;;  %v5755_v26 = vsel %vm5738_vm14, %v5722_v16, %v11048_v58  ;;  %v12604_v55 = vld [vmem:[#allocation37_spill] sm:$0xff]  ;;  %v12605_v20 = vld [vmem:[#allocation118_spill] sm:$0xff] }
 0xc53   :  { %v5754_v1 = vsel %vm5738_vm14, %v5721_v15, %v11018_v35  ;;  %5788 = vst.msk [vmem:[%s11554_s8 + $0x80] sm:$0xff] %vm5771_vm15, %v5755_v26  ;;  %v5358_v25 = vpop.permute.xlu0 %5357  ;;  %v12606_v26 = vld [vmem:[#allocation105_spill] sm:$0xff] }
 0xc54   :  { %5787 = vst.msk [vmem:[%s11554_s8 + $0x78] sm:$0xff] %vm5771_vm15, %v5754_v1  ;;  %v5356_v7 = vpop.permute.xlu1 %5355  ;;  %v5691_v41 = vsel %vm1176_vm4, %v12587_v63, %v5358_v25 }
 0xc55   :  { %v5690_v58 = vsel %vm1176_vm4, %v12588_v36, %v5356_v7  ;;  %v5724_v35 = vsel %vm5705_vm13, %v5691_v41, %v12589_v42  ;;  %v12607_v7 = vld [vmem:[#allocation172_spill] sm:$0xff]  ;;  %v12608_v41 = vld [vmem:[#allocation106_spill] sm:$0xff] }
 0xc56   :  { %v5723_v57 = vsel %vm5705_vm13, %v5690_v58, %v12590_v5  ;;  %v5757_v47 = vsel %vm5738_vm14, %v5724_v35, %v11102_v45  ;;  %v12609_v42 = vld [vmem:[#allocation126_spill] sm:$0xff]  ;;  %v12610_v5 = vld [vmem:[#allocation101_spill] sm:$0xff] }
 0xc57   :  { %v5756_v3 = vsel %vm5738_vm14, %v5723_v57, %v11064_v17  ;;  %5790 = vst.msk [vmem:[%s11554_s8 + $0x90] sm:$0xff] %vm5771_vm15, %v5757_v47  ;;  %v5362_v2 = vpop.permute.xlu0 %5361 }
 0xc58   :  { %5789 = vst.msk [vmem:[%s11554_s8 + $0x88] sm:$0xff] %vm5771_vm15, %v5756_v3  ;;  %v5360_v6 = vpop.permute.xlu1 %5359  ;;  %v5693_v27 = vsel %vm1176_vm4, %v12591_v11, %v5362_v2  ;;  %v12611_v3 = vld [vmem:[#allocation173_spill] sm:$0xff] }
 0xc59   :  { %v5692_v45 = vsel %vm1176_vm4, %v12592_v22, %v5360_v6  ;;  %v5726_v17 = vsel %vm5705_vm13, %v5693_v27, %v12593_v54  ;;  %v12612_v6 = vld [vmem:[#allocation40_spill] sm:$0xff]  ;;  %v12613_v22 = vld [vmem:[#allocation131_spill] sm:$0xff] }
 0xc5a   :  { %v5725_v49 = vsel %vm5705_vm13, %v5692_v45, %v12594_v39  ;;  %v5759_v14 = vsel %vm5738_vm14, %v5726_v17, %v11152_v48  ;;  %v12614_v54 = vld [vmem:[#allocation188_spill] sm:$0xff] }
 0xc5b   :  { %v5758_v59 = vsel %vm5738_vm14, %v5725_v49, %v11116_v28  ;;  %5792 = vst.msk [vmem:[%s11554_s8 + $0xa0] sm:$0xff] %vm5771_vm15, %v5759_v14 }
 0xc5c   :  { %5791 = vst.msk [vmem:[%s11554_s8 + $0x98] sm:$0xff] %vm5771_vm15, %v5758_v59  ;;  %v5364_v50 = vpop.permute.xlu1 %5363  ;;  %v12615_v59 = vld [vmem:[#allocation179_spill] sm:$0xff] }
 0xc5d   :  { %v5694_v23 = vsel %vm1176_vm4, %v12595_v10, %v5364_v50 }
 0xc5e   :  { %v5727_v48 = vsel %vm5705_vm13, %v5694_v23, %v12596_v43 }
 0xc5f   :  { %v5760_v28 = vsel %vm5738_vm14, %v5727_v48, %v11161_v40  ;;  %v5366_v29 = vpop.permute.xlu0 %5365 }
 0xc60   :  { %5793 = vst.msk [vmem:[%s11554_s8 + $0xa8] sm:$0xff] %vm5771_vm15, %v5760_v28  ;;  %v5695_v19 = vsel %vm1176_vm4, %v12597_v13, %v5366_v29 }
 0xc61   :  { %v5728_v12 = vsel %vm5705_vm13, %v5695_v19, %v12598_v46 }
 0xc62   :  { %v5761_v31 = vsel %vm5738_vm14, %v5728_v12, %v11174_v38 }
 0xc63   :  { %5794 = vst.msk [vmem:[%s11554_s8 + $0xb0] sm:$0xff] %vm5771_vm15, %v5761_v31 }
 0xc64   :  { %v5368_v40 = vpop.permute.xlu1 %5367 }
 0xc65   :  { %v5696_v8 = vsel %vm1176_vm4, %v12599_v4, %v5368_v40 }
 0xc66   :  { %v5729_v61 = vsel %vm5705_vm13, %v5696_v8, %v12600_v53 }
 0xc67   :  { %v5762_v62 = vsel %vm5738_vm14, %v5729_v61, %v11178_v30 }
 0xc68   :  { %5795 = vst.msk [vmem:[%s11554_s8 + $0xb8] sm:$0xff] %vm5771_vm15, %v5762_v62 }
 0xc6f   :  { %v5370_v38 = vpop.permute.xlu0 %5369 }
 0xc70   :  { %v5697_v52 = vsel %vm1176_vm4, %v12601_v44, %v5370_v38 }
 0xc71   :  { %v5730_v33 = vsel %vm5705_vm13, %v5697_v52, %v12602_v51 }
 0xc72   :  { %v5763_v60 = vsel %vm5738_vm14, %v5730_v33, %v11184_v9 }
 0xc73   :  { %5796 = vst.msk [vmem:[%s11554_s8 + $0xc0] sm:$0xff] %vm5771_vm15, %v5763_v60 }
 0xc74   :  { %v5372_v30 = vpop.permute.xlu1 %5371 }
 0xc75   :  { %v5698_v34 = vsel %vm1176_vm4, %v12603_v21, %v5372_v30 }
 0xc76   :  { %v5731_v32 = vsel %vm5705_vm13, %v5698_v34, %v12604_v55 }
 0xc77   :  { %v5764_v16 = vsel %vm5738_vm14, %v5731_v32, %v11188_v37 }
 0xc78   :  { %5797 = vst.msk [vmem:[%s11554_s8 + $0xc8] sm:$0xff] %vm5771_vm15, %v5764_v16 }
 0xc7f   :  { %v5374_v9 = vpop.permute.xlu0 %5373 }
 0xc80   :  { %v5699_v15 = vsel %vm1176_vm4, %v12605_v20, %v5374_v9 }
 0xc81   :  { %v5732_v1 = vsel %vm5705_vm13, %v5699_v15, %v12606_v26 }
 0xc82   :  { %v5765_v25 = vsel %vm5738_vm14, %v5732_v1, %v11194_v18 }
 0xc83   :  { %5798 = vst.msk [vmem:[%s11554_s8 + $0xd0] sm:$0xff] %vm5771_vm15, %v5765_v25 }
 0xc84   :  { %v5376_v37 = vpop.permute.xlu1 %5375 }
 0xc85   :  { %v5700_v63 = vsel %vm1176_vm4, %v12607_v7, %v5376_v37 }
 0xc86   :  { %v5733_v36 = vsel %vm5705_vm13, %v5700_v63, %v12608_v41 }
 0xc87   :  { %v5766_v58 = vsel %vm5738_vm14, %v5733_v36, %v11198_v56 }
 0xc88   :  { %5799 = vst.msk [vmem:[%s11554_s8 + $0xd8] sm:$0xff] %vm5771_vm15, %v5766_v58 }
 0xc8f   :  { %v5378_v18 = vpop.permute.xlu0 %5377 }
 0xc90   :  { %v5701_v35 = vsel %vm1176_vm4, %v12609_v42, %v5378_v18 }
 0xc91   :  { %v5734_v57 = vsel %vm5705_vm13, %v5701_v35, %v12610_v5 }
 0xc92   :  { %v5767_v47 = vsel %vm5738_vm14, %v5734_v57, %v11204_v24 }
 0xc93   :  { %5800 = vst.msk [vmem:[%s11554_s8 + $0xe0] sm:$0xff] %vm5771_vm15, %v5767_v47 }
 0xc94   :  { %v5380_v56 = vpop.permute.xlu1 %5379 }
 0xc95   :  { %v5702_v2 = vsel %vm1176_vm4, %v12611_v3, %v5380_v56 }
 0xc96   :  { %v5735_v11 = vsel %vm5705_vm13, %v5702_v2, %v12612_v6 }
 0xc97   :  { %v5768_v27 = vsel %vm5738_vm14, %v5735_v11, %v11208_v0  ;;  %v12616_v0 = vld [vmem:[#allocation44_spill] sm:$0xff] }
 0xc98   :  { %5801 = vst.msk [vmem:[%s11554_s8 + $0xe8] sm:$0xff] %vm5771_vm15, %v5768_v27 }
 0xc9f   :  { %v5382_v24 = vpop.permute.xlu0 %5381 }
 0xca0   :  { %v5703_v45 = vsel %vm1176_vm4, %v12613_v22, %v5382_v24 }
 0xca1   :  { %v5736_v17 = vsel %vm5705_vm13, %v5703_v45, %v12614_v54 }
 0xca3   :  { %v5638_v39 = vpop.permute.xlu0 %5637 }
 0xca4   :  { %v5384_v49 = vpop.permute.xlu1 %5383  ;;  %v5769_v14 = vsel %vm5738_vm14, %v5736_v17, %v5638_v39 }
 0xca5   :  { %v5704_v50 = vsel %vm1176_vm4, %v12615_v59, %v5384_v49  ;;  %5802 = vst.msk [vmem:[%s11554_s8 + $0xf0] sm:$0xff] %vm5771_vm15, %v5769_v14 }
 0xca6   :  { %v5737_v10 = vsel %vm5705_vm13, %v5704_v50, %v12616_v0 }
 0xca8   :  { %v5640_v23 = vpop.permute.xlu1 %5639 }
 0xca9   :  { %v5770_v43 = vsel %vm5738_vm14, %v5737_v10, %v5640_v23 }
 0xcaa   :  { %5803 = vst.msk [vmem:[%s11554_s8 + $0xf8] sm:$0xff] %vm5771_vm15, %v5770_v43 }

</bundles_post_ra>
